<compile_context>
chip_gen: v5e
topology: v5e:2x2
jax: 0.10.0
libtpu: 0.0.40
codegen_flags: <defaults>
</compile_context>

<pallas_src>
import functools
import math

import jax
import jax.numpy as jnp
from jax.experimental import pallas as pl
from jax.experimental.pallas import tpu as pltpu


# ------------------------------ Pallas kernel -------------------------------

_ACC_BUDGET_BYTES = 256 * 1024  # keep f32 accumulators around the vreg-file size


def _row_chunk(n_rows, row_bytes):
    """Largest divisor of n_rows whose accumulator fits the budget."""
    cap = max(1, _ACC_BUDGET_BYTES // max(1, row_bytes))
    best = 1
    for r in range(1, n_rows + 1):
        if n_rows % r == 0 and r <= cap:
            best = r
    return best


def _avg_pool_2x2_flat(v, rows, w, ch):
    """2x2 average pool.

    v: (rows * w, ch) f32, row-major over (row, col); rows and w even.
    Returns (rows // 2, w // 2, ch).  All reshapes keep the channel (lane)
    dim minor, which is the layout-friendly case on TPU.
    """
    v = v.reshape(rows * (w // 2), 2, ch)
    v = v[:, 0, :] + v[:, 1, :]                      # pool width pairs
    v = v.reshape(rows // 2, 2, w // 2, ch)
    v = v[:, 0, :, :] + v[:, 1, :, :]                # pool height pairs
    return v * 0.25


def _first_res_block_kernel(x_ref, w1_ref, b1_ref, w2_ref, b2_ref, wb_ref,
                            bb_ref, o_ref, xpad_ref, hpad_ref, *, rt, pt,
                            neg_slope):
    """Fused SNFirstResBlockDiscriminator forward for one batch element.

    x_ref   : (1, H, W, Cin)        bf16   input image
    w1_ref  : (9, Cin, Cout)        bf16   conv1 weights, tap-major
    b1_ref  : (1, Cout)             f32
    w2_ref  : (9, Cout, Cout)       bf16   conv2 weights, tap-major
    b2_ref  : (1, Cout)             f32
    wb_ref  : (Cin, Cout)           bf16   1x1 bypass weights
    bb_ref  : (1, Cout)             f32
    o_ref   : (1, H//2, W//2, Cout) f32    output
    xpad_ref: (H+2, W+2, Cin)       f32    VMEM scratch (padded input)
    hpad_ref: (H+2, W+2, Cout)      f32    VMEM scratch (padded conv1 output)
    """
    _, H, W, Cin = x_ref.shape
    Cout = o_ref.shape[3]
    H2, W2 = H // 2, W // 2

    # ---- fused zero padding: no padded HBM copies are materialized ----
    xpad_ref[...] = jnp.zeros(xpad_ref.shape, xpad_ref.dtype)
    xpad_ref[pl.ds(1, H), pl.ds(1, W), :] = x_ref[0].astype(jnp.float32)
    hpad_ref[...] = jnp.zeros(hpad_ref.shape, hpad_ref.dtype)

    # ---- conv1 (3x3, pad 1) + LeakyReLU(0.2), row-chunked ----
    for r0 in range(0, H, rt):
        acc = jnp.zeros((rt * W, Cout), jnp.float32)
        for dy in range(3):
            for dx in range(3):
                patch = xpad_ref[pl.ds(r0 + dy, rt), pl.ds(dx, W), :]
                patch = patch.reshape(rt * W, Cin).astype(jnp.bfloat16)
                acc = acc + jnp.dot(patch, w1_ref[dy * 3 + dx],
                                    preferred_element_type=jnp.float32)
        acc = acc + b1_ref[...]
        acc = jnp.where(acc > 0, acc, neg_slope * acc)   # LeakyReLU, once
        hpad_ref[pl.ds(r0 + 1, rt), pl.ds(1, W), :] = acc.reshape(rt, W, Cout)

    # ---- conv2 (3x3, pad 1) + AvgPool2d(2) + bypass (pool -> 1x1) + add ----
    for p0 in range(0, H2, pt):
        r0 = 2 * p0
        rows = 2 * pt
        acc = jnp.zeros((rows * W, Cout), jnp.float32)
        for dy in range(3):
            for dx in range(3):
                patch = hpad_ref[pl.ds(r0 + dy, rows), pl.ds(dx, W), :]
                patch = patch.reshape(rows * W, Cout).astype(jnp.bfloat16)
                acc = acc + jnp.dot(patch, w2_ref[dy * 3 + dx],
                                    preferred_element_type=jnp.float32)
        acc = acc + b2_ref[...]
        main = _avg_pool_2x2_flat(acc, rows, W, Cout)        # (pt, W2, Cout)

        # bypass: pool the input first, then the 1x1 conv (module order).
        xb = x_ref[:, pl.ds(r0, rows), :, :].astype(jnp.float32)
        xb = _avg_pool_2x2_flat(xb.reshape(rows * W, Cin), rows, W, Cin)
        byp = jnp.dot(xb.reshape(pt * W2, Cin).astype(jnp.bfloat16),
                      wb_ref[...], preferred_element_type=jnp.float32)
        byp = byp + bb_ref[...]

        out = main + byp.reshape(pt, W2, Cout)
        o_ref[:, pl.ds(p0, pt), :, :] = (
            out.reshape(1, pt, W2, Cout).astype(o_ref.dtype))


def sn_first_res_block(params, x_nchw):
    """x_nchw: (N, Cin, H, W) f32 -> (N, Cout, H//2, W//2) f32."""
    x = jnp.transpose(x_nchw, (0, 2, 3, 1)).astype(jnp.bfloat16)  # NHWC, bf16
    N, H, W, Cin = x.shape
    Cout = params["w1"].shape[-1]
    assert H % 2 == 0 and W % 2 == 0
    H2, W2 = H // 2, W // 2

    # row-chunk sizes so the f32 accumulators stay small (vreg-file sized).
    rt = _row_chunk(H, W * Cout * 4)
    pt = _row_chunk(H2, 2 * W * Cout * 4)

    w1 = params["w1"].reshape(9, Cin, Cout).astype(jnp.bfloat16)
    w2 = params["w2"].reshape(9, Cout, Cout).astype(jnp.bfloat16)
    wb = params["wb"].astype(jnp.bfloat16)
    b1 = params["b1"].reshape(1, Cout).astype(jnp.float32)
    b2 = params["b2"].reshape(1, Cout).astype(jnp.float32)
    bb = params["bb"].reshape(1, Cout).astype(jnp.float32)

    kernel = functools.partial(_first_res_block_kernel, rt=rt, pt=pt,
                               neg_slope=0.2)
    # TODO(synk): for H >> 128 the full-image-per-batch-element block should be
    # replaced with a row-band window (halo DMA) to bound VMEM on v7x.
    out = pl.pallas_call(
        kernel,
        out_shape=jax.ShapeDtypeStruct((N, H2, W2, Cout), jnp.float32),
        grid_spec=pltpu.PrefetchScalarGridSpec(
            num_scalar_prefetch=0,
            grid=(N,),
            in_specs=[
                pl.BlockSpec((1, H, W, Cin), lambda n: (n, 0, 0, 0)),
                pl.BlockSpec((9, Cin, Cout), lambda n: (0, 0, 0)),
                pl.BlockSpec((1, Cout), lambda n: (0, 0)),
                pl.BlockSpec((9, Cout, Cout), lambda n: (0, 0, 0)),
                pl.BlockSpec((1, Cout), lambda n: (0, 0)),
                pl.BlockSpec((Cin, Cout), lambda n: (0, 0)),
                pl.BlockSpec((1, Cout), lambda n: (0, 0)),
            ],
            out_specs=pl.BlockSpec((1, H2, W2, Cout), lambda n: (n, 0, 0, 0)),
            scratch_shapes=[
                pltpu.VMEM((H + 2, W + 2, Cin), jnp.float32),
                pltpu.VMEM((H + 2, W + 2, Cout), jnp.float32),
            ],
        ),
        compiler_params=pltpu.CompilerParams(
            dimension_semantics=("parallel",)),   # batch across v7x's 2 TCs
    )(x, w1, b1, w2, b2, wb, bb)
    return jnp.transpose(out, (0, 3, 1, 2))       # back to NCHW


# ------------------------ parameter init (synthetic) ------------------------

def _xavier_uniform(key, shape, gain):
    rf = shape[2] * shape[3]
    fan_in, fan_out = shape[1] * rf, shape[0] * rf
    bound = gain * math.sqrt(6.0 / (fan_in + fan_out))
    return jax.random.uniform(key, shape, jnp.float32, -bound, bound)


def _bias_init(key, shape, fan_in):
    bound = 1.0 / math.sqrt(fan_in)
    return jax.random.uniform(key, shape, jnp.float32, -bound, bound)


def _spectral_norm(key, w):
    """One power iteration (PyTorch SpectralNorm training-mode forward)."""
    # TODO(synk): PyTorch keeps a persistent power-iteration buffer `u`; a
    # fresh random u is used here (synthetic weights, not checkpoint-compatible).
    wm = w.reshape(w.shape[0], -1)
    eps = 1e-12
    u = jax.random.normal(key, (wm.shape[0],), jnp.float32)
    u = u / (jnp.linalg.norm(u) + eps)
    v = wm.T @ u
    v = v / (jnp.linalg.norm(v) + eps)
    u = wm @ v
    u = u / (jnp.linalg.norm(u) + eps)
    sigma = u @ (wm @ v)
    return w / sigma


def init_params(key, in_channels, out_channels):
    ks = jax.random.split(key, 9)
    w1 = _spectral_norm(ks[1], _xavier_uniform(
        ks[0], (out_channels, in_channels, 3, 3), 1.0))
    b1 = _bias_init(ks[2], (out_channels,), in_channels * 9)
    w2 = _spectral_norm(ks[4], _xavier_uniform(
        ks[3], (out_channels, out_channels, 3, 3), 1.0))
    b2 = _bias_init(ks[5], (out_channels,), out_channels * 9)
    wb = _spectral_norm(ks[7], _xavier_uniform(
        ks[6], (out_channels, in_channels, 1, 1), math.sqrt(2.0)))
    bb = _bias_init(ks[8], (out_channels,), in_channels)
    return {
        "w1": jnp.transpose(w1, (2, 3, 1, 0)),   # (3, 3, Cin, Cout)  HWIO
        "b1": b1,
        "w2": jnp.transpose(w2, (2, 3, 1, 0)),   # (3, 3, Cout, Cout) HWIO
        "b2": b2,
        "wb": wb[:, :, 0, 0].T,                  # (Cin, Cout)
        "bb": bb,
    }


# ------------------------- pure-JAX reference (f32) -------------------------

def _reference_forward(params, x_nchw):
    x = jnp.transpose(x_nchw, (0, 2, 3, 1)).astype(jnp.float32)
    dn = ("NHWC", "HWIO", "NHWC")
    h = jax.lax.conv_general_dilated(x, params["w1"], (1, 1), "SAME",
                                     dimension_numbers=dn) + params["b1"]
    h = jnp.where(h > 0, h, 0.2 * h)
    h = jax.lax.conv_general_dilated(h, params["w2"], (1, 1), "SAME",
                                     dimension_numbers=dn) + params["b2"]

    def pool(v):
        n, hh, ww, c = v.shape
        return v.reshape(n, hh // 2, 2, ww // 2, 2, c).mean(axis=(2, 4))

    main = pool(h)
    byp = jnp.einsum("nhwc,cd->nhwd", pool(x), params["wb"]) + params["bb"]
    return jnp.transpose(main + byp, (0, 3, 1, 2))


# ---------------------------------- main -------------------------------------

if __name__ == "__main__":
    B, CIN, COUT, H, W = 2, 6, 64, 16, 16      # SNFirstResBlockDiscriminator(6, 64)
    key = jax.random.PRNGKey(0)
    kp, kx = jax.random.split(key)
    params = init_params(kp, CIN, COUT)
    x = jax.random.normal(kx, (B, CIN, H, W), jnp.float32)   # NCHW like PyTorch

    fwd = jax.jit(sn_first_res_block)
    out = jax.block_until_ready(fwd(params, x))

    assert out.shape == (B, COUT, H // 2, W // 2), out.shape
    assert bool(jnp.all(jnp.isfinite(out)))

    ref = _reference_forward(params, x)
    max_err = float(jnp.max(jnp.abs(out - ref)))
    assert max_err < 1e-1, max_err            # bf16-compute vs f32 reference

    print("KERNEL_OK")
</pallas_src>

<mosaic_0001>
module attributes {stable_mosaic.version = 11 : i64} {
  func.func @_first_res_block_kernel(%arg0: i32, %arg1: memref<1x16x16x6xbf16, #tpu.memory_space<vmem>>, %arg2: memref<9x6x64xbf16, #tpu.memory_space<vmem>>, %arg3: memref<1x64xf32, #tpu.memory_space<vmem>>, %arg4: memref<9x64x64xbf16, #tpu.memory_space<vmem>>, %arg5: memref<1x64xf32, #tpu.memory_space<vmem>>, %arg6: memref<6x64xbf16, #tpu.memory_space<vmem>>, %arg7: memref<1x64xf32, #tpu.memory_space<vmem>>, %arg8: memref<1x8x8x64xf32, #tpu.memory_space<vmem>>, %arg9: memref<18x18x6xf32, #tpu.memory_space<vmem>>, %arg10: memref<18x18x64xf32, #tpu.memory_space<vmem>>) attributes {dimension_semantics = [#tpu.dimension_semantics<parallel>], iteration_bounds = array<i64: 2>, scalar_prefetch = 0 : i64, scratch_operands = 2 : i64, tpu.core_type = #tpu.core_type<tc>, window_params = [{transform_indices = @transform_0, window_bounds = array<i64: 1, 16, 16, 6>}, {pipeline_mode = #tpu.pipeline_mode<synchronous>, transform_indices = @transform_1, window_bounds = array<i64: 9, 6, 64>}, {pipeline_mode = #tpu.pipeline_mode<synchronous>, transform_indices = @transform_2, window_bounds = array<i64: 1, 64>}, {pipeline_mode = #tpu.pipeline_mode<synchronous>, transform_indices = @transform_3, window_bounds = array<i64: 9, 64, 64>}, {pipeline_mode = #tpu.pipeline_mode<synchronous>, transform_indices = @transform_4, window_bounds = array<i64: 1, 64>}, {pipeline_mode = #tpu.pipeline_mode<synchronous>, transform_indices = @transform_5, window_bounds = array<i64: 6, 64>}, {pipeline_mode = #tpu.pipeline_mode<synchronous>, transform_indices = @transform_6, window_bounds = array<i64: 1, 64>}, {transform_indices = @transform_7, window_bounds = array<i64: 1, 8, 8, 64>}]} {
    %cst = arith.constant 0.000000e+00 : f32
    %0 = vector.broadcast %cst : f32 to vector<18x18x6xf32>
    %c0 = arith.constant 0 : index
    %c0_0 = arith.constant 0 : index
    %c0_1 = arith.constant 0 : index
    %1 = vector.load %arg9[%c0, %c0_0, %c0_1] : memref<18x18x6xf32, #tpu.memory_space<vmem>>, vector<18x18x6xf32>
    tpu.vector_store %arg9[%c0, %c0_0, %c0_1], %0 {strides = array<i32>} : memref<18x18x6xf32, #tpu.memory_space<vmem>>, vector<18x18x6xf32>,
    %c0_2 = arith.constant 0 : index
    %c0_3 = arith.constant 0 : index
    %c0_4 = arith.constant 0 : index
    %c0_5 = arith.constant 0 : index
    %2 = vector.load %arg1[%c0_2, %c0_3, %c0_4, %c0_5] : memref<1x16x16x6xbf16, #tpu.memory_space<vmem>>, vector<1x16x16x6xbf16>
    %3 = vector.shape_cast %2 : vector<1x16x16x6xbf16> to vector<16x16x6xbf16>
    %4 = arith.extf %3 : vector<16x16x6xbf16> to vector<16x16x6xf32>
    %c1 = arith.constant 1 : index
    %c1_6 = arith.constant 1 : index
    %c0_7 = arith.constant 0 : index
    %5 = vector.load %arg9[%c1, %c1_6, %c0_7] : memref<18x18x6xf32, #tpu.memory_space<vmem>>, vector<16x16x6xf32>
    tpu.vector_store %arg9[%c1, %c1_6, %c0_7], %4 {strides = array<i32>} : memref<18x18x6xf32, #tpu.memory_space<vmem>>, vector<16x16x6xf32>,
    %cst_8 = arith.constant 0.000000e+00 : f32
    %6 = vector.broadcast %cst_8 : f32 to vector<18x18x64xf32>
    %c0_9 = arith.constant 0 : index
    %c0_10 = arith.constant 0 : index
    %c0_11 = arith.constant 0 : index
    %7 = vector.load %arg10[%c0_9, %c0_10, %c0_11] : memref<18x18x64xf32, #tpu.memory_space<vmem>>, vector<18x18x64xf32>
    tpu.vector_store %arg10[%c0_9, %c0_10, %c0_11], %6 {strides = array<i32>} : memref<18x18x64xf32, #tpu.memory_space<vmem>>, vector<18x18x64xf32>,
    %cst_12 = arith.constant 0.000000e+00 : f32
    %8 = vector.broadcast %cst_12 : f32 to vector<256x64xf32>
    %c0_13 = arith.constant 0 : index
    %c0_14 = arith.constant 0 : index
    %c0_15 = arith.constant 0 : index
    %9 = vector.load %arg9[%c0_13, %c0_14, %c0_15] : memref<18x18x6xf32, #tpu.memory_space<vmem>>, vector<16x16x6xf32>
    %10 = vector.shape_cast %9 : vector<16x16x6xf32> to vector<256x6xf32>
    %11 = arith.truncf %10 : vector<256x6xf32> to vector<256x6xbf16>
    %c0_16 = arith.constant 0 : index
    %c0_17 = arith.constant 0 : index
    %c0_18 = arith.constant 0 : index
    %12 = vector.load %arg2[%c0_16, %c0_17, %c0_18] : memref<9x6x64xbf16, #tpu.memory_space<vmem>>, vector<1x6x64xbf16>
    %13 = vector.shape_cast %12 : vector<1x6x64xbf16> to vector<6x64xbf16>
    %cst_19 = arith.constant dense<0.000000e+00> : vector<256x64xf32>
    %14 = tpu.matmul %11, %13, %cst_19 {dimension_numbers = #tpu.dot_dimension_numbers<[1], [0], [0], [1], [0, 0, 1, 1], [], []>} : vector<256x6xbf16>, vector<6x64xbf16>, vector<256x64xf32> -> vector<256x64xf32>
    %15 = arith.addf %8, %14 : vector<256x64xf32>
    %c0_20 = arith.constant 0 : index
    %c1_21 = arith.constant 1 : index
    %c0_22 = arith.constant 0 : index
    %16 = vector.load %arg9[%c0_20, %c1_21, %c0_22] : memref<18x18x6xf32, #tpu.memory_space<vmem>>, vector<16x16x6xf32>
    %17 = vector.shape_cast %16 : vector<16x16x6xf32> to vector<256x6xf32>
    %18 = arith.truncf %17 : vector<256x6xf32> to vector<256x6xbf16>
    %c1_23 = arith.constant 1 : index
    %c0_24 = arith.constant 0 : index
    %c0_25 = arith.constant 0 : index
    %19 = vector.load %arg2[%c1_23, %c0_24, %c0_25] : memref<9x6x64xbf16, #tpu.memory_space<vmem>>, vector<1x6x64xbf16>
    %20 = vector.shape_cast %19 : vector<1x6x64xbf16> to vector<6x64xbf16>
    %cst_26 = arith.constant dense<0.000000e+00> : vector<256x64xf32>
    %21 = tpu.matmul %18, %20, %cst_26 {dimension_numbers = #tpu.dot_dimension_numbers<[1], [0], [0], [1], [0, 0, 1, 1], [], []>} : vector<256x6xbf16>, vector<6x64xbf16>, vector<256x64xf32> -> vector<256x64xf32>
    %22 = arith.addf %15, %21 : vector<256x64xf32>
    %c0_27 = arith.constant 0 : index
    %c2 = arith.constant 2 : index
    %c0_28 = arith.constant 0 : index
    %23 = vector.load %arg9[%c0_27, %c2, %c0_28] : memref<18x18x6xf32, #tpu.memory_space<vmem>>, vector<16x16x6xf32>
    %24 = vector.shape_cast %23 : vector<16x16x6xf32> to vector<256x6xf32>
    %25 = arith.truncf %24 : vector<256x6xf32> to vector<256x6xbf16>
    %c2_29 = arith.constant 2 : index
    %c0_30 = arith.constant 0 : index
    %c0_31 = arith.constant 0 : index
    %26 = vector.load %arg2[%c2_29, %c0_30, %c0_31] : memref<9x6x64xbf16, #tpu.memory_space<vmem>>, vector<1x6x64xbf16>
    %27 = vector.shape_cast %26 : vector<1x6x64xbf16> to vector<6x64xbf16>
    %cst_32 = arith.constant dense<0.000000e+00> : vector<256x64xf32>
    %28 = tpu.matmul %25, %27, %cst_32 {dimension_numbers = #tpu.dot_dimension_numbers<[1], [0], [0], [1], [0, 0, 1, 1], [], []>} : vector<256x6xbf16>, vector<6x64xbf16>, vector<256x64xf32> -> vector<256x64xf32>
    %29 = arith.addf %22, %28 : vector<256x64xf32>
    %c1_33 = arith.constant 1 : index
    %c0_34 = arith.constant 0 : index
    %c0_35 = arith.constant 0 : index
    %30 = vector.load %arg9[%c1_33, %c0_34, %c0_35] : memref<18x18x6xf32, #tpu.memory_space<vmem>>, vector<16x16x6xf32>
    %31 = vector.shape_cast %30 : vector<16x16x6xf32> to vector<256x6xf32>
    %32 = arith.truncf %31 : vector<256x6xf32> to vector<256x6xbf16>
    %c3 = arith.constant 3 : index
    %c0_36 = arith.constant 0 : index
    %c0_37 = arith.constant 0 : index
    %33 = vector.load %arg2[%c3, %c0_36, %c0_37] : memref<9x6x64xbf16, #tpu.memory_space<vmem>>, vector<1x6x64xbf16>
    %34 = vector.shape_cast %33 : vector<1x6x64xbf16> to vector<6x64xbf16>
    %cst_38 = arith.constant dense<0.000000e+00> : vector<256x64xf32>
    %35 = tpu.matmul %32, %34, %cst_38 {dimension_numbers = #tpu.dot_dimension_numbers<[1], [0], [0], [1], [0, 0, 1, 1], [], []>} : vector<256x6xbf16>, vector<6x64xbf16>, vector<256x64xf32> -> vector<256x64xf32>
    %36 = arith.addf %29, %35 : vector<256x64xf32>
    %c1_39 = arith.constant 1 : index
    %c1_40 = arith.constant 1 : index
    %c0_41 = arith.constant 0 : index
    %37 = vector.load %arg9[%c1_39, %c1_40, %c0_41] : memref<18x18x6xf32, #tpu.memory_space<vmem>>, vector<16x16x6xf32>
    %38 = vector.shape_cast %37 : vector<16x16x6xf32> to vector<256x6xf32>
    %39 = arith.truncf %38 : vector<256x6xf32> to vector<256x6xbf16>
    %c4 = arith.constant 4 : index
    %c0_42 = arith.constant 0 : index
    %c0_43 = arith.constant 0 : index
    %40 = vector.load %arg2[%c4, %c0_42, %c0_43] : memref<9x6x64xbf16, #tpu.memory_space<vmem>>, vector<1x6x64xbf16>
    %41 = vector.shape_cast %40 : vector<1x6x64xbf16> to vector<6x64xbf16>
    %cst_44 = arith.constant dense<0.000000e+00> : vector<256x64xf32>
    %42 = tpu.matmul %39, %41, %cst_44 {dimension_numbers = #tpu.dot_dimension_numbers<[1], [0], [0], [1], [0, 0, 1, 1], [], []>} : vector<256x6xbf16>, vector<6x64xbf16>, vector<256x64xf32> -> vector<256x64xf32>
    %43 = arith.addf %36, %42 : vector<256x64xf32>
    %c1_45 = arith.constant 1 : index
    %c2_46 = arith.constant 2 : index
    %c0_47 = arith.constant 0 : index
    %44 = vector.load %arg9[%c1_45, %c2_46, %c0_47] : memref<18x18x6xf32, #tpu.memory_space<vmem>>, vector<16x16x6xf32>
    %45 = vector.shape_cast %44 : vector<16x16x6xf32> to vector<256x6xf32>
    %46 = arith.truncf %45 : vector<256x6xf32> to vector<256x6xbf16>
    %c5 = arith.constant 5 : index
    %c0_48 = arith.constant 0 : index
    %c0_49 = arith.constant 0 : index
    %47 = vector.load %arg2[%c5, %c0_48, %c0_49] : memref<9x6x64xbf16, #tpu.memory_space<vmem>>, vector<1x6x64xbf16>
    %48 = vector.shape_cast %47 : vector<1x6x64xbf16> to vector<6x64xbf16>
    %cst_50 = arith.constant dense<0.000000e+00> : vector<256x64xf32>
    %49 = tpu.matmul %46, %48, %cst_50 {dimension_numbers = #tpu.dot_dimension_numbers<[1], [0], [0], [1], [0, 0, 1, 1], [], []>} : vector<256x6xbf16>, vector<6x64xbf16>, vector<256x64xf32> -> vector<256x64xf32>
    %50 = arith.addf %43, %49 : vector<256x64xf32>
    %c2_51 = arith.constant 2 : index
    %c0_52 = arith.constant 0 : index
    %c0_53 = arith.constant 0 : index
    %51 = vector.load %arg9[%c2_51, %c0_52, %c0_53] : memref<18x18x6xf32, #tpu.memory_space<vmem>>, vector<16x16x6xf32>
    %52 = vector.shape_cast %51 : vector<16x16x6xf32> to vector<256x6xf32>
    %53 = arith.truncf %52 : vector<256x6xf32> to vector<256x6xbf16>
    %c6 = arith.constant 6 : index
    %c0_54 = arith.constant 0 : index
    %c0_55 = arith.constant 0 : index
    %54 = vector.load %arg2[%c6, %c0_54, %c0_55] : memref<9x6x64xbf16, #tpu.memory_space<vmem>>, vector<1x6x64xbf16>
    %55 = vector.shape_cast %54 : vector<1x6x64xbf16> to vector<6x64xbf16>
    %cst_56 = arith.constant dense<0.000000e+00> : vector<256x64xf32>
    %56 = tpu.matmul %53, %55, %cst_56 {dimension_numbers = #tpu.dot_dimension_numbers<[1], [0], [0], [1], [0, 0, 1, 1], [], []>} : vector<256x6xbf16>, vector<6x64xbf16>, vector<256x64xf32> -> vector<256x64xf32>
    %57 = arith.addf %50, %56 : vector<256x64xf32>
    %c2_57 = arith.constant 2 : index
    %c1_58 = arith.constant 1 : index
    %c0_59 = arith.constant 0 : index
    %58 = vector.load %arg9[%c2_57, %c1_58, %c0_59] : memref<18x18x6xf32, #tpu.memory_space<vmem>>, vector<16x16x6xf32>
    %59 = vector.shape_cast %58 : vector<16x16x6xf32> to vector<256x6xf32>
    %60 = arith.truncf %59 : vector<256x6xf32> to vector<256x6xbf16>
    %c7 = arith.constant 7 : index
    %c0_60 = arith.constant 0 : index
    %c0_61 = arith.constant 0 : index
    %61 = vector.load %arg2[%c7, %c0_60, %c0_61] : memref<9x6x64xbf16, #tpu.memory_space<vmem>>, vector<1x6x64xbf16>
    %62 = vector.shape_cast %61 : vector<1x6x64xbf16> to vector<6x64xbf16>
    %cst_62 = arith.constant dense<0.000000e+00> : vector<256x64xf32>
    %63 = tpu.matmul %60, %62, %cst_62 {dimension_numbers = #tpu.dot_dimension_numbers<[1], [0], [0], [1], [0, 0, 1, 1], [], []>} : vector<256x6xbf16>, vector<6x64xbf16>, vector<256x64xf32> -> vector<256x64xf32>
    %64 = arith.addf %57, %63 : vector<256x64xf32>
    %c2_63 = arith.constant 2 : index
    %c2_64 = arith.constant 2 : index
    %c0_65 = arith.constant 0 : index
    %65 = vector.load %arg9[%c2_63, %c2_64, %c0_65] : memref<18x18x6xf32, #tpu.memory_space<vmem>>, vector<16x16x6xf32>
    %66 = vector.shape_cast %65 : vector<16x16x6xf32> to vector<256x6xf32>
    %67 = arith.truncf %66 : vector<256x6xf32> to vector<256x6xbf16>
    %c8 = arith.constant 8 : index
    %c0_66 = arith.constant 0 : index
    %c0_67 = arith.constant 0 : index
    %68 = vector.load %arg2[%c8, %c0_66, %c0_67] : memref<9x6x64xbf16, #tpu.memory_space<vmem>>, vector<1x6x64xbf16>
    %69 = vector.shape_cast %68 : vector<1x6x64xbf16> to vector<6x64xbf16>
    %cst_68 = arith.constant dense<0.000000e+00> : vector<256x64xf32>
    %70 = tpu.matmul %67, %69, %cst_68 {dimension_numbers = #tpu.dot_dimension_numbers<[1], [0], [0], [1], [0, 0, 1, 1], [], []>} : vector<256x6xbf16>, vector<6x64xbf16>, vector<256x64xf32> -> vector<256x64xf32>
    %71 = arith.addf %64, %70 : vector<256x64xf32>
    %c0_69 = arith.constant 0 : index
    %c0_70 = arith.constant 0 : index
    %72 = vector.load %arg3[%c0_69, %c0_70] : memref<1x64xf32, #tpu.memory_space<vmem>>, vector<1x64xf32>
    %73 = vector.broadcast %72 : vector<1x64xf32> to vector<256x64xf32>
    %74 = arith.addf %71, %73 : vector<256x64xf32>
    %cst_71 = arith.constant 0.000000e+00 : f32
    %75 = vector.broadcast %cst_71 : f32 to vector<256x64xf32>
    %76 = arith.cmpf ogt, %74, %75 : vector<256x64xf32>
    %cst_72 = arith.constant 2.000000e-01 : f32
    %77 = vector.broadcast %cst_72 : f32 to vector<256x64xf32>
    %78 = arith.mulf %77, %74 : vector<256x64xf32>
    %79 = arith.select %76, %74, %78 : vector<256x64xi1>, vector<256x64xf32>
    %80 = vector.shape_cast %79 : vector<256x64xf32> to vector<16x16x64xf32>
    %c1_73 = arith.constant 1 : index
    %c1_74 = arith.constant 1 : index
    %c0_75 = arith.constant 0 : index
    %81 = vector.load %arg10[%c1_73, %c1_74, %c0_75] : memref<18x18x64xf32, #tpu.memory_space<vmem>>, vector<16x16x64xf32>
    tpu.vector_store %arg10[%c1_73, %c1_74, %c0_75], %80 {strides = array<i32>} : memref<18x18x64xf32, #tpu.memory_space<vmem>>, vector<16x16x64xf32>,
    %cst_76 = arith.constant 0.000000e+00 : f32
    %82 = vector.broadcast %cst_76 : f32 to vector<256x64xf32>
    %c0_77 = arith.constant 0 : index
    %c0_78 = arith.constant 0 : index
    %c0_79 = arith.constant 0 : index
    %83 = vector.load %arg10[%c0_77, %c0_78, %c0_79] : memref<18x18x64xf32, #tpu.memory_space<vmem>>, vector<16x16x64xf32>
    %84 = vector.shape_cast %83 : vector<16x16x64xf32> to vector<256x64xf32>
    %85 = arith.truncf %84 : vector<256x64xf32> to vector<256x64xbf16>
    %c0_80 = arith.constant 0 : index
    %c0_81 = arith.constant 0 : index
    %c0_82 = arith.constant 0 : index
    %86 = vector.load %arg4[%c0_80, %c0_81, %c0_82] : memref<9x64x64xbf16, #tpu.memory_space<vmem>>, vector<1x64x64xbf16>
    %87 = vector.shape_cast %86 : vector<1x64x64xbf16> to vector<64x64xbf16>
    %cst_83 = arith.constant dense<0.000000e+00> : vector<256x64xf32>
    %88 = tpu.matmul %85, %87, %cst_83 {dimension_numbers = #tpu.dot_dimension_numbers<[1], [0], [0], [1], [0, 0, 1, 1], [], []>} : vector<256x64xbf16>, vector<64x64xbf16>, vector<256x64xf32> -> vector<256x64xf32>
    %89 = arith.addf %82, %88 : vector<256x64xf32>
    %c0_84 = arith.constant 0 : index
    %c1_85 = arith.constant 1 : index
    %c0_86 = arith.constant 0 : index
    %90 = vector.load %arg10[%c0_84, %c1_85, %c0_86] : memref<18x18x64xf32, #tpu.memory_space<vmem>>, vector<16x16x64xf32>
    %91 = vector.shape_cast %90 : vector<16x16x64xf32> to vector<256x64xf32>
    %92 = arith.truncf %91 : vector<256x64xf32> to vector<256x64xbf16>
    %c1_87 = arith.constant 1 : index
    %c0_88 = arith.constant 0 : index
    %c0_89 = arith.constant 0 : index
    %93 = vector.load %arg4[%c1_87, %c0_88, %c0_89] : memref<9x64x64xbf16, #tpu.memory_space<vmem>>, vector<1x64x64xbf16>
    %94 = vector.shape_cast %93 : vector<1x64x64xbf16> to vector<64x64xbf16>
    %cst_90 = arith.constant dense<0.000000e+00> : vector<256x64xf32>
    %95 = tpu.matmul %92, %94, %cst_90 {dimension_numbers = #tpu.dot_dimension_numbers<[1], [0], [0], [1], [0, 0, 1, 1], [], []>} : vector<256x64xbf16>, vector<64x64xbf16>, vector<256x64xf32> -> vector<256x64xf32>
    %96 = arith.addf %89, %95 : vector<256x64xf32>
    %c0_91 = arith.constant 0 : index
    %c2_92 = arith.constant 2 : index
    %c0_93 = arith.constant 0 : index
    %97 = vector.load %arg10[%c0_91, %c2_92, %c0_93] : memref<18x18x64xf32, #tpu.memory_space<vmem>>, vector<16x16x64xf32>
    %98 = vector.shape_cast %97 : vector<16x16x64xf32> to vector<256x64xf32>
    %99 = arith.truncf %98 : vector<256x64xf32> to vector<256x64xbf16>
    %c2_94 = arith.constant 2 : index
    %c0_95 = arith.constant 0 : index
    %c0_96 = arith.constant 0 : index
    %100 = vector.load %arg4[%c2_94, %c0_95, %c0_96] : memref<9x64x64xbf16, #tpu.memory_space<vmem>>, vector<1x64x64xbf16>
    %101 = vector.shape_cast %100 : vector<1x64x64xbf16> to vector<64x64xbf16>
    %cst_97 = arith.constant dense<0.000000e+00> : vector<256x64xf32>
    %102 = tpu.matmul %99, %101, %cst_97 {dimension_numbers = #tpu.dot_dimension_numbers<[1], [0], [0], [1], [0, 0, 1, 1], [], []>} : vector<256x64xbf16>, vector<64x64xbf16>, vector<256x64xf32> -> vector<256x64xf32>
    %103 = arith.addf %96, %102 : vector<256x64xf32>
    %c1_98 = arith.constant 1 : index
    %c0_99 = arith.constant 0 : index
    %c0_100 = arith.constant 0 : index
    %104 = vector.load %arg10[%c1_98, %c0_99, %c0_100] : memref<18x18x64xf32, #tpu.memory_space<vmem>>, vector<16x16x64xf32>
    %105 = vector.shape_cast %104 : vector<16x16x64xf32> to vector<256x64xf32>
    %106 = arith.truncf %105 : vector<256x64xf32> to vector<256x64xbf16>
    %c3_101 = arith.constant 3 : index
    %c0_102 = arith.constant 0 : index
    %c0_103 = arith.constant 0 : index
    %107 = vector.load %arg4[%c3_101, %c0_102, %c0_103] : memref<9x64x64xbf16, #tpu.memory_space<vmem>>, vector<1x64x64xbf16>
    %108 = vector.shape_cast %107 : vector<1x64x64xbf16> to vector<64x64xbf16>
    %cst_104 = arith.constant dense<0.000000e+00> : vector<256x64xf32>
    %109 = tpu.matmul %106, %108, %cst_104 {dimension_numbers = #tpu.dot_dimension_numbers<[1], [0], [0], [1], [0, 0, 1, 1], [], []>} : vector<256x64xbf16>, vector<64x64xbf16>, vector<256x64xf32> -> vector<256x64xf32>
    %110 = arith.addf %103, %109 : vector<256x64xf32>
    %c1_105 = arith.constant 1 : index
    %c1_106 = arith.constant 1 : index
    %c0_107 = arith.constant 0 : index
    %111 = vector.load %arg10[%c1_105, %c1_106, %c0_107] : memref<18x18x64xf32, #tpu.memory_space<vmem>>, vector<16x16x64xf32>
    %112 = vector.shape_cast %111 : vector<16x16x64xf32> to vector<256x64xf32>
    %113 = arith.truncf %112 : vector<256x64xf32> to vector<256x64xbf16>
    %c4_108 = arith.constant 4 : index
    %c0_109 = arith.constant 0 : index
    %c0_110 = arith.constant 0 : index
    %114 = vector.load %arg4[%c4_108, %c0_109, %c0_110] : memref<9x64x64xbf16, #tpu.memory_space<vmem>>, vector<1x64x64xbf16>
    %115 = vector.shape_cast %114 : vector<1x64x64xbf16> to vector<64x64xbf16>
    %cst_111 = arith.constant dense<0.000000e+00> : vector<256x64xf32>
    %116 = tpu.matmul %113, %115, %cst_111 {dimension_numbers = #tpu.dot_dimension_numbers<[1], [0], [0], [1], [0, 0, 1, 1], [], []>} : vector<256x64xbf16>, vector<64x64xbf16>, vector<256x64xf32> -> vector<256x64xf32>
    %117 = arith.addf %110, %116 : vector<256x64xf32>
    %c1_112 = arith.constant 1 : index
    %c2_113 = arith.constant 2 : index
    %c0_114 = arith.constant 0 : index
    %118 = vector.load %arg10[%c1_112, %c2_113, %c0_114] : memref<18x18x64xf32, #tpu.memory_space<vmem>>, vector<16x16x64xf32>
    %119 = vector.shape_cast %118 : vector<16x16x64xf32> to vector<256x64xf32>
    %120 = arith.truncf %119 : vector<256x64xf32> to vector<256x64xbf16>
    %c5_115 = arith.constant 5 : index
    %c0_116 = arith.constant 0 : index
    %c0_117 = arith.constant 0 : index
    %121 = vector.load %arg4[%c5_115, %c0_116, %c0_117] : memref<9x64x64xbf16, #tpu.memory_space<vmem>>, vector<1x64x64xbf16>
    %122 = vector.shape_cast %121 : vector<1x64x64xbf16> to vector<64x64xbf16>
    %cst_118 = arith.constant dense<0.000000e+00> : vector<256x64xf32>
    %123 = tpu.matmul %120, %122, %cst_118 {dimension_numbers = #tpu.dot_dimension_numbers<[1], [0], [0], [1], [0, 0, 1, 1], [], []>} : vector<256x64xbf16>, vector<64x64xbf16>, vector<256x64xf32> -> vector<256x64xf32>
    %124 = arith.addf %117, %123 : vector<256x64xf32>
    %c2_119 = arith.constant 2 : index
    %c0_120 = arith.constant 0 : index
    %c0_121 = arith.constant 0 : index
    %125 = vector.load %arg10[%c2_119, %c0_120, %c0_121] : memref<18x18x64xf32, #tpu.memory_space<vmem>>, vector<16x16x64xf32>
    %126 = vector.shape_cast %125 : vector<16x16x64xf32> to vector<256x64xf32>
    %127 = arith.truncf %126 : vector<256x64xf32> to vector<256x64xbf16>
    %c6_122 = arith.constant 6 : index
    %c0_123 = arith.constant 0 : index
    %c0_124 = arith.constant 0 : index
    %128 = vector.load %arg4[%c6_122, %c0_123, %c0_124] : memref<9x64x64xbf16, #tpu.memory_space<vmem>>, vector<1x64x64xbf16>
    %129 = vector.shape_cast %128 : vector<1x64x64xbf16> to vector<64x64xbf16>
    %cst_125 = arith.constant dense<0.000000e+00> : vector<256x64xf32>
    %130 = tpu.matmul %127, %129, %cst_125 {dimension_numbers = #tpu.dot_dimension_numbers<[1], [0], [0], [1], [0, 0, 1, 1], [], []>} : vector<256x64xbf16>, vector<64x64xbf16>, vector<256x64xf32> -> vector<256x64xf32>
    %131 = arith.addf %124, %130 : vector<256x64xf32>
    %c2_126 = arith.constant 2 : index
    %c1_127 = arith.constant 1 : index
    %c0_128 = arith.constant 0 : index
    %132 = vector.load %arg10[%c2_126, %c1_127, %c0_128] : memref<18x18x64xf32, #tpu.memory_space<vmem>>, vector<16x16x64xf32>
    %133 = vector.shape_cast %132 : vector<16x16x64xf32> to vector<256x64xf32>
    %134 = arith.truncf %133 : vector<256x64xf32> to vector<256x64xbf16>
    %c7_129 = arith.constant 7 : index
    %c0_130 = arith.constant 0 : index
    %c0_131 = arith.constant 0 : index
    %135 = vector.load %arg4[%c7_129, %c0_130, %c0_131] : memref<9x64x64xbf16, #tpu.memory_space<vmem>>, vector<1x64x64xbf16>
    %136 = vector.shape_cast %135 : vector<1x64x64xbf16> to vector<64x64xbf16>
    %cst_132 = arith.constant dense<0.000000e+00> : vector<256x64xf32>
    %137 = tpu.matmul %134, %136, %cst_132 {dimension_numbers = #tpu.dot_dimension_numbers<[1], [0], [0], [1], [0, 0, 1, 1], [], []>} : vector<256x64xbf16>, vector<64x64xbf16>, vector<256x64xf32> -> vector<256x64xf32>
    %138 = arith.addf %131, %137 : vector<256x64xf32>
    %c2_133 = arith.constant 2 : index
    %c2_134 = arith.constant 2 : index
    %c0_135 = arith.constant 0 : index
    %139 = vector.load %arg10[%c2_133, %c2_134, %c0_135] : memref<18x18x64xf32, #tpu.memory_space<vmem>>, vector<16x16x64xf32>
    %140 = vector.shape_cast %139 : vector<16x16x64xf32> to vector<256x64xf32>
    %141 = arith.truncf %140 : vector<256x64xf32> to vector<256x64xbf16>
    %c8_136 = arith.constant 8 : index
    %c0_137 = arith.constant 0 : index
    %c0_138 = arith.constant 0 : index
    %142 = vector.load %arg4[%c8_136, %c0_137, %c0_138] : memref<9x64x64xbf16, #tpu.memory_space<vmem>>, vector<1x64x64xbf16>
    %143 = vector.shape_cast %142 : vector<1x64x64xbf16> to vector<64x64xbf16>
    %cst_139 = arith.constant dense<0.000000e+00> : vector<256x64xf32>
    %144 = tpu.matmul %141, %143, %cst_139 {dimension_numbers = #tpu.dot_dimension_numbers<[1], [0], [0], [1], [0, 0, 1, 1], [], []>} : vector<256x64xbf16>, vector<64x64xbf16>, vector<256x64xf32> -> vector<256x64xf32>
    %145 = arith.addf %138, %144 : vector<256x64xf32>
    %c0_140 = arith.constant 0 : index
    %c0_141 = arith.constant 0 : index
    %146 = vector.load %arg5[%c0_140, %c0_141] : memref<1x64xf32, #tpu.memory_space<vmem>>, vector<1x64xf32>
    %147 = vector.broadcast %146 : vector<1x64xf32> to vector<256x64xf32>
    %148 = arith.addf %145, %147 : vector<256x64xf32>
    %149 = vector.shape_cast %148 : vector<256x64xf32> to vector<128x2x64xf32>
    %150 = vector.extract_strided_slice %149 {offsets = [0, 0, 0], sizes = [128, 1, 64], strides = [1, 1, 1]} : vector<128x2x64xf32> to vector<128x1x64xf32>
    %151 = vector.shape_cast %150 : vector<128x1x64xf32> to vector<128x64xf32>
    %152 = vector.extract_strided_slice %149 {offsets = [0, 1, 0], sizes = [128, 1, 64], strides = [1, 1, 1]} : vector<128x2x64xf32> to vector<128x1x64xf32>
    %153 = vector.shape_cast %152 : vector<128x1x64xf32> to vector<128x64xf32>
    %154 = arith.addf %151, %153 : vector<128x64xf32>
    %155 = vector.shape_cast %154 : vector<128x64xf32> to vector<8x2x8x64xf32>
    %156 = vector.extract_strided_slice %155 {offsets = [0, 0, 0, 0], sizes = [8, 1, 8, 64], strides = [1, 1, 1, 1]} : vector<8x2x8x64xf32> to vector<8x1x8x64xf32>
    %157 = vector.shape_cast %156 : vector<8x1x8x64xf32> to vector<8x8x64xf32>
    %158 = vector.extract_strided_slice %155 {offsets = [0, 1, 0, 0], sizes = [8, 1, 8, 64], strides = [1, 1, 1, 1]} : vector<8x2x8x64xf32> to vector<8x1x8x64xf32>
    %159 = vector.shape_cast %158 : vector<8x1x8x64xf32> to vector<8x8x64xf32>
    %160 = arith.addf %157, %159 : vector<8x8x64xf32>
    %cst_142 = arith.constant 2.500000e-01 : f32
    %161 = vector.broadcast %cst_142 : f32 to vector<8x8x64xf32>
    %162 = arith.mulf %160, %161 : vector<8x8x64xf32>
    %c0_143 = arith.constant 0 : index
    %c0_144 = arith.constant 0 : index
    %c0_145 = arith.constant 0 : index
    %c0_146 = arith.constant 0 : index
    %163 = vector.load %arg1[%c0_143, %c0_144, %c0_145, %c0_146] : memref<1x16x16x6xbf16, #tpu.memory_space<vmem>>, vector<1x16x16x6xbf16>
    %164 = arith.extf %163 : vector<1x16x16x6xbf16> to vector<1x16x16x6xf32>
    %165 = vector.shape_cast %164 : vector<1x16x16x6xf32> to vector<256x6xf32>
    %166 = vector.shape_cast %165 : vector<256x6xf32> to vector<128x2x6xf32>
    %167 = vector.extract_strided_slice %166 {offsets = [0, 0, 0], sizes = [128, 1, 6], strides = [1, 1, 1]} : vector<128x2x6xf32> to vector<128x1x6xf32>
    %168 = vector.shape_cast %167 : vector<128x1x6xf32> to vector<128x6xf32>
    %169 = vector.extract_strided_slice %166 {offsets = [0, 1, 0], sizes = [128, 1, 6], strides = [1, 1, 1]} : vector<128x2x6xf32> to vector<128x1x6xf32>
    %170 = vector.shape_cast %169 : vector<128x1x6xf32> to vector<128x6xf32>
    %171 = arith.addf %168, %170 : vector<128x6xf32>
    %172 = vector.shape_cast %171 : vector<128x6xf32> to vector<8x2x8x6xf32>
    %173 = vector.extract_strided_slice %172 {offsets = [0, 0, 0, 0], sizes = [8, 1, 8, 6], strides = [1, 1, 1, 1]} : vector<8x2x8x6xf32> to vector<8x1x8x6xf32>
    %174 = vector.shape_cast %173 : vector<8x1x8x6xf32> to vector<8x8x6xf32>
    %175 = vector.extract_strided_slice %172 {offsets = [0, 1, 0, 0], sizes = [8, 1, 8, 6], strides = [1, 1, 1, 1]} : vector<8x2x8x6xf32> to vector<8x1x8x6xf32>
    %176 = vector.shape_cast %175 : vector<8x1x8x6xf32> to vector<8x8x6xf32>
    %177 = arith.addf %174, %176 : vector<8x8x6xf32>
    %cst_147 = arith.constant 2.500000e-01 : f32
    %178 = vector.broadcast %cst_147 : f32 to vector<8x8x6xf32>
    %179 = arith.mulf %177, %178 : vector<8x8x6xf32>
    %180 = vector.shape_cast %179 : vector<8x8x6xf32> to vector<64x6xf32>
    %181 = arith.truncf %180 : vector<64x6xf32> to vector<64x6xbf16>
    %c0_148 = arith.constant 0 : index
    %c0_149 = arith.constant 0 : index
    %182 = vector.load %arg6[%c0_148, %c0_149] : memref<6x64xbf16, #tpu.memory_space<vmem>>, vector<6x64xbf16>
    %cst_150 = arith.constant dense<0.000000e+00> : vector<64x64xf32>
    %183 = tpu.matmul %181, %182, %cst_150 {dimension_numbers = #tpu.dot_dimension_numbers<[1], [0], [0], [1], [0, 0, 1, 1], [], []>} : vector<64x6xbf16>, vector<6x64xbf16>, vector<64x64xf32> -> vector<64x64xf32>
    %c0_151 = arith.constant 0 : index
    %c0_152 = arith.constant 0 : index
    %184 = vector.load %arg7[%c0_151, %c0_152] : memref<1x64xf32, #tpu.memory_space<vmem>>, vector<1x64xf32>
    %185 = vector.broadcast %184 : vector<1x64xf32> to vector<64x64xf32>
    %186 = arith.addf %183, %185 : vector<64x64xf32>
    %187 = vector.shape_cast %186 : vector<64x64xf32> to vector<8x8x64xf32>
    %188 = arith.addf %162, %187 : vector<8x8x64xf32>
    %189 = vector.shape_cast %188 : vector<8x8x64xf32> to vector<1x8x8x64xf32>
    %c0_153 = arith.constant 0 : index
    %c0_154 = arith.constant 0 : index
    %c0_155 = arith.constant 0 : index
    %c0_156 = arith.constant 0 : index
    %190 = vector.load %arg8[%c0_153, %c0_154, %c0_155, %c0_156] : memref<1x8x8x64xf32, #tpu.memory_space<vmem>>, vector<1x8x8x64xf32>
    tpu.vector_store %arg8[%c0_153, %c0_154, %c0_155, %c0_156], %189 {strides = array<i32>} : memref<1x8x8x64xf32, #tpu.memory_space<vmem>>, vector<1x8x8x64xf32>,
    return
  }
  func.func @transform_0(%arg0: i32) -> (i32, i32, i32, i32) {
    %c0_i32 = arith.constant 0 : i32
    %c0_i32_0 = arith.constant 0 : i32
    %c0_i32_1 = arith.constant 0 : i32
    %c0_i32_2 = arith.constant 0 : i32
    return %arg0, %c0_i32, %c0_i32_0, %c0_i32_1 : i32, i32, i32, i32
  }
  func.func @transform_1(%arg0: i32) -> (i32, i32, i32) {
    %c0_i32 = arith.constant 0 : i32
    %c0_i32_0 = arith.constant 0 : i32
    %c0_i32_1 = arith.constant 0 : i32
    %c0_i32_2 = arith.constant 0 : i32
    return %c0_i32, %c0_i32_0, %c0_i32_1 : i32, i32, i32
  }
  func.func @transform_2(%arg0: i32) -> (i32, i32) {
    %c0_i32 = arith.constant 0 : i32
    %c0_i32_0 = arith.constant 0 : i32
    %c0_i32_1 = arith.constant 0 : i32
    return %c0_i32, %c0_i32_0 : i32, i32
  }
  func.func @transform_3(%arg0: i32) -> (i32, i32, i32) {
    %c0_i32 = arith.constant 0 : i32
    %c0_i32_0 = arith.constant 0 : i32
    %c0_i32_1 = arith.constant 0 : i32
    %c0_i32_2 = arith.constant 0 : i32
    return %c0_i32, %c0_i32_0, %c0_i32_1 : i32, i32, i32
  }
  func.func @transform_4(%arg0: i32) -> (i32, i32) {
    %c0_i32 = arith.constant 0 : i32
    %c0_i32_0 = arith.constant 0 : i32
    %c0_i32_1 = arith.constant 0 : i32
    return %c0_i32, %c0_i32_0 : i32, i32
  }
  func.func @transform_5(%arg0: i32) -> (i32, i32) {
    %c0_i32 = arith.constant 0 : i32
    %c0_i32_0 = arith.constant 0 : i32
    %c0_i32_1 = arith.constant 0 : i32
    return %c0_i32, %c0_i32_0 : i32, i32
  }
  func.func @transform_6(%arg0: i32) -> (i32, i32) {
    %c0_i32 = arith.constant 0 : i32
    %c0_i32_0 = arith.constant 0 : i32
    %c0_i32_1 = arith.constant 0 : i32
    return %c0_i32, %c0_i32_0 : i32, i32
  }
  func.func @transform_7(%arg0: i32) -> (i32, i32, i32, i32) {
    %c0_i32 = arith.constant 0 : i32
    %c0_i32_0 = arith.constant 0 : i32
    %c0_i32_1 = arith.constant 0 : i32
    %c0_i32_2 = arith.constant 0 : i32
    return %arg0, %c0_i32, %c0_i32_0, %c0_i32_1 : i32, i32, i32, i32
  }
}

</mosaic_0001>

<bundles_post_ra>
// kernel: sn_first_res_block.1
= control target key start
LH: loop header
LB: loop body
LE: loop exit
PB: predicated region body
PF: predicated region fallthrough
CT: control target
= control target key end

     0   :  { %12 = vsyncpa [#allocation5], 0  ;;  %s11988_s0 = inlined_call_operand.vmem [shape: bf16[2,16,16,6], index: 0, kind: input, shape index: {}]   ;;  %s11989_s1 = inlined_call_operand.vmem [shape: bf16[9,6,64], index: 1, kind: input, shape index: {}]   ;;  %s11990_s2 = inlined_call_operand.vmem [shape: f32[1,64], index: 2, kind: input, shape index: {}]   ;;  %s11991_s3 = inlined_call_operand.vmem [shape: bf16[9,64,64], index: 3, kind: input, shape index: {}]   ;;  %s11992_s4 = inlined_call_operand.vmem [shape: f32[1,64], index: 4, kind: input, shape index: {}]   ;;  %s11993_s5 = inlined_call_operand.vmem [shape: bf16[6,64], index: 5, kind: input, shape index: {}]   ;;  %s11994_s6 = inlined_call_operand.vmem [shape: f32[1,64], index: 6, kind: input, shape index: {}]   ;;  %s11995_s7 = inlined_call_operand.hbm [shape: f32[2,8,8,64], index: 7, kind: output, shape index: {}]  }
   0x1   :  { %14 = vsyncpa [#allocation5 + $0x1], 0  ;;  %s8566_s24 = smov 0   ;;  %s8568_s25 = smov 0  }
   0x2   :  { %s8570_s26 = smov 0   ;;  %s8572_s27 = smov 0  }
   0x3 LB: > { %s8587_s28 = sadd.s32 4294967295, %s8521_s27   ;;  %s7435_s29 = sadd.s32 4294967294, %s8521_s27   ;;  %s8521_s27 = sphi %s8572_s27, %s12525_s27   ;;  %s8517_s26 = sphi %s8570_s26, %s12524_s26   ;;  %s8513_s25 = sphi %s8568_s25, %s12523_s25   ;;  %s8509_s24 = sphi %s8566_s24, %s12522_s24  }
   0x4   : > { %s8591_s30 = sadd.s32 1, %s8521_s27   ;;  %s179_s8 = sadd.s32 1, %s8517_s26 }
   0x5   : > { %s176_s9 = ssub.s32 %s8521_s27, %s8591_s30  ;;  %p189_p0 = scmp.ne.s32.totalorder %s8517_s26, %s8513_s25 }
   0x6   : > { %p177_p1 = scmp.eq.s32.totalorder %s176_s9, 0  ;;  %p190_p2 = scmp.eq.s32.totalorder %s8587_s28, 1 }
   0x7   : > { %p195_p3 = scmp.ne.s32.totalorder %s8513_s25, %s8509_s24  ;;  %p196_p4 = scmp.eq.s32.totalorder %s7435_s29, 1 }
   0x8   : > { %s8602_s10 = scalar_select %p177_p1, %s8517_s26, %s179_s8  }
   0x9   : > { %p8604_p5 = por %p190_p2, %p189_p0  ;;  %p8608_p6 = por %p196_p4, %p195_p3 }
   0xa   : > { %p7438_p7 = scmp.ge.s32.totalorder %s8521_s27, 1  ;;  %p240_p8 = scmp.lt.s32.totalorder %s8521_s27, 3 }
   0xc   : > { %p241_p9 = pnand %p7438_p7, %p240_p8 }
   0xe   : > { %244 = sbr.rel (%p241_p9) target bundleno = 1622 (0x656), region = 48 }
  0x13   : > { %v7442_v0 = vld [vmem:[%s11989_s1 + $0x4] sm:$0x7]  ;;  %vm634_vm0 = vcmask 1042432   ;;  %vm278_vm1 = vcmask 48128   ;;  %vm281_vm2 = vcmask 41984   ;;  %v11996_v2 = vmov 0.0  }
  0x14   : > { %v636_v1 = vsel %vm634_vm0, %v7442_v0, 0  ;;  %279 = vst.msk [vmem:[#allocation2] sm:$0xff] %vm278_vm1, %v11996_v2  ;;  %v535_v3 = vld [vmem:[%s11989_s1] sm:$0x7]  ;;  %p272_p10 = scmp.lt.s32.totalorder %s8587_s28, 1  ;;  %vm431_vm3 = vcmask 523264  }
  0x15   : > { %645 = vmatpush.bf16.msra.mxu0 %v636_v1  ;;  %280 = vst.msk [vmem:[#allocation2 + $0x8] sm:$0xff] %vm278_vm1, %v11996_v2  ;;  %8407 = vmatpush.bf16.msra.mxu3 %v636_v1  ;;  %v776_v4 = vsel %vm634_vm0, %v535_v3, 0  ;;  %v7509_v11 = vld [vmem:[%s11989_s1 + $0x10] sm:$0x7]  ;;  %v7475_v61 = vld [vmem:[%s11989_s1 + $0x8] sm:$0x7] }
  0x16   : > { %282 = vst.msk [vmem:[#allocation2 + $0x10] sm:$0x3] %vm281_vm2, %v11996_v2  ;;  %785 = vmatpush.bf16.msra.mxu1 %v776_v4  ;;  %8408 = vmatpush.bf16.msra.mxu2 %v776_v4  ;;  %v1410_v12 = vsel %vm634_vm0, %v7509_v11, 0  ;;  %s273_s19 = scalar_select %p272_p10, %s8587_s28, 1  ;;  %v966_v63 = vsel %vm634_vm0, %v7475_v61, 0  ;;  %vm434_vm4 = vcmask 517120  }
  0x17   : > { %283 = vst.msk [vmem:[#allocation2 + $0x18] sm:$0xff] %vm278_vm1, %v11996_v2  ;;  %s269_s13 = sand.u32 1, %s8513_s25   ;;  %s8248_s21 = sshll.u32 %s8587_s28, 6 }
  0x18   : > { %284 = vst.msk [vmem:[#allocation2 + $0x20] sm:$0xff] %vm278_vm1, %v11996_v2  ;;  %s8211_s20 = sshll.u32 %s273_s19, 7  ;;  %s7439_s14 = sshll.u32 %s269_s13, 6 }
  0x19   : > { %285 = vst.msk [vmem:[#allocation2 + $0x28] sm:$0x3] %vm281_vm2, %v11996_v2  ;;  %8409 = vmatpush.bf16.msrb.mxu3 %v776_v4  ;;  %1419 = vmatpush.bf16.msrb.mxu0 %v1410_v12  ;;  %s8723_s23 = scalar_lea.vmem %s11988_s0, %s8211_s20  ;;  %s11505_s15 = scalar_lea.vmem [#allocation4], %s7439_s14 }
  0x1a   : > { %286 = vst.msk [vmem:[#allocation2 + $0x30] sm:$0xff] %vm278_vm1, %v11996_v2  ;;  %v8384_v13 = vld [vmem:[%s8723_s23 + $0x40] sm:$0xff]   ;;  %v8385_v17 = vld [vmem:[%s8723_s23 + $0x48] sm:$0xff]   ;;  %v8386_v23 = vld [vmem:[%s8723_s23 + $0x50] sm:$0xff]   ;;  %975 = vmatpush.bf16.msrb.mxu2 %v966_v63  ;;  %s7369_s8 = scalar_lea.hbm %s11995_s7, %s8248_s21  ;;  %s7370_s28 = sshll.u32 %s11505_s15, 4  ;;  %s7371_s28 = int_to_ptr.vmem [resolvable:$true] %s7370_s28 }
  0x1b   : > { %287 = vst.msk [vmem:[#allocation2 + $0x38] sm:$0xff] %vm278_vm1, %v11996_v2  ;;  %v487_v8 = vld [vmem:[#allocation2] sm:$0xff]  ;;  %v8283_v15 = vunpack.c.l.bf16 %v8384_v13  ;;  %v8284_v16 = vunpack.c.h.bf16 %v8384_v13  ;;  %v8377_v20 = vld [vmem:[%s8723_s23 + $0x8] sm:$0xff]   ;;  %v8287_v21 = vunpack.c.l.bf16 %v8385_v17  ;;  %v8288_v22 = vunpack.c.h.bf16 %v8385_v17  ;;  %v8378_v28 = vld [vmem:[%s8723_s23 + $0x10] sm:$0xff]   ;;  %s7372_s9 = sshll.u32 %s7369_s8, 4  ;;  %s7358_s14 = scalar_lea.sflag [#allocation5], %s269_s13  ;;  %s7373_s9 = int_to_ptr.hbm [resolvable:$true] %s7372_s9 }
  0x1c   : > { %v536_v5 = vld [vmem:[#allocation2 + $0x1] sm:$0xff]  ;;  %288 = vst.msk [vmem:[#allocation2 + $0x40] sm:$0x3] %vm281_vm2, %v11996_v2  ;;  %v8255_v24 = vunpack.c.l.bf16 %v8377_v20  ;;  %v8256_v25 = vunpack.c.h.bf16 %v8377_v20  ;;  %v8291_v26 = vunpack.c.l.bf16 %v8386_v23  ;;  %v8292_v27 = vunpack.c.h.bf16 %v8386_v23  ;;  %v8387_v43 = vld [vmem:[%s8723_s23 + $0x58] sm:$0xff]   ;;  %s8479_s19 = scalar_lea.hbm %s11995_s7, 128 }
  0x1d   : > { %v537_v6 = vld [vmem:[#allocation2 + $0x9] sm:$0xff]  ;;  %289 = vst.msk [vmem:[#allocation2 + $0x48] sm:$0xff] %vm278_vm1, %v11996_v2  ;;  %v8250_v14 = vld [vmem:[%s8723_s23] sm:$0xff]   ;;  %v8259_v31 = vunpack.c.l.bf16 %v8378_v28  ;;  %v8260_v32 = vunpack.c.h.bf16 %v8378_v28  ;;  %v8295_v44 = vunpack.c.l.bf16 %v8387_v43  ;;  %v8296_v45 = vunpack.c.h.bf16 %v8387_v43  ;;  %v8379_v54 = vld [vmem:[%s8723_s23 + $0x18] sm:$0xff]  }
  0x1e   : > { %v568_v7 = vpack.c.bf16 %v537_v6, %v536_v5  ;;  %290 = vst.msk [vmem:[#allocation2 + $0x50] sm:$0xff] %vm278_vm1, %v11996_v2  ;;  %v488_v9 = vld [vmem:[#allocation2 + $0x8] sm:$0xff]  ;;  %v8251_v18 = vunpack.c.l.bf16 %v8250_v14  ;;  %v8252_v19 = vunpack.c.h.bf16 %v8250_v14  ;;  %v8263_v57 = vunpack.c.l.bf16 %v8379_v54  ;;  %v8388_v62 = vld [vmem:[%s8723_s23 + $0x60] sm:$0xff]  }
  0x1f   : > { %291 = vst.msk [vmem:[#allocation2 + $0x58] sm:$0x3] %vm281_vm2, %v11996_v2  ;;  %v519_v10 = vpack.c.bf16 %v488_v9, %v487_v8  ;;  %v8264_v58 = vunpack.c.h.bf16 %v8379_v54  ;;  %v8299_v0 = vunpack.c.l.bf16 %v8388_v62  ;;  %v8300_v1 = vunpack.c.h.bf16 %v8388_v62  ;;  %v8380_v11 = vld [vmem:[%s8723_s23 + $0x20] sm:$0xff]  }
  0x20   : > { %7443 = vmatmul.msk.bf16.vlgmr.msra.gmra.mxu0 %vm278_vm1, %v568_v7  ;;  %292 = vst.msk [vmem:[#allocation2 + $0x60] sm:$0xff] %vm278_vm1, %v11996_v2  ;;  %v8267_v14 = vunpack.c.l.bf16 %v8380_v11 }
  0x21   : > { %293 = vst.msk [vmem:[#allocation2 + $0x68] sm:$0xff] %vm278_vm1, %v11996_v2  ;;  %7459 = vmatmul.msk.bf16.vlgmr.msra.gmra.mxu1 %vm278_vm1, %v519_v10 }
  0x22   : > { %294 = vst.msk [vmem:[#allocation2 + $0x70] sm:$0x3] %vm281_vm2, %v11996_v2 }
  0x23   : > { %295 = vst.msk [vmem:[#allocation2 + $0x78] sm:$0xff] %vm278_vm1, %v11996_v2 }
  0x24   : > { %296 = vst.msk [vmem:[#allocation2 + $0x80] sm:$0xff] %vm278_vm1, %v11996_v2 }
  0x25   : > { %297 = vst.msk [vmem:[#allocation2 + $0x88] sm:$0x3] %vm281_vm2, %v11996_v2 }
  0x26   : > { %298 = vst.msk [vmem:[#allocation2 + $0x90] sm:$0xff] %vm278_vm1, %v11996_v2 }
  0x27   : > { %299 = vst.msk [vmem:[#allocation2 + $0x98] sm:$0xff] %vm278_vm1, %v11996_v2 }
  0x28   : > { %300 = vst.msk [vmem:[#allocation2 + $0xa0] sm:$0x3] %vm281_vm2, %v11996_v2 }
  0x29   : > { %301 = vst.msk [vmem:[#allocation2 + $0xa8] sm:$0xff] %vm278_vm1, %v11996_v2 }
  0x2a   : > { %302 = vst.msk [vmem:[#allocation2 + $0xb0] sm:$0xff] %vm278_vm1, %v11996_v2 }
  0x2b   : > { %303 = vst.msk [vmem:[#allocation2 + $0xb8] sm:$0x3] %vm281_vm2, %v11996_v2 }
  0x2c   : > { %304 = vst.msk [vmem:[#allocation2 + $0xc0] sm:$0xff] %vm278_vm1, %v11996_v2 }
  0x2d   : > { %305 = vst.msk [vmem:[#allocation2 + $0xc8] sm:$0xff] %vm278_vm1, %v11996_v2 }
  0x2e   : > { %306 = vst.msk [vmem:[#allocation2 + $0xd0] sm:$0x3] %vm281_vm2, %v11996_v2 }
  0x2f   : > { %307 = vst.msk [vmem:[#allocation2 + $0xd8] sm:$0xff] %vm278_vm1, %v11996_v2 }
  0x30   : > { %308 = vst.msk [vmem:[#allocation2 + $0xe0] sm:$0xff] %vm278_vm1, %v11996_v2 }
  0x31   : > { %309 = vst.msk [vmem:[#allocation2 + $0xe8] sm:$0x3] %vm281_vm2, %v11996_v2 }
  0x32   : > { %310 = vst.msk [vmem:[#allocation2 + $0xf0] sm:$0xff] %vm278_vm1, %v11996_v2 }
  0x33   : > { %311 = vst.msk [vmem:[#allocation2 + $0xf8] sm:$0xff] %vm278_vm1, %v11996_v2 }
  0x34   : > { %312 = vst.msk [vmem:[#allocation2 + $0x100] sm:$0x3] %vm281_vm2, %v11996_v2 }
  0x35   : > { %313 = vst.msk [vmem:[#allocation2 + $0x108] sm:$0xff] %vm278_vm1, %v11996_v2 }
  0x36   : > { %314 = vst.msk [vmem:[#allocation2 + $0x110] sm:$0xff] %vm278_vm1, %v11996_v2 }
  0x37   : > { %315 = vst.msk [vmem:[#allocation2 + $0x118] sm:$0x3] %vm281_vm2, %v11996_v2 }
  0x38   : > { %316 = vst.msk [vmem:[#allocation2 + $0x120] sm:$0xff] %vm278_vm1, %v11996_v2 }
  0x39   : > { %317 = vst.msk [vmem:[#allocation2 + $0x128] sm:$0xff] %vm278_vm1, %v11996_v2 }
  0x3a   : > { %318 = vst.msk [vmem:[#allocation2 + $0x130] sm:$0x3] %vm281_vm2, %v11996_v2 }
  0x3b   : > { %319 = vst.msk [vmem:[#allocation2 + $0x138] sm:$0xff] %vm278_vm1, %v11996_v2 }
  0x3c   : > { %320 = vst.msk [vmem:[#allocation2 + $0x140] sm:$0xff] %vm278_vm1, %v11996_v2 }
  0x3d   : > { %321 = vst.msk [vmem:[#allocation2 + $0x148] sm:$0x3] %vm281_vm2, %v11996_v2 }
  0x3e   : > { %322 = vst.msk [vmem:[#allocation2 + $0x150] sm:$0xff] %vm278_vm1, %v11996_v2 }
  0x3f   : > { %323 = vst.msk [vmem:[#allocation2 + $0x158] sm:$0xff] %vm278_vm1, %v11996_v2 }
  0x40   : > { %324 = vst.msk [vmem:[#allocation2 + $0x160] sm:$0x3] %vm281_vm2, %v11996_v2 }
  0x41   : > { %325 = vst.msk [vmem:[#allocation2 + $0x168] sm:$0xff] %vm278_vm1, %v11996_v2 }
  0x42   : > { %326 = vst.msk [vmem:[#allocation2 + $0x170] sm:$0xff] %vm278_vm1, %v11996_v2 }
  0x43   : > { %327 = vst.msk [vmem:[#allocation2 + $0x178] sm:$0x3] %vm281_vm2, %v11996_v2 }
  0x44   : > { %328 = vst.msk [vmem:[#allocation2 + $0x180] sm:$0xff] %vm278_vm1, %v11996_v2 }
  0x45   : > { %329 = vst.msk [vmem:[#allocation2 + $0x188] sm:$0xff] %vm278_vm1, %v11996_v2 }
  0x46   : > { %330 = vst.msk [vmem:[#allocation2 + $0x190] sm:$0x3] %vm281_vm2, %v11996_v2 }
  0x47   : > { %331 = vst.msk [vmem:[#allocation2 + $0x198] sm:$0xff] %vm278_vm1, %v11996_v2 }
  0x48   : > { %332 = vst.msk [vmem:[#allocation2 + $0x1a0] sm:$0xff] %vm278_vm1, %v11996_v2 }
  0x49   : > { %333 = vst.msk [vmem:[#allocation2 + $0x1a8] sm:$0x3] %vm281_vm2, %v11996_v2 }
  0x4a   : > { %415 = vst.msk [vmem:[#allocation2 + $0xd9] sm:$0xff] %vm278_vm1, %v8283_v15  ;;  %v8268_v15 = vunpack.c.h.bf16 %v8380_v11 }
  0x4b   : > { %416 = vst.msk [vmem:[#allocation2 + $0xe1] sm:$0xff] %vm278_vm1, %v8284_v16 }
  0x4c   : > { %399 = vst.msk [vmem:[#allocation2 + $0x19] sm:$0xff] %vm278_vm1, %v8251_v18  ;;  %v8389_v18 = vld [vmem:[%s8723_s23 + $0x68] sm:$0xff]  }
  0x4d   : > { %400 = vst.msk [vmem:[#allocation2 + $0x21] sm:$0xff] %vm278_vm1, %v8252_v19  ;;  %v8303_v19 = vunpack.c.l.bf16 %v8389_v18  ;;  %v8304_v20 = vunpack.c.h.bf16 %v8389_v18  ;;  %v7492_v18 = vld [vmem:[%s11989_s1 + $0xc] sm:$0x7] }
  0x4e   : > { %417 = vst.msk [vmem:[#allocation2 + $0xf1] sm:$0xff] %vm278_vm1, %v8287_v21 }
  0x4f   : > { %418 = vst.msk [vmem:[#allocation2 + $0xf9] sm:$0xff] %vm278_vm1, %v8288_v22 }
  0x50   : > { %401 = vst.msk [vmem:[#allocation2 + $0x31] sm:$0xff] %vm278_vm1, %v8255_v24 }
  0x51   : > { %v554_v29 = vld [vmem:[#allocation2 + $0xd9] sm:$0xff]  ;;  %402 = vst.msk [vmem:[#allocation2 + $0x39] sm:$0xff] %vm278_vm1, %v8256_v25 }
  0x52   : > { %v505_v30 = vld [vmem:[#allocation2 + $0xd8] sm:$0xff]  ;;  %v555_v33 = vld [vmem:[#allocation2 + $0xe1] sm:$0xff]  ;;  %419 = vst.msk [vmem:[#allocation2 + $0x109] sm:$0xff] %vm278_vm1, %v8291_v26 }
  0x53   : > { %v506_v34 = vld [vmem:[#allocation2 + $0xe0] sm:$0xff]  ;;  %v8758_v35 = vpack.c.bf16 %v555_v33, %v554_v29  ;;  %v489_v38 = vld [vmem:[#allocation2 + $0x18] sm:$0xff]  ;;  %420 = vst.msk [vmem:[#allocation2 + $0x111] sm:$0xff] %vm278_vm1, %v8292_v27  ;;  %v8381_v29 = vld [vmem:[%s8723_s23 + $0x28] sm:$0xff]  }
  0x54   : > { %v8760_v36 = vpack.c.bf16 %v506_v34, %v505_v30  ;;  %v538_v37 = vld [vmem:[#allocation2 + $0x19] sm:$0xff]  ;;  %v539_v39 = vld [vmem:[#allocation2 + $0x21] sm:$0xff]  ;;  %403 = vst.msk [vmem:[#allocation2 + $0x49] sm:$0xff] %vm278_vm1, %v8259_v31  ;;  %v8272_v33 = vunpack.c.h.bf16 %v8381_v29 }
  0x55   : > { %v490_v40 = vld [vmem:[#allocation2 + $0x20] sm:$0xff]  ;;  %7452 = vmatmul.msk.bf16.vlgmr.msra.gmra.mxu3 %vm278_vm1, %v8758_v35  ;;  %v8768_v41 = vpack.c.bf16 %v539_v39, %v538_v37  ;;  %404 = vst.msk [vmem:[#allocation2 + $0x51] sm:$0xff] %vm278_vm1, %v8260_v32  ;;  %v556_v46 = vld [vmem:[#allocation2 + $0xf1] sm:$0xff]  ;;  %v8271_v32 = vunpack.c.l.bf16 %v8381_v29 }
  0x56   : > { %7468 = vmatmul.msk.bf16.vlgmr.msra.gmra.mxu2 %vm278_vm1, %v8760_v36  ;;  %v8770_v42 = vpack.c.bf16 %v490_v40, %v489_v38  ;;  %421 = vst.msk [vmem:[#allocation2 + $0x121] sm:$0xff] %vm278_vm1, %v8295_v44  ;;  %v557_v47 = vld [vmem:[#allocation2 + $0xf9] sm:$0xff]  ;;  %v507_v48 = vld [vmem:[#allocation2 + $0xf0] sm:$0xff] }
  0x57   : > { %7444 = vmatmul.msk.bf16.gmra.mxu0 %vm278_vm1, %v8768_v41  ;;  %422 = vst.msk [vmem:[#allocation2 + $0x129] sm:$0xff] %vm278_vm1, %v8296_v45  ;;  %v508_v49 = vld [vmem:[#allocation2 + $0xf8] sm:$0xff]  ;;  %v491_v51 = vld [vmem:[#allocation2 + $0x30] sm:$0xff]  ;;  %v8781_v55 = vpack.c.bf16 %v557_v47, %v556_v46 }
  0x58   : > { %7460 = vmatmul.msk.bf16.gmra.mxu1 %vm278_vm1, %v8770_v42  ;;  %v540_v50 = vld [vmem:[#allocation2 + $0x31] sm:$0xff]  ;;  %v541_v52 = vld [vmem:[#allocation2 + $0x39] sm:$0xff]  ;;  %v8783_v56 = vpack.c.bf16 %v508_v49, %v507_v48  ;;  %405 = vst.msk [vmem:[#allocation2 + $0x61] sm:$0xff] %vm278_vm1, %v8263_v57 }
  0x59   : > { %v492_v53 = vld [vmem:[#allocation2 + $0x38] sm:$0xff]  ;;  %v8785_v59 = vpack.c.bf16 %v541_v52, %v540_v50  ;;  %406 = vst.msk [vmem:[#allocation2 + $0x69] sm:$0xff] %vm278_vm1, %v8264_v58  ;;  %v558_v3 = vld [vmem:[#allocation2 + $0x109] sm:$0xff] }
  0x5a   : > { %v8787_v60 = vpack.c.bf16 %v492_v53, %v491_v51  ;;  %423 = vst.msk [vmem:[#allocation2 + $0x139] sm:$0xff] %vm278_vm1, %v8299_v0  ;;  %v559_v4 = vld [vmem:[#allocation2 + $0x111] sm:$0xff]  ;;  %v509_v5 = vld [vmem:[#allocation2 + $0x108] sm:$0xff] }
  0x5b   : > { %424 = vst.msk [vmem:[#allocation2 + $0x141] sm:$0xff] %vm278_vm1, %v8300_v1  ;;  %v510_v6 = vld [vmem:[#allocation2 + $0x110] sm:$0xff]  ;;  %v493_v9 = vld [vmem:[#allocation2 + $0x48] sm:$0xff]  ;;  %v8807_v12 = vpack.c.bf16 %v559_v4, %v558_v3 }
  0x5c   : > { %v542_v7 = vld [vmem:[#allocation2 + $0x49] sm:$0xff]  ;;  %v543_v8 = vld [vmem:[#allocation2 + $0x51] sm:$0xff]  ;;  %v8809_v13 = vpack.c.bf16 %v510_v6, %v509_v5  ;;  %407 = vst.msk [vmem:[#allocation2 + $0x79] sm:$0xff] %vm278_vm1, %v8267_v14 }
  0x5d   : > { %v494_v10 = vld [vmem:[#allocation2 + $0x50] sm:$0xff]  ;;  %v8811_v16 = vpack.c.bf16 %v543_v8, %v542_v7  ;;  %408 = vst.msk [vmem:[#allocation2 + $0x81] sm:$0xff] %vm278_vm1, %v8268_v15  ;;  %v560_v21 = vld [vmem:[#allocation2 + $0x121] sm:$0xff]  ;;  %v8383_v7 = vld [vmem:[%s8723_s23 + $0x38] sm:$0xff]  }
  0x5e   : > { %v8813_v17 = vpack.c.bf16 %v494_v10, %v493_v9  ;;  %425 = vst.msk [vmem:[#allocation2 + $0x151] sm:$0xff] %vm278_vm1, %v8303_v19  ;;  %v561_v22 = vld [vmem:[#allocation2 + $0x129] sm:$0xff]  ;;  %v511_v23 = vld [vmem:[#allocation2 + $0x120] sm:$0xff]  ;;  %v8279_v10 = vunpack.c.l.bf16 %v8383_v7  ;;  %v8280_v11 = vunpack.c.h.bf16 %v8383_v7  ;;  %v1188_v19 = vsel %vm634_vm0, %v7492_v18, 0 }
  0x5f   : > { %426 = vst.msk [vmem:[#allocation2 + $0x159] sm:$0xff] %vm278_vm1, %v8304_v20  ;;  %v512_v24 = vld [vmem:[#allocation2 + $0x128] sm:$0xff]  ;;  %v495_v27 = vld [vmem:[#allocation2 + $0x60] sm:$0xff]  ;;  %v8829_v30 = vpack.c.bf16 %v561_v22, %v560_v21  ;;  %v8390_v38 = vld [vmem:[%s8723_s23 + $0x70] sm:$0xff]   ;;  %1197 = vmatpush.bf16.msra.mxu3 %v1188_v19 }
  0x60   : > { %v544_v25 = vld [vmem:[#allocation2 + $0x61] sm:$0xff]  ;;  %v545_v26 = vld [vmem:[#allocation2 + $0x69] sm:$0xff]  ;;  %v8831_v31 = vpack.c.bf16 %v512_v24, %v511_v23  ;;  %409 = vst.msk [vmem:[#allocation2 + $0x91] sm:$0xff] %vm278_vm1, %v8271_v32  ;;  %v8307_v39 = vunpack.c.l.bf16 %v8390_v38  ;;  %v8308_v40 = vunpack.c.h.bf16 %v8390_v38 }
  0x61   : > { %v496_v28 = vld [vmem:[#allocation2 + $0x68] sm:$0xff]  ;;  %v8833_v34 = vpack.c.bf16 %v545_v26, %v544_v25  ;;  %410 = vst.msk [vmem:[#allocation2 + $0x99] sm:$0xff] %vm278_vm1, %v8272_v33  ;;  %v562_v43 = vld [vmem:[#allocation2 + $0x139] sm:$0xff]  ;;  %v8382_v51 = vld [vmem:[%s8723_s23 + $0x30] sm:$0xff]  }
  0x62   : > { %v8835_v37 = vpack.c.bf16 %v496_v28, %v495_v27  ;;  %427 = vst.msk [vmem:[#allocation2 + $0x169] sm:$0xff] %vm278_vm1, %v8307_v39  ;;  %v563_v44 = vld [vmem:[#allocation2 + $0x141] sm:$0xff]  ;;  %v513_v45 = vld [vmem:[#allocation2 + $0x138] sm:$0xff]  ;;  %v8275_v54 = vunpack.c.l.bf16 %v8382_v51  ;;  %v8276_v57 = vunpack.c.h.bf16 %v8382_v51  ;;  %v868_v1 = vld [vmem:[#allocation2 + $0xa] sm:$0xff] }
  0x63   : > { %428 = vst.msk [vmem:[#allocation2 + $0x171] sm:$0xff] %vm278_vm1, %v8308_v40  ;;  %v514_v46 = vld [vmem:[#allocation2 + $0x140] sm:$0xff]  ;;  %v497_v49 = vld [vmem:[#allocation2 + $0x78] sm:$0xff]  ;;  %v8851_v52 = vpack.c.bf16 %v563_v44, %v562_v43  ;;  %v873_v19 = vld [vmem:[#allocation2 + $0x4a] sm:$0xff] }
  0x64   : > { %v546_v47 = vld [vmem:[#allocation2 + $0x79] sm:$0xff]  ;;  %v547_v48 = vld [vmem:[#allocation2 + $0x81] sm:$0xff]  ;;  %v8853_v53 = vpack.c.bf16 %v514_v46, %v513_v45  ;;  %411 = vst.msk [vmem:[#allocation2 + $0xa9] sm:$0xff] %vm278_vm1, %v8275_v54 }
  0x65   : > { %7453 = vmatmul.msk.bf16.gmra.mxu3 %vm278_vm1, %v8781_v55  ;;  %v498_v50 = vld [vmem:[#allocation2 + $0x80] sm:$0xff]  ;;  %v8855_v58 = vpack.c.bf16 %v547_v48, %v546_v47  ;;  %412 = vst.msk [vmem:[#allocation2 + $0xb1] sm:$0xff] %vm278_vm1, %v8276_v57  ;;  %v564_v62 = vld [vmem:[#allocation2 + $0x151] sm:$0xff] }
  0x66   : > { %7469 = vmatmul.msk.bf16.gmra.mxu2 %vm278_vm1, %v8783_v56  ;;  %v8857_v61 = vpack.c.bf16 %v498_v50, %v497_v49  ;;  %v565_v63 = vld [vmem:[#allocation2 + $0x159] sm:$0xff]  ;;  %v867_v0 = vld [vmem:[#allocation2 + $0x2] sm:$0xff]  ;;  %413 = vst.msk [vmem:[#allocation2 + $0xc1] sm:$0xff] %vm278_vm1, %v8279_v10  ;;  %v515_v43 = vld [vmem:[#allocation2 + $0x150] sm:$0xff] }
  0x67   : > { %7445 = vmatmul.msk.bf16.gmra.mxu0 %vm278_vm1, %v8785_v59  ;;  %v548_v3 = vld [vmem:[#allocation2 + $0x91] sm:$0xff]  ;;  %v8870_v8 = vpack.c.bf16 %v565_v63, %v564_v62  ;;  %v899_v9 = vpack.c.bf16 %v868_v1, %v867_v0  ;;  %414 = vst.msk [vmem:[#allocation2 + $0xc9] sm:$0xff] %vm278_vm1, %v8280_v11  ;;  %v869_v22 = vld [vmem:[#allocation2 + $0x1a] sm:$0xff]  ;;  %v870_v23 = vld [vmem:[#allocation2 + $0x22] sm:$0xff] }
  0x68   : > { %7461 = vmatmul.msk.bf16.gmra.mxu1 %vm278_vm1, %v8787_v60  ;;  %v549_v4 = vld [vmem:[#allocation2 + $0x99] sm:$0xff]  ;;  %v499_v5 = vld [vmem:[#allocation2 + $0x90] sm:$0xff]  ;;  %v900_v29 = vpack.c.bf16 %v870_v23, %v869_v22 }
  0x69   : > { %v500_v6 = vld [vmem:[#allocation2 + $0x98] sm:$0xff]  ;;  %v8872_v14 = vpack.c.bf16 %v549_v4, %v548_v3  ;;  %v566_v20 = vld [vmem:[#allocation2 + $0x169] sm:$0xff]  ;;  %v7526_v62 = vld [vmem:[%s11989_s1 + $0x14] sm:$0x7] }
  0x6a   : > { %v8874_v15 = vpack.c.bf16 %v500_v6, %v499_v5  ;;  %v567_v21 = vld [vmem:[#allocation2 + $0x171] sm:$0xff]  ;;  %v872_v46 = vld [vmem:[#allocation2 + $0x3a] sm:$0xff]  ;;  %v1632_v0 = vsel %vm634_vm0, %v7526_v62, 0  ;;  %v517_v11 = vld [vmem:[#allocation2 + $0x168] sm:$0xff] }
  0x6b   : > { %v550_v24 = vld [vmem:[#allocation2 + $0xa9] sm:$0xff]  ;;  %v8889_v28 = vpack.c.bf16 %v567_v21, %v566_v20  ;;  %v516_v44 = vld [vmem:[#allocation2 + $0x158] sm:$0xff]  ;;  %1641 = vmatpush.bf16.msrb.mxu1 %v1632_v0  ;;  %v7577_v6 = vld [vmem:[%s11989_s1 + $0x20] sm:$0x7] }
  0x6c   : > { %v551_v25 = vld [vmem:[#allocation2 + $0xb1] sm:$0xff]  ;;  %v501_v26 = vld [vmem:[#allocation2 + $0xa8] sm:$0xff]  ;;  %v8904_v51 = vpack.c.bf16 %v516_v44, %v515_v43  ;;  %v7560_v4 = vld [vmem:[%s11989_s1 + $0x1c] sm:$0x7]  ;;  %v2299_v10 = vsel %vm634_vm0, %v7577_v6, 0 }
  0x6d   : > { %v502_v27 = vld [vmem:[#allocation2 + $0xb0] sm:$0xff]  ;;  %v8891_v38 = vpack.c.bf16 %v551_v25, %v550_v24  ;;  %v552_v47 = vld [vmem:[#allocation2 + $0xc1] sm:$0xff]  ;;  %v7543_v57 = vld [vmem:[%s11989_s1 + $0x18] sm:$0x7]  ;;  %v2077_v5 = vsel %vm634_vm0, %v7560_v4, 0  ;;  %2308 = vmatpush.bf16.msra.mxu0 %v2299_v10 }
  0x6e   : > { %v8893_v39 = vpack.c.bf16 %v502_v27, %v501_v26  ;;  %v871_v45 = vld [vmem:[#allocation2 + $0x32] sm:$0xff]  ;;  %v553_v48 = vld [vmem:[#allocation2 + $0xc9] sm:$0xff]  ;;  %v503_v49 = vld [vmem:[#allocation2 + $0xc0] sm:$0xff]  ;;  %v1855_v63 = vsel %vm634_vm0, %v7543_v57, 0 }
  0x6f   : > { %v504_v50 = vld [vmem:[#allocation2 + $0xc8] sm:$0xff]  ;;  %v901_v54 = vpack.c.bf16 %v872_v46, %v871_v45  ;;  %v8914_v1 = vpack.c.bf16 %v553_v48, %v552_v47  ;;  %1864 = vmatpush.bf16.msra.mxu2 %v1855_v63  ;;  %v518_v18 = vld [vmem:[#allocation2 + $0x170] sm:$0xff]  ;;  %v877_v10 = vld [vmem:[#allocation2 + $0x7a] sm:$0xff] }
  0x70   : > { %v8916_v3 = vpack.c.bf16 %v504_v50, %v503_v49  ;;  %v874_v20 = vld [vmem:[#allocation2 + $0x52] sm:$0xff]  ;;  %v8937_v21 = vpack.c.bf16 %v518_v18, %v517_v11  ;;  %v875_v45 = vld [vmem:[#allocation2 + $0x62] sm:$0xff]  ;;  %v876_v46 = vld [vmem:[#allocation2 + $0x6a] sm:$0xff] }
  0x71   : > { %v902_v22 = vpack.c.bf16 %v874_v20, %v873_v19  ;;  %v903_v50 = vpack.c.bf16 %v876_v46, %v875_v45  ;;  %v878_v11 = vld [vmem:[#allocation2 + $0x82] sm:$0xff]  ;;  %v879_v46 = vld [vmem:[#allocation2 + $0x92] sm:$0xff] }
  0x72   : > { %v904_v20 = vpack.c.bf16 %v878_v11, %v877_v10 }
  0x75   : > { %7454 = vmatmul.msk.bf16.gmra.mxu3 %vm278_vm1, %v8807_v12 }
  0x76   : > { %7470 = vmatmul.msk.bf16.gmra.mxu2 %vm278_vm1, %v8809_v13 }
  0x77   : > { %7446 = vmatmul.msk.bf16.gmra.mxu0 %vm278_vm1, %v8811_v16 }
  0x78   : > { %7462 = vmatmul.msk.bf16.gmra.mxu1 %vm278_vm1, %v8813_v17 }
  0x85   : > { %7455 = vmatmul.msk.bf16.gmra.mxu3 %vm278_vm1, %v8829_v30 }
  0x86   : > { %7471 = vmatmul.msk.bf16.gmra.mxu2 %vm278_vm1, %v8831_v31 }
  0x87   : > { %7447 = vmatmul.msk.bf16.gmra.mxu0 %vm278_vm1, %v8833_v34 }
  0x88   : > { %7463 = vmatmul.msk.bf16.gmra.mxu1 %vm278_vm1, %v8835_v37 }
  0x95   : > { %7456 = vmatmul.msk.bf16.gmra.mxu3 %vm278_vm1, %v8851_v52 }
  0x96   : > { %7472 = vmatmul.msk.bf16.gmra.mxu2 %vm278_vm1, %v8853_v53 }
  0x97   : > { %7448 = vmatmul.msk.bf16.gmra.mxu0 %vm278_vm1, %v8855_v58 }
  0x98   : > { %7464 = vmatmul.msk.bf16.gmra.mxu1 %vm278_vm1, %v8857_v61 }
  0x9d   : > { %v647_v32 = vpop.f32.mrf.mxu0 }
  0x9e   : > { %v787_v33 = vpop.f32.mrf.mxu1 }
  0x9f   : > { %v8895_v40 = vadd.f32 %v787_v33, %v647_v32 }
  0xa5   : > { %7457 = vmatmul.msk.bf16.gmra.mxu3 %vm278_vm1, %v8870_v8  ;;  %v8932_v7 = vpop.f32.mrf.mxu0 }
  0xa6   : > { %7476 = vmatmul.msk.bf16.vlgmr.msrb.gmra.mxu2 %vm278_vm1, %v899_v9  ;;  %v8934_v9 = vpop.f32.mrf.mxu1 }
  0xa7   : > { %7449 = vmatmul.msk.bf16.gmra.mxu0 %vm278_vm1, %v8872_v14 }
  0xa8   : > { %7465 = vmatmul.msk.bf16.gmra.mxu1 %vm278_vm1, %v8874_v15 }
  0xb5   : > { %7458 = vmatmul.msk.bf16.gmra.mxu3 %vm278_vm1, %v8889_v28 }
  0xb6   : > { %7477 = vmatmul.msk.bf16.gmra.mxu2 %vm278_vm1, %v900_v29 }
  0xb7   : > { %7450 = vmatmul.msk.bf16.gmra.mxu0 %vm278_vm1, %v8891_v38 }
  0xb8   : > { %7466 = vmatmul.msk.bf16.gmra.mxu1 %vm278_vm1, %v8893_v39 }
  0xc5   : > { %7473 = vmatmul.msk.bf16.vlgmr.msrb.gmra.mxu3 %vm278_vm1, %v8904_v51 }
  0xc6   : > { %7478 = vmatmul.msk.bf16.gmra.mxu2 %vm278_vm1, %v901_v54  ;;  %2086 = vmatpush.bf16.msrb.mxu3 %v2077_v5 }
  0xc7   : > { %7451 = vmatmul.msk.bf16.gmra.mxu0 %vm278_vm1, %v8914_v1 }
  0xc8   : > { %7467 = vmatmul.msk.bf16.gmra.mxu1 %vm278_vm1, %v8916_v3 }
  0xd4   : > { %v652_v23 = vpop.f32.mrf.mxu0 }
  0xd5   : > { %v792_v24 = vpop.f32.mrf.mxu1  ;;  %7474 = vmatmul.msk.bf16.gmra.mxu3 %vm278_vm1, %v8937_v21 }
  0xd6   : > { %7479 = vmatmul.msk.bf16.gmra.mxu2 %vm278_vm1, %v902_v22  ;;  %v8942_v25 = vadd.f32 %v792_v24, %v652_v23 }
  0xd7   : > { %7510 = vmatmul.msk.bf16.vlgmr.msrb.gmra.mxu0 %vm278_vm1, %v8768_v41 }
  0xd8   : > { %7527 = vmatmul.msk.bf16.vlgmr.msrb.gmra.mxu1 %vm278_vm1, %v900_v29  ;;  %v692_v26 = vpop.f32.mrf.mxu3 }
  0xd9   : > { %v832_v27 = vpop.f32.mrf.mxu2 }
  0xda   : > { %v8947_v32 = vadd.f32 %v832_v27, %v692_v26 }
  0xdc   : > { %v654_v33 = vpop.f32.mrf.mxu0 }
  0xdd   : > { %v794_v43 = vpop.f32.mrf.mxu1 }
  0xde   : > { %v8949_v44 = vadd.f32 %v794_v43, %v654_v33 }
  0xe0   : > { %v694_v47 = vpop.f32.mrf.mxu3 }
  0xe1   : > { %v834_v48 = vpop.f32.mrf.mxu2 }
  0xe2   : > { %v8951_v49 = vadd.f32 %v834_v48, %v694_v47  ;;  %v880_v47 = vld [vmem:[#allocation2 + $0x9a] sm:$0xff] }
  0xe4   : > { %v657_v57 = vpop.f32.mrf.mxu0 }
  0xe5   : > { %v797_v62 = vpop.f32.mrf.mxu1  ;;  %7493 = vmatmul.msk.bf16.vlgmr.msra.gmra.mxu3 %vm278_vm1, %v8770_v42 }
  0xe6   : > { %7480 = vmatmul.msk.bf16.gmra.mxu2 %vm278_vm1, %v903_v50  ;;  %v8956_v41 = vadd.f32 %v797_v62, %v657_v57  ;;  %v905_v62 = vpack.c.bf16 %v880_v47, %v879_v46 }
  0xe7   : > { %7511 = vmatmul.msk.bf16.gmra.mxu0 %vm278_vm1, %v8785_v59 }
  0xe8   : > { %7528 = vmatmul.msk.bf16.gmra.mxu1 %vm278_vm1, %v901_v54  ;;  %v697_v29 = vpop.f32.mrf.mxu3 }
  0xe9   : > { %v837_v63 = vpop.f32.mrf.mxu2 }
  0xea   : > { %v8961_v0 = vadd.f32 %v837_v63, %v697_v29 }
  0xec   : > { %v659_v4 = vpop.f32.mrf.mxu0 }
  0xed   : > { %v799_v5 = vpop.f32.mrf.mxu1 }
  0xee   : > { %v8963_v6 = vadd.f32 %v799_v5, %v659_v4 }
  0xf0   : > { %v699_v18 = vpop.f32.mrf.mxu3 }
  0xf1   : > { %v839_v19 = vpop.f32.mrf.mxu2 }
  0xf2   : > { %v8965_v42 = vadd.f32 %v839_v19, %v699_v18  ;;  %v881_v19 = vld [vmem:[#allocation2 + $0xaa] sm:$0xff] }
  0xf4   : > { %v662_v23 = vpop.f32.mrf.mxu0 }
  0xf5   : > { %v802_v24 = vpop.f32.mrf.mxu1  ;;  %7494 = vmatmul.msk.bf16.gmra.mxu3 %vm278_vm1, %v8787_v60 }
  0xf6   : > { %7481 = vmatmul.msk.bf16.gmra.mxu2 %vm278_vm1, %v904_v20  ;;  %v8970_v59 = vadd.f32 %v802_v24, %v662_v23  ;;  %v882_v23 = vld [vmem:[#allocation2 + $0xb2] sm:$0xff] }
  0xf7   : > { %7512 = vmatmul.msk.bf16.gmra.mxu0 %vm278_vm1, %v8811_v16 }
  0xf8   : > { %7529 = vmatmul.msk.bf16.gmra.mxu1 %vm278_vm1, %v902_v22  ;;  %v702_v54 = vpop.f32.mrf.mxu3 }
  0xf9   : > { %v842_v26 = vpop.f32.mrf.mxu2 }
  0xfa   : > { %v8975_v27 = vadd.f32 %v842_v26, %v702_v54  ;;  %v906_v26 = vpack.c.bf16 %v882_v23, %v881_v19 }
  0xfc   : > { %v664_v33 = vpop.f32.mrf.mxu0 }
  0xfd   : > { %v804_v43 = vpop.f32.mrf.mxu1 }
  0xfe   : > { %v8977_v45 = vadd.f32 %v804_v43, %v664_v33 }
 0x100   : > { %v704_v48 = vpop.f32.mrf.mxu3 }
 0x101   : > { %v844_v57 = vpop.f32.mrf.mxu2 }
 0x102   : > { %v8979_v60 = vadd.f32 %v844_v57, %v704_v48 }
 0x104   : > { %v667_v29 = vpop.f32.mrf.mxu0 }
 0x105   : > { %v807_v63 = vpop.f32.mrf.mxu1  ;;  %7495 = vmatmul.msk.bf16.gmra.mxu3 %vm278_vm1, %v8813_v17 }
 0x106   : > { %7482 = vmatmul.msk.bf16.gmra.mxu2 %vm278_vm1, %v905_v62  ;;  %v8984_v16 = vadd.f32 %v807_v63, %v667_v29  ;;  %v883_v63 = vld [vmem:[#allocation2 + $0xc2] sm:$0xff] }
 0x107   : > { %7513 = vmatmul.msk.bf16.gmra.mxu0 %vm278_vm1, %v8833_v34 }
 0x108   : > { %7530 = vmatmul.msk.bf16.gmra.mxu1 %vm278_vm1, %v903_v50  ;;  %v707_v22 = vpop.f32.mrf.mxu3 }
 0x109   : > { %v847_v4 = vpop.f32.mrf.mxu2 }
 0x10a   : > { %v8989_v5 = vadd.f32 %v847_v4, %v707_v22  ;;  %v884_v22 = vld [vmem:[#allocation2 + $0xca] sm:$0xff] }
 0x10c   : > { %v669_v10 = vpop.f32.mrf.mxu0 }
 0x10d   : > { %v809_v11 = vpop.f32.mrf.mxu1 }
 0x10e   : > { %v8991_v18 = vadd.f32 %v809_v11, %v669_v10  ;;  %v907_v11 = vpack.c.bf16 %v884_v22, %v883_v63 }
 0x110   : > { %v709_v24 = vpop.f32.mrf.mxu3 }
 0x111   : > { %v849_v54 = vpop.f32.mrf.mxu2 }
 0x112   : > { %v8993_v17 = vadd.f32 %v849_v54, %v709_v24 }
 0x114   : > { %v672_v33 = vpop.f32.mrf.mxu0 }
 0x115   : > { %v812_v43 = vpop.f32.mrf.mxu1  ;;  %7496 = vmatmul.msk.bf16.gmra.mxu3 %vm278_vm1, %v8835_v37 }
 0x116   : > { %7483 = vmatmul.msk.bf16.gmra.mxu2 %vm278_vm1, %v906_v26  ;;  %v8998_v34 = vadd.f32 %v812_v43, %v672_v33 }
 0x117   : > { %7514 = vmatmul.msk.bf16.gmra.mxu0 %vm278_vm1, %v8855_v58 }
 0x118   : > { %7531 = vmatmul.msk.bf16.gmra.mxu1 %vm278_vm1, %v904_v20  ;;  %v712_v50 = vpop.f32.mrf.mxu3 }
 0x119   : > { %v852_v46 = vpop.f32.mrf.mxu2 }
 0x11a   : > { %v9003_v47 = vadd.f32 %v852_v46, %v712_v50  ;;  %v885_v46 = vld [vmem:[#allocation2 + $0xda] sm:$0xff] }
 0x11c   : > { %v674_v48 = vpop.f32.mrf.mxu0 }
 0x11d   : > { %v814_v57 = vpop.f32.mrf.mxu1 }
 0x11e   : > { %v9005_v29 = vadd.f32 %v814_v57, %v674_v48  ;;  %v886_v48 = vld [vmem:[#allocation2 + $0xe2] sm:$0xff] }
 0x11f   : > { %v908_v63 = vpack.c.bf16 %v886_v48, %v885_v46 }
 0x120   : > { %v714_v4 = vpop.f32.mrf.mxu3 }
 0x121   : > { %v854_v10 = vpop.f32.mrf.mxu2 }
 0x122   : > { %v9007_v37 = vadd.f32 %v854_v10, %v714_v4 }
 0x124   : > { %12058 = vst [vmem:[#allocation7_spill] sm:$0xff] %v9007_v37  ;;  %v677_v19 = vpop.f32.mrf.mxu0 }
 0x125   : > { %v817_v23 = vpop.f32.mrf.mxu1  ;;  %7497 = vmatmul.msk.bf16.gmra.mxu3 %vm278_vm1, %v8857_v61 }
 0x126   : > { %7484 = vmatmul.msk.bf16.gmra.mxu2 %vm278_vm1, %v907_v11  ;;  %v9012_v58 = vadd.f32 %v817_v23, %v677_v19 }
 0x127   : > { %7515 = vmatmul.msk.bf16.gmra.mxu0 %vm278_vm1, %v8872_v14 }
 0x128   : > { %7532 = vmatmul.msk.bf16.gmra.mxu1 %vm278_vm1, %v905_v62  ;;  %v717_v20 = vpop.f32.mrf.mxu3 }
 0x129   : > { %v977_v24 = vpop.f32.mrf.mxu2 }
 0x12a   : > { %v9018_v54 = vadd.f32 %v977_v24, %v8895_v40 }
 0x12c   : > { %v679_v33 = vpop.f32.mrf.mxu0 }
 0x12d   : > { %v819_v43 = vpop.f32.mrf.mxu1 }
 0x12e   : > { %v9020_v50 = vadd.f32 %v819_v43, %v679_v33  ;;  %v887_v33 = vld [vmem:[#allocation2 + $0xf2] sm:$0xff]  ;;  %v888_v43 = vld [vmem:[#allocation2 + $0xfa] sm:$0xff] }
 0x130   : > { %v719_v57 = vpop.f32.mrf.mxu3 }
 0x131   : > { %v9022_v61 = vpop.f32.mrf.mxu2 }
 0x134   : > { %v682_v22 = vpop.f32.mrf.mxu0 }
 0x135   : > { %v822_v4 = vpop.f32.mrf.mxu1  ;;  %7498 = vmatmul.msk.bf16.gmra.mxu3 %vm278_vm1, %v8874_v15 }
 0x136   : > { %7485 = vmatmul.msk.bf16.gmra.mxu2 %vm278_vm1, %v908_v63  ;;  %v9027_v14 = vadd.f32 %v822_v4, %v682_v22  ;;  %v909_v22 = vpack.c.bf16 %v888_v43, %v887_v33 }
 0x137   : > { %7516 = vmatmul.msk.bf16.gmra.mxu0 %vm278_vm1, %v8891_v38 }
 0x138   : > { %7533 = vmatmul.msk.bf16.gmra.mxu1 %vm278_vm1, %v906_v26  ;;  %v722_v40 = vpop.f32.mrf.mxu3 }
 0x139   : > { %v982_v62 = vpop.f32.mrf.mxu2 }
 0x13a   : > { %v9033_v10 = vadd.f32 %v982_v62, %v8942_v25 }
 0x13c   : > { %v684_v19 = vpop.f32.mrf.mxu0 }
 0x13d   : > { %v824_v23 = vpop.f32.mrf.mxu1 }
 0x13e   : > { %v9035_v24 = vadd.f32 %v824_v23, %v684_v19 }
 0x140   : > { %v724_v46 = vpop.f32.mrf.mxu3 }
 0x141   : > { %v984_v15 = vpop.f32.mrf.mxu2 }
 0x142   : > { %v9038_v48 = vadd.f32 %v984_v15, %v8949_v44  ;;  %v889_v15 = vld [vmem:[#allocation2 + $0x10a] sm:$0xff] }
 0x144   : > { %v687_v38 = vpop.f32.mrf.mxu0 }
 0x145   : > { %v827_v4 = vpop.f32.mrf.mxu1  ;;  %7499 = vmatmul.msk.bf16.gmra.mxu3 %vm278_vm1, %v8893_v39  ;;  %v890_v39 = vld [vmem:[#allocation2 + $0x112] sm:$0xff] }
 0x146   : > { %7486 = vmatmul.msk.bf16.gmra.mxu2 %vm278_vm1, %v909_v22  ;;  %v9043_v25 = vadd.f32 %v827_v4, %v687_v38 }
 0x147   : > { %7517 = vmatmul.msk.bf16.gmra.mxu0 %vm278_vm1, %v8914_v1 }
 0x148   : > { %7534 = vmatmul.msk.bf16.gmra.mxu1 %vm278_vm1, %v907_v11  ;;  %v857_v26 = vpop.f32.mrf.mxu3  ;;  %v910_v11 = vpack.c.bf16 %v890_v39, %v889_v15  ;;  %v892_v15 = vld [vmem:[#allocation2 + $0x12a] sm:$0xff] }
 0x149   : > { %v987_v62 = vpop.f32.mrf.mxu2  ;;  %v9048_v19 = vadd.f32 %v857_v26, %v717_v20 }
 0x14a   : > { %v9051_v44 = vadd.f32 %v987_v62, %v8956_v41  ;;  %v8219_v41 = vld [vmem:[%s11991_s3 + $0x38] sm:$0xff] }
 0x14b   : > { %12059 = vst [vmem:[#allocation8_spill] sm:$0xff] %v9048_v19  ;;  %2776 = vmatpush.bf16.msra.mxu1 %v8219_v41 }
 0x14c   : > { %v689_v23 = vpop.f32.mrf.mxu0 }
 0x14d   : > { %v829_v33 = vpop.f32.mrf.mxu1 }
 0x14e   : > { %v9053_v43 = vadd.f32 %v829_v33, %v689_v23 }
 0x150   : > { %v859_v38 = vpop.f32.mrf.mxu3 }
 0x151   : > { %v989_v4 = vpop.f32.mrf.mxu2  ;;  %v9055_v2 = vadd.f32 %v859_v38, %v719_v57 }
 0x152   : > { %v9058_v1 = vadd.f32 %v989_v4, %v8963_v6 }
 0x153   : > { %12060 = vst [vmem:[#allocation9_spill] sm:$0xff] %v9055_v2 }
 0x154   : > { %v1421_v37 = vpop.f32.mrf.mxu0 }
 0x155   : > { %v1643_v20 = vpop.f32.mrf.mxu1  ;;  %7500 = vmatmul.msk.bf16.gmra.mxu3 %vm278_vm1, %v8916_v3  ;;  %v891_v3 = vld [vmem:[#allocation2 + $0x122] sm:$0xff] }
 0x156   : > { %7487 = vmatmul.msk.bf16.gmra.mxu2 %vm278_vm1, %v910_v11 }
 0x157   : > { %7518 = vmatmul.msk.bf16.gmra.mxu0 %vm278_vm1, %v8758_v35 }
 0x158   : > { %7535 = vmatmul.msk.bf16.gmra.mxu1 %vm278_vm1, %v908_v63  ;;  %v862_v57 = vpop.f32.mrf.mxu3  ;;  %v911_v63 = vpack.c.bf16 %v892_v15, %v891_v3  ;;  %v790_v3 = vadd.f32 %v8934_v9, %v8932_v7 }
 0x159   : > { %v992_v6 = vpop.f32.mrf.mxu2  ;;  %v9069_v26 = vadd.f32 %v862_v57, %v722_v40 }
 0x15a   : > { %v9072_v62 = vadd.f32 %v992_v6, %v8970_v59 }
 0x15c   : > { %v1423_v23 = vpop.f32.mrf.mxu0 }
 0x15d   : > { %v1645_v33 = vpop.f32.mrf.mxu1 }
 0x160   : > { %v864_v39 = vpop.f32.mrf.mxu3 }
 0x161   : > { %v994_v38 = vpop.f32.mrf.mxu2  ;;  %v9074_v4 = vadd.f32 %v864_v39, %v724_v46  ;;  %v894_v39 = vld [vmem:[#allocation2 + $0x142] sm:$0xff] }
 0x162   : > { %v9077_v35 = vadd.f32 %v994_v38, %v8977_v45 }
 0x163   : > { %12061 = vst [vmem:[#allocation10_spill] sm:$0xff] %v9074_v4 }
 0x164   : > { %v1426_v2 = vpop.f32.mrf.mxu0 }
 0x165   : > { %v1648_v19 = vpop.f32.mrf.mxu1  ;;  %7501 = vmatmul.msk.bf16.gmra.mxu3 %vm278_vm1, %v8760_v36  ;;  %v893_v36 = vld [vmem:[#allocation2 + $0x13a] sm:$0xff] }
 0x166   : > { %7488 = vmatmul.msk.bf16.gmra.mxu2 %vm278_vm1, %v911_v63 }
 0x167   : > { %7519 = vmatmul.msk.bf16.gmra.mxu0 %vm278_vm1, %v8781_v55  ;;  %v1058_v55 = vadd.f32 %v9022_v61, %v790_v3  ;;  %v895_v3 = vld [vmem:[#allocation2 + $0x152] sm:$0xff] }
 0x168   : > { %7536 = vmatmul.msk.bf16.gmra.mxu1 %vm278_vm1, %v909_v22  ;;  %v1199_v40 = vpop.f32.mrf.mxu3 }
 0x169   : > { %v997_v59 = vpop.f32.mrf.mxu2  ;;  %v1279_v45 = vadd.f32 %v1199_v40, %v9018_v54 }
 0x16a   : > { %v9086_v46 = vadd.f32 %v997_v59, %v8984_v16  ;;  %v912_v59 = vpack.c.bf16 %v894_v39, %v893_v36  ;;  %v896_v36 = vld [vmem:[#allocation2 + $0x15a] sm:$0xff] }
 0x16b   : > { %v1501_v41 = vadd.f32 %v1421_v37, %v1279_v45 }
 0x16c   : > { %v1428_v57 = vpop.f32.mrf.mxu0 }
 0x16d   : > { %v1650_v6 = vpop.f32.mrf.mxu1  ;;  %v9091_v15 = vadd.f32 %v1643_v20, %v1501_v41 }
 0x170   : > { %v1201_v38 = vpop.f32.mrf.mxu3 }
 0x171   : > { %v999_v22 = vpop.f32.mrf.mxu2  ;;  %v1280_v16 = vadd.f32 %v1201_v38, %v1058_v55  ;;  %v913_v55 = vpack.c.bf16 %v896_v36, %v895_v3 }
 0x172   : > { %v9095_v4 = vadd.f32 %v999_v22, %v8991_v18 }
 0x173   : > { %v1502_v54 = vadd.f32 %v1423_v23, %v1280_v16 }
 0x174   : > { %v1431_v37 = vpop.f32.mrf.mxu0 }
 0x175   : > { %v1653_v40 = vpop.f32.mrf.mxu1  ;;  %v9097_v45 = vadd.f32 %v1645_v33, %v1502_v54  ;;  %7502 = vmatmul.msk.bf16.gmra.mxu3 %vm278_vm1, %v8783_v56 }
 0x176   : > { %7489 = vmatmul.msk.bf16.gmra.mxu2 %vm278_vm1, %v912_v59 }
 0x177   : > { %7520 = vmatmul.msk.bf16.gmra.mxu0 %vm278_vm1, %v8807_v12 }
 0x178   : > { %7537 = vmatmul.msk.bf16.gmra.mxu1 %vm278_vm1, %v910_v11  ;;  %v1204_v9 = vpop.f32.mrf.mxu3 }
 0x179   : > { %v1002_v7 = vpop.f32.mrf.mxu2  ;;  %v1281_v61 = vadd.f32 %v1204_v9, %v9033_v10  ;;  %v898_v9 = vld [vmem:[#allocation2 + $0x172] sm:$0xff] }
 0x17a   : > { %v9106_v18 = vadd.f32 %v1002_v7, %v8998_v34  ;;  %v897_v7 = vld [vmem:[#allocation2 + $0x16a] sm:$0xff] }
 0x17b   : > { %v1503_v20 = vadd.f32 %v1426_v2, %v1281_v61 }
 0x17c   : > { %v1433_v23 = vpop.f32.mrf.mxu0 }
 0x17d   : > { %v1655_v33 = vpop.f32.mrf.mxu1  ;;  %v9109_v41 = vadd.f32 %v1648_v19, %v1503_v20  ;;  %v914_v20 = vpack.c.bf16 %v898_v9, %v897_v7 }
 0x180   : > { %v1206_v39 = vpop.f32.mrf.mxu3 }
 0x181   : > { %v1004_v56 = vpop.f32.mrf.mxu2  ;;  %v1282_v11 = vadd.f32 %v1206_v39, %v9038_v48 }
 0x182   : > { %v9112_v12 = vadd.f32 %v1004_v56, %v9005_v29 }
 0x183   : > { %v1504_v22 = vadd.f32 %v1428_v57, %v1282_v11  ;;  %v1756_v11 = vld [vmem:[#allocation2 + $0x30] sm:$0xff] }
 0x184   : > { %v1436_v34 = vpop.f32.mrf.mxu0 }
 0x185   : > { %v1658_v38 = vpop.f32.mrf.mxu1  ;;  %v9115_v16 = vadd.f32 %v1650_v6, %v1504_v22  ;;  %7503 = vmatmul.msk.bf16.gmra.mxu3 %vm278_vm1, %v8809_v13  ;;  %v1757_v22 = vld [vmem:[#allocation2 + $0x38] sm:$0xff] }
 0x186   : > { %7490 = vmatmul.msk.bf16.gmra.mxu2 %vm278_vm1, %v913_v55 }
 0x187   : > { %7521 = vmatmul.msk.bf16.gmra.mxu0 %vm278_vm1, %v8829_v30 }
 0x188   : > { %7538 = vmatmul.msk.bf16.gmra.mxu1 %vm278_vm1, %v911_v63  ;;  %v1209_v29 = vpop.f32.mrf.mxu3 }
 0x189   : > { %v1007_v2 = vpop.f32.mrf.mxu2  ;;  %v1283_v48 = vadd.f32 %v1209_v29, %v9051_v44  ;;  %v8218_v44 = vld [vmem:[%s11991_s3 + $0x30] sm:$0xff]  ;;  %v1788_v29 = vpack.c.bf16 %v1757_v22, %v1756_v11 }
 0x18a   : > { %v9124_v10 = vadd.f32 %v1007_v2, %v9012_v58  ;;  %2777 = vmatpush.bf16.msra.mxu1 %v8218_v44  ;;  %v1759_v44 = vld [vmem:[#allocation2 + $0x50] sm:$0xff] }
 0x18b   : > { %v1505_v19 = vadd.f32 %v1431_v37, %v1283_v48 }
 0x18c   : > { %v1438_v57 = vpop.f32.mrf.mxu0 }
 0x18d   : > { %v1660_v6 = vpop.f32.mrf.mxu1  ;;  %v9127_v54 = vadd.f32 %v1653_v40, %v1505_v19 }
 0x190   : > { %v1211_v61 = vpop.f32.mrf.mxu3 }
 0x191   : > { %v1009_v13 = vpop.f32.mrf.mxu2  ;;  %v1284_v63 = vadd.f32 %v1211_v61, %v9058_v1 }
 0x192   : > { %v9130_v30 = vadd.f32 %v1009_v13, %v9020_v50 }
 0x193   : > { %v1506_v3 = vadd.f32 %v1433_v23, %v1284_v63 }
 0x194   : > { %v1441_v58 = vpop.f32.mrf.mxu0 }
 0x195   : > { %v1663_v36 = vpop.f32.mrf.mxu1  ;;  %v9133_v56 = vadd.f32 %v1655_v33, %v1506_v3  ;;  %7504 = vmatmul.msk.bf16.gmra.mxu3 %vm278_vm1, %v8831_v31 }
 0x196   : > { %7491 = vmatmul.msk.bf16.gmra.mxu2 %vm278_vm1, %v914_v20 }
 0x197   : > { %7522 = vmatmul.msk.bf16.gmra.mxu0 %vm278_vm1, %v8851_v52 }
 0x198   : > { %7539 = vmatmul.msk.bf16.gmra.mxu1 %vm278_vm1, %v912_v59  ;;  %v1214_v1 = vpop.f32.mrf.mxu3  ;;  %v8391_v59 = vld [vmem:[%s8723_s23 + $0x78] sm:$0xff]  }
 0x199   : > { %v1012_v50 = vpop.f32.mrf.mxu2  ;;  %v1285_v40 = vadd.f32 %v1214_v1, %v9072_v62  ;;  %v8311_v19 = vunpack.c.l.bf16 %v8391_v59  ;;  %v8312_v7 = vunpack.c.h.bf16 %v8391_v59 }
 0x19a   : > { %v9145_v37 = vadd.f32 %v1012_v50, %v9027_v14 }
 0x19b   : > { %v1507_v23 = vadd.f32 %v1436_v34, %v1285_v40  ;;  %429 = vst.msk [vmem:[#allocation2 + $0x181] sm:$0xff] %vm278_vm1, %v8311_v19 }
 0x19c   : > { %v1443_v31 = vpop.f32.mrf.mxu0  ;;  %430 = vst.msk [vmem:[#allocation2 + $0x189] sm:$0xff] %vm278_vm1, %v8312_v7 }
 0x19d   : > { %v9148_v33 = vpop.f32.mrf.mxu1  ;;  %v9150_v39 = vadd.f32 %v1658_v38, %v1507_v23 }
 0x1a0   : > { %v1216_v2 = vpop.f32.mrf.mxu3 }
 0x1a1   : > { %v1014_v52 = vpop.f32.mrf.mxu2  ;;  %v1286_v14 = vadd.f32 %v1216_v2, %v9077_v35  ;;  %v1761_v2 = vld [vmem:[#allocation2 + $0x68] sm:$0xff] }
 0x1a2   : > { %v9154_v48 = vadd.f32 %v1014_v52, %v9035_v24 }
 0x1a3   : > { %v1508_v62 = vadd.f32 %v1438_v57, %v1286_v14  ;;  %v1342_v14 = vld [vmem:[#allocation2 + $0x189] sm:$0xff] }
 0x1a4   : > { %v1446_v34 = vpop.f32.mrf.mxu0  ;;  %v1564_v19 = vld [vmem:[#allocation2 + $0x18a] sm:$0xff] }
 0x1a5   : > { %v1668_v9 = vpop.f32.mrf.mxu1  ;;  %v9159_v38 = vadd.f32 %v1660_v6, %v1508_v62  ;;  %7505 = vmatmul.msk.bf16.gmra.mxu3 %vm278_vm1, %v8853_v53  ;;  %v1758_v53 = vld [vmem:[#allocation2 + $0x48] sm:$0xff] }
 0x1a6   : > { %7544 = vmatmul.msk.bf16.vlgmr.msra.gmra.mxu2 %vm278_vm1, %v1788_v29  ;;  %v1789_v40 = vpack.c.bf16 %v1759_v44, %v1758_v53  ;;  %v1341_v29 = vld [vmem:[#allocation2 + $0x181] sm:$0xff] }
 0x1a7   : > { %7523 = vmatmul.msk.bf16.gmra.mxu0 %vm278_vm1, %v8870_v8 }
 0x1a8   : > { %7540 = vmatmul.msk.bf16.gmra.mxu1 %vm278_vm1, %v913_v55  ;;  %v1219_v35 = vpop.f32.mrf.mxu3 }
 0x1a9   : > { %v1017_v24 = vpop.f32.mrf.mxu2  ;;  %v1287_v13 = vadd.f32 %v1219_v35, %v9086_v46 }
 0x1aa   : > { %v9168_v57 = vadd.f32 %v1017_v24, %v9043_v25 }
 0x1ab   : > { %v1509_v61 = vadd.f32 %v1441_v58, %v1287_v13 }
 0x1ac   : > { %v1448_v6 = vpop.f32.mrf.mxu0 }
 0x1ad   : > { %v9171_v63 = vpop.f32.mrf.mxu1  ;;  %v9173_v3 = vadd.f32 %v1663_v36, %v1509_v61 }
 0x1b0   : > { %v1221_v1 = vpop.f32.mrf.mxu3 }
 0x1b1   : > { %v1019_v50 = vpop.f32.mrf.mxu2  ;;  %v1288_v55 = vadd.f32 %v1221_v1, %v9095_v4  ;;  %v1120_v1 = vld [vmem:[#allocation2 + $0x188] sm:$0xff] }
 0x1b2   : > { %v9176_v8 = vadd.f32 %v1019_v50, %v9053_v43 }
 0x1b3   : > { %v9179_v25 = vadd.f32 %v1443_v31, %v1288_v55  ;;  %v1762_v55 = vld [vmem:[#allocation2 + $0x78] sm:$0xff] }
 0x1b4   : > { %v1451_v23 = vpop.f32.mrf.mxu0 }
 0x1b5   : > { %v1673_v46 = vpop.f32.mrf.mxu1  ;;  %7506 = vmatmul.msk.bf16.gmra.mxu3 %vm278_vm1, %v8904_v51  ;;  %v1760_v51 = vld [vmem:[#allocation2 + $0x60] sm:$0xff] }
 0x1b6   : > { %7545 = vmatmul.msk.bf16.gmra.mxu2 %vm278_vm1, %v1789_v40  ;;  %v1763_v40 = vld [vmem:[#allocation2 + $0x80] sm:$0xff] }
 0x1b7   : > { %7524 = vmatmul.msk.bf16.gmra.mxu0 %vm278_vm1, %v8889_v28 }
 0x1b8   : > { %7541 = vmatmul.msk.bf16.gmra.mxu1 %vm278_vm1, %v914_v20  ;;  %v1224_v43 = vpop.f32.mrf.mxu3  ;;  %v1563_v20 = vld [vmem:[#allocation2 + $0x182] sm:$0xff] }
 0x1b9   : > { %v1022_v58 = vpop.f32.mrf.mxu2  ;;  %v1289_v4 = vadd.f32 %v1224_v43, %v9106_v18  ;;  %v1790_v18 = vpack.c.bf16 %v1761_v2, %v1760_v51  ;;  %v1580_v24 = vpack.c.bf16 %v1564_v19, %v1563_v20 }
 0x1ba   : > { %v9188_v36 = vadd.f32 %v1022_v58, %v8947_v32 }
 0x1bb   : > { %v1511_v31 = vadd.f32 %v1446_v34, %v1289_v4  ;;  %v1358_v34 = vpack.c.bf16 %v1342_v14, %v1341_v29  ;;  %v2200_v4 = vld [vmem:[#allocation2 + $0x32] sm:$0xff] }
 0x1bc   : > { %v1453_v11 = vpop.f32.mrf.mxu0 }
 0x1bd   : > { %v9191_v22 = vpop.f32.mrf.mxu1  ;;  %v9193_v52 = vadd.f32 %v1668_v9, %v1511_v31  ;;  %v2201_v31 = vld [vmem:[#allocation2 + $0x3a] sm:$0xff] }
 0x1c0   : > { %v1226_v28 = vpop.f32.mrf.mxu3 }
 0x1c1   : > { %v1024_v59 = vpop.f32.mrf.mxu2  ;;  %v1290_v32 = vadd.f32 %v1226_v28, %v9112_v12 }
 0x1c2   : > { %v9196_v7 = vadd.f32 %v1024_v59, %v8951_v49 }
 0x1c3   : > { %v9199_v62 = vadd.f32 %v1448_v6, %v1290_v32 }
 0x1c4   : > { %v1456_v9 = vpop.f32.mrf.mxu0 }
 0x1c5   : > { %v1678_v35 = vpop.f32.mrf.mxu1  ;;  %7507 = vmatmul.msk.bf16.gmra.mxu3 %vm278_vm1, %v8937_v21  ;;  %v1119_v21 = vld [vmem:[#allocation2 + $0x180] sm:$0xff] }
 0x1c6   : > { %7546 = vmatmul.msk.bf16.gmra.mxu2 %vm278_vm1, %v1790_v18 }
 0x1c7   : > { %7525 = vmatmul.msk.bf16.gmra.mxu0 %vm278_vm1, %v1358_v34  ;;  %v1764_v34 = vld [vmem:[#allocation2 + $0x90] sm:$0xff] }
 0x1c8   : > { %7542 = vmatmul.msk.bf16.gmra.mxu1 %vm278_vm1, %v1580_v24  ;;  %v1229_v13 = vpop.f32.mrf.mxu3  ;;  %v1765_v24 = vld [vmem:[#allocation2 + $0x98] sm:$0xff] }
 0x1c9   : > { %v1027_v49 = vpop.f32.mrf.mxu2  ;;  %v1291_v61 = vadd.f32 %v1229_v13, %v9124_v10  ;;  %v9218_v10 = vpack.c.bf16 %v1120_v1, %v1119_v21  ;;  %v1979_v13 = vld [vmem:[#allocation2 + $0x39] sm:$0xff]  ;;  %v2202_v21 = vld [vmem:[#allocation2 + $0x4a] sm:$0xff] }
 0x1ca   : > { %v9207_v12 = vadd.f32 %v1027_v49, %v8961_v0  ;;  %v1978_v49 = vld [vmem:[#allocation2 + $0x31] sm:$0xff] }
 0x1cb   : > { %v1513_v6 = vadd.f32 %v1451_v23, %v1291_v61  ;;  %v1791_v23 = vpack.c.bf16 %v1763_v40, %v1762_v55  ;;  %v2203_v1 = vld [vmem:[#allocation2 + $0x52] sm:$0xff] }
 0x1cc   : > { %v1458_v53 = vpop.f32.mrf.mxu0 }
 0x1cd   : > { %v9210_v44 = vpop.f32.mrf.mxu1  ;;  %v9212_v50 = vadd.f32 %v1673_v46, %v1513_v6  ;;  %v2232_v46 = vpack.c.bf16 %v2201_v31, %v2200_v4 }
 0x1d0   : > { %v1231_v43 = vpop.f32.mrf.mxu3 }
 0x1d1   : > { %v1029_v58 = vpop.f32.mrf.mxu2  ;;  %v1292_v0 = vadd.f32 %v1231_v43, %v9130_v30 }
 0x1d2   : > { %v9215_v51 = vadd.f32 %v1029_v58, %v8965_v42  ;;  %v8217_v42 = vld [vmem:[%s11991_s3 + $0x28] sm:$0xff]  ;;  %v2233_v58 = vpack.c.bf16 %v2203_v1, %v2202_v21 }
 0x1d3   : > { %v9220_v2 = vadd.f32 %v1453_v11, %v1292_v0  ;;  %2778 = vmatpush.bf16.msra.mxu1 %v8217_v42  ;;  %v1766_v42 = vld [vmem:[#allocation2 + $0xa8] sm:$0xff] }
 0x1d4   : > { %v1461_v29 = vpop.f32.mrf.mxu0 }
 0x1d5   : > { %v1683_v59 = vpop.f32.mrf.mxu1  ;;  %7508 = vmatmul.msk.bf16.gmra.mxu3 %vm278_vm1, %v9218_v10 }
 0x1d6   : > { %7547 = vmatmul.msk.bf16.gmra.mxu2 %vm278_vm1, %v1791_v23 }
 0x1d7   : > { %7578 = vmatmul.msk.bf16.vlgmr.msra.gmra.mxu0 %vm278_vm1, %v2232_v46 }
 0x1d8   : > { %v1234_v28 = vpop.f32.mrf.mxu3 }
 0x1d9   : > { %v1032_v30 = vpop.f32.mrf.mxu2  ;;  %v1293_v14 = vadd.f32 %v1234_v28, %v9145_v37  ;;  %v1792_v37 = vpack.c.bf16 %v1765_v24, %v1764_v34  ;;  %v1980_v28 = vld [vmem:[#allocation2 + $0x49] sm:$0xff] }
 0x1da   : > { %v9230_v11 = vadd.f32 %v1032_v30, %v8975_v27  ;;  %v1767_v30 = vld [vmem:[#allocation2 + $0xb0] sm:$0xff]  ;;  %v2204_v24 = vld [vmem:[#allocation2 + $0x62] sm:$0xff] }
 0x1db   : > { %v1515_v20 = vadd.f32 %v1456_v9, %v1293_v14  ;;  %v2010_v9 = vpack.c.bf16 %v1979_v13, %v1978_v49  ;;  %v1981_v14 = vld [vmem:[#allocation2 + $0x51] sm:$0xff] }
 0x1dc   : > { %v1463_v19 = vpop.f32.mrf.mxu0  ;;  %v2205_v49 = vld [vmem:[#allocation2 + $0x6a] sm:$0xff] }
 0x1dd   : > { %v9233_v32 = vpop.f32.mrf.mxu1  ;;  %v9235_v18 = vadd.f32 %v1678_v35, %v1515_v20 }
 0x1e0   : > { %v1236_v6 = vpop.f32.mrf.mxu3 }
 0x1e1   : > { %v1034_v61 = vpop.f32.mrf.mxu2  ;;  %v1294_v27 = vadd.f32 %v1236_v6, %v9154_v48  ;;  %v2234_v6 = vpack.c.bf16 %v2205_v49, %v2204_v24 }
 0x1e2   : > { %v9238_v55 = vadd.f32 %v1034_v61, %v8979_v60 }
 0x1e3   : > { %v9241_v40 = vadd.f32 %v1458_v53, %v1294_v27 }
 0x1e4   : > { %v1466_v35 = vpop.f32.mrf.mxu0 }
 0x1e5   : > { %v1688_v43 = vpop.f32.mrf.mxu1  ;;  %7561 = vmatmul.msk.bf16.vlgmr.msrb.gmra.mxu3 %vm278_vm1, %v2010_v9 }
 0x1e6   : > { %7548 = vmatmul.msk.bf16.gmra.mxu2 %vm278_vm1, %v1792_v37 }
 0x1e7   : > { %7579 = vmatmul.msk.bf16.gmra.mxu0 %vm278_vm1, %v2233_v58  ;;  %v1768_v58 = vld [vmem:[#allocation2 + $0xc0] sm:$0xff] }
 0x1e8   : > { %v1239_v31 = vpop.f32.mrf.mxu3 }
 0x1e9   : > { %v1037_v4 = vpop.f32.mrf.mxu2  ;;  %v1295_v48 = vadd.f32 %v1239_v31, %v9168_v57  ;;  %v1793_v57 = vpack.c.bf16 %v1767_v30, %v1766_v42  ;;  %v1982_v31 = vld [vmem:[#allocation2 + $0x61] sm:$0xff] }
 0x1ea   : > { %v9247_v60 = vadd.f32 %v1037_v4, %v8989_v5  ;;  %v1769_v4 = vld [vmem:[#allocation2 + $0xc8] sm:$0xff] }
 0x1eb   : > { %v1517_v0 = vadd.f32 %v1461_v29, %v1295_v48  ;;  %v2011_v29 = vpack.c.bf16 %v1981_v14, %v1980_v28  ;;  %v1983_v48 = vld [vmem:[#allocation2 + $0x69] sm:$0xff]  ;;  %v2206_v28 = vld [vmem:[#allocation2 + $0x7a] sm:$0xff] }
 0x1ec   : > { %v1468_v23 = vpop.f32.mrf.mxu0  ;;  %v2207_v14 = vld [vmem:[#allocation2 + $0x82] sm:$0xff] }
 0x1ed   : > { %v9250_v53 = vpop.f32.mrf.mxu1  ;;  %v9252_v46 = vadd.f32 %v1683_v59, %v1517_v0 }
 0x1f0   : > { %v1241_v34 = vpop.f32.mrf.mxu3 }
 0x1f1   : > { %v1039_v20 = vpop.f32.mrf.mxu2  ;;  %v1296_v5 = vadd.f32 %v1241_v34, %v9176_v8 }
 0x1f2   : > { %v9255_v13 = vadd.f32 %v1039_v20, %v8993_v17  ;;  %v12062_v20 = vld [vmem:[#allocation7_spill] sm:$0xff] }
 0x1f3   : > { %v9258_v61 = vadd.f32 %v1463_v19, %v1296_v5 }
 0x1f4   : > { %v1471_v59 = vpop.f32.mrf.mxu0 }
 0x1f5   : > { %7562 = vmatmul.msk.bf16.gmra.mxu3 %vm278_vm1, %v2011_v29  ;;  %v1693_v21 = vpop.f32.mrf.mxu1  ;;  %v12063_v29 = vld [vmem:[#allocation8_spill] sm:$0xff] }
 0x1f6   : > { %7549 = vmatmul.msk.bf16.gmra.mxu2 %vm278_vm1, %v1793_v57 }
 0x1f7   : > { %7580 = vmatmul.msk.bf16.gmra.mxu0 %vm278_vm1, %v2234_v6 }
 0x1f8   : > { %v1244_v27 = vpop.f32.mrf.mxu3 }
 0x1f9   : > { %v1042_v1 = vpop.f32.mrf.mxu2  ;;  %v1297_v8 = vadd.f32 %v1244_v27, %v9188_v36  ;;  %v1794_v36 = vpack.c.bf16 %v1769_v4, %v1768_v58  ;;  %v1771_v58 = vld [vmem:[#allocation2 + $0xe0] sm:$0xff] }
 0x1fa   : > { %v9264_v17 = vadd.f32 %v1042_v1, %v9003_v47  ;;  %v1984_v4 = vld [vmem:[#allocation2 + $0x79] sm:$0xff] }
 0x1fb   : > { %v1519_v37 = vadd.f32 %v1466_v35, %v1297_v8  ;;  %v2012_v35 = vpack.c.bf16 %v1983_v48, %v1982_v31  ;;  %v1985_v31 = vld [vmem:[#allocation2 + $0x81] sm:$0xff] }
 0x1fc   : > { %v1473_v9 = vpop.f32.mrf.mxu0 }
 0x1fd   : > { %v9267_v19 = vadd.f32 %v1688_v43, %v1519_v37  ;;  %v9269_v0 = vpop.f32.mrf.mxu1  ;;  %v2235_v43 = vpack.c.bf16 %v2207_v14, %v2206_v28  ;;  %v1770_v37 = vld [vmem:[#allocation2 + $0xd8] sm:$0xff]  ;;  %v12064_v14 = vld [vmem:[#allocation9_spill] sm:$0xff] }
 0x1fe   : > { %v2209_v28 = vld [vmem:[#allocation2 + $0x9a] sm:$0xff] }
 0x200   : > { %v1246_v30 = vpop.f32.mrf.mxu3 }
 0x201   : > { %v1044_v42 = vpop.f32.mrf.mxu2  ;;  %v1298_v47 = vadd.f32 %v1246_v30, %v9196_v7  ;;  %v2208_v30 = vld [vmem:[#allocation2 + $0x92] sm:$0xff] }
 0x202   : > { %v9272_v34 = vadd.f32 %v1044_v42, %v12062_v20 }
 0x203   : > { %v9275_v24 = vadd.f32 %v1468_v23, %v1298_v47 }
 0x204   : > { %v1476_v49 = vpop.f32.mrf.mxu0 }
 0x205   : > { %7563 = vmatmul.msk.bf16.gmra.mxu3 %vm278_vm1, %v2012_v35  ;;  %v1698_v7 = vpop.f32.mrf.mxu1 }
 0x206   : > { %7550 = vmatmul.msk.bf16.gmra.mxu2 %vm278_vm1, %v1794_v36  ;;  %v1795_v36 = vpack.c.bf16 %v1771_v58, %v1770_v37 }
 0x207   : > { %7581 = vmatmul.msk.bf16.gmra.mxu0 %vm278_vm1, %v2235_v43 }
 0x208   : > { %v1249_v57 = vpop.f32.mrf.mxu3 }
 0x209   : > { %v1047_v5 = vpop.f32.mrf.mxu2  ;;  %v1299_v1 = vadd.f32 %v1249_v57, %v9207_v12  ;;  %v2013_v12 = vpack.c.bf16 %v1985_v31, %v1984_v4  ;;  %v1772_v4 = vld [vmem:[#allocation2 + $0xf0] sm:$0xff] }
 0x20a   : > { %v9281_v6 = vadd.f32 %v1047_v5, %v12063_v29  ;;  %v8216_v5 = vld [vmem:[%s11991_s3 + $0x20] sm:$0xff] }
 0x20b   : > { %v1521_v27 = vadd.f32 %v1471_v59, %v1299_v1  ;;  %v2236_v59 = vpack.c.bf16 %v2209_v28, %v2208_v30  ;;  %2779 = vmatpush.bf16.msra.mxu1 %v8216_v5  ;;  %v1987_v30 = vld [vmem:[#allocation2 + $0x99] sm:$0xff] }
 0x20c   : > { %v1478_v8 = vpop.f32.mrf.mxu0 }
 0x20d   : > { %v9284_v23 = vadd.f32 %v1693_v21, %v1521_v27  ;;  %v9292_v21 = vpop.f32.mrf.mxu1 }
 0x210   : > { %v1251_v42 = vpop.f32.mrf.mxu3 }
 0x211   : > { %v1049_v48 = vpop.f32.mrf.mxu2  ;;  %v1300_v47 = vadd.f32 %v1251_v42, %v9215_v51  ;;  %v8215_v51 = vld [vmem:[%s11991_s3 + $0x18] sm:$0xff] }
 0x212   : > { %v9287_v20 = vadd.f32 %v1049_v48, %v12064_v14  ;;  %2937 = vmatpush.bf16.msrb.mxu2 %v8215_v51  ;;  %v1773_v48 = vld [vmem:[#allocation2 + $0xf8] sm:$0xff] }
 0x213   : > { %v9290_v35 = vadd.f32 %v1473_v9, %v1300_v47  ;;  %v1986_v42 = vld [vmem:[#allocation2 + $0x91] sm:$0xff]  ;;  %v1796_v5 = vpack.c.bf16 %v1773_v48, %v1772_v4 }
 0x214   : > { %v1481_v43 = vpop.f32.mrf.mxu0  ;;  %v2210_v47 = vld [vmem:[#allocation2 + $0xaa] sm:$0xff] }
 0x215   : > { %7564 = vmatmul.msk.bf16.gmra.mxu3 %vm278_vm1, %v2013_v12  ;;  %v1703_v31 = vpop.f32.mrf.mxu1  ;;  %v12065_v12 = vld [vmem:[#allocation10_spill] sm:$0xff] }
 0x216   : > { %7551 = vmatmul.msk.bf16.gmra.mxu2 %vm278_vm1, %v1795_v36  ;;  %v2211_v36 = vld [vmem:[#allocation2 + $0xb2] sm:$0xff] }
 0x217   : > { %7582 = vmatmul.msk.bf16.gmra.mxu0 %vm278_vm1, %v2236_v59 }
 0x218   : > { %v1254_v57 = vpop.f32.mrf.mxu3 }
 0x219   : > { %v1052_v9 = vpop.f32.mrf.mxu2  ;;  %v1301_v1 = vadd.f32 %v1254_v57, %v9230_v11  ;;  %v2014_v11 = vpack.c.bf16 %v1987_v30, %v1986_v42  ;;  %v1775_v42 = vld [vmem:[#allocation2 + $0x110] sm:$0xff] }
 0x21a   : > { %v9304_v29 = vadd.f32 %v1052_v9, %v9069_v26  ;;  %v1988_v30 = vld [vmem:[#allocation2 + $0xa9] sm:$0xff] }
 0x21b   : > { %v1523_v27 = vadd.f32 %v1476_v49, %v1301_v1 }
 0x21c   : > { %v1483_v37 = vpop.f32.mrf.mxu0 }
 0x21d   : > { %v9307_v58 = vadd.f32 %v1698_v7, %v1523_v27  ;;  %v2237_v7 = vpack.c.bf16 %v2211_v36, %v2210_v47  ;;  %v9318_v9 = vpop.f32.mrf.mxu1  ;;  %v2212_v36 = vld [vmem:[#allocation2 + $0xc2] sm:$0xff] }
 0x21e   : > { %12066 = vst [vmem:[#allocation7_spill] sm:$0xff] %v9318_v9 }
 0x220   : > { %v1256_v14 = vpop.f32.mrf.mxu3 }
 0x221   : > { %v1054_v28 = vpop.f32.mrf.mxu2  ;;  %v1302_v26 = vadd.f32 %v1256_v14, %v9238_v55 }
 0x222   : > { %v9310_v59 = vadd.f32 %v1054_v28, %v12065_v12  ;;  %v1989_v28 = vld [vmem:[#allocation2 + $0xb1] sm:$0xff] }
 0x223   : > { %v9313_v49 = vadd.f32 %v1478_v8, %v1302_v26  ;;  %v1774_v8 = vld [vmem:[#allocation2 + $0x108] sm:$0xff] }
 0x224   : > { %v1486_v51 = vpop.f32.mrf.mxu0  ;;  %v2213_v12 = vld [vmem:[#allocation2 + $0xca] sm:$0xff] }
 0x225   : > { %7565 = vmatmul.msk.bf16.gmra.mxu3 %vm278_vm1, %v2014_v11  ;;  %v2015_v11 = vpack.c.bf16 %v1989_v28, %v1988_v30  ;;  %v1777_v30 = vld [vmem:[#allocation2 + $0x128] sm:$0xff] }
 0x226   : > { %7552 = vmatmul.msk.bf16.gmra.mxu2 %vm278_vm1, %v1796_v5  ;;  %v1797_v5 = vpack.c.bf16 %v1775_v42, %v1774_v8  ;;  %v1990_v28 = vld [vmem:[#allocation2 + $0xc1] sm:$0xff] }
 0x227   : > { %7583 = vmatmul.msk.bf16.gmra.mxu0 %vm278_vm1, %v2237_v7  ;;  %v1708_v7 = vpop.f32.mrf.mxu1 }
 0x228   : > { %v1259_v57 = vpop.f32.mrf.mxu3 }
 0x229   : > { %v9320_v1 = vpop.f32.mrf.mxu2  ;;  %v1303_v27 = vadd.f32 %v1259_v57, %v9247_v60  ;;  %v2238_v60 = vpack.c.bf16 %v2213_v12, %v2212_v36 }
 0x22b   : > { %v1525_v55 = vadd.f32 %v1481_v43, %v1303_v27 }
 0x22c   : > { %v1488_v4 = vpop.f32.mrf.mxu0 }
 0x22d   : > { %v9323_v48 = vadd.f32 %v1703_v31, %v1525_v55 }
 0x230   : > { %v1261_v14 = vpop.f32.mrf.mxu3 }
 0x231   : > { %v9325_v47 = vpop.f32.mrf.mxu2  ;;  %v1304_v26 = vadd.f32 %v1261_v14, %v9255_v13  ;;  %v9336_v13 = vpop.f32.mrf.mxu1  ;;  %v1991_v14 = vld [vmem:[#allocation2 + $0xc9] sm:$0xff] }
 0x232   : > { %12068 = vst [vmem:[#allocation9_spill] sm:$0xff] %v9336_v13 }
 0x233   : > { %v9328_v9 = vadd.f32 %v1483_v37, %v1304_v26  ;;  %v1776_v37 = vld [vmem:[#allocation2 + $0x120] sm:$0xff] }
 0x234   : > { %v1491_v43 = vpop.f32.mrf.mxu0  ;;  %v2214_v26 = vld [vmem:[#allocation2 + $0xda] sm:$0xff] }
 0x235   : > { %12067 = vst [vmem:[#allocation8_spill] sm:$0xff] %v9328_v9  ;;  %7566 = vmatmul.msk.bf16.gmra.mxu3 %vm278_vm1, %v2015_v11  ;;  %v2016_v9 = vpack.c.bf16 %v1991_v14, %v1990_v28  ;;  %v1778_v28 = vld [vmem:[#allocation2 + $0x138] sm:$0xff] }
 0x236   : > { %7553 = vmatmul.msk.bf16.gmra.mxu2 %vm278_vm1, %v1797_v5  ;;  %v2215_v5 = vld [vmem:[#allocation2 + $0xe2] sm:$0xff]  ;;  %v1992_v14 = vld [vmem:[#allocation2 + $0xd9] sm:$0xff] }
 0x237   : > { %7584 = vmatmul.msk.bf16.gmra.mxu0 %vm278_vm1, %v2238_v60  ;;  %v1798_v60 = vpack.c.bf16 %v1777_v30, %v1776_v37 }
 0x238   : > { %v1264_v31 = vpop.f32.mrf.mxu3 }
 0x239   : > { %v9333_v57 = vpop.f32.mrf.mxu2  ;;  %v1305_v27 = vadd.f32 %v1264_v31, %v9264_v17  ;;  %v12069_v17 = vmov 0.0  }
 0x23a   : > { %436 = vst.msk [vmem:[#allocation3 + $0x18] sm:$0xff] %vm431_vm3, %v12069_v17 }
 0x23b   : > { %v1527_v55 = vadd.f32 %v1486_v51, %v1305_v27  ;;  %437 = vst.msk [vmem:[#allocation3 + $0x20] sm:$0xff] %vm431_vm3, %v12069_v17 }
 0x23c   : > { %v1493_v8 = vpop.f32.mrf.mxu0  ;;  %432 = vst.msk [vmem:[#allocation3] sm:$0xff] %vm431_vm3, %v12069_v17 }
 0x23d   : > { %v9338_v42 = vadd.f32 %v1708_v7, %v1527_v55  ;;  %v2239_v7 = vpack.c.bf16 %v2215_v5, %v2214_v26  ;;  %433 = vst.msk [vmem:[#allocation3 + $0x8] sm:$0xff] %vm431_vm3, %v12069_v17 }
 0x23e   : > { %439 = vst.msk [vmem:[#allocation3 + $0x30] sm:$0xff] %vm431_vm3, %v12069_v17 }
 0x23f   : > { %440 = vst.msk [vmem:[#allocation3 + $0x38] sm:$0xff] %vm431_vm3, %v12069_v17 }
 0x240   : > { %v1266_v36 = vpop.f32.mrf.mxu3  ;;  %442 = vst.msk [vmem:[#allocation3 + $0x48] sm:$0xff] %vm431_vm3, %v12069_v17 }
 0x241   : > { %v9340_v12 = vpop.f32.mrf.mxu2  ;;  %v1306_v11 = vadd.f32 %v1266_v36, %v9272_v34  ;;  %v1713_v34 = vpop.f32.mrf.mxu1  ;;  %443 = vst.msk [vmem:[#allocation3 + $0x50] sm:$0xff] %vm431_vm3, %v12069_v17  ;;  %v1993_v36 = vld [vmem:[#allocation2 + $0xe1] sm:$0xff] }
 0x242   : > { %445 = vst.msk [vmem:[#allocation3 + $0x60] sm:$0xff] %vm431_vm3, %v12069_v17 }
 0x243   : > { %v9345_v51 = vadd.f32 %v1488_v4, %v1306_v11  ;;  %446 = vst.msk [vmem:[#allocation3 + $0x68] sm:$0xff] %vm431_vm3, %v12069_v17  ;;  %v2216_v11 = vld [vmem:[#allocation2 + $0xf2] sm:$0xff] }
 0x244   : > { %v1496_v31 = vpop.f32.mrf.mxu0  ;;  %448 = vst.msk [vmem:[#allocation3 + $0x78] sm:$0xff] %vm431_vm3, %v12069_v17 }
 0x245   : > { %7567 = vmatmul.msk.bf16.gmra.mxu3 %vm278_vm1, %v2016_v9  ;;  %449 = vst.msk [vmem:[#allocation3 + $0x80] sm:$0xff] %vm431_vm3, %v12069_v17 }
 0x246   : > { %7554 = vmatmul.msk.bf16.gmra.mxu2 %vm278_vm1, %v1798_v60  ;;  %451 = vst.msk [vmem:[#allocation3 + $0x90] sm:$0xff] %vm431_vm3, %v12069_v17  ;;  %v2217_v60 = vld [vmem:[#allocation2 + $0xfa] sm:$0xff] }
 0x247   : > { %7585 = vmatmul.msk.bf16.gmra.mxu0 %vm278_vm1, %v2239_v7  ;;  %452 = vst.msk [vmem:[#allocation3 + $0x98] sm:$0xff] %vm431_vm3, %v12069_v17 }
 0x248   : > { %v1269_v4 = vpop.f32.mrf.mxu3  ;;  %454 = vst.msk [vmem:[#allocation3 + $0xa8] sm:$0xff] %vm431_vm3, %v12069_v17 }
 0x249   : > { %v9360_v27 = vpop.f32.mrf.mxu2  ;;  %v1307_v9 = vadd.f32 %v1269_v4, %v9281_v6  ;;  %v1779_v6 = vld [vmem:[#allocation2 + $0x140] sm:$0xff]  ;;  %v2017_v4 = vpack.c.bf16 %v1993_v36, %v1992_v14  ;;  %455 = vst.msk [vmem:[#allocation3 + $0xb0] sm:$0xff] %vm431_vm3, %v12069_v17  ;;  %v8227_v14 = vld [vmem:[%s11991_s3 + $0x78] sm:$0xff]  ;;  %v8214_v36 = vld [vmem:[%s11991_s3 + $0x10] sm:$0xff] }
 0x24a   : > { %457 = vst.msk [vmem:[#allocation3 + $0xc0] sm:$0xff] %vm431_vm3, %v12069_v17  ;;  %3405 = vmatpush.bf16.msrb.mxu0 %v8227_v14  ;;  %2938 = vmatpush.bf16.msrb.mxu2 %v8214_v36 }
 0x24b   : > { %v1529_v55 = vadd.f32 %v1491_v43, %v1307_v9  ;;  %v9381_v43 = vpop.f32.mrf.mxu1  ;;  %v8223_v9 = vld [vmem:[%s11991_s3 + $0x58] sm:$0xff]  ;;  %458 = vst.msk [vmem:[#allocation3 + $0xc8] sm:$0xff] %vm431_vm3, %v12069_v17 }
 0x24c   : > { %v9371_v37 = vpop.f32.mrf.mxu0  ;;  %12071 = vst [vmem:[#allocation11_spill] sm:$0xff] %v9381_v43  ;;  %v2240_v43 = vpack.c.bf16 %v2217_v60, %v2216_v11  ;;  %3155 = vmatpush.bf16.msra.mxu3 %v8223_v9  ;;  %v1780_v60 = vld [vmem:[#allocation2 + $0x150] sm:$0xff] }
 0x24d   : > { %v9375_v30 = vadd.f32 %v1713_v34, %v1529_v55  ;;  %v1799_v34 = vpack.c.bf16 %v1779_v6, %v1778_v28  ;;  %460 = vst.msk [vmem:[#allocation3 + $0xd8] sm:$0xff] %vm431_vm3, %v12069_v17 }
 0x24e   : > { %461 = vst.msk [vmem:[#allocation3 + $0xe0] sm:$0xff] %vm431_vm3, %v12069_v17 }
 0x24f   : > { %12070 = vst [vmem:[#allocation10_spill] sm:$0xff] %v9375_v30 }
 0x250   : > { %v1271_v26 = vpop.f32.mrf.mxu3  ;;  %463 = vst.msk [vmem:[#allocation3 + $0xf0] sm:$0xff] %vm431_vm3, %v12069_v17 }
 0x251   : > { %v9385_v5 = vpop.f32.mrf.mxu2  ;;  %v1308_v7 = vadd.f32 %v1271_v26, %v9287_v20  ;;  %464 = vst.msk [vmem:[#allocation3 + $0xf8] sm:$0xff] %vm431_vm3, %v12069_v17 }
 0x252   : > { %466 = vst.msk [vmem:[#allocation3 + $0x108] sm:$0xff] %vm431_vm3, %v12069_v17 }
 0x253   : > { %v9397_v55 = vadd.f32 %v1493_v8, %v1308_v7  ;;  %467 = vst.msk [vmem:[#allocation3 + $0x110] sm:$0xff] %vm431_vm3, %v12069_v17  ;;  %v1718_v6 = vpop.f32.mrf.mxu1  ;;  %v1781_v7 = vld [vmem:[#allocation2 + $0x158] sm:$0xff] }
 0x254   : > { %v9401_v30 = vpop.f32.mrf.mxu0  ;;  %469 = vst.msk [vmem:[#allocation3 + $0x120] sm:$0xff] %vm431_vm3, %v12069_v17  ;;  %v1800_v14 = vpack.c.bf16 %v1781_v7, %v1780_v60 }
 0x255   : > { %12072 = vst [vmem:[#allocation12_spill] sm:$0xff] %v9397_v55  ;;  %7568 = vmatmul.msk.bf16.gmra.mxu3 %vm278_vm1, %v2017_v4 }
 0x256   : > { %7555 = vmatmul.msk.bf16.gmra.mxu2 %vm278_vm1, %v1799_v34  ;;  %470 = vst.msk [vmem:[#allocation3 + $0x128] sm:$0xff] %vm431_vm3, %v12069_v17  ;;  %v1994_v34 = vld [vmem:[#allocation2 + $0xf1] sm:$0xff] }
 0x257   : > { %7586 = vmatmul.msk.bf16.gmra.mxu0 %vm278_vm1, %v2240_v43  ;;  %v8231_v43 = vld [vmem:[%s11991_s3 + $0x98] sm:$0xff]  ;;  %472 = vst.msk [vmem:[#allocation3 + $0x138] sm:$0xff] %vm431_vm3, %v12069_v17 }
 0x258   : > { %v1274_v20 = vpop.f32.mrf.mxu3  ;;  %473 = vst.msk [vmem:[#allocation3 + $0x140] sm:$0xff] %vm431_vm3, %v12069_v17  ;;  %3655 = vmatpush.bf16.msrb.mxu1 %v8231_v43 }
 0x259   : > { %v9414_v8 = vpop.f32.mrf.mxu2  ;;  %v1309_v28 = vadd.f32 %v1274_v20, %v9304_v29  ;;  %475 = vst.msk [vmem:[#allocation3 + $0x150] sm:$0xff] %vm431_vm3, %v12069_v17  ;;  %v2218_v20 = vld [vmem:[#allocation2 + $0x10a] sm:$0xff] }
 0x25a   : > { %476 = vst.msk [vmem:[#allocation3 + $0x158] sm:$0xff] %vm431_vm3, %v12069_v17 }
 0x25b   : > { %v1531_v29 = vadd.f32 %v1496_v31, %v1309_v28  ;;  %v1995_v31 = vld [vmem:[#allocation2 + $0xf9] sm:$0xff]  ;;  %478 = vst.msk [vmem:[#allocation3 + $0x168] sm:$0xff] %vm431_vm3, %v12069_v17 }
 0x25c   : > { %v9434_v26 = vpop.f32.mrf.mxu0  ;;  %v2219_v28 = vld [vmem:[#allocation2 + $0x112] sm:$0xff]  ;;  %v2018_v36 = vpack.c.bf16 %v1995_v31, %v1994_v34  ;;  %479 = vst.msk [vmem:[#allocation3 + $0x170] sm:$0xff] %vm431_vm3, %v12069_v17  ;;  %v9482_v31 = vld [vmem:[%s11990_s2] ss:$0 sm:$0xff] }
 0x25d   : > { %v9438_v11 = vadd.f32 %v1718_v6, %v1531_v29  ;;  %481 = vst.msk [vmem:[#allocation3 + $0x180] sm:$0xff] %vm431_vm3, %v12069_v17  ;;  %v2241_v29 = vpack.c.bf16 %v2219_v28, %v2218_v20 }
 0x25e   : > { %482 = vst.msk [vmem:[#allocation3 + $0x188] sm:$0xff] %vm431_vm3, %v12069_v17 }
 0x25f   : > { %12073 = vst [vmem:[#allocation13_spill] sm:$0xff] %v9438_v11 }
 0x260   : > { %v1276_v4 = vpop.f32.mrf.mxu3  ;;  %484 = vst.msk [vmem:[#allocation3 + $0x198] sm:$0xff] %vm431_vm3, %v12069_v17 }
 0x261   : > { %v9446_v9 = vpop.f32.mrf.mxu2  ;;  %v1310_v6 = vadd.f32 %v1276_v4, %v9310_v59  ;;  %485 = vst.msk [vmem:[#allocation3 + $0x1a0] sm:$0xff] %vm431_vm3, %v12069_v17 }
 0x262   : > { %435 = vst.msk [vmem:[#allocation3 + $0x10] sm:$0x3] %vm434_vm4, %v12069_v17 }
 0x263   : > { %v9456_v43 = vadd.f32 %v9371_v37, %v1310_v6  ;;  %v1946_v37 = vadd.f32 %v9320_v1, %v9091_v15  ;;  %438 = vst.msk [vmem:[#allocation3 + $0x28] sm:$0x3] %vm434_vm4, %v12069_v17  ;;  %v2643_v1 = vld [vmem:[#allocation3 + $0x1] sm:$0xff]  ;;  %v1782_v6 = vld [vmem:[#allocation2 + $0x168] sm:$0xff] }
 0x264   : > { %v9462_v59 = vpop.f32.mrf.mxu0  ;;  %441 = vst.msk [vmem:[#allocation3 + $0x40] sm:$0x3] %vm434_vm4, %v12069_v17 }
 0x265   : > { %12074 = vst [vmem:[#allocation14_spill] sm:$0xff] %v9456_v43  ;;  %7569 = vmatmul.msk.bf16.gmra.mxu3 %vm278_vm1, %v2018_v36  ;;  %v1996_v36 = vld [vmem:[#allocation2 + $0x109] sm:$0xff] }
 0x266   : > { %7556 = vmatmul.msk.bf16.gmra.mxu2 %vm278_vm1, %v1800_v14  ;;  %444 = vst.msk [vmem:[#allocation3 + $0x58] sm:$0x3] %vm434_vm4, %v12069_v17 }
 0x267   : > { %7587 = vmatmul.msk.bf16.gmra.mxu0 %vm278_vm1, %v2241_v29  ;;  %447 = vst.msk [vmem:[#allocation3 + $0x70] sm:$0x3] %vm434_vm4, %v12069_v17  ;;  %v1997_v29 = vld [vmem:[#allocation2 + $0x111] sm:$0xff] }
 0x268   : > { %v2088_v7 = vpop.f32.mrf.mxu3  ;;  %450 = vst.msk [vmem:[#allocation3 + $0x88] sm:$0x3] %vm434_vm4, %v12069_v17  ;;  %v2019_v11 = vpack.c.bf16 %v1997_v29, %v1996_v36 }
 0x269   : > { %v9475_v60 = vpop.f32.mrf.mxu2  ;;  %v2168_v34 = vadd.f32 %v2088_v7, %v1946_v37  ;;  %453 = vst.msk [vmem:[#allocation3 + $0xa0] sm:$0x3] %vm434_vm4, %v12069_v17  ;;  %v2644_v28 = vld [vmem:[#allocation3 + $0x9] sm:$0xff]  ;;  %v1947_v37 = vadd.f32 %v9325_v47, %v9097_v45 }
 0x26a   : > { %456 = vst.msk [vmem:[#allocation3 + $0xb8] sm:$0x3] %vm434_vm4, %v12069_v17  ;;  %v2675_v14 = vpack.c.bf16 %v2644_v28, %v2643_v1  ;;  %v2220_v1 = vld [vmem:[#allocation2 + $0x122] sm:$0xff]  ;;  %v2221_v28 = vld [vmem:[#allocation2 + $0x12a] sm:$0xff] }
 0x26b   : > { %v2390_v15 = vadd.f32 %v9401_v30, %v2168_v34  ;;  %459 = vst.msk [vmem:[#allocation3 + $0xd0] sm:$0x3] %vm434_vm4, %v12069_v17  ;;  %v1783_v30 = vld [vmem:[#allocation2 + $0x170] sm:$0xff]  ;;  %v2242_v55 = vpack.c.bf16 %v2221_v28, %v2220_v1  ;;  %v2222_v28 = vld [vmem:[#allocation2 + $0x13a] sm:$0xff] }
 0x26c   : > { %v9493_v4 = vpop.f32.mrf.mxu0  ;;  %462 = vst.msk [vmem:[#allocation3 + $0xe8] sm:$0x3] %vm434_vm4, %v12069_v17  ;;  %7618 = vmatmul.msk.bf16.vlgmr.msra.gmra.mxu1 %vm431_vm3, %v2675_v14  ;;  %v1801_v47 = vpack.c.bf16 %v1783_v30, %v1782_v6 }
 0x26d   : > { %v2426_v20 = vadd.f32 %v9482_v31, %v2390_v15  ;;  %465 = vst.msk [vmem:[#allocation3 + $0x100] sm:$0x3] %vm434_vm4, %v12069_v17 }
 0x26e   : > { %468 = vst.msk [vmem:[#allocation3 + $0x118] sm:$0x3] %vm434_vm4, %v12069_v17 }
 0x26f   : > { %vm2458_vm5 = vcmp.gt.f32.partialorder %v2426_v20, 0.0  ;;  %v2490_v7 = vmul.f32 0.2, %v2426_v20  ;;  %471 = vst.msk [vmem:[#allocation3 + $0x130] sm:$0x3] %vm434_vm4, %v12069_v17 }
 0x270   : > { %v2090_v15 = vpop.f32.mrf.mxu3  ;;  %474 = vst.msk [vmem:[#allocation3 + $0x148] sm:$0x3] %vm434_vm4, %v12069_v17 }
 0x271   : > { %v9507_v34 = vpop.f32.mrf.mxu2  ;;  %v2522_v43 = vsel %vm2458_vm5, %v2426_v20, %v2490_v7  ;;  %v2169_v45 = vadd.f32 %v2090_v15, %v1947_v37  ;;  %477 = vst.msk [vmem:[#allocation3 + $0x160] sm:$0x3] %vm434_vm4, %v12069_v17  ;;  %v1998_v37 = vld [vmem:[#allocation2 + $0x121] sm:$0xff]  ;;  %v1999_v7 = vld [vmem:[#allocation2 + $0x129] sm:$0xff] }
 0x272   : > { %2555 = vst.msk [vmem:[#allocation3 + $0x19] sm:$0xff] %vm431_vm3, %v2522_v43 }
 0x273   : > { %v2391_v14 = vadd.f32 %v9434_v26, %v2169_v45  ;;  %480 = vst.msk [vmem:[#allocation3 + $0x178] sm:$0x3] %vm434_vm4, %v12069_v17  ;;  %v1948_v26 = vadd.f32 %v9333_v57, %v9109_v41  ;;  %v2223_v45 = vld [vmem:[#allocation2 + $0x142] sm:$0xff] }
 0x274   : > { %v2320_v13 = vpop.f32.mrf.mxu0  ;;  %483 = vst.msk [vmem:[#allocation3 + $0x190] sm:$0x3] %vm434_vm4, %v12069_v17 }
 0x275   : > { %v2427_v20 = vadd.f32 %v9482_v31, %v2391_v14  ;;  %7570 = vmatmul.msk.bf16.gmra.mxu3 %vm278_vm1, %v2019_v11  ;;  %486 = vst.msk [vmem:[#allocation3 + $0x1a8] sm:$0x3] %vm434_vm4, %v12069_v17 }
 0x276   : > { %7557 = vmatmul.msk.bf16.gmra.mxu2 %vm278_vm1, %v1801_v47  ;;  %v8213_v47 = vld [vmem:[%s11991_s3 + $0x8] sm:$0xff] }
 0x277   : > { %vm2459_vm6 = vcmp.gt.f32.partialorder %v2427_v20, 0.0  ;;  %v2491_v43 = vmul.f32 0.2, %v2427_v20  ;;  %7588 = vmatmul.msk.bf16.gmra.mxu0 %vm278_vm1, %v2242_v55  ;;  %v1949_v55 = vadd.f32 %v9340_v12, %v9115_v16  ;;  %2939 = vmatpush.bf16.msrb.mxu2 %v8213_v47  ;;  %v2243_v12 = vpack.c.bf16 %v2223_v45, %v2222_v28  ;;  %v1786_v45 = vld [vmem:[#allocation2 + $0x198] sm:$0xff]  ;;  %v1787_v47 = vld [vmem:[#allocation2 + $0x1a0] sm:$0xff] }
 0x278   : > { %v2093_v30 = vpop.f32.mrf.mxu3 }
 0x279   : > { %v9531_v6 = vpop.f32.mrf.mxu2  ;;  %v2523_v11 = vsel %vm2459_vm6, %v2427_v20, %v2491_v43  ;;  %v2170_v36 = vadd.f32 %v2093_v30, %v1948_v26  ;;  %v2645_v20 = vld [vmem:[#allocation3 + $0x19] sm:$0xff]  ;;  %v2020_v43 = vpack.c.bf16 %v1999_v7, %v1998_v37 }
 0x27a   : > { %2556 = vst.msk [vmem:[#allocation3 + $0x21] sm:$0xff] %vm431_vm3, %v2523_v11 }
 0x27b   : > { %v2392_v29 = vadd.f32 %v9462_v59, %v2170_v36  ;;  %v8212_v36 = vld [vmem:[%s11991_s3] sm:$0xff] }
 0x27c   : > { %v2322_v41 = vpop.f32.mrf.mxu0  ;;  %2940 = vmatpush.bf16.msrb.mxu2 %v8212_v36 }
 0x27d   : > { %v2428_v57 = vadd.f32 %v9482_v31, %v2392_v29 }
 0x27f   : > { %vm2460_vm7 = vcmp.gt.f32.partialorder %v2428_v57, 0.0  ;;  %v2492_v15 = vmul.f32 0.2, %v2428_v57 }
 0x280   : > { %v2095_v1 = vpop.f32.mrf.mxu3 }
 0x281   : > { %v9538_v17 = vpop.f32.mrf.mxu2  ;;  %v2524_v59 = vsel %vm2460_vm7, %v2428_v57, %v2492_v15  ;;  %v2171_v14 = vadd.f32 %v2095_v1, %v1949_v55  ;;  %v2646_v26 = vld [vmem:[#allocation3 + $0x21] sm:$0xff]  ;;  %v1950_v57 = vadd.f32 %v9360_v27, %v9127_v54  ;;  %v2001_v54 = vld [vmem:[#allocation2 + $0x141] sm:$0xff]  ;;  %v1951_v27 = vadd.f32 %v9385_v5, %v9133_v56 }
 0x282   : > { %2557 = vst.msk [vmem:[#allocation3 + $0x31] sm:$0xff] %vm431_vm3, %v2524_v59  ;;  %v2676_v30 = vpack.c.bf16 %v2646_v26, %v2645_v20  ;;  %v2000_v59 = vld [vmem:[#allocation2 + $0x139] sm:$0xff]  ;;  %v8222_v56 = vld [vmem:[%s11991_s3 + $0x50] sm:$0xff] }
 0x283   : > { %v2393_v16 = vadd.f32 %v9493_v4, %v2171_v14  ;;  %3156 = vmatpush.bf16.msra.mxu3 %v8222_v56 }
 0x284   : > { %7619 = vmatmul.msk.bf16.gmra.mxu1 %vm431_vm3, %v2676_v30  ;;  %v2325_v11 = vpop.f32.mrf.mxu0  ;;  %v2225_v30 = vld [vmem:[#allocation2 + $0x15a] sm:$0xff] }
 0x285   : > { %v2429_v29 = vadd.f32 %v9482_v31, %v2393_v16  ;;  %7571 = vmatmul.msk.bf16.gmra.mxu3 %vm278_vm1, %v2020_v43  ;;  %v2224_v43 = vld [vmem:[#allocation2 + $0x152] sm:$0xff] }
 0x286   : > { %7558 = vmatmul.msk.bf16.gmra.mxu2 %vm278_vm1, %v9218_v10 }
 0x287   : > { %vm2461_vm8 = vcmp.gt.f32.partialorder %v2429_v29, 0.0  ;;  %v2493_v4 = vmul.f32 0.2, %v2429_v29  ;;  %7589 = vmatmul.msk.bf16.gmra.mxu0 %vm278_vm1, %v2243_v12 }
 0x288   : > { %v2098_v7 = vpop.f32.mrf.mxu3 }
 0x289   : > { %v9556_v37 = vpop.f32.mrf.mxu2  ;;  %v2525_v55 = vsel %vm2461_vm8, %v2429_v29, %v2493_v4  ;;  %v2172_v15 = vadd.f32 %v2098_v7, %v1950_v57  ;;  %v2647_v12 = vld [vmem:[#allocation3 + $0x31] sm:$0xff]  ;;  %v1803_v29 = vpack.c.bf16 %v1787_v47, %v1786_v45  ;;  %v2021_v57 = vpack.c.bf16 %v2001_v54, %v2000_v59  ;;  %v8226_v54 = vld [vmem:[%s11991_s3 + $0x70] sm:$0xff] }
 0x28a   : > { %2558 = vst.msk [vmem:[#allocation3 + $0x39] sm:$0xff] %vm431_vm3, %v2525_v55  ;;  %v2244_v7 = vpack.c.bf16 %v2225_v30, %v2224_v43  ;;  %3406 = vmatpush.bf16.msrb.mxu0 %v8226_v54  ;;  %v2003_v43 = vld [vmem:[#allocation2 + $0x159] sm:$0xff]  ;;  %v2587_v30 = vld [vmem:[#allocation3] sm:$0xff] }
 0x28b   : > { %v2394_v1 = vadd.f32 %v2320_v13, %v2172_v15 }
 0x28c   : > { %v9559_v28 = vpop.f32.mrf.mxu0 }
 0x28d   : > { %v2430_v10 = vadd.f32 %v9482_v31, %v2394_v1  ;;  %v1952_v1 = vadd.f32 %v9414_v8, %v9150_v39 }
 0x28f   : > { %vm2462_vm9 = vcmp.gt.f32.partialorder %v2430_v10, 0.0  ;;  %v2494_v14 = vmul.f32 0.2, %v2430_v10 }
 0x290   : > { %v2100_v26 = vpop.f32.mrf.mxu3 }
 0x291   : > { %v9564_v20 = vpop.f32.mrf.mxu2  ;;  %v2526_v16 = vsel %vm2462_vm9, %v2430_v10, %v2494_v14  ;;  %v2173_v13 = vadd.f32 %v2100_v26, %v1951_v27  ;;  %v2648_v36 = vld [vmem:[#allocation3 + $0x39] sm:$0xff]  ;;  %v2002_v26 = vld [vmem:[#allocation2 + $0x151] sm:$0xff] }
 0x292   : > { %2559 = vst.msk [vmem:[#allocation3 + $0x49] sm:$0xff] %vm431_vm3, %v2526_v16  ;;  %v2677_v4 = vpack.c.bf16 %v2648_v36, %v2647_v12  ;;  %v8230_v27 = vld [vmem:[%s11991_s3 + $0x90] sm:$0xff]  ;;  %v2588_v16 = vld [vmem:[#allocation3 + $0x8] sm:$0xff] }
 0x293   : > { %v2395_v5 = vadd.f32 %v2322_v41, %v2173_v13  ;;  %3656 = vmatpush.bf16.msrb.mxu1 %v8230_v27  ;;  %v1953_v13 = vadd.f32 %v9446_v9, %v9159_v38 }
 0x294   : > { %7620 = vmatmul.msk.bf16.gmra.mxu1 %vm431_vm3, %v2677_v4  ;;  %v2330_v55 = vpop.f32.mrf.mxu0  ;;  %v2227_v4 = vld [vmem:[#allocation2 + $0x172] sm:$0xff] }
 0x295   : > { %v2431_v15 = vadd.f32 %v9482_v31, %v2395_v5  ;;  %7572 = vmatmul.msk.bf16.gmra.mxu3 %vm278_vm1, %v2021_v57  ;;  %v2226_v57 = vld [vmem:[#allocation2 + $0x16a] sm:$0xff] }
 0x296   : > { %7559 = vmatmul.msk.bf16.gmra.mxu2 %vm278_vm1, %v1803_v29 }
 0x297   : > { %vm2463_vm10 = vcmp.gt.f32.partialorder %v2431_v15, 0.0  ;;  %v2495_v10 = vmul.f32 0.2, %v2431_v15  ;;  %7590 = vmatmul.msk.bf16.gmra.mxu0 %vm278_vm1, %v2244_v7 }
 0x298   : > { %v2103_v41 = vpop.f32.mrf.mxu3 }
 0x299   : > { %v9577_v45 = vpop.f32.mrf.mxu2  ;;  %v2527_v47 = vsel %vm2463_vm10, %v2431_v15, %v2495_v10  ;;  %v2174_v59 = vadd.f32 %v2103_v41, %v1952_v1  ;;  %v2649_v5 = vld [vmem:[#allocation3 + $0x49] sm:$0xff]  ;;  %v2022_v15 = vpack.c.bf16 %v2003_v43, %v2002_v26  ;;  %v2619_v1 = vpack.c.bf16 %v2588_v16, %v2587_v30 }
 0x29a   : > { %2560 = vst.msk [vmem:[#allocation3 + $0x51] sm:$0xff] %vm431_vm3, %v2527_v47  ;;  %v2245_v47 = vpack.c.bf16 %v2227_v4, %v2226_v57  ;;  %v1732_v30 = vadd.f32 %v9148_v33, %v9179_v25  ;;  %v2590_v4 = vld [vmem:[#allocation3 + $0x20] sm:$0xff]  ;;  %v2589_v25 = vld [vmem:[#allocation3 + $0x18] sm:$0xff] }
 0x29b   : > { %v2396_v39 = vadd.f32 %v2325_v11, %v2174_v59  ;;  %v1954_v59 = vadd.f32 %v9475_v60, %v9173_v3  ;;  %v2004_v3 = vld [vmem:[#allocation2 + $0x169] sm:$0xff]  ;;  %v2005_v60 = vld [vmem:[#allocation2 + $0x171] sm:$0xff] }
 0x29c   : > { %v2332_v8 = vpop.f32.mrf.mxu0 }
 0x29d   : > { %v2432_v14 = vadd.f32 %v9482_v31, %v2396_v39 }
 0x29f   : > { %vm2464_vm11 = vcmp.gt.f32.partialorder %v2432_v14, 0.0  ;;  %v2496_v12 = vmul.f32 0.2, %v2432_v14 }
 0x2a0   : > { %v2105_v29 = vpop.f32.mrf.mxu3 }
 0x2a1   : > { %v9589_v36 = vpop.f32.mrf.mxu2  ;;  %v2528_v11 = vsel %vm2464_vm11, %v2432_v14, %v2496_v12  ;;  %v2175_v56 = vadd.f32 %v2105_v29, %v1953_v13  ;;  %v2650_v7 = vld [vmem:[#allocation3 + $0x51] sm:$0xff]  ;;  %v1955_v13 = vadd.f32 %v9507_v34, %v1732_v30 }
 0x2a2   : > { %2561 = vst.msk [vmem:[#allocation3 + $0x61] sm:$0xff] %vm431_vm3, %v2528_v11  ;;  %v2678_v10 = vpack.c.bf16 %v2650_v7, %v2649_v5  ;;  %v2228_v11 = vld [vmem:[#allocation2 + $0x182] sm:$0xff] }
 0x2a3   : > { %v2397_v41 = vadd.f32 %v9559_v28, %v2175_v56  ;;  %v2229_v56 = vld [vmem:[#allocation2 + $0x18a] sm:$0xff] }
 0x2a4   : > { %7621 = vmatmul.msk.bf16.gmra.mxu1 %vm431_vm3, %v2678_v10  ;;  %v2335_v38 = vpop.f32.mrf.mxu0  ;;  %v2246_v34 = vpack.c.bf16 %v2229_v56, %v2228_v11  ;;  %v2230_v56 = vld [vmem:[#allocation2 + $0x19a] sm:$0xff] }
 0x2a5   : > { %v2433_v9 = vadd.f32 %v9482_v31, %v2397_v41  ;;  %7573 = vmatmul.msk.bf16.gmra.mxu3 %vm278_vm1, %v2022_v15  ;;  %v9612_v41 = vpack.c.bf16 %v2590_v4, %v2589_v25  ;;  %v2592_v4 = vld [vmem:[#allocation3 + $0x38] sm:$0xff] }
 0x2a6   : > { %7650 = vmatmul.msk.bf16.vlgmr.msrb.gmra.mxu2 %vm431_vm3, %v2619_v1  ;;  %v2023_v1 = vpack.c.bf16 %v2005_v60, %v2004_v3  ;;  %v2006_v60 = vld [vmem:[#allocation2 + $0x181] sm:$0xff] }
 0x2a7   : > { %vm2465_vm12 = vcmp.gt.f32.partialorder %v2433_v9, 0.0  ;;  %v2497_v54 = vmul.f32 0.2, %v2433_v9  ;;  %7591 = vmatmul.msk.bf16.gmra.mxu0 %vm278_vm1, %v2245_v47 }
 0x2a8   : > { %v2108_v28 = vpop.f32.mrf.mxu3 }
 0x2a9   : > { %v9600_v27 = vpop.f32.mrf.mxu2  ;;  %v2529_v39 = vsel %vm2465_vm12, %v2433_v9, %v2497_v54  ;;  %v2176_v14 = vadd.f32 %v2108_v28, %v1954_v59  ;;  %v2651_v7 = vld [vmem:[#allocation3 + $0x61] sm:$0xff]  ;;  %v1956_v59 = vadd.f32 %v9531_v6, %v9193_v52  ;;  %v8224_v52 = vld [vmem:[%s11991_s3 + $0x60] sm:$0xff]  ;;  %v1734_v6 = vadd.f32 %v9171_v63, %v9199_v62 }
 0x2aa   : > { %2562 = vst.msk [vmem:[#allocation3 + $0x69] sm:$0xff] %vm431_vm3, %v2529_v39  ;;  %v8225_v39 = vld [vmem:[%s11991_s3 + $0x68] sm:$0xff] }
 0x2ab   : > { %v2398_v26 = vadd.f32 %v2330_v55, %v2176_v14  ;;  %3407 = vmatpush.bf16.msrb.mxu0 %v8225_v39 }
 0x2ac   : > { %v9603_v43 = vpop.f32.mrf.mxu0 }
 0x2ad   : > { %v2434_v16 = vadd.f32 %v9482_v31, %v2398_v26 }
 0x2af   : > { %vm2466_vm13 = vcmp.gt.f32.partialorder %v2434_v16, 0.0  ;;  %v2498_v12 = vmul.f32 0.2, %v2434_v16  ;;  %3408 = vmatpush.bf16.msrb.mxu0 %v8224_v52 }
 0x2b0   : > { %v2110_v57 = vpop.f32.mrf.mxu3 }
 0x2b1   : > { %v9609_v29 = vpop.f32.mrf.mxu2  ;;  %v2530_v55 = vsel %vm2466_vm13, %v2434_v16, %v2498_v12  ;;  %v2177_v5 = vadd.f32 %v2110_v57, %v1955_v13  ;;  %v2652_v15 = vld [vmem:[#allocation3 + $0x69] sm:$0xff]  ;;  %v2007_v13 = vld [vmem:[#allocation2 + $0x189] sm:$0xff]  ;;  %v1957_v12 = vadd.f32 %v9538_v17, %v1734_v6 }
 0x2b2   : > { %2563 = vst.msk [vmem:[#allocation3 + $0x79] sm:$0xff] %vm431_vm3, %v2530_v55  ;;  %v2679_v33 = vpack.c.bf16 %v2652_v15, %v2651_v7  ;;  %v2231_v55 = vld [vmem:[#allocation2 + $0x1a2] sm:$0xff] }
 0x2b3   : > { %v2399_v10 = vadd.f32 %v2332_v8, %v2177_v5  ;;  %v8221_v5 = vld [vmem:[%s11991_s3 + $0x48] sm:$0xff] }
 0x2b4   : > { %7622 = vmatmul.msk.bf16.gmra.mxu1 %vm431_vm3, %v2679_v33  ;;  %v2340_v47 = vpop.f32.mrf.mxu0  ;;  %v2591_v33 = vld [vmem:[#allocation3 + $0x30] sm:$0xff]  ;;  %3157 = vmatpush.bf16.msra.mxu3 %v8221_v5 }
 0x2b5   : > { %v2435_v9 = vadd.f32 %v9482_v31, %v2399_v10  ;;  %7574 = vmatmul.msk.bf16.gmra.mxu3 %vm278_vm1, %v2023_v1  ;;  %v2024_v1 = vpack.c.bf16 %v2007_v13, %v2006_v60  ;;  %v9644_v10 = vpack.c.bf16 %v2592_v4, %v2591_v33  ;;  %v2008_v13 = vld [vmem:[#allocation2 + $0x199] sm:$0xff] }
 0x2b6   : > { %7651 = vmatmul.msk.bf16.gmra.mxu2 %vm431_vm3, %v9612_v41 }
 0x2b7   : > { %vm2467_vm14 = vcmp.gt.f32.partialorder %v2435_v9, 0.0  ;;  %v2499_v54 = vmul.f32 0.2, %v2435_v9  ;;  %7592 = vmatmul.msk.bf16.gmra.mxu0 %vm278_vm1, %v2246_v34  ;;  %v2247_v34 = vpack.c.bf16 %v2231_v55, %v2230_v56 }
 0x2b8   : > { %v2113_v28 = vpop.f32.mrf.mxu3 }
 0x2b9   : > { %v9622_v8 = vpop.f32.mrf.mxu2  ;;  %v2531_v14 = vsel %vm2467_vm14, %v2435_v9, %v2499_v54  ;;  %v2178_v26 = vadd.f32 %v2113_v28, %v1956_v59  ;;  %v2653_v7 = vld [vmem:[#allocation3 + $0x79] sm:$0xff]  ;;  %v8220_v59 = vld [vmem:[%s11991_s3 + $0x40] sm:$0xff] }
 0x2ba   : > { %2564 = vst.msk [vmem:[#allocation3 + $0x81] sm:$0xff] %vm431_vm3, %v2531_v14  ;;  %3158 = vmatpush.bf16.msra.mxu3 %v8220_v59  ;;  %v8229_v59 = vld [vmem:[%s11991_s3 + $0x88] sm:$0xff] }
 0x2bb   : > { %v2400_v30 = vadd.f32 %v2335_v38, %v2178_v26  ;;  %3657 = vmatpush.bf16.msrb.mxu1 %v8229_v59  ;;  %v3025_v59 = vld [vmem:[#allocation3 + $0x22] sm:$0xff] }
 0x2bc   : > { %v9628_v16 = vpop.f32.mrf.mxu0 }
 0x2bd   : > { %v2436_v3 = vadd.f32 %v9482_v31, %v2400_v30 }
 0x2bf   : > { %vm2468_vm15 = vcmp.gt.f32.partialorder %v2436_v3, 0.0  ;;  %v2500_v57 = vmul.f32 0.2, %v2436_v3 }
 0x2c0   : > { %v2115_v11 = vpop.f32.mrf.mxu3 }
 0x2c1   : > { %v9637_v38 = vpop.f32.mrf.mxu2  ;;  %v2532_v63 = vsel %vm2468_vm15, %v2436_v3, %v2500_v57  ;;  %v2179_v62 = vadd.f32 %v2115_v11, %v1957_v12  ;;  %v2654_v15 = vld [vmem:[#allocation3 + $0x81] sm:$0xff]  ;;  %v1736_v3 = vadd.f32 %v9191_v22, %v9220_v2  ;;  %v2594_v11 = vld [vmem:[#allocation3 + $0x50] sm:$0xff] }
 0x2c2   : > { %2565 = vst.msk [vmem:[#allocation3 + $0x91] sm:$0xff] %vm431_vm3, %v2532_v63  ;;  %v2680_v17 = vpack.c.bf16 %v2654_v15, %v2653_v7  ;;  %v2593_v2 = vld [vmem:[#allocation3 + $0x48] sm:$0xff] }
 0x2c3   : > { %v2401_v25 = vadd.f32 %v9603_v43, %v2179_v62  ;;  %v1958_v43 = vadd.f32 %v9556_v37, %v9212_v50  ;;  %v2009_v50 = vld [vmem:[#allocation2 + $0x1a1] sm:$0xff]  ;;  %v1959_v37 = vadd.f32 %v9564_v20, %v1736_v3  ;;  %v9668_v7 = vpack.c.bf16 %v2594_v11, %v2593_v2  ;;  %v2596_v3 = vld [vmem:[#allocation3 + $0x68] sm:$0xff] }
 0x2c4   : > { %7623 = vmatmul.msk.bf16.gmra.mxu1 %vm431_vm3, %v2680_v17  ;;  %v2345_v9 = vpop.f32.mrf.mxu0  ;;  %v2025_v63 = vpack.c.bf16 %v2009_v50, %v2008_v13 }
 0x2c5   : > { %v2437_v54 = vadd.f32 %v9482_v31, %v2401_v25  ;;  %7575 = vmatmul.msk.bf16.gmra.mxu3 %vm278_vm1, %v2024_v1  ;;  %v1960_v1 = vadd.f32 %v9577_v45, %v9235_v18  ;;  %v1738_v18 = vadd.f32 %v9210_v44, %v9241_v40  ;;  %v2595_v40 = vld [vmem:[#allocation3 + $0x60] sm:$0xff] }
 0x2c6   : > { %7652 = vmatmul.msk.bf16.gmra.mxu2 %vm431_vm3, %v9644_v10 }
 0x2c7   : > { %vm2469_vm2 = vcmp.gt.f32.partialorder %v2437_v54, 0.0  ;;  %v2501_v28 = vmul.f32 0.2, %v2437_v54  ;;  %7593 = vmatmul.msk.bf16.gmra.mxu0 %vm278_vm1, %v2247_v34 }
 0x2c8   : > { %v2118_v14 = vpop.f32.mrf.mxu3 }
 0x2c9   : > { %v9657_v39 = vpop.f32.mrf.mxu2  ;;  %v2533_v26 = vsel %vm2469_vm2, %v2437_v54, %v2501_v28  ;;  %v2180_v30 = vadd.f32 %v2118_v14, %v1958_v43  ;;  %v2655_v5 = vld [vmem:[#allocation3 + $0x91] sm:$0xff]  ;;  %v1961_v14 = vadd.f32 %v9589_v36, %v1738_v18 }
 0x2ca   : > { %2566 = vst.msk [vmem:[#allocation3 + $0x99] sm:$0xff] %vm431_vm3, %v2533_v26  ;;  %v3023_v28 = vld [vmem:[#allocation3 + $0xa] sm:$0xff] }
 0x2cb   : > { %v2402_v52 = vadd.f32 %v2340_v47, %v2180_v30 }
 0x2cc   : > { %v2347_v6 = vpop.f32.mrf.mxu0 }
 0x2cd   : > { %v2438_v60 = vadd.f32 %v9482_v31, %v2402_v52 }
 0x2cf   : > { %vm2470_vm4 = vcmp.gt.f32.partialorder %v2438_v60, 0.0  ;;  %v2502_v12 = vmul.f32 0.2, %v2438_v60 }
 0x2d0   : > { %v2120_v4 = vpop.f32.mrf.mxu3 }
 0x2d1   : > { %v9664_v57 = vpop.f32.mrf.mxu2  ;;  %v2534_v56 = vsel %vm2470_vm4, %v2438_v60, %v2502_v12  ;;  %v2181_v55 = vadd.f32 %v2120_v4, %v1959_v37  ;;  %v2656_v47 = vld [vmem:[#allocation3 + $0x99] sm:$0xff]  ;;  %v9692_v4 = vpack.c.bf16 %v2596_v3, %v2595_v40  ;;  %v1742_v40 = vadd.f32 %v9250_v53, %v9275_v24  ;;  %v2599_v24 = vld [vmem:[#allocation3 + $0x90] sm:$0xff] }
 0x2d2   : > { %2567 = vst.msk [vmem:[#allocation3 + $0xa9] sm:$0xff] %vm431_vm3, %v2534_v56  ;;  %v2681_v22 = vpack.c.bf16 %v2656_v47, %v2655_v5  ;;  %v9699_v56 = vpop.f32.mrf.mxu1 }
 0x2d3   : > { %v2403_v62 = vadd.f32 %v9628_v16, %v2181_v55  ;;  %v1962_v55 = vadd.f32 %v9600_v27, %v9252_v46 }
 0x2d4   : > { %7624 = vmatmul.msk.bf16.gmra.mxu1 %vm431_vm3, %v2681_v22  ;;  %v2350_v20 = vpop.f32.mrf.mxu0 }
 0x2d5   : > { %v2439_v15 = vadd.f32 %v9482_v31, %v2403_v62  ;;  %7576 = vmatmul.msk.bf16.gmra.mxu3 %vm278_vm1, %v2025_v63 }
 0x2d6   : > { %7653 = vmatmul.msk.bf16.gmra.mxu2 %vm431_vm3, %v9668_v7 }
 0x2d7   : > { %vm2471_vm5 = vcmp.gt.f32.partialorder %v2439_v15, 0.0  ;;  %v2503_v17 = vmul.f32 0.2, %v2439_v15  ;;  %7730 = vmatmul.msk.bf16.vlgmr.msrb.gmra.mxu0 %vm431_vm3, %v9612_v41  ;;  %v3022_v41 = vld [vmem:[#allocation3 + $0x2] sm:$0xff] }
 0x2d8   : > { %v2123_v33 = vpop.f32.mrf.mxu3  ;;  %v3054_v37 = vpack.c.bf16 %v3023_v28, %v3022_v41 }
 0x2d9   : > { %v9679_v16 = vpop.f32.mrf.mxu2  ;;  %v2535_v25 = vsel %vm2471_vm5, %v2439_v15, %v2503_v17  ;;  %v2182_v34 = vadd.f32 %v2123_v33, %v1960_v1  ;;  %v1740_v15 = vadd.f32 %v9233_v32, %v9258_v61  ;;  %v2597_v61 = vld [vmem:[#allocation3 + $0x78] sm:$0xff] }
 0x2da   : > { %2568 = vst.msk [vmem:[#allocation3 + $0xb1] sm:$0xff] %vm431_vm3, %v2535_v25  ;;  %v2598_v25 = vld [vmem:[#allocation3 + $0x80] sm:$0xff] }
 0x2db   : > { %v2404_v54 = vadd.f32 %v2345_v9, %v2182_v34  ;;  %v2657_v9 = vld [vmem:[#allocation3 + $0xa9] sm:$0xff]  ;;  %v1963_v46 = vadd.f32 %v9609_v29, %v1740_v15  ;;  %v3024_v34 = vld [vmem:[#allocation3 + $0x1a] sm:$0xff]  ;;  %v9717_v29 = vpack.c.bf16 %v2598_v25, %v2597_v61  ;;  %v1966_v25 = vadd.f32 %v9657_v39, %v9284_v23 }
 0x2dc   : > { %v2352_v43 = vpop.f32.mrf.mxu0  ;;  %v9719_v28 = vpack.c.bf16 %v3025_v59, %v3024_v34  ;;  %v1744_v61 = vadd.f32 %v9269_v0, %v9290_v35  ;;  %v2601_v35 = vld [vmem:[#allocation3 + $0xa8] sm:$0xff] }
 0x2dd   : > { %v2440_v45 = vadd.f32 %v9482_v31, %v2404_v54 }
 0x2de   : > { %v1967_v39 = vadd.f32 %v9664_v57, %v1744_v61 }
 0x2df   : > { %vm2472_vm6 = vcmp.gt.f32.partialorder %v2440_v45, 0.0  ;;  %v2504_v26 = vmul.f32 0.2, %v2440_v45 }
 0x2e0   : > { %v2125_v52 = vpop.f32.mrf.mxu3 }
 0x2e1   : > { %v9689_v30 = vpop.f32.mrf.mxu2  ;;  %v2536_v60 = vsel %vm2472_vm6, %v2440_v45, %v2504_v26  ;;  %v2183_v13 = vadd.f32 %v2125_v52, %v1961_v14  ;;  %v2658_v50 = vld [vmem:[#allocation3 + $0xb1] sm:$0xff]  ;;  %v1964_v52 = vadd.f32 %v9622_v8, %v9267_v19  ;;  %v1965_v8 = vadd.f32 %v9637_v38, %v1742_v40 }
 0x2e2   : > { %2569 = vst.msk [vmem:[#allocation3 + $0xc1] sm:$0xff] %vm431_vm3, %v2536_v60  ;;  %v2682_v44 = vpack.c.bf16 %v2658_v50, %v2657_v9 }
 0x2e3   : > { %v2405_v12 = vadd.f32 %v2347_v6, %v2183_v13 }
 0x2e4   : > { %7625 = vmatmul.msk.bf16.gmra.mxu1 %vm431_vm3, %v2682_v44  ;;  %v2355_v36 = vpop.f32.mrf.mxu0 }
 0x2e5   : > { %v2441_v11 = vadd.f32 %v9482_v31, %v2405_v12  ;;  %7690 = vmatmul.msk.bf16.vlgmr.msra.gmra.mxu3 %vm431_vm3, %v3054_v37 }
 0x2e6   : > { %7654 = vmatmul.msk.bf16.gmra.mxu2 %vm431_vm3, %v9692_v4 }
 0x2e7   : > { %vm2473_vm7 = vcmp.gt.f32.partialorder %v2441_v11, 0.0  ;;  %v2505_v5 = vmul.f32 0.2, %v2441_v11  ;;  %7731 = vmatmul.msk.bf16.gmra.mxu0 %vm431_vm3, %v9644_v10 }
 0x2e8   : > { %v2128_v47 = vpop.f32.mrf.mxu3 }
 0x2e9   : > { %v9705_v6 = vpop.f32.mrf.mxu2  ;;  %v2537_v63 = vsel %vm2473_vm7, %v2441_v11, %v2505_v5  ;;  %v2184_v22 = vadd.f32 %v2128_v47, %v1962_v55  ;;  %v9712_v17 = vpop.f32.mrf.mxu1  ;;  %v2659_v18 = vld [vmem:[#allocation3 + $0xc1] sm:$0xff]  ;;  %v2600_v55 = vld [vmem:[#allocation3 + $0x98] sm:$0xff] }
 0x2ea   : > { %2570 = vst.msk [vmem:[#allocation3 + $0xc9] sm:$0xff] %vm431_vm3, %v2537_v63  ;;  %v3026_v5 = vld [vmem:[#allocation3 + $0x32] sm:$0xff]  ;;  %v3027_v47 = vld [vmem:[#allocation3 + $0x3a] sm:$0xff]  ;;  %v9745_v38 = vpack.c.bf16 %v2600_v55, %v2599_v24  ;;  %v1968_v55 = vadd.f32 %v9679_v16, %v9307_v58  ;;  %v8235_v58 = vld [vmem:[%s11991_s3 + $0xb8] sm:$0xff] }
 0x2eb   : > { %v2406_v2 = vadd.f32 %v2350_v20, %v2184_v22  ;;  %3905 = vmatpush.bf16.msra.mxu2 %v8235_v58  ;;  %v3033_v58 = vld [vmem:[#allocation3 + $0x82] sm:$0xff] }
 0x2ec   : > { %v2357_v62 = vpop.f32.mrf.mxu0 }
 0x2ed   : > { %v2442_v1 = vadd.f32 %v9482_v31, %v2406_v2 }
 0x2ef   : > { %vm2474_vm8 = vcmp.gt.f32.partialorder %v2442_v1, 0.0  ;;  %v2506_v27 = vmul.f32 0.2, %v2442_v1 }
 0x2f0   : > { %v2130_v33 = vpop.f32.mrf.mxu3 }
 0x2f1   : > { %v9714_v10 = vpop.f32.mrf.mxu2  ;;  %v2538_v54 = vsel %vm2474_vm8, %v2442_v1, %v2506_v27  ;;  %v2185_v20 = vadd.f32 %v2130_v33, %v1963_v46  ;;  %v2660_v45 = vld [vmem:[#allocation3 + $0xc9] sm:$0xff]  ;;  %v9733_v9 = vpop.f32.mrf.mxu1  ;;  %v9747_v46 = vpack.c.bf16 %v3027_v47, %v3026_v5 }
 0x2f2   : > { %2571 = vst.msk [vmem:[#allocation3 + $0xd9] sm:$0xff] %vm431_vm3, %v2538_v54  ;;  %v2683_v32 = vpack.c.bf16 %v2660_v45, %v2659_v18 }
 0x2f3   : > { %v2407_v41 = vadd.f32 %v2352_v43, %v2185_v20 }
 0x2f4   : > { %7626 = vmatmul.msk.bf16.gmra.mxu1 %vm431_vm3, %v2683_v32  ;;  %v2360_v14 = vpop.f32.mrf.mxu0 }
 0x2f5   : > { %v2443_v26 = vadd.f32 %v9482_v31, %v2407_v41  ;;  %7691 = vmatmul.msk.bf16.gmra.mxu3 %vm431_vm3, %v9719_v28 }
 0x2f6   : > { %7655 = vmatmul.msk.bf16.gmra.mxu2 %vm431_vm3, %v9717_v29 }
 0x2f7   : > { %vm2475_vm9 = vcmp.gt.f32.partialorder %v2443_v26, 0.0  ;;  %v2507_v43 = vmul.f32 0.2, %v2443_v26  ;;  %7732 = vmatmul.msk.bf16.gmra.mxu0 %vm431_vm3, %v9668_v7 }
 0x2f8   : > { %v2133_v60 = vpop.f32.mrf.mxu3 }
 0x2f9   : > { %v9731_v3 = vpop.f32.mrf.mxu2  ;;  %v2539_v13 = vsel %vm2475_vm9, %v2443_v26, %v2507_v43  ;;  %v2186_v50 = vadd.f32 %v2133_v60, %v1964_v52  ;;  %v2602_v52 = vld [vmem:[#allocation3 + $0xb0] sm:$0xff] }
 0x2fa   : > { %2572 = vst.msk [vmem:[#allocation3 + $0xe1] sm:$0xff] %vm431_vm3, %v2539_v13  ;;  %v3028_v43 = vld [vmem:[#allocation3 + $0x4a] sm:$0xff]  ;;  %v3029_v60 = vld [vmem:[#allocation3 + $0x52] sm:$0xff]  ;;  %v9773_v57 = vpack.c.bf16 %v2602_v52, %v2601_v35 }
 0x2fb   : > { %v2408_v37 = vadd.f32 %v2355_v36, %v2186_v50  ;;  %v2661_v36 = vld [vmem:[#allocation3 + $0xd9] sm:$0xff] }
 0x2fc   : > { %v2362_v44 = vpop.f32.mrf.mxu0 }
 0x2fd   : > { %v2444_v19 = vadd.f32 %v9482_v31, %v2408_v37 }
 0x2ff   : > { %vm2476_vm10 = vcmp.gt.f32.partialorder %v2444_v19, 0.0  ;;  %v2508_v7 = vmul.f32 0.2, %v2444_v19 }
 0x300   : > { %v2135_v11 = vpop.f32.mrf.mxu3 }
 0x301   : > { %v9740_v12 = vpop.f32.mrf.mxu2  ;;  %v2540_v63 = vsel %vm2476_vm10, %v2444_v19, %v2508_v7  ;;  %v2187_v22 = vadd.f32 %v2135_v11, %v1965_v8  ;;  %v9742_v2 = vpop.f32.mrf.mxu1  ;;  %v2662_v15 = vld [vmem:[#allocation3 + $0xe1] sm:$0xff]  ;;  %v9775_v8 = vpack.c.bf16 %v3029_v60, %v3028_v43  ;;  %v1970_v60 = vadd.f32 %v9705_v6, %v9323_v48  ;;  %v12076_v48 = vld [vmem:[#allocation7_spill] sm:$0xff] }
 0x302   : > { %2573 = vst.msk [vmem:[#allocation3 + $0xf1] sm:$0xff] %vm431_vm3, %v2540_v63  ;;  %v2684_v53 = vpack.c.bf16 %v2662_v15, %v2661_v36  ;;  %v8228_v15 = vld [vmem:[%s11991_s3 + $0x80] sm:$0xff] }
 0x303   : > { %v2409_v1 = vadd.f32 %v2357_v62, %v2187_v22  ;;  %3658 = vmatpush.bf16.msrb.mxu1 %v8228_v15  ;;  %v2606_v15 = vld [vmem:[#allocation3 + $0xe0] sm:$0xff] }
 0x304   : > { %7627 = vmatmul.msk.bf16.gmra.mxu1 %vm431_vm3, %v2684_v53  ;;  %v2365_v27 = vpop.f32.mrf.mxu0 }
 0x305   : > { %v2445_v33 = vadd.f32 %v9482_v31, %v2409_v1  ;;  %7692 = vmatmul.msk.bf16.gmra.mxu3 %vm431_vm3, %v9747_v46 }
 0x306   : > { %7656 = vmatmul.msk.bf16.gmra.mxu2 %vm431_vm3, %v9745_v38 }
 0x307   : > { %vm2477_vm11 = vcmp.gt.f32.partialorder %v2445_v33, 0.0  ;;  %v2509_v62 = vmul.f32 0.2, %v2445_v33  ;;  %7733 = vmatmul.msk.bf16.gmra.mxu0 %vm431_vm3, %v9692_v4 }
 0x308   : > { %v2138_v59 = vpop.f32.mrf.mxu3 }
 0x309   : > { %v9759_v34 = vpop.f32.mrf.mxu2  ;;  %v2541_v54 = vsel %vm2477_vm11, %v2445_v33, %v2509_v62  ;;  %v2188_v20 = vadd.f32 %v2138_v59, %v1966_v25  ;;  %v9761_v18 = vpop.f32.mrf.mxu1  ;;  %v2604_v59 = vld [vmem:[#allocation3 + $0xc8] sm:$0xff]  ;;  %vm6802_vm11 = vcmask 1042434  }
 0x30a   : > { %2574 = vst.msk [vmem:[#allocation3 + $0xf9] sm:$0xff] %vm431_vm3, %v2541_v54  ;;  %v3030_v54 = vld [vmem:[#allocation3 + $0x62] sm:$0xff] }
 0x30b   : > { %v2410_v45 = vadd.f32 %v2360_v14, %v2188_v20  ;;  %v2663_v14 = vld [vmem:[#allocation3 + $0xf1] sm:$0xff] }
 0x30c   : > { %v2367_v32 = vpop.f32.mrf.mxu0  ;;  %v3031_v20 = vld [vmem:[#allocation3 + $0x6a] sm:$0xff] }
 0x30d   : > { %v2446_v23 = vadd.f32 %v9482_v31, %v2410_v45 }
 0x30f   : > { %vm2478_vm12 = vcmp.gt.f32.partialorder %v2446_v23, 0.0  ;;  %v2510_v4 = vmul.f32 0.2, %v2446_v23 }
 0x310   : > { %v2140_v26 = vpop.f32.mrf.mxu3 }
 0x311   : > { %v9768_v41 = vpop.f32.mrf.mxu2  ;;  %v2542_v13 = vsel %vm2478_vm12, %v2446_v23, %v2510_v4  ;;  %v2189_v50 = vadd.f32 %v2140_v26, %v1967_v39  ;;  %v9770_v37 = vpop.f32.mrf.mxu1  ;;  %v2664_v40 = vld [vmem:[#allocation3 + $0xf9] sm:$0xff]  ;;  %v9809_v26 = vpack.c.bf16 %v3031_v20, %v3030_v54  ;;  %vm6805_vm12 = vcmask 1043459  }
 0x312   : > { %2575 = vst.msk [vmem:[#allocation3 + $0x109] sm:$0xff] %vm431_vm3, %v2542_v13  ;;  %v2685_v0 = vpack.c.bf16 %v2664_v40, %v2663_v14 }
 0x313   : > { %v2411_v19 = vadd.f32 %v2362_v44, %v2189_v50 }
 0x314   : > { %7628 = vmatmul.msk.bf16.gmra.mxu1 %vm431_vm3, %v2685_v0  ;;  %v2370_v7 = vpop.f32.mrf.mxu0 }
 0x315   : > { %v2447_v11 = vadd.f32 %v9482_v31, %v2411_v19  ;;  %7693 = vmatmul.msk.bf16.gmra.mxu3 %vm431_vm3, %v9775_v8 }
 0x316   : > { %7657 = vmatmul.msk.bf16.gmra.mxu2 %vm431_vm3, %v9773_v57 }
 0x317   : > { %vm2479_vm13 = vcmp.gt.f32.partialorder %v2447_v11, 0.0  ;;  %v2511_v44 = vmul.f32 0.2, %v2447_v11  ;;  %7734 = vmatmul.msk.bf16.gmra.mxu0 %vm431_vm3, %v9717_v29  ;;  %v1746_v29 = vadd.f32 %v9292_v21, %v9313_v49  ;;  %v2603_v49 = vld [vmem:[#allocation3 + $0xc0] sm:$0xff] }
 0x318   : > { %v2143_v47 = vpop.f32.mrf.mxu3 }
 0x319   : > { %v9787_v5 = vpop.f32.mrf.mxu2  ;;  %v2543_v63 = vsel %vm2479_vm13, %v2447_v11, %v2511_v44  ;;  %v2190_v22 = vadd.f32 %v2143_v47, %v1968_v55  ;;  %v9789_v36 = vpop.f32.mrf.mxu1  ;;  %v1969_v1 = vadd.f32 %v9689_v30, %v1746_v29  ;;  %v2665_v23 = vld [vmem:[#allocation3 + $0x109] sm:$0xff]  ;;  %v9807_v30 = vpack.c.bf16 %v2604_v59, %v2603_v49  ;;  %v12075_v55 = vld [vmem:[#allocation8_spill] sm:$0xff] }
 0x31a   : > { %2576 = vst.msk [vmem:[#allocation3 + $0x111] sm:$0xff] %vm431_vm3, %v2543_v63  ;;  %v1748_v6 = vadd.f32 %v12076_v48, %v12075_v55  ;;  %v3035_v55 = vld [vmem:[#allocation3 + $0x9a] sm:$0xff]  ;;  %vm6808_vm13 = vcmask 1044484  }
 0x31b   : > { %v2412_v16 = vadd.f32 %v2365_v27, %v2190_v22 }
 0x31c   : > { %v2372_v53 = vpop.f32.mrf.mxu0 }
 0x31d   : > { %v2448_v24 = vadd.f32 %v9482_v31, %v2412_v16 }
 0x31f   : > { %vm2480_vm14 = vcmp.gt.f32.partialorder %v2448_v24, 0.0  ;;  %v2512_v33 = vmul.f32 0.2, %v2448_v24 }
 0x320   : > { %v2145_v62 = vpop.f32.mrf.mxu3 }
 0x321   : > { %v9802_v25 = vpop.f32.mrf.mxu2  ;;  %v2544_v45 = vsel %vm2480_vm14, %v2448_v24, %v2512_v33  ;;  %v2191_v27 = vadd.f32 %v2145_v62, %v1969_v1  ;;  %v9804_v61 = vpop.f32.mrf.mxu1  ;;  %v2666_v39 = vld [vmem:[#allocation3 + $0x111] sm:$0xff]  ;;  %vm6811_vm14 = vcmask 1045509  }
 0x322   : > { %2577 = vst.msk [vmem:[#allocation3 + $0x121] sm:$0xff] %vm431_vm3, %v2544_v45  ;;  %v2686_v21 = vpack.c.bf16 %v2666_v39, %v2665_v23 }
 0x323   : > { %v2413_v4 = vadd.f32 %v2367_v32, %v2191_v27 }
 0x324   : > { %7629 = vmatmul.msk.bf16.gmra.mxu1 %vm431_vm3, %v2686_v21  ;;  %v2375_v52 = vpop.f32.mrf.mxu0 }
 0x325   : > { %v2449_v43 = vadd.f32 %v9482_v31, %v2413_v4  ;;  %7694 = vmatmul.msk.bf16.gmra.mxu3 %vm431_vm3, %v9809_v26 }
 0x326   : > { %7658 = vmatmul.msk.bf16.gmra.mxu2 %vm431_vm3, %v9807_v30 }
 0x327   : > { %vm2481_vm15 = vcmp.gt.f32.partialorder %v2449_v43, 0.0  ;;  %v2513_v32 = vmul.f32 0.2, %v2449_v43  ;;  %7735 = vmatmul.msk.bf16.gmra.mxu0 %vm431_vm3, %v9745_v38  ;;  %v1971_v38 = vadd.f32 %v9714_v10, %v1748_v6  ;;  %v2605_v10 = vld [vmem:[#allocation3 + $0xd8] sm:$0xff] }
 0x328   : > { %v2148_v13 = vpop.f32.mrf.mxu3  ;;  %v9837_v59 = vpack.c.bf16 %v2606_v15, %v2605_v10 }
 0x329   : > { %v2942_v50 = vpop.f32.mrf.mxu2  ;;  %v2545_v14 = vsel %vm2481_vm15, %v2449_v43, %v2513_v32  ;;  %v2192_v40 = vadd.f32 %v2148_v13, %v1970_v60  ;;  %v9824_v35 = vpop.f32.mrf.mxu1  ;;  %v2667_v1 = vld [vmem:[#allocation3 + $0x121] sm:$0xff]  ;;  %vm6814_vm15 = vcmask 1046534  }
 0x32a   : > { %v9822_v0 = vadd.f32 %v2942_v50, %v9712_v17  ;;  %2578 = vst.msk [vmem:[#allocation3 + $0x129] sm:$0xff] %vm431_vm3, %v2545_v14  ;;  %v3032_v17 = vld [vmem:[#allocation3 + $0x7a] sm:$0xff] }
 0x32b   : > { %v2414_v19 = vadd.f32 %v2370_v7, %v2192_v40  ;;  %v9839_v54 = vpack.c.bf16 %v3033_v58, %v3032_v17  ;;  %v12078_v58 = vld [vmem:[#allocation10_spill] sm:$0xff] }
 0x32c   : > { %v2377_v11 = vpop.f32.mrf.mxu0 }
 0x32d   : > { %v2450_v44 = vadd.f32 %v9482_v31, %v2414_v19  ;;  %v3034_v19 = vld [vmem:[#allocation3 + $0x92] sm:$0xff] }
 0x32e   : > { %v9876_v15 = vpack.c.bf16 %v3035_v55, %v3034_v19  ;;  %v2609_v55 = vld [vmem:[#allocation3 + $0x108] sm:$0xff] }
 0x32f   : > { %vm2482_vm2 = vcmp.gt.f32.partialorder %v2450_v44, 0.0  ;;  %v2514_v47 = vmul.f32 0.2, %v2450_v44 }
 0x330   : > { %v2150_v63 = vpop.f32.mrf.mxu3 }
 0x331   : > { %v2944_v22 = vpop.f32.mrf.mxu2  ;;  %v2546_v16 = vsel %vm2482_vm2, %v2450_v44, %v2514_v47  ;;  %v2193_v29 = vadd.f32 %v2150_v63, %v1971_v38  ;;  %v9834_v7 = vpop.f32.mrf.mxu1  ;;  %v2668_v33 = vld [vmem:[#allocation3 + $0x129] sm:$0xff]  ;;  %vm6817_vm2 = vcmask 1047559  }
 0x332   : > { %v9832_v24 = vadd.f32 %v2944_v22, %v9733_v9  ;;  %2579 = vst.msk [vmem:[#allocation3 + $0x139] sm:$0xff] %vm431_vm3, %v2546_v16  ;;  %v2687_v31 = vpack.c.bf16 %v2668_v33, %v2667_v1  ;;  %v9845_v9 = vld [vmem:[%s11990_s2] ss:$0 sm:$0xff]  ;;  %v1974_v16 = vadd.f32 %v9759_v34, %v12078_v58  ;;  %v8239_v34 = vld [vmem:[%s11991_s3 + $0xd8] sm:$0xff] }
 0x333   : > { %v2415_v62 = vadd.f32 %v2372_v53, %v2193_v29  ;;  %v1972_v53 = vadd.f32 %v9731_v3, %v9338_v42  ;;  %v12077_v42 = vld [vmem:[#allocation9_spill] sm:$0xff]  ;;  %4156 = vmatpush.bf16.msrb.mxu3 %v8239_v34 }
 0x334   : > { %7630 = vmatmul.msk.bf16.gmra.mxu1 %vm431_vm3, %v2687_v31  ;;  %v2380_v20 = vpop.f32.mrf.mxu0  ;;  %v1750_v3 = vadd.f32 %v12077_v42, %v9345_v51  ;;  %v2610_v42 = vld [vmem:[#allocation3 + $0x110] sm:$0xff] }
 0x335   : > { %v2451_v45 = vadd.f32 %v9845_v9, %v2415_v62  ;;  %7695 = vmatmul.msk.bf16.gmra.mxu3 %vm431_vm3, %v9839_v54 }
 0x336   : > { %7659 = vmatmul.msk.bf16.gmra.mxu2 %vm431_vm3, %v9837_v59 }
 0x337   : > { %vm2483_vm4 = vcmp.gt.f32.partialorder %v2451_v45, 0.0  ;;  %v2515_v27 = vmul.f32 0.2, %v2451_v45  ;;  %7736 = vmatmul.msk.bf16.gmra.mxu0 %vm431_vm3, %v9773_v57  ;;  %v1973_v57 = vadd.f32 %v9740_v12, %v1750_v3  ;;  %v2607_v12 = vld [vmem:[#allocation3 + $0xf0] sm:$0xff] }
 0x338   : > { %v2153_v23 = vpop.f32.mrf.mxu3  ;;  %v3036_v3 = vld [vmem:[#allocation3 + $0xaa] sm:$0xff] }
 0x339   : > { %v2947_v39 = vpop.f32.mrf.mxu2  ;;  %v2547_v21 = vsel %vm2483_vm4, %v2451_v45, %v2515_v27  ;;  %v2194_v49 = vadd.f32 %v2153_v23, %v1972_v53  ;;  %v9859_v43 = vpop.f32.mrf.mxu1  ;;  %v2669_v38 = vld [vmem:[#allocation3 + $0x139] sm:$0xff]  ;;  %v12080_v27 = vld [vmem:[#allocation11_spill] sm:$0xff] }
 0x33a   : > { %v9857_v4 = vadd.f32 %v2947_v39, %v9742_v2  ;;  %2580 = vst.msk [vmem:[#allocation3 + $0x141] sm:$0xff] %vm431_vm3, %v2547_v21  ;;  %v2608_v2 = vld [vmem:[#allocation3 + $0xf8] sm:$0xff] }
 0x33b   : > { %v2416_v60 = vadd.f32 %v2375_v52, %v2194_v49  ;;  %v9874_v22 = vpack.c.bf16 %v2608_v2, %v2607_v12 }
 0x33c   : > { %v9862_v32 = vpop.f32.mrf.mxu0 }
 0x33d   : > { %v2452_v13 = vadd.f32 %v9845_v9, %v2416_v60 }
 0x33f   : > { %vm2484_vm5 = vcmp.gt.f32.partialorder %v2452_v13, 0.0  ;;  %v2516_v50 = vmul.f32 0.2, %v2452_v13 }
 0x340   : > { %v2155_v14 = vpop.f32.mrf.mxu3 }
 0x341   : > { %v2949_v40 = vpop.f32.mrf.mxu2  ;;  %v2548_v48 = vsel %vm2484_vm5, %v2452_v13, %v2516_v50  ;;  %v2195_v6 = vadd.f32 %v2155_v14, %v1973_v57  ;;  %v9871_v44 = vpop.f32.mrf.mxu1  ;;  %v2670_v51 = vld [vmem:[#allocation3 + $0x141] sm:$0xff]  ;;  %v3037_v13 = vld [vmem:[#allocation3 + $0xb2] sm:$0xff] }
 0x342   : > { %v9869_v52 = vadd.f32 %v2949_v40, %v9761_v18  ;;  %2581 = vst.msk [vmem:[#allocation3 + $0x151] sm:$0xff] %vm431_vm3, %v2548_v48  ;;  %v2688_v47 = vpack.c.bf16 %v2670_v51, %v2669_v38  ;;  %v9917_v38 = vpack.c.bf16 %v3037_v13, %v3036_v3  ;;  %v8234_v51 = vld [vmem:[%s11991_s3 + $0xb0] sm:$0xff] }
 0x343   : > { %v2417_v63 = vadd.f32 %v2377_v11, %v2195_v6  ;;  %v9915_v6 = vpack.c.bf16 %v2610_v42, %v2609_v55  ;;  %3906 = vmatpush.bf16.msra.mxu2 %v8234_v51 }
 0x344   : > { %7631 = vmatmul.msk.bf16.gmra.mxu1 %vm431_vm3, %v2688_v47  ;;  %v9879_v17 = vpop.f32.mrf.mxu0  ;;  %v8247_v47 = vld [vmem:[%s11991_s3 + $0x118] sm:$0xff] }
 0x345   : > { %v2453_v18 = vadd.f32 %v9845_v9, %v2417_v63  ;;  %7696 = vmatmul.msk.bf16.gmra.mxu3 %vm431_vm3, %v9876_v15  ;;  %4656 = vmatpush.bf16.msra.mxu1 %v8247_v47 }
 0x346   : > { %7660 = vmatmul.msk.bf16.gmra.mxu2 %vm431_vm3, %v9874_v22 }
 0x347   : > { %vm2485_vm6 = vcmp.gt.f32.partialorder %v2453_v18, 0.0  ;;  %v2517_v11 = vmul.f32 0.2, %v2453_v18  ;;  %7737 = vmatmul.msk.bf16.gmra.mxu0 %vm431_vm3, %v9807_v30  ;;  %v12079_v30 = vld [vmem:[#allocation12_spill] sm:$0xff] }
 0x348   : > { %v2158_v29 = vpop.f32.mrf.mxu3  ;;  %v1752_v23 = vadd.f32 %v12080_v27, %v12079_v30 }
 0x349   : > { %v2952_v1 = vpop.f32.mrf.mxu2  ;;  %v2549_v33 = vsel %vm2485_vm6, %v2453_v18, %v2517_v11  ;;  %v2196_v31 = vadd.f32 %v2158_v29, %v1974_v16  ;;  %v9893_v62 = vpop.f32.mrf.mxu1  ;;  %v2671_v40 = vld [vmem:[#allocation3 + $0x151] sm:$0xff] }
 0x34a   : > { %v9891_v10 = vadd.f32 %v2952_v1, %v9770_v37  ;;  %2582 = vst.msk [vmem:[#allocation3 + $0x159] sm:$0xff] %vm431_vm3, %v2549_v33  ;;  %v1975_v37 = vadd.f32 %v9768_v41, %v1752_v23  ;;  %v8243_v41 = vld [vmem:[%s11991_s3 + $0xf8] sm:$0xff] }
 0x34b   : > { %v2418_v45 = vadd.f32 %v2380_v20, %v2196_v31  ;;  %4406 = vmatpush.bf16.msra.mxu0 %v8243_v41 }
 0x34c   : > { %v9899_v53 = vpop.f32.mrf.mxu0 }
 0x34d   : > { %v2454_v39 = vadd.f32 %v9845_v9, %v2418_v45 }
 0x34f   : > { %vm2486_vm7 = vcmp.gt.f32.partialorder %v2454_v39, 0.0  ;;  %v2518_v21 = vmul.f32 0.2, %v2454_v39 }
 0x350   : > { %v2160_v49 = vpop.f32.mrf.mxu3 }
 0x351   : > { %v2954_v60 = vpop.f32.mrf.mxu2  ;;  %v2550_v57 = vsel %vm2486_vm7, %v2454_v39, %v2518_v21  ;;  %v2197_v50 = vadd.f32 %v2160_v49, %v1975_v37  ;;  %v9908_v14 = vpop.f32.mrf.mxu1  ;;  %v2672_v2 = vld [vmem:[#allocation3 + $0x159] sm:$0xff]  ;;  %v3038_v37 = vld [vmem:[#allocation3 + $0xc2] sm:$0xff]  ;;  %v3039_v21 = vld [vmem:[#allocation3 + $0xca] sm:$0xff] }
 0x352   : > { %v9906_v20 = vadd.f32 %v2954_v60, %v9789_v36  ;;  %2583 = vst.msk [vmem:[#allocation3 + $0x169] sm:$0xff] %vm431_vm3, %v2550_v57  ;;  %v2689_v19 = vpack.c.bf16 %v2672_v2, %v2671_v40  ;;  %v9957_v40 = vpack.c.bf16 %v3039_v21, %v3038_v37  ;;  %v3525_v21 = vld [vmem:[#allocation3 + $0x39] sm:$0xff] }
 0x353   : > { %v2419_v48 = vadd.f32 %v9862_v32, %v2197_v50  ;;  %v12081_v32 = vld [vmem:[#allocation13_spill] sm:$0xff] }
 0x354   : > { %7632 = vmatmul.msk.bf16.gmra.mxu1 %vm431_vm3, %v2689_v19  ;;  %v3410_v36 = vpop.f32.mrf.mxu0  ;;  %v1976_v63 = vadd.f32 %v9787_v5, %v12081_v32  ;;  %v12082_v5 = vld [vmem:[#allocation14_spill] sm:$0xff] }
 0x355   : > { %v2455_v12 = vadd.f32 %v9845_v9, %v2419_v48  ;;  %7697 = vmatmul.msk.bf16.gmra.mxu3 %vm431_vm3, %v9917_v38  ;;  %v1754_v45 = vadd.f32 %v9699_v56, %v12082_v5  ;;  %v3523_v32 = vld [vmem:[#allocation3 + $0x21] sm:$0xff]  ;;  %v2613_v5 = vld [vmem:[#allocation3 + $0x138] sm:$0xff] }
 0x356   : > { %7661 = vmatmul.msk.bf16.gmra.mxu2 %vm431_vm3, %v9915_v6 }
 0x357   : > { %vm2487_vm8 = vcmp.gt.f32.partialorder %v2455_v12, 0.0  ;;  %v2519_v18 = vmul.f32 0.2, %v2455_v12  ;;  %7738 = vmatmul.msk.bf16.gmra.mxu0 %vm431_vm3, %v9837_v59  ;;  %v1977_v59 = vadd.f32 %v9802_v25, %v1754_v45  ;;  %v2611_v25 = vld [vmem:[#allocation3 + $0x120] sm:$0xff] }
 0x358   : > { %v2163_v58 = vpop.f32.mrf.mxu3 }
 0x359   : > { %v2957_v16 = vpop.f32.mrf.mxu2  ;;  %v2551_v11 = vsel %vm2487_vm8, %v2455_v12, %v2519_v18  ;;  %v2198_v29 = vadd.f32 %v2163_v58, %v1976_v63  ;;  %v9938_v33 = vpop.f32.mrf.mxu1  ;;  %v2673_v3 = vld [vmem:[#allocation3 + $0x169] sm:$0xff]  ;;  %v2614_v58 = vld [vmem:[#allocation3 + $0x140] sm:$0xff] }
 0x35a   : > { %v9936_v1 = vadd.f32 %v2957_v16, %v9804_v61  ;;  %2584 = vst.msk [vmem:[#allocation3 + $0x171] sm:$0xff] %vm431_vm3, %v2551_v11  ;;  %v2612_v61 = vld [vmem:[#allocation3 + $0x128] sm:$0xff]  ;;  %v9983_v45 = vpack.c.bf16 %v2614_v58, %v2613_v5  ;;  %v3045_v5 = vld [vmem:[#allocation3 + $0x112] sm:$0xff] }
 0x35b   : > { %v2420_v31 = vadd.f32 %v9879_v17, %v2198_v29  ;;  %v9955_v50 = vpack.c.bf16 %v2612_v61, %v2611_v25  ;;  %v3041_v16 = vld [vmem:[#allocation3 + $0xe2] sm:$0xff] }
 0x35c   : > { %v3412_v34 = vpop.f32.mrf.mxu0 }
 0x35d   : > { %v2456_v30 = vadd.f32 %v9845_v9, %v2420_v31 }
 0x35f   : > { %vm2488_vm9 = vcmp.gt.f32.partialorder %v2456_v30, 0.0  ;;  %v2520_v27 = vmul.f32 0.2, %v2456_v30 }
 0x360   : > { %v2165_v23 = vpop.f32.mrf.mxu3 }
 0x361   : > { %v2959_v39 = vpop.f32.mrf.mxu2  ;;  %v2552_v49 = vsel %vm2488_vm9, %v2456_v30, %v2520_v27  ;;  %v2199_v60 = vadd.f32 %v2165_v23, %v1977_v59  ;;  %v9949_v17 = vpop.f32.mrf.mxu1  ;;  %v2674_v56 = vld [vmem:[#allocation3 + $0x171] sm:$0xff] }
 0x362   : > { %v9947_v42 = vadd.f32 %v2959_v39, %v9824_v35  ;;  %2585 = vst.msk [vmem:[#allocation3 + $0x181] sm:$0xff] %vm431_vm3, %v2552_v49  ;;  %v9952_v13 = vpack.c.bf16 %v2674_v56, %v2673_v3  ;;  %v8233_v39 = vld [vmem:[%s11991_s3 + $0xa8] sm:$0xff] }
 0x363   : > { %v2421_v57 = vadd.f32 %v9899_v53, %v2199_v60  ;;  %3907 = vmatpush.bf16.msra.mxu2 %v8233_v39  ;;  %v2616_v60 = vld [vmem:[#allocation3 + $0x158] sm:$0xff]  ;;  %v2617_v39 = vld [vmem:[#allocation3 + $0x168] sm:$0xff] }
 0x364   : > { %7633 = vmatmul.msk.bf16.gmra.mxu1 %vm431_vm3, %v9952_v13  ;;  %v3415_v35 = vpop.f32.mrf.mxu0  ;;  %v3042_v3 = vld [vmem:[#allocation3 + $0xf2] sm:$0xff]  ;;  %v3043_v56 = vld [vmem:[#allocation3 + $0xfa] sm:$0xff] }
 0x365   : > { %v2457_v2 = vadd.f32 %v9845_v9, %v2421_v57  ;;  %7698 = vmatmul.msk.bf16.gmra.mxu3 %vm431_vm3, %v9957_v40  ;;  %v3524_v57 = vld [vmem:[#allocation3 + $0x31] sm:$0xff] }
 0x366   : > { %7662 = vmatmul.msk.bf16.gmra.mxu2 %vm431_vm3, %v9955_v50 }
 0x367   : > { %vm2489_vm10 = vcmp.gt.f32.partialorder %v2457_v2, 0.0  ;;  %v2521_v41 = vmul.f32 0.2, %v2457_v2  ;;  %7739 = vmatmul.msk.bf16.gmra.mxu0 %vm431_vm3, %v9874_v22  ;;  %v3040_v22 = vld [vmem:[#allocation3 + $0xda] sm:$0xff] }
 0x368   : > { %v3160_v19 = vpop.f32.mrf.mxu3 }
 0x369   : > { %v2962_v53 = vpop.f32.mrf.mxu2  ;;  %v2553_v55 = vsel %vm2489_vm10, %v2457_v2, %v2521_v41  ;;  %v3240_v51 = vadd.f32 %v3160_v19, %v9822_v0  ;;  %v9972_v9 = vpop.f32.mrf.mxu1  ;;  %v3522_v0 = vld [vmem:[#allocation3 + $0x19] sm:$0xff]  ;;  %v10016_v2 = vpack.c.bf16 %v3525_v21, %v3524_v57  ;;  %v2615_v41 = vld [vmem:[#allocation3 + $0x150] sm:$0xff]  ;;  %v10020_v19 = vpack.c.bf16 %v3043_v56, %v3042_v3 }
 0x36a   : > { %v9969_v48 = vadd.f32 %v2962_v53, %v9834_v7  ;;  %2586 = vst.msk [vmem:[#allocation3 + $0x189] sm:$0xff] %vm431_vm3, %v2553_v55  ;;  %v3554_v31 = vpack.c.bf16 %v3523_v32, %v3522_v0  ;;  %v10018_v53 = vpack.c.bf16 %v2616_v60, %v2615_v41  ;;  %v2618_v0 = vld [vmem:[#allocation3 + $0x170] sm:$0xff] }
 0x36b   : > { %v9975_v47 = vadd.f32 %v3410_v36, %v3240_v51  ;;  %v9985_v36 = vpack.c.bf16 %v3041_v16, %v3040_v22  ;;  %v3527_v16 = vld [vmem:[#allocation3 + $0x51] sm:$0xff]  ;;  %v2634_v21 = vpack.c.bf16 %v2618_v0, %v2617_v39  ;;  %v3529_v41 = vld [vmem:[#allocation3 + $0x69] sm:$0xff] }
 0x36c   : > { %v3417_v12 = vpop.f32.mrf.mxu0 }
 0x370   : > { %v3162_v18 = vpop.f32.mrf.mxu3 }
 0x371   : > { %v2964_v63 = vpop.f32.mrf.mxu2  ;;  %v3241_v7 = vadd.f32 %v3162_v18, %v9832_v24  ;;  %v9981_v29 = vpop.f32.mrf.mxu1  ;;  %v8238_v18 = vld [vmem:[%s11991_s3 + $0xd0] sm:$0xff] }
 0x372   : > { %v9978_v11 = vadd.f32 %v2964_v63, %v9859_v43  ;;  %4157 = vmatpush.bf16.msrb.mxu3 %v8238_v18  ;;  %v3047_v18 = vld [vmem:[#allocation3 + $0x12a] sm:$0xff] }
 0x373   : > { %v9987_v30 = vadd.f32 %v3412_v34, %v3241_v7 }
 0x374   : > { %7770 = vmatmul.msk.bf16.vlgmr.msrb.gmra.mxu1 %vm431_vm3, %v3554_v31  ;;  %v3420_v59 = vpop.f32.mrf.mxu0  ;;  %v3044_v31 = vld [vmem:[#allocation3 + $0x10a] sm:$0xff] }
 0x375   : > { %7699 = vmatmul.msk.bf16.gmra.mxu3 %vm431_vm3, %v9985_v36 }
 0x376   : > { %7663 = vmatmul.msk.bf16.gmra.mxu2 %vm431_vm3, %v9983_v45 }
 0x377   : > { %7740 = vmatmul.msk.bf16.gmra.mxu0 %vm431_vm3, %v9915_v6 }
 0x378   : > { %v3165_v43 = vpop.f32.mrf.mxu3 }
 0x379   : > { %v2967_v24 = vpop.f32.mrf.mxu2  ;;  %v3242_v34 = vadd.f32 %v3165_v43, %v9857_v4  ;;  %v10000_v23 = vpop.f32.mrf.mxu1  ;;  %v3526_v43 = vld [vmem:[#allocation3 + $0x49] sm:$0xff] }
 0x37a   : > { %v9997_v27 = vadd.f32 %v2967_v24, %v9871_v44 }
 0x37b   : > { %v10005_v61 = vadd.f32 %v3415_v35, %v3242_v34  ;;  %v8232_v35 = vld [vmem:[%s11991_s3 + $0xa0] sm:$0xff]  ;;  %v10052_v34 = vpack.c.bf16 %v3527_v16, %v3526_v43 }
 0x37c   : > { %v3422_v37 = vpop.f32.mrf.mxu0  ;;  %3908 = vmatpush.bf16.msra.mxu2 %v8232_v35 }
 0x380   : > { %v3167_v6 = vpop.f32.mrf.mxu3 }
 0x381   : > { %v2969_v49 = vpop.f32.mrf.mxu2  ;;  %v3243_v4 = vadd.f32 %v3167_v6, %v9869_v52  ;;  %v10011_v25 = vpop.f32.mrf.mxu1 }
 0x382   : > { %v10008_v44 = vadd.f32 %v2969_v49, %v9893_v62  ;;  %v10054_v49 = vpack.c.bf16 %v3045_v5, %v3044_v31 }
 0x383   : > { %v10022_v55 = vadd.f32 %v3417_v12, %v3243_v4 }
 0x384   : > { %7771 = vmatmul.msk.bf16.gmra.mxu1 %vm431_vm3, %v10016_v2  ;;  %v3425_v52 = vpop.f32.mrf.mxu0 }
 0x385   : > { %7700 = vmatmul.msk.bf16.gmra.mxu3 %vm431_vm3, %v10020_v19 }
 0x386   : > { %7664 = vmatmul.msk.bf16.gmra.mxu2 %vm431_vm3, %v10018_v53 }
 0x387   : > { %7741 = vmatmul.msk.bf16.gmra.mxu0 %vm431_vm3, %v9955_v50 }
 0x388   : > { %v3170_v51 = vpop.f32.mrf.mxu3 }
 0x389   : > { %v2972_v62 = vpop.f32.mrf.mxu2  ;;  %v3244_v12 = vadd.f32 %v3170_v51, %v9891_v10  ;;  %v10036_v63 = vpop.f32.mrf.mxu1 }
 0x38a   : > { %v10033_v32 = vadd.f32 %v2972_v62, %v9908_v14 }
 0x38b   : > { %v10041_v58 = vadd.f32 %v3420_v59, %v3244_v12  ;;  %v8242_v59 = vld [vmem:[%s11991_s3 + $0xf0] sm:$0xff] }
 0x38c   : > { %v3427_v22 = vpop.f32.mrf.mxu0  ;;  %4407 = vmatpush.bf16.msra.mxu0 %v8242_v59  ;;  %v3046_v12 = vld [vmem:[#allocation3 + $0x122] sm:$0xff] }
 0x38d   : > { %v3531_v59 = vld [vmem:[#allocation3 + $0x81] sm:$0xff] }
 0x390   : > { %v3172_v50 = vpop.f32.mrf.mxu3 }
 0x391   : > { %v2974_v7 = vpop.f32.mrf.mxu2  ;;  %v3245_v10 = vadd.f32 %v3172_v50, %v9906_v20  ;;  %v10047_v24 = vpop.f32.mrf.mxu1 }
 0x392   : > { %v10044_v14 = vadd.f32 %v2974_v7, %v9938_v33  ;;  %v8246_v33 = vld [vmem:[%s11991_s3 + $0x110] sm:$0xff] }
 0x393   : > { %v10056_v6 = vadd.f32 %v3422_v37, %v3245_v10  ;;  %4657 = vmatpush.bf16.msra.mxu1 %v8246_v33 }
 0x394   : > { %7772 = vmatmul.msk.bf16.gmra.mxu1 %vm431_vm3, %v10052_v34  ;;  %v3430_v20 = vpop.f32.mrf.mxu0 }
 0x395   : > { %7701 = vmatmul.msk.bf16.gmra.mxu3 %vm431_vm3, %v10054_v49 }
 0x396   : > { %7665 = vmatmul.msk.bf16.gmra.mxu2 %vm431_vm3, %v2634_v21 }
 0x397   : > { %7742 = vmatmul.msk.bf16.gmra.mxu0 %vm431_vm3, %v9983_v45 }
 0x398   : > { %v3175_v37 = vpop.f32.mrf.mxu3 }
 0x399   : > { %v2977_v60 = vpop.f32.mrf.mxu2  ;;  %v3246_v56 = vadd.f32 %v3175_v37, %v9936_v1  ;;  %v10072_v4 = vpop.f32.mrf.mxu1  ;;  %v10084_v1 = vpack.c.bf16 %v3047_v18, %v3046_v12 }
 0x39a   : > { %v10069_v3 = vadd.f32 %v2977_v60, %v9949_v17  ;;  %v3528_v17 = vld [vmem:[#allocation3 + $0x61] sm:$0xff] }
 0x39b   : > { %v10074_v57 = vadd.f32 %v3425_v52, %v3246_v56  ;;  %v10082_v50 = vpack.c.bf16 %v3529_v41, %v3528_v17  ;;  %v3048_v60 = vld [vmem:[#allocation3 + $0x13a] sm:$0xff] }
 0x39c   : > { %v3432_v35 = vpop.f32.mrf.mxu0 }
 0x3a0   : > { %v3177_v51 = vpop.f32.mrf.mxu3 }
 0x3a1   : > { %v2979_v62 = vpop.f32.mrf.mxu2  ;;  %v3247_v45 = vadd.f32 %v3177_v51, %v9947_v42  ;;  %v10080_v7 = vpop.f32.mrf.mxu1 }
 0x3a2   : > { %v10077_v16 = vadd.f32 %v2979_v62, %v9972_v9 }
 0x3a3   : > { %v10086_v52 = vadd.f32 %v3427_v22, %v3247_v45  ;;  %v8237_v45 = vld [vmem:[%s11991_s3 + $0xc8] sm:$0xff] }
 0x3a4   : > { %7773 = vmatmul.msk.bf16.gmra.mxu1 %vm431_vm3, %v10082_v50  ;;  %v3435_v0 = vpop.f32.mrf.mxu0  ;;  %4158 = vmatpush.bf16.msrb.mxu3 %v8237_v45 }
 0x3a5   : > { %7702 = vmatmul.msk.bf16.gmra.mxu3 %vm431_vm3, %v10084_v1 }
 0x3a6   : > { %7810 = vmatmul.msk.bf16.vlgmr.msra.gmra.mxu2 %vm431_vm3, %v9719_v28  ;;  %v3049_v28 = vld [vmem:[#allocation3 + $0x142] sm:$0xff] }
 0x3a7   : > { %7743 = vmatmul.msk.bf16.gmra.mxu0 %vm431_vm3, %v10018_v53 }
 0x3a8   : > { %v3180_v9 = vpop.f32.mrf.mxu3 }
 0x3a9   : > { %v2982_v42 = vpop.f32.mrf.mxu2  ;;  %v3248_v22 = vadd.f32 %v3180_v9, %v9969_v48  ;;  %v10100_v5 = vpop.f32.mrf.mxu1  ;;  %v10112_v48 = vpack.c.bf16 %v3049_v28, %v3048_v60  ;;  %v3532_v60 = vld [vmem:[#allocation3 + $0x91] sm:$0xff] }
 0x3aa   : > { %v10097_v31 = vadd.f32 %v2982_v42, %v9981_v29  ;;  %v3530_v29 = vld [vmem:[#allocation3 + $0x79] sm:$0xff] }
 0x3ab   : > { %v10102_v10 = vadd.f32 %v3430_v20, %v3248_v22  ;;  %v10110_v41 = vpack.c.bf16 %v3531_v59, %v3530_v29  ;;  %v3533_v42 = vld [vmem:[#allocation3 + $0x99] sm:$0xff] }
 0x3ac   : > { %v3437_v43 = vpop.f32.mrf.mxu0  ;;  %v3050_v22 = vld [vmem:[#allocation3 + $0x152] sm:$0xff]  ;;  %v10149_v28 = vpack.c.bf16 %v3533_v42, %v3532_v60 }
 0x3b0   : > { %v3182_v33 = vpop.f32.mrf.mxu3 }
 0x3b1   : > { %v2984_v39 = vpop.f32.mrf.mxu2  ;;  %v3249_v53 = vadd.f32 %v3182_v33, %v9978_v11  ;;  %v10108_v56 = vpop.f32.mrf.mxu1  ;;  %v8241_v11 = vld [vmem:[%s11991_s3 + $0xe8] sm:$0xff] }
 0x3b2   : > { %v10105_v37 = vadd.f32 %v2984_v39, %v10000_v23  ;;  %4408 = vmatpush.bf16.msra.mxu0 %v8241_v11 }
 0x3b3   : > { %v10114_v20 = vadd.f32 %v3432_v35, %v3249_v53  ;;  %v3303_v53 = vld [vmem:[#allocation3 + $0x188] sm:$0xff] }
 0x3b4   : > { %7774 = vmatmul.msk.bf16.gmra.mxu1 %vm431_vm3, %v10110_v41  ;;  %v3440_v62 = vpop.f32.mrf.mxu0 }
 0x3b5   : > { %7703 = vmatmul.msk.bf16.gmra.mxu3 %vm431_vm3, %v10112_v48 }
 0x3b6   : > { %7811 = vmatmul.msk.bf16.gmra.mxu2 %vm431_vm3, %v9747_v46  ;;  %v8240_v46 = vld [vmem:[%s11991_s3 + $0xe0] sm:$0xff] }
 0x3b7   : > { %7744 = vmatmul.msk.bf16.gmra.mxu0 %vm431_vm3, %v2634_v21 }
 0x3b8   : > { %v3185_v51 = vpop.f32.mrf.mxu3  ;;  %4409 = vmatpush.bf16.msra.mxu0 %v8240_v46 }
 0x3b9   : > { %v2987_v23 = vpop.f32.mrf.mxu2  ;;  %v3250_v12 = vadd.f32 %v3185_v51, %v9997_v27  ;;  %v10130_v18 = vpop.f32.mrf.mxu1  ;;  %v3051_v27 = vld [vmem:[#allocation3 + $0x15a] sm:$0xff] }
 0x3ba   : > { %v10127_v35 = vadd.f32 %v2987_v23, %v10011_v25  ;;  %v10151_v29 = vpack.c.bf16 %v3051_v27, %v3050_v22 }
 0x3bb   : > { %v10138_v21 = vadd.f32 %v3435_v0, %v3250_v12  ;;  %v8236_v0 = vld [vmem:[%s11991_s3 + $0xc0] sm:$0xff] }
 0x3bc   : > { %v3442_v17 = vpop.f32.mrf.mxu0  ;;  %4159 = vmatpush.bf16.msrb.mxu3 %v8236_v0 }
 0x3c0   : > { %v3187_v9 = vpop.f32.mrf.mxu3 }
 0x3c1   : > { %v2989_v25 = vpop.f32.mrf.mxu2  ;;  %v3251_v39 = vadd.f32 %v3187_v9, %v10008_v44  ;;  %v10144_v33 = vpop.f32.mrf.mxu1  ;;  %v3302_v44 = vld [vmem:[#allocation3 + $0x180] sm:$0xff]  ;;  %v3535_v9 = vld [vmem:[#allocation3 + $0xb1] sm:$0xff] }
 0x3c2   : > { %v10141_v59 = vadd.f32 %v2989_v25, %v10036_v63  ;;  %v3319_v23 = vpack.c.bf16 %v3303_v53, %v3302_v44 }
 0x3c3   : > { %v10153_v11 = vadd.f32 %v3437_v43, %v3251_v39  ;;  %v3052_v39 = vld [vmem:[#allocation3 + $0x16a] sm:$0xff] }
 0x3c4   : > { %7775 = vmatmul.msk.bf16.gmra.mxu1 %vm431_vm3, %v10149_v28  ;;  %v3445_v63 = vpop.f32.mrf.mxu0 }
 0x3c5   : > { %7704 = vmatmul.msk.bf16.gmra.mxu3 %vm431_vm3, %v10151_v29 }
 0x3c6   : > { %7812 = vmatmul.msk.bf16.gmra.mxu2 %vm431_vm3, %v9775_v8  ;;  %v3053_v8 = vld [vmem:[#allocation3 + $0x172] sm:$0xff] }
 0x3c7   : > { %7745 = vmatmul.msk.bf16.gmra.mxu0 %vm431_vm3, %v3319_v23 }
 0x3c8   : > { %v3190_v12 = vpop.f32.mrf.mxu3 }
 0x3c9   : > { %v2992_v51 = vpop.f32.mrf.mxu2  ;;  %v3252_v43 = vadd.f32 %v3190_v12, %v10033_v32  ;;  %v10166_v45 = vpop.f32.mrf.mxu1  ;;  %v10178_v32 = vpack.c.bf16 %v3053_v8, %v3052_v39 }
 0x3ca   : > { %v10163_v46 = vadd.f32 %v2992_v51, %v10047_v24  ;;  %v3534_v24 = vld [vmem:[#allocation3 + $0xa9] sm:$0xff] }
 0x3cb   : > { %v10168_v42 = vadd.f32 %v3440_v62, %v3252_v43  ;;  %v10176_v44 = vpack.c.bf16 %v3535_v9, %v3534_v24  ;;  %12083 = vst [vmem:[#allocation8_spill] sm:$0xff] %v10178_v32 }
 0x3cc   : > { %v3447_v25 = vpop.f32.mrf.mxu0 }
 0x3d0   : > { %v3192_v27 = vpop.f32.mrf.mxu3 }
 0x3d1   : > { %v2994_v22 = vpop.f32.mrf.mxu2  ;;  %v3253_v0 = vadd.f32 %v3192_v27, %v10044_v14  ;;  %v10174_v53 = vpop.f32.mrf.mxu1  ;;  %v3537_v27 = vld [vmem:[#allocation3 + $0xc9] sm:$0xff] }
 0x3d2   : > { %v10171_v60 = vadd.f32 %v2994_v22, %v10072_v4  ;;  %v8245_v4 = vld [vmem:[%s11991_s3 + $0x108] sm:$0xff] }
 0x3d3   : > { %v10180_v62 = vadd.f32 %v3442_v17, %v3253_v0  ;;  %4658 = vmatpush.bf16.msra.mxu1 %v8245_v4 }
 0x3d4   : > { %7776 = vmatmul.msk.bf16.gmra.mxu1 %vm431_vm3, %v10176_v44  ;;  %v3450_v23 = vpop.f32.mrf.mxu0 }
 0x3d5   : > { %7705 = vmatmul.msk.bf16.gmra.mxu3 %vm431_vm3, %v10178_v32  ;;  %v3538_v32 = vld [vmem:[#allocation3 + $0xd9] sm:$0xff] }
 0x3d6   : > { %7813 = vmatmul.msk.bf16.gmra.mxu2 %vm431_vm3, %v9809_v26  ;;  %v4024_v26 = vld [vmem:[#allocation3 + $0x38] sm:$0xff] }
 0x3d7   : > { %7890 = vmatmul.msk.bf16.vlgmr.msra.gmra.mxu0 %vm431_vm3, %v10016_v2 }
 0x3d8   : > { %v3195_v17 = vpop.f32.mrf.mxu3 }
 0x3d9   : > { %v2997_v14 = vpop.f32.mrf.mxu2  ;;  %v3254_v12 = vadd.f32 %v3195_v17, %v10069_v3  ;;  %v10197_v43 = vpop.f32.mrf.mxu1  ;;  %v4023_v3 = vld [vmem:[#allocation3 + $0x30] sm:$0xff] }
 0x3da   : > { %v10194_v51 = vadd.f32 %v2997_v14, %v10080_v7  ;;  %v3536_v7 = vld [vmem:[#allocation3 + $0xc1] sm:$0xff]  ;;  %v4055_v14 = vpack.c.bf16 %v4024_v26, %v4023_v3 }
 0x3db   : > { %v10199_v9 = vadd.f32 %v3445_v63, %v3254_v12  ;;  %v10207_v4 = vpack.c.bf16 %v3537_v27, %v3536_v7  ;;  %v3539_v26 = vld [vmem:[#allocation3 + $0xe1] sm:$0xff]  ;;  %v4026_v7 = vld [vmem:[#allocation3 + $0x50] sm:$0xff] }
 0x3dc   : > { %v3452_v22 = vpop.f32.mrf.mxu0 }
 0x3e0   : > { %v3197_v8 = vpop.f32.mrf.mxu3 }
 0x3e1   : > { %v2999_v39 = vpop.f32.mrf.mxu2  ;;  %v3255_v2 = vadd.f32 %v3197_v8, %v10077_v16  ;;  %v10205_v24 = vpop.f32.mrf.mxu1 }
 0x3e2   : > { %v10202_v0 = vadd.f32 %v2999_v39, %v10100_v5 }
 0x3e3   : > { %v10209_v17 = vadd.f32 %v3447_v25, %v3255_v2 }
 0x3e4   : > { %7777 = vmatmul.msk.bf16.gmra.mxu1 %vm431_vm3, %v10207_v4  ;;  %v3455_v63 = vpop.f32.mrf.mxu0 }
 0x3e5   : > { %7850 = vmatmul.msk.bf16.vlgmr.msrb.gmra.mxu3 %vm431_vm3, %v4055_v14 }
 0x3e6   : > { %7814 = vmatmul.msk.bf16.gmra.mxu2 %vm431_vm3, %v9839_v54 }
 0x3e7   : > { %7891 = vmatmul.msk.bf16.gmra.mxu0 %vm431_vm3, %v10052_v34 }
 0x3e8   : > { %v3200_v5 = vpop.f32.mrf.mxu3 }
 0x3e9   : > { %v3002_v16 = vpop.f32.mrf.mxu2  ;;  %v3256_v25 = vadd.f32 %v3200_v5, %v10097_v31  ;;  %v10222_v27 = vpop.f32.mrf.mxu1  ;;  %v10233_v31 = vpack.c.bf16 %v3539_v26, %v3538_v32 }
 0x3ea   : > { %v10219_v12 = vadd.f32 %v3002_v16, %v10108_v56  ;;  %v4025_v16 = vld [vmem:[#allocation3 + $0x48] sm:$0xff] }
 0x3eb   : > { %v10224_v39 = vadd.f32 %v3450_v23, %v3256_v25  ;;  %v4056_v23 = vpack.c.bf16 %v4026_v7, %v4025_v16 }
 0x3ec   : > { %v3457_v8 = vpop.f32.mrf.mxu0 }
 0x3f0   : > { %v3202_v54 = vpop.f32.mrf.mxu3 }
 0x3f1   : > { %v3004_v2 = vpop.f32.mrf.mxu2  ;;  %v3257_v34 = vadd.f32 %v3202_v54, %v10105_v37  ;;  %v3660_v14 = vpop.f32.mrf.mxu1 }
 0x3f2   : > { %v10227_v3 = vadd.f32 %v3004_v2, %v10130_v18  ;;  %v10231_v56 = vadd.f32 %v3660_v14, %v9975_v47  ;;  %v4028_v14 = vld [vmem:[#allocation3 + $0x68] sm:$0xff] }
 0x3f3   : > { %v10235_v5 = vadd.f32 %v3452_v22, %v3257_v34 }
 0x3f4   : > { %7778 = vmatmul.msk.bf16.gmra.mxu1 %vm431_vm3, %v10233_v31  ;;  %v3460_v25 = vpop.f32.mrf.mxu0 }
 0x3f5   : > { %7851 = vmatmul.msk.bf16.gmra.mxu3 %vm431_vm3, %v4056_v23  ;;  %v3540_v23 = vld [vmem:[#allocation3 + $0xf1] sm:$0xff] }
 0x3f6   : > { %7815 = vmatmul.msk.bf16.gmra.mxu2 %vm431_vm3, %v9876_v15  ;;  %v3541_v15 = vld [vmem:[#allocation3 + $0xf9] sm:$0xff] }
 0x3f7   : > { %7892 = vmatmul.msk.bf16.gmra.mxu0 %vm431_vm3, %v10082_v50 }
 0x3f8   : > { %v3205_v37 = vpop.f32.mrf.mxu3 }
 0x3f9   : > { %v3007_v47 = vpop.f32.mrf.mxu2  ;;  %v3258_v32 = vadd.f32 %v3205_v37, %v10127_v35  ;;  %v3662_v22 = vpop.f32.mrf.mxu1 }
 0x3fa   : > { %v10245_v18 = vadd.f32 %v3007_v47, %v10144_v33  ;;  %v10249_v26 = vadd.f32 %v3662_v22, %v9987_v30  ;;  %v10260_v47 = vpack.c.bf16 %v3541_v15, %v3540_v23  ;;  %v4027_v30 = vld [vmem:[#allocation3 + $0x60] sm:$0xff] }
 0x3fb   : > { %v10251_v2 = vadd.f32 %v3455_v63, %v3258_v32  ;;  %v4057_v63 = vpack.c.bf16 %v4028_v14, %v4027_v30  ;;  %v3542_v30 = vld [vmem:[#allocation3 + $0x109] sm:$0xff] }
 0x3fc   : > { %v3462_v54 = vpop.f32.mrf.mxu0 }
 0x400   : > { %v3207_v34 = vpop.f32.mrf.mxu3 }
 0x401   : > { %v3009_v7 = vpop.f32.mrf.mxu2  ;;  %v3259_v16 = vadd.f32 %v3207_v34, %v10141_v59  ;;  %v3665_v33 = vpop.f32.mrf.mxu1  ;;  %v3543_v34 = vld [vmem:[#allocation3 + $0x111] sm:$0xff] }
 0x402   : > { %v10254_v50 = vadd.f32 %v3009_v7, %v10166_v45  ;;  %v10258_v35 = vadd.f32 %v3665_v33, %v10005_v61  ;;  %v4030_v33 = vld [vmem:[#allocation3 + $0x80] sm:$0xff] }
 0x403   : > { %v10262_v37 = vadd.f32 %v3457_v8, %v3259_v16 }
 0x404   : > { %7779 = vmatmul.msk.bf16.gmra.mxu1 %vm431_vm3, %v10260_v47  ;;  %v3465_v59 = vpop.f32.mrf.mxu0 }
 0x405   : > { %7852 = vmatmul.msk.bf16.gmra.mxu3 %vm431_vm3, %v4057_v63  ;;  %v10287_v63 = vpack.c.bf16 %v3543_v34, %v3542_v30  ;;  %v4032_v30 = vld [vmem:[#allocation3 + $0x98] sm:$0xff] }
 0x406   : > { %7816 = vmatmul.msk.bf16.gmra.mxu2 %vm431_vm3, %v9917_v38 }
 0x407   : > { %7893 = vmatmul.msk.bf16.gmra.mxu0 %vm431_vm3, %v10110_v41 }
 0x408   : > { %v3210_v45 = vpop.f32.mrf.mxu3 }
 0x409   : > { %v3012_v61 = vpop.f32.mrf.mxu2  ;;  %v3260_v8 = vadd.f32 %v3210_v45, %v10163_v46  ;;  %v3667_v22 = vpop.f32.mrf.mxu1 }
 0x40a   : > { %v10272_v32 = vadd.f32 %v3012_v61, %v10174_v53  ;;  %v10276_v15 = vadd.f32 %v3667_v22, %v10022_v55  ;;  %v4029_v55 = vld [vmem:[#allocation3 + $0x78] sm:$0xff] }
 0x40b   : > { %v10278_v7 = vadd.f32 %v3460_v25, %v3260_v8  ;;  %v4058_v25 = vpack.c.bf16 %v4030_v33, %v4029_v55  ;;  %v3545_v33 = vld [vmem:[#allocation3 + $0x129] sm:$0xff] }
 0x40c   : > { %v3467_v38 = vpop.f32.mrf.mxu0 }
 0x40d   : > { %12084 = vst [vmem:[#allocation7_spill] sm:$0xff] %v10278_v7 }
 0x410   : > { %v3212_v16 = vpop.f32.mrf.mxu3 }
 0x411   : > { %v3014_v14 = vpop.f32.mrf.mxu2  ;;  %v3261_v23 = vadd.f32 %v3212_v16, %v10171_v60  ;;  %v3670_v53 = vpop.f32.mrf.mxu1  ;;  %v6665_v60 = vld [vmem:[%s11993_s5] sm:$0x7] }
 0x412   : > { %v10281_v41 = vadd.f32 %v3014_v14, %v10197_v43  ;;  %v10285_v46 = vadd.f32 %v3670_v53, %v10041_v58  ;;  %v8244_v43 = vld [vmem:[%s11991_s3 + $0x100] sm:$0xff]  ;;  %v6934_v58 = vsel %vm634_vm0, %v6665_v60, 0  ;;  %vm6799_vm0 = vcmask 1041409  }
 0x413   : > { %v10289_v61 = vadd.f32 %v3462_v54, %v3261_v23  ;;  %4659 = vmatpush.bf16.msra.mxu1 %v8244_v43  ;;  %6943 = vmatpush.bf16.msrb.mxu2 %v6934_v58 }
 0x414   : > { %7780 = vmatmul.msk.bf16.gmra.mxu1 %vm431_vm3, %v10287_v63  ;;  %v3470_v14 = vpop.f32.mrf.mxu0 }
 0x415   : > { %12085 = vst [vmem:[#allocation9_spill] sm:$0xff] %v10289_v61  ;;  %7853 = vmatmul.msk.bf16.gmra.mxu3 %vm431_vm3, %v4058_v25  ;;  %v3544_v25 = vld [vmem:[#allocation3 + $0x121] sm:$0xff] }
 0x416   : > { %7817 = vmatmul.msk.bf16.gmra.mxu2 %vm431_vm3, %v9957_v40  ;;  %v10321_v43 = vpack.c.bf16 %v3545_v33, %v3544_v25 }
 0x417   : > { %7894 = vmatmul.msk.bf16.gmra.mxu0 %vm431_vm3, %v10149_v28 }
 0x418   : > { %v3215_v45 = vpop.f32.mrf.mxu3 }
 0x419   : > { %v3017_v54 = vpop.f32.mrf.mxu2  ;;  %v3262_v22 = vadd.f32 %v3215_v45, %v10194_v51  ;;  %v3672_v34 = vpop.f32.mrf.mxu1 }
 0x41a   : > { %v10306_v8 = vadd.f32 %v3017_v54, %v10205_v24  ;;  %v10310_v40 = vadd.f32 %v3672_v34, %v10056_v6  ;;  %v4031_v6 = vld [vmem:[#allocation3 + $0x90] sm:$0xff] }
 0x41b   : > { %v10312_v16 = vadd.f32 %v3465_v59, %v3262_v22  ;;  %v4059_v59 = vpack.c.bf16 %v4032_v30, %v4031_v6 }
 0x41c   : > { %v3472_v60 = vpop.f32.mrf.mxu0 }
 0x41d   : > { %12086 = vst [vmem:[#allocation10_spill] sm:$0xff] %v10312_v16 }
 0x420   : > { %v3217_v53 = vpop.f32.mrf.mxu3 }
 0x421   : > { %v3019_v23 = vpop.f32.mrf.mxu2  ;;  %v3263_v55 = vadd.f32 %v3217_v53, %v10202_v0  ;;  %v3675_v24 = vpop.f32.mrf.mxu1  ;;  %v4034_v53 = vld [vmem:[#allocation3 + $0xb0] sm:$0xff] }
 0x422   : > { %v10315_v28 = vadd.f32 %v3019_v23, %v10222_v27  ;;  %v10319_v51 = vadd.f32 %v3675_v24, %v10074_v57 }
 0x423   : > { %v10323_v58 = vadd.f32 %v3467_v38, %v3263_v55  ;;  %v3546_v55 = vld [vmem:[#allocation3 + $0x139] sm:$0xff] }
 0x424   : > { %7781 = vmatmul.msk.bf16.gmra.mxu1 %vm431_vm3, %v10321_v43  ;;  %v3475_v34 = vpop.f32.mrf.mxu0 }
 0x425   : > { %12087 = vst [vmem:[#allocation12_spill] sm:$0xff] %v10323_v58  ;;  %7854 = vmatmul.msk.bf16.gmra.mxu3 %vm431_vm3, %v4059_v59 }
 0x426   : > { %7818 = vmatmul.msk.bf16.gmra.mxu2 %vm431_vm3, %v9985_v36  ;;  %v3547_v36 = vld [vmem:[#allocation3 + $0x141] sm:$0xff] }
 0x427   : > { %7895 = vmatmul.msk.bf16.gmra.mxu0 %vm431_vm3, %v10176_v44  ;;  %v10348_v24 = vpack.c.bf16 %v3547_v36, %v3546_v55  ;;  %v4036_v36 = vld [vmem:[#allocation3 + $0xc8] sm:$0xff] }
 0x428   : > { %v3220_v57 = vpop.f32.mrf.mxu3 }
 0x429   : > { %v3910_v0 = vpop.f32.mrf.mxu2  ;;  %v3264_v27 = vadd.f32 %v3220_v57, %v10219_v12  ;;  %v3677_v38 = vpop.f32.mrf.mxu1 }
 0x42a   : > { %v10334_v54 = vadd.f32 %v3910_v0, %v10231_v56  ;;  %v10337_v45 = vadd.f32 %v3677_v38, %v10086_v52  ;;  %v4033_v52 = vld [vmem:[#allocation3 + $0xa8] sm:$0xff] }
 0x42b   : > { %v10339_v22 = vadd.f32 %v3470_v14, %v3264_v27  ;;  %v4060_v14 = vpack.c.bf16 %v4034_v53, %v4033_v52  ;;  %v3548_v53 = vld [vmem:[#allocation3 + $0x151] sm:$0xff] }
 0x42d   : > { %12088 = vst [vmem:[#allocation11_spill] sm:$0xff] %v10339_v22 }
 0x430   : > { %v3222_v33 = vpop.f32.mrf.mxu3 }
 0x431   : > { %v3912_v23 = vpop.f32.mrf.mxu2  ;;  %v3265_v44 = vadd.f32 %v3222_v33, %v10227_v3  ;;  %v3680_v12 = vpop.f32.mrf.mxu1 }
 0x432   : > { %v10343_v30 = vadd.f32 %v3912_v23, %v10249_v26  ;;  %v10346_v56 = vadd.f32 %v3680_v12, %v10102_v10  ;;  %v3477_v3 = vpop.f32.mrf.mxu0 }
 0x433   : > { %v10350_v25 = vadd.f32 %v3472_v60, %v3265_v44 }
 0x434   : > { %7782 = vmatmul.msk.bf16.gmra.mxu1 %vm431_vm3, %v10348_v24 }
 0x435   : > { %12089 = vst [vmem:[#allocation13_spill] sm:$0xff] %v10350_v25  ;;  %7855 = vmatmul.msk.bf16.gmra.mxu3 %vm431_vm3, %v4060_v14 }
 0x436   : > { %7819 = vmatmul.msk.bf16.gmra.mxu2 %vm431_vm3, %v10020_v19  ;;  %v3549_v19 = vld [vmem:[#allocation3 + $0x159] sm:$0xff] }
 0x437   : > { %7896 = vmatmul.msk.bf16.gmra.mxu0 %vm431_vm3, %v10207_v4  ;;  %v10375_v44 = vpack.c.bf16 %v3549_v19, %v3548_v53 }
 0x438   : > { %v3225_v10 = vpop.f32.mrf.mxu3 }
 0x439   : > { %v3915_v26 = vpop.f32.mrf.mxu2  ;;  %v3266_v6 = vadd.f32 %v3225_v10, %v10245_v18  ;;  %v3682_v60 = vpop.f32.mrf.mxu1  ;;  %12091 = vst [vmem:[#allocation15_spill] sm:$0xff] %v10375_v44 }
 0x43a   : > { %v10361_v59 = vadd.f32 %v3915_v26, %v10258_v35  ;;  %v10364_v57 = vadd.f32 %v3682_v60, %v10114_v20  ;;  %v3480_v33 = vpop.f32.mrf.mxu0  ;;  %v4035_v20 = vld [vmem:[#allocation3 + $0xc0] sm:$0xff] }
 0x43b   : > { %v10366_v0 = vadd.f32 %v3475_v34, %v3266_v6  ;;  %v4061_v34 = vpack.c.bf16 %v4036_v36, %v4035_v20  ;;  %v4038_v6 = vld [vmem:[#allocation3 + $0xe0] sm:$0xff] }
 0x43d   : > { %12090 = vst [vmem:[#allocation14_spill] sm:$0xff] %v10366_v0 }
 0x440   : > { %v3227_v27 = vpop.f32.mrf.mxu3 }
 0x441   : > { %v3917_v38 = vpop.f32.mrf.mxu2  ;;  %v3267_v4 = vadd.f32 %v3227_v27, %v10254_v50  ;;  %v3685_v18 = vpop.f32.mrf.mxu1 }
 0x442   : > { %v10370_v23 = vadd.f32 %v3917_v38, %v10276_v15  ;;  %v10373_v35 = vadd.f32 %v3685_v18, %v10138_v21 }
 0x443   : > { %v10377_v12 = vadd.f32 %v3477_v3, %v3267_v4  ;;  %v3482_v3 = vpop.f32.mrf.mxu0 }
 0x444   : > { %7783 = vmatmul.msk.bf16.gmra.mxu1 %vm431_vm3, %v10375_v44 }
 0x445   : > { %12092 = vst [vmem:[#allocation16_spill] sm:$0xff] %v10377_v12  ;;  %7856 = vmatmul.msk.bf16.gmra.mxu3 %vm431_vm3, %v4061_v34  ;;  %v4040_v34 = vld [vmem:[#allocation3 + $0xf8] sm:$0xff] }
 0x446   : > { %7820 = vmatmul.msk.bf16.gmra.mxu2 %vm431_vm3, %v10054_v49 }
 0x447   : > { %7897 = vmatmul.msk.bf16.gmra.mxu0 %vm431_vm3, %v10233_v31 }
 0x448   : > { %v3230_v50 = vpop.f32.mrf.mxu3 }
 0x449   : > { %v3920_v21 = vpop.f32.mrf.mxu2  ;;  %v3268_v15 = vadd.f32 %v3230_v50, %v10272_v32  ;;  %v3687_v52 = vpop.f32.mrf.mxu1 }
 0x44a   : > { %v10388_v55 = vadd.f32 %v3920_v21, %v10285_v46  ;;  %v10391_v14 = vadd.f32 %v3687_v52, %v10153_v11  ;;  %v4037_v46 = vld [vmem:[#allocation3 + $0xd8] sm:$0xff]  ;;  %v3552_v21 = vld [vmem:[#allocation3 + $0x181] sm:$0xff] }
 0x44b   : > { %v10393_v10 = vadd.f32 %v3480_v33, %v3268_v15  ;;  %v4062_v27 = vpack.c.bf16 %v4038_v6, %v4037_v46  ;;  %v3485_v11 = vpop.f32.mrf.mxu0  ;;  %v10440_v6 = vld [vmem:[#allocation3 + $0x52] sm:$0xff] }
 0x44c   : > { %12093 = vst [vmem:[#allocation17_spill] sm:$0xff] %v10391_v14 }
 0x44d   : > { %12094 = vst [vmem:[#allocation18_spill] sm:$0xff] %v10393_v10 }
 0x450   : > { %v3232_v49 = vpop.f32.mrf.mxu3 }
 0x451   : > { %v3922_v26 = vpop.f32.mrf.mxu2  ;;  %v3269_v60 = vadd.f32 %v3232_v49, %v10281_v41  ;;  %v3690_v19 = vpop.f32.mrf.mxu1  ;;  %v4524_v49 = vld [vmem:[#allocation3 + $0x3a] sm:$0xff] }
 0x452   : > { %v10397_v31 = vadd.f32 %v3922_v26, %v10310_v40  ;;  %v10400_v32 = vadd.f32 %v3690_v19, %v10168_v42  ;;  %v10438_v26 = vld [vmem:[#allocation3 + $0x4a] sm:$0xff] }
 0x453   : > { %v10402_v38 = vadd.f32 %v3482_v3, %v3269_v60  ;;  %v3487_v18 = vpop.f32.mrf.mxu0 }
 0x454   : > { %7784 = vmatmul.msk.bf16.gmra.mxu1 %vm431_vm3, %v9952_v13 }
 0x455   : > { %12095 = vst [vmem:[#allocation19_spill] sm:$0xff] %v10402_v38  ;;  %7857 = vmatmul.msk.bf16.gmra.mxu3 %vm431_vm3, %v4062_v27  ;;  %v10448_v27 = vld [vmem:[#allocation3 + $0x6a] sm:$0xff] }
 0x456   : > { %7821 = vmatmul.msk.bf16.gmra.mxu2 %vm431_vm3, %v10084_v1  ;;  %v3553_v1 = vld [vmem:[#allocation3 + $0x189] sm:$0xff]  ;;  %12105 = vst [vmem:[#allocation29_spill] sm:$0xff] %v10448_v27 }
 0x457   : > { %7898 = vmatmul.msk.bf16.gmra.mxu0 %vm431_vm3, %v10260_v47  ;;  %v10427_v15 = vpack.c.bf16 %v3553_v1, %v3552_v21  ;;  %v8392_v21 = vld [vmem:[%s8723_s23 + $0x8] sm:$0xff]  }
 0x458   : > { %v3235_v41 = vpop.f32.mrf.mxu3  ;;  %v10520_v12 = vunpack.c.h.bf16 %v8392_v21 }
 0x459   : > { %v3925_v40 = vpop.f32.mrf.mxu2  ;;  %v3270_v42 = vadd.f32 %v3235_v41, %v10306_v8  ;;  %v3692_v33 = vpop.f32.mrf.mxu1  ;;  %12101 = vst [vmem:[#allocation25_spill] sm:$0xff] %v10427_v15 }
 0x45a   : > { %v10413_v36 = vadd.f32 %v3925_v40, %v10319_v51  ;;  %v10416_v4 = vadd.f32 %v3692_v33, %v10180_v62  ;;  %v4039_v62 = vld [vmem:[#allocation3 + $0xf0] sm:$0xff]  ;;  %v10455_v40 = vld [vmem:[#allocation3 + $0x82] sm:$0xff]  ;;  %v12129_v25 = vrot.slane %v10520_v12, 4 }
 0x45b   : > { %v10418_v13 = vadd.f32 %v3485_v11, %v3270_v42  ;;  %v4063_v52 = vpack.c.bf16 %v4040_v34, %v4039_v62  ;;  %v4411_v11 = vpop.f32.mrf.mxu0  ;;  %12108 = vst [vmem:[#allocation32_spill] sm:$0xff] %v10455_v40  ;;  %v10459_v42 = vld [vmem:[#allocation3 + $0x9a] sm:$0xff]  ;;  %v10461_v33 = vld [vmem:[#allocation3 + $0x128] sm:$0xff] }
 0x45c   : > { %12096 = vst [vmem:[#allocation20_spill] sm:$0xff] %v10413_v36  ;;  %v8393_v62 = vld [vmem:[%s8723_s23 + $0x10] sm:$0xff]  }
 0x45d   : > { %12097 = vst [vmem:[#allocation21_spill] sm:$0xff] %v10416_v4 }
 0x45e   : > { %12098 = vst [vmem:[#allocation22_spill] sm:$0xff] %v10418_v13 }
 0x45f   : > { %12110 = vst [vmem:[#allocation34_spill] sm:$0xff] %v10459_v42 }
 0x460   : > { %v3237_v53 = vpop.f32.mrf.mxu3 }
 0x461   : > { %v3927_v20 = vpop.f32.mrf.mxu2  ;;  %v3271_v47 = vadd.f32 %v3237_v53, %v10315_v28  ;;  %v3695_v8 = vpop.f32.mrf.mxu1  ;;  %v10467_v53 = vld [vmem:[#allocation3 + $0x182] sm:$0xff] }
 0x462   : > { %v10422_v50 = vadd.f32 %v3927_v20, %v10337_v45  ;;  %v10425_v51 = vadd.f32 %v3695_v8, %v10199_v9  ;;  %v4523_v45 = vld [vmem:[#allocation3 + $0x32] sm:$0xff]  ;;  %12113 = vst [vmem:[#allocation37_spill] sm:$0xff] %v10467_v53  ;;  %v10469_v20 = vld [vmem:[#allocation3 + $0x18a] sm:$0xff] }
 0x463   : > { %v10429_v3 = vadd.f32 %v3487_v18, %v3271_v47  ;;  %v10463_v18 = vld [vmem:[#allocation3 + $0x140] sm:$0xff]  ;;  %12114 = vst [vmem:[#allocation38_spill] sm:$0xff] %v10469_v20  ;;  %v4555_v34 = vpack.c.bf16 %v4524_v49, %v4523_v45  ;;  %v8314_v8 = vld [vmem:[%s8723_s23] sm:$0xff]   ;;  %v8394_v45 = vld [vmem:[%s8723_s23 + $0x18] sm:$0xff]  }
 0x464   : > { %12099 = vst [vmem:[#allocation23_spill] sm:$0xff] %v10422_v50  ;;  %7785 = vmatmul.msk.bf16.gmra.mxu1 %vm431_vm3, %v10427_v15  ;;  %v10505_v47 = vunpack.c.l.bf16 %v8394_v45  ;;  %v10524_v0 = vunpack.c.h.bf16 %v8394_v45  ;;  %v12130_v15 = vrot.slane %v10520_v12, 6 }
 0x465   : > { %12100 = vst [vmem:[#allocation24_spill] sm:$0xff] %v10425_v51  ;;  %7858 = vmatmul.msk.bf16.gmra.mxu3 %vm431_vm3, %v4063_v52  ;;  %v4041_v52 = vld [vmem:[#allocation3 + $0x108] sm:$0xff] }
 0x466   : > { %12102 = vst [vmem:[#allocation26_spill] sm:$0xff] %v10429_v3  ;;  %7822 = vmatmul.msk.bf16.gmra.mxu2 %vm431_vm3, %v10112_v48  ;;  %v10446_v48 = vld [vmem:[#allocation3 + $0x62] sm:$0xff]  ;;  %v8098_v40 = vrot.slane %v10505_v47, 9  ;;  %v12140_v36 = vrot.slane %v10505_v47, 6  ;;  %v8102_v51 = vrot.slane %v10524_v0, 9 }
 0x467   : > { %7899 = vmatmul.msk.bf16.gmra.mxu0 %vm431_vm3, %v10287_v63  ;;  %12104 = vst [vmem:[#allocation28_spill] sm:$0xff] %v10446_v48  ;;  %v10450_v63 = vld [vmem:[#allocation3 + $0x7a] sm:$0xff] }
 0x468   : > { %v4161_v9 = vpop.f32.mrf.mxu3  ;;  %12106 = vst [vmem:[#allocation30_spill] sm:$0xff] %v10450_v63 }
 0x469   : > { %v3930_v28 = vpop.f32.mrf.mxu2  ;;  %v4241_v19 = vadd.f32 %v4161_v9, %v10334_v54  ;;  %v3697_v46 = vpop.f32.mrf.mxu1  ;;  %v4042_v54 = vld [vmem:[#allocation3 + $0x110] sm:$0xff]  ;;  %12111 = vst [vmem:[#allocation35_spill] sm:$0xff] %v10463_v18 }
 0x46a   : > { %v10443_v60 = vadd.f32 %v3930_v28, %v10346_v56  ;;  %v10453_v41 = vadd.f32 %v3697_v46, %v10209_v17  ;;  %v10457_v56 = vld [vmem:[#allocation3 + $0x92] sm:$0xff]  ;;  %v10478_v28 = vld [vmem:[#allocation3 + $0x120] sm:$0xff]  ;;  %v10484_v46 = vunpack.c.l.bf16 %v8314_v8  ;;  %v4064_v49 = vpack.c.bf16 %v4042_v54, %v4041_v52 }
 0x46b   : > { %12109 = vst [vmem:[#allocation33_spill] sm:$0xff] %v10457_v56  ;;  %v10465_v1 = vadd.f32 %v4411_v11, %v4241_v19  ;;  %v10471_v17 = vld [vmem:[#allocation3 + $0x158] sm:$0xff]  ;;  %v10486_v11 = vunpack.c.l.bf16 %v8392_v21  ;;  %v10518_v54 = vunpack.c.h.bf16 %v8314_v8  ;;  %v10522_v52 = vunpack.c.h.bf16 %v8393_v62 }
 0x46c   : > { %12103 = vst [vmem:[#allocation27_spill] sm:$0xff] %v10443_v60  ;;  %v10493_v60 = vld [vmem:[#allocation3 + $0x150] sm:$0xff]  ;;  %v11999_v38 = vrot.slane %v10484_v46, 2  ;;  %v8074_v21 = vrot.slane %v10484_v46, 9  ;;  %v8089_v56 = vrot.slane %v12130_v15, 9  ;;  %v12144_v53 = vrot.slane %v10484_v46, 2 }
 0x46d   : > { %12107 = vst [vmem:[#allocation31_spill] sm:$0xff] %v10453_v41  ;;  %v10495_v41 = vunpack.c.l.bf16 %v8393_v62  ;;  %v12136_v15 = vrot.slane %v10522_v52, 6 }
 0x46e   : > { %12112 = vst [vmem:[#allocation36_spill] sm:$0xff] %v10465_v1  ;;  %v10491_v1 = vld [vmem:[#allocation3 + $0x138] sm:$0xff]  ;;  %v8075_v45 = vrot.slane %v11999_v38, 9  ;;  %v8082_v38 = vrot.slane %v10486_v11, 9 }
 0x46f   : > { %12115 = vst [vmem:[#allocation39_spill] sm:$0xff] %v10471_v17  ;;  %v8090_v42 = vrot.slane %v10495_v41, 9  ;;  %v8097_v63 = vrot.slane %v12136_v15, 9 }
 0x470   : > { %12116 = vst [vmem:[#allocation40_spill] sm:$0xff] %v10491_v1  ;;  %v4163_v19 = vpop.f32.mrf.mxu3 }
 0x471   : > { %12117 = vst [vmem:[#allocation41_spill] sm:$0xff] %v10493_v60  ;;  %v3932_v4 = vpop.f32.mrf.mxu2  ;;  %v10511_v13 = vadd.f32 %v4163_v19, %v10343_v30  ;;  %v3700_v9 = vpop.f32.mrf.mxu1  ;;  %v12001_v19 = vrot.slane %v10484_v46, 6  ;;  %v8078_v30 = vrot.slane %v10518_v54, 9 }
 0x472   : > { %v10508_v14 = vadd.f32 %v3932_v4, %v10364_v57  ;;  %v10516_v3 = vadd.f32 %v3700_v9, %v10224_v39  ;;  %v12000_v57 = vrot.slane %v10484_v46, 4  ;;  %v12002_v39 = vrot.slane %v10518_v54, 2 }
 0x473   : > { %12119 = vst [vmem:[#allocation43_spill] sm:$0xff] %v10511_v13  ;;  %v5774_v4 = vrot.slane %v10518_v54, 6  ;;  %v8077_v8 = vrot.slane %v12001_v19, 9  ;;  %v12127_v13 = vrot.slane %v10486_v11, 6 }
 0x474   : > { %12118 = vst [vmem:[#allocation42_spill] sm:$0xff] %v10508_v14  ;;  %7930 = vmatmul.msk.bf16.vlgmr.msra.gmra.mxu1 %vm431_vm3, %v4555_v34  ;;  %v8076_v9 = vrot.slane %v12000_v57, 9  ;;  %v12128_v14 = vrot.slane %v10520_v12, 2 }
 0x475   : > { %12120 = vst [vmem:[#allocation44_spill] sm:$0xff] %v10516_v3  ;;  %7859 = vmatmul.msk.bf16.gmra.mxu3 %vm431_vm3, %v4064_v49  ;;  %v8085_v19 = vrot.slane %v12127_v13, 9  ;;  %v12133_v13 = vrot.slane %v10495_v41, 6  ;;  %v8094_v3 = vrot.slane %v10522_v52, 9 }
 0x476   : > { %7823 = vmatmul.msk.bf16.gmra.mxu2 %vm431_vm3, %v10151_v29 }
 0x477   : > { %7900 = vmatmul.msk.bf16.gmra.mxu0 %vm431_vm3, %v10321_v43  ;;  %v8093_v58 = vrot.slane %v12133_v13, 9  ;;  %v12139_v13 = vrot.slane %v10505_v47, 4 }
 0x478   : > { %v4166_v10 = vpop.f32.mrf.mxu3 }
 0x479   : > { %v3935_v34 = vpop.f32.mrf.mxu2  ;;  %v10559_v29 = vadd.f32 %v4166_v10, %v10361_v59  ;;  %v3702_v49 = vpop.f32.mrf.mxu1  ;;  %v12124_v59 = vrot.slane %v10518_v54, 4  ;;  %v8100_v61 = vrot.slane %v12139_v13, 9  ;;  %v6346_v13 = vadd.f32 %v8075_v45, %v12144_v53 }
 0x47a   : > { %v10556_v43 = vadd.f32 %v3935_v34, %v10373_v35  ;;  %v10566_v62 = vadd.f32 %v3702_v49, %v10235_v5  ;;  %v8079_v35 = vrot.slane %v12002_v39, 9  ;;  %v8081_v34 = vrot.slane %v5774_v4, 9 }
 0x47b   : > { %12122 = vst [vmem:[#allocation46_spill] sm:$0xff] %v10559_v29  ;;  %v8080_v10 = vrot.slane %v12124_v59, 9  ;;  %v12125_v29 = vrot.slane %v10486_v11, 2  ;;  %v12126_v5 = vrot.slane %v10486_v11, 4  ;;  %v8087_v39 = vrot.slane %v12128_v14, 9 }
 0x47c   : > { %12121 = vst [vmem:[#allocation45_spill] sm:$0xff] %v10556_v43  ;;  %v8086_v43 = vrot.slane %v10520_v12, 9  ;;  %v8088_v59 = vrot.slane %v12129_v25, 9  ;;  %v12134_v14 = vrot.slane %v10522_v52, 2  ;;  %v12135_v25 = vrot.slane %v10522_v52, 4 }
 0x47d   : > { %12123 = vst [vmem:[#allocation47_spill] sm:$0xff] %v10566_v62  ;;  %v8083_v57 = vrot.slane %v12125_v29, 9  ;;  %v8084_v49 = vrot.slane %v12126_v5, 9  ;;  %v12131_v29 = vrot.slane %v10495_v41, 2  ;;  %v12132_v5 = vrot.slane %v10495_v41, 4 }
 0x47e   : > { %v8095_v60 = vrot.slane %v12134_v14, 9  ;;  %v8096_v17 = vrot.slane %v12135_v25, 9  ;;  %v8101_v14 = vrot.slane %v12140_v36, 9  ;;  %v12141_v25 = vrot.slane %v10524_v0, 2 }
 0x47f   : > { %v8091_v22 = vrot.slane %v12131_v29, 9  ;;  %v8092_v62 = vrot.slane %v12132_v5, 9  ;;  %v12137_v29 = vrot.slane %v10505_v47, 2  ;;  %v12145_v36 = vrot.slane %v10484_v46, 4 }
 0x480   : > { %v4168_v50 = vpop.f32.mrf.mxu3  ;;  %v8103_v44 = vrot.slane %v12141_v25, 9  ;;  %v12146_v25 = vrot.slane %v10484_v46, 6  ;;  %v6352_v7 = vadd.f32 %v8081_v34, %v5774_v4  ;;  %v6353_v53 = vadd.f32 %v10486_v11, %v8082_v38 }
 0x481   : > { %v8099_v16 = vrot.slane %v12137_v29, 9  ;;  %v10606_v5 = vpop.f32.mrf.mxu2  ;;  %v10616_v15 = vadd.f32 %v4168_v50, %v10370_v23  ;;  %v3705_v1 = vpop.f32.mrf.mxu1  ;;  %v12143_v29 = vrot.slane %v10524_v0, 4  ;;  %v6347_v48 = vadd.f32 %v8076_v9, %v12145_v36 }
 0x482   : > { %12138 = vst [vmem:[#allocation48_spill] sm:$0xff] %v10606_v5  ;;  %v6345_v5 = vadd.f32 %v10484_v46, %v8074_v21  ;;  %v10624_v20 = vadd.f32 %v3705_v1, %v10251_v2  ;;  %v6348_v27 = vadd.f32 %v8077_v8, %v12146_v25  ;;  %v6349_v23 = vadd.f32 %v10518_v54, %v8078_v30 }
 0x483   : > { %12142 = vst [vmem:[#allocation49_spill] sm:$0xff] %v10616_v15  ;;  %v8104_v18 = vrot.slane %v12143_v29, 9  ;;  %v12147_v50 = vrot.slane %v10518_v54, 2  ;;  %v12148_v29 = vrot.slane %v10518_v54, 4  ;;  %v12149_v2 = vpack.c.bf16 %v10440_v6, %v10438_v26 }
 0x484   : > { %v12150_v1 = vrot.slane %v10486_v11, 2  ;;  %v12151_v8 = vrot.slane %v10486_v11, 4  ;;  %v12152_v9 = vrot.slane %v10486_v11, 6  ;;  %v6357_v54 = vadd.f32 %v10520_v12, %v8086_v43 }
 0x485   : > { %v6350_v15 = vadd.f32 %v8079_v35, %v12147_v50  ;;  %v6351_v21 = vadd.f32 %v8080_v10, %v12148_v29  ;;  %7931 = vmatmul.msk.bf16.gmra.mxu1 %vm431_vm3, %v12149_v2  ;;  %v12153_v35 = vld [vmem:[#allocation8_spill] sm:$0xff]  ;;  %v12154_v38 = vpack.c.bf16 %v10461_v33, %v10478_v28  ;;  %v12155_v26 = vrot.slane %v10524_v0, 6 }
 0x486   : > { %v6354_v46 = vadd.f32 %v8083_v57, %v12150_v1  ;;  %v6355_v30 = vadd.f32 %v8084_v49, %v12151_v8  ;;  %v6356_v45 = vadd.f32 %v8085_v19, %v12152_v9  ;;  %7824 = vmatmul.msk.bf16.gmra.mxu2 %vm431_vm3, %v12153_v35  ;;  %v12156_v57 = vrot.slane %v10520_v12, 2 }
 0x487   : > { %7860 = vmatmul.msk.bf16.gmra.mxu3 %vm431_vm3, %v12154_v38  ;;  %v8105_v6 = vrot.slane %v12155_v26, 9  ;;  %v12157_v10 = vrot.slane %v10520_v12, 4  ;;  %v12158_v19 = vrot.slane %v10520_v12, 6  ;;  %v6361_v34 = vadd.f32 %v10495_v41, %v8090_v42  ;;  %7901 = vmatmul.msk.bf16.gmra.mxu0 %vm431_vm3, %v10348_v24 }
 0x488   : > { %v6358_v4 = vadd.f32 %v8087_v39, %v12156_v57  ;;  %v12159_v49 = vrot.slane %v10495_v41, 2  ;;  %v12160_v33 = vrot.slane %v10495_v41, 4  ;;  %v12161_v25 = vrot.slane %v10495_v41, 6  ;;  %v4171_v1 = vpop.f32.mrf.mxu3 }
 0x489   : > { %v6359_v11 = vadd.f32 %v8088_v59, %v12157_v10  ;;  %v6360_v43 = vadd.f32 %v8089_v56, %v12158_v19  ;;  %v6365_v39 = vadd.f32 %v10522_v52, %v8094_v3  ;;  %v12162_v59 = vrot.slane %v10522_v52, 2  ;;  %v3940_v2 = vpop.f32.mrf.mxu2 }
 0x48a   : > { %v6362_v36 = vadd.f32 %v8091_v22, %v12159_v49  ;;  %v6363_v28 = vadd.f32 %v8092_v62, %v12160_v33  ;;  %v6364_v50 = vadd.f32 %v8093_v58, %v12161_v25  ;;  %v12163_v56 = vrot.slane %v10522_v52, 4 }
 0x48b   : > { %v6366_v12 = vadd.f32 %v8095_v60, %v12162_v59  ;;  %v12164_v29 = vrot.slane %v10522_v52, 6  ;;  %v6369_v62 = vadd.f32 %v10505_v47, %v8098_v40  ;;  %v12165_v58 = vrot.slane %v10505_v47, 2 }
 0x48c   : > { %v6367_v42 = vadd.f32 %v8096_v17, %v12163_v56  ;;  %v12166_v24 = vrot.slane %v10505_v47, 4  ;;  %v12167_v3 = vrot.slane %v10505_v47, 6  ;;  %v10685_v60 = vadd.f32 %v3940_v2, %v10400_v32 }
 0x48d   : > { %v6368_v22 = vadd.f32 %v8097_v63, %v12164_v29  ;;  %v6370_v41 = vadd.f32 %v8099_v16, %v12165_v58  ;;  %v10688_v17 = vadd.f32 %v4171_v1, %v10388_v55  ;;  %v3707_v63 = vpop.f32.mrf.mxu1  ;;  %v6373_v52 = vadd.f32 %v10524_v0, %v8102_v51  ;;  %v10700_v1 = vpop.f32.mrf.mxu0 }
 0x48e   : > { %v6371_v8 = vadd.f32 %v8100_v61, %v12166_v24  ;;  %v6372_v9 = vadd.f32 %v8101_v14, %v12167_v3  ;;  %12168 = vst [vmem:[#allocation8_spill] sm:$0xff] %v10685_v60  ;;  %v12170_v40 = vrot.slane %v10524_v0, 2  ;;  %v10694_v16 = vadd.f32 %v3707_v63, %v10262_v37  ;;  %v12181_v3 = vld [vmem:[#allocation37_spill] sm:$0xff]  ;;  %v12183_v63 = vld [vmem:[#allocation35_spill] sm:$0xff] }
 0x48f   : > { %12169 = vst [vmem:[#allocation50_spill] sm:$0xff] %v10688_v17  ;;  %v12171_v61 = vrot.slane %v10524_v0, 4  ;;  %v12172_v47 = vmov %v12155_v26  ;;  %v6473_v32 = vadd.f32 %v6353_v53, %v6345_v5  ;;  %v6474_v26 = vadd.f32 %v6354_v46, %v6346_v13 }
 0x490   : > { %v6374_v35 = vadd.f32 %v8103_v44, %v12170_v40  ;;  %v6376_v14 = vadd.f32 %v8105_v6, %v12172_v47  ;;  %v6475_v57 = vadd.f32 %v6355_v30, %v6347_v48  ;;  %v6476_v55 = vadd.f32 %v6356_v45, %v6348_v27  ;;  %12173 = vst [vmem:[#allocation51_spill] sm:$0xff] %v10700_v1 }
 0x491   : > { %v6375_v38 = vadd.f32 %v8104_v18, %v12171_v61  ;;  %v6477_v10 = vadd.f32 %v6357_v54, %v6349_v23  ;;  %v6478_v19 = vadd.f32 %v6358_v4, %v6350_v15  ;;  %v6479_v49 = vadd.f32 %v6359_v11, %v6351_v21  ;;  %v10702_v27 = vpop.f32.mrf.mxu2  ;;  %v4173_v15 = vpop.f32.mrf.mxu3  ;;  %v12176_v4 = vld [vmem:[#allocation7_spill] sm:$0xff] }
 0x492   : > { %v6480_v51 = vadd.f32 %v6360_v43, %v6352_v7  ;;  %v6481_v33 = vadd.f32 %v6369_v62, %v6361_v34  ;;  %v6482_v25 = vadd.f32 %v6370_v41, %v6362_v36  ;;  %v6483_v44 = vadd.f32 %v6371_v8, %v6363_v28  ;;  %12174 = vst [vmem:[#allocation52_spill] sm:$0xff] %v10702_v27  ;;  %v12180_v8 = vld [vmem:[#allocation38_spill] sm:$0xff] }
 0x493   : > { %v6484_v59 = vadd.f32 %v6372_v9, %v6364_v50  ;;  %v6485_v37 = vadd.f32 %v6373_v52, %v6365_v39  ;;  %v6486_v56 = vadd.f32 %v6374_v35, %v6366_v12  ;;  %v6487_v29 = vadd.f32 %v6375_v38, %v6367_v42  ;;  %v12177_v42 = vld [vmem:[#allocation29_spill] sm:$0xff]  ;;  %v12184_v52 = vld [vmem:[#allocation40_spill] sm:$0xff] }
 0x494   : > { %v6488_v2 = vadd.f32 %v6376_v14, %v6368_v22  ;;  %v6537_v18 = vmul.f32 0.25, %v6473_v32  ;;  %v6538_v0 = vmul.f32 0.25, %v6474_v26  ;;  %v6539_v5 = vmul.f32 0.25, %v6475_v57  ;;  %v12178_v22 = vld [vmem:[#allocation28_spill] sm:$0xff]  ;;  %v12186_v57 = vld [vmem:[#allocation15_spill] sm:$0xff] }
 0x495   : > { %v6540_v13 = vmul.f32 0.25, %v6476_v55  ;;  %v6541_v48 = vmul.f32 0.25, %v6477_v10  ;;  %v6542_v23 = vmul.f32 0.25, %v6478_v19  ;;  %v6543_v7 = vmul.f32 0.25, %v6479_v49  ;;  %v3710_v30 = vpop.f32.mrf.mxu1 }
 0x496   : > { %v6544_v21 = vmul.f32 0.25, %v6480_v51  ;;  %v6545_v53 = vmul.f32 0.25, %v6481_v33  ;;  %v10705_v46 = vadd.f32 %v4173_v15, %v10397_v31  ;;  %v6546_v45 = vmul.f32 0.25, %v6482_v25  ;;  %v12192_v15 = vld [vmem:[#allocation9_spill] sm:$0xff] }
 0x497   : > { %v6547_v54 = vmul.f32 0.25, %v6483_v44  ;;  %v6548_v6 = vmul.f32 0.25, %v6484_v59  ;;  %v10708_v11 = vadd.f32 %v3710_v30, %v12176_v4  ;;  %v6549_v43 = vmul.f32 0.25, %v6485_v37  ;;  %7902 = vmatmul.msk.bf16.gmra.mxu0 %vm431_vm3, %v12186_v57 }
 0x498   : > { %12175 = vst [vmem:[#allocation53_spill] sm:$0xff] %v10705_v46  ;;  %v6550_v34 = vmul.f32 0.25, %v6486_v56  ;;  %v6551_v36 = vmul.f32 0.25, %v6487_v29  ;;  %v6552_v28 = vmul.f32 0.25, %v6488_v2  ;;  %v6601_v50 = vpack.c.bf16 %v6537_v18, %v6537_v18  ;;  %v10724_v56 = vpop.f32.mrf.mxu0  ;;  %v12188_v29 = vld [vmem:[#allocation24_spill] sm:$0xff] }
 0x499   : > { %v6602_v39 = vpack.c.bf16 %v6538_v0, %v6538_v0  ;;  %v6603_v12 = vpack.c.bf16 %v6539_v5, %v6539_v5  ;;  %v12179_v62 = vpack.c.bf16 %v12177_v42, %v12178_v22  ;;  %v6604_v31 = vpack.c.bf16 %v6540_v13, %v6540_v13  ;;  %v3945_v51 = vpop.f32.mrf.mxu2  ;;  %v4176_v33 = vpop.f32.mrf.mxu3  ;;  %12187 = vst [vmem:[#allocation7_spill] sm:$0xff] %v10724_v56  ;;  %v12190_v18 = vld [vmem:[#allocation20_spill] sm:$0xff] }
 0x49a   : > { %v6605_v58 = vpack.c.bf16 %v6541_v48, %v6541_v48  ;;  %v6606_v41 = vpack.c.bf16 %v6542_v23, %v6542_v23  ;;  %v6607_v24 = vpack.c.bf16 %v6543_v7, %v6543_v7  ;;  %v12182_v9 = vpack.c.bf16 %v12180_v8, %v12181_v3 }
 0x49b   : > { %7932 = vmatmul.msk.bf16.gmra.mxu1 %vm431_vm3, %v12179_v62  ;;  %v12185_v40 = vpack.c.bf16 %v12183_v63, %v12184_v52  ;;  %v6608_v35 = vpack.c.bf16 %v6544_v21, %v6544_v21  ;;  %v6609_v61 = vpack.c.bf16 %v6545_v53, %v6545_v53  ;;  %v6610_v38 = vpack.c.bf16 %v6546_v45, %v6546_v45  ;;  %v10747_v63 = vld [vmem:[#allocation3 + $0xb2] sm:$0xff] }
 0x49c   : > { %7825 = vmatmul.msk.bf16.gmra.mxu2 %vm431_vm3, %v12182_v9  ;;  %v6611_v47 = vpack.c.bf16 %v6547_v54, %v6547_v54  ;;  %v6612_v14 = vpack.c.bf16 %v6548_v6, %v6548_v6  ;;  %v6613_v32 = vpack.c.bf16 %v6549_v43, %v6549_v43  ;;  %v6734_v26 = vunpack.c.l.b16 %v6601_v50  ;;  %v10745_v9 = vld [vmem:[#allocation3 + $0xaa] sm:$0xff] }
 0x49d   : > { %7861 = vmatmul.msk.bf16.gmra.mxu3 %vm431_vm3, %v12185_v40  ;;  %v6614_v55 = vpack.c.bf16 %v6550_v34, %v6550_v34  ;;  %v6615_v10 = vpack.c.bf16 %v6551_v36, %v6551_v36  ;;  %v6616_v19 = vpack.c.bf16 %v6552_v28, %v6552_v28  ;;  %v6735_v49 = vunpack.c.l.b16 %v6602_v39  ;;  %v3712_v5 = vpop.f32.mrf.mxu1  ;;  %v12195_v52 = vld [vmem:[#allocation23_spill] sm:$0xff] }
 0x49e   : > { %v6736_v25 = vunpack.c.l.b16 %v6603_v12  ;;  %v6737_v44 = vunpack.c.l.b16 %v6604_v31  ;;  %v6738_v59 = vunpack.c.l.b16 %v6605_v58  ;;  %v6739_v37 = vunpack.c.l.b16 %v6606_v41 }
 0x49f   : > { %v10727_v2 = vadd.f32 %v3945_v51, %v12188_v29  ;;  %v10730_v0 = vadd.f32 %v4176_v33, %v12190_v18  ;;  %v6740_v13 = vunpack.c.l.b16 %v6607_v24  ;;  %v10732_v48 = vunpack.c.l.b16 %v6608_v35  ;;  %v10771_v29 = vld [vmem:[#allocation3 + $0x188] sm:$0xff]  ;;  %v8396_v18 = vld [vmem:[%s8723_s23 + $0x28] sm:$0xff]  }
 0x4a0   : > { %v10735_v23 = vadd.f32 %v3712_v5, %v12192_v15  ;;  %v6742_v7 = vunpack.c.l.b16 %v6609_v61  ;;  %v6743_v21 = vunpack.c.l.b16 %v6610_v38  ;;  %v6744_v53 = vunpack.c.l.b16 %v6611_v47  ;;  %v8395_v47 = vld [vmem:[%s8723_s23 + $0x20] sm:$0xff]   ;;  %v10764_v51 = vpop.f32.mrf.mxu0  ;;  %v12200_v5 = vld [vmem:[#allocation32_spill] sm:$0xff] }
 0x4a1   : > { %12189 = vst [vmem:[#allocation29_spill] sm:$0xff] %v10727_v2  ;;  %v6745_v30 = vunpack.c.l.b16 %v6612_v14  ;;  %v6746_v45 = vunpack.c.l.b16 %v6613_v32  ;;  %v6747_v54 = vunpack.c.l.b16 %v6614_v55  ;;  %v10737_v6 = vunpack.c.l.b16 %v6615_v10  ;;  %v10742_v31 = vpop.f32.mrf.mxu2  ;;  %v4178_v58 = vpop.f32.mrf.mxu3  ;;  %v10755_v14 = vld [vmem:[#allocation3 + $0xc2] sm:$0xff]  ;;  %v10757_v32 = vld [vmem:[#allocation3 + $0xca] sm:$0xff] }
 0x4a2   : > { %12191 = vst [vmem:[#allocation28_spill] sm:$0xff] %v10730_v0  ;;  %v6798_v4 = vrot.slane %v6735_v49, 7  ;;  %v6801_v43 = vrot.slane %v6736_v25, 6  ;;  %v6804_v34 = vrot.slane %v6737_v44, 5  ;;  %v6749_v36 = vunpack.c.l.b16 %v6616_v19  ;;  %v4300_v49 = vld [vmem:[#allocation3 + $0x171] sm:$0xff] }
 0x4a3   : > { %12193 = vst [vmem:[#allocation38_spill] sm:$0xff] %v10735_v23  ;;  %v6807_v28 = vrot.slane %v6738_v59, 4  ;;  %v6810_v39 = vrot.slane %v6739_v37, 3  ;;  %v6813_v12 = vrot.slane %v6740_v13, 2  ;;  %v6816_v22 = vrot.slane %v10732_v48, 1  ;;  %v10769_v37 = vld [vmem:[#allocation3 + $0x170] sm:$0xff] }
 0x4a4   : > { %v6800_v50 = vsel %vm6799_vm0, %v6798_v4, %v6734_v26  ;;  %v6819_v62 = vrot.slane %v6743_v21, 7  ;;  %12194 = vst [vmem:[#allocation37_spill] sm:$0xff] %v10742_v31  ;;  %v6821_v24 = vrot.slane %v6744_v53, 6  ;;  %v6823_v8 = vrot.slane %v6745_v30, 5  ;;  %v12197_v26 = vld [vmem:[#allocation10_spill] sm:$0xff]  ;;  %v8397_v30 = vld [vmem:[%s8723_s23 + $0x30] sm:$0xff]  }
 0x4a5   : > { %v6803_v42 = vsel %vm6802_vm11, %v6801_v43, %v6800_v50  ;;  %v6825_v3 = vrot.slane %v6746_v45, 4  ;;  %v10750_v40 = vadd.f32 %v4178_v58, %v12195_v52  ;;  %v3715_v35 = vpop.f32.mrf.mxu1  ;;  %v6827_v19 = vrot.slane %v6747_v54, 3  ;;  %12199 = vst [vmem:[#allocation15_spill] sm:$0xff] %v10764_v51  ;;  %v12201_v13 = vld [vmem:[#allocation30_spill] sm:$0xff]  ;;  %v12203_v54 = vld [vmem:[#allocation39_spill] sm:$0xff]  ;;  %v10794_v50 = vld [vmem:[#allocation3 + $0x180] sm:$0xff] }
 0x4a6   : > { %v6806_v41 = vsel %vm6805_vm12, %v6804_v34, %v6803_v42  ;;  %v6820_v38 = vsel %vm6799_vm0, %v6819_v62, %v6742_v7  ;;  %v10760_v57 = vadd.f32 %v3715_v35, %v12197_v26  ;;  %v6829_v44 = vrot.slane %v10737_v6, 2  ;;  %v4299_v7 = vld [vmem:[#allocation3 + $0x169] sm:$0xff]  ;;  %v12204_v6 = vld [vmem:[#allocation41_spill] sm:$0xff]  ;;  %v12206_v26 = vld [vmem:[#allocation44_spill] sm:$0xff] }
 0x4a7   : > { %12196 = vst [vmem:[#allocation35_spill] sm:$0xff] %v10750_v40  ;;  %v6809_v61 = vsel %vm6808_vm13, %v6807_v28, %v6806_v41  ;;  %v6822_v10 = vsel %vm6802_vm11, %v6821_v24, %v6820_v38  ;;  %v6831_v59 = vrot.slane %v6749_v36, 1  ;;  %v12202_v48 = vpack.c.bf16 %v12200_v5, %v12201_v13  ;;  %v10792_v28 = vld [vmem:[#allocation3 + $0x168] sm:$0xff]  ;;  %v12229_v51 = vld [vmem:[#allocation25_spill] sm:$0xff] }
 0x4a8   : > { %12198 = vst [vmem:[#allocation40_spill] sm:$0xff] %v10760_v57  ;;  %v6812_v55 = vsel %vm6811_vm14, %v6810_v39, %v6809_v61  ;;  %v6824_v25 = vsel %vm6805_vm12, %v6823_v8, %v6822_v10  ;;  %v10781_v53 = vunpack.c.l.bf16 %v8395_v47  ;;  %v12205_v4 = vpack.c.bf16 %v12203_v54, %v12204_v6  ;;  %v12241_v23 = vld [vmem:[#allocation13_spill] sm:$0xff] }
 0x4a9   : > { %v6815_v33 = vsel %vm6814_vm15, %v6813_v12, %v6812_v55  ;;  %v6826_v15 = vsel %vm6808_vm13, %v6825_v3, %v6824_v25  ;;  %v4318_v36 = vpack.c.bf16 %v4300_v49, %v4299_v7  ;;  %v10796_v39 = vunpack.c.h.bf16 %v8395_v47  ;;  %v8398_v12 = vld [vmem:[%s8723_s23 + $0x38] sm:$0xff]   ;;  %v3950_v35 = vpop.f32.mrf.mxu2  ;;  %v12208_v25 = vld [vmem:[#allocation12_spill] sm:$0xff] }
 0x4aa   : > { %v6818_v43 = vsel %vm6817_vm2, %v6816_v22, %v6815_v33  ;;  %v6828_v34 = vsel %vm6811_vm14, %v6827_v19, %v6826_v15  ;;  %v10804_v41 = vunpack.c.l.bf16 %v8396_v18  ;;  %v10808_v24 = vunpack.c.h.bf16 %v8396_v18 }
 0x4ab   : > { %7933 = vmatmul.msk.bf16.gmra.mxu1 %vm431_vm3, %v12202_v48  ;;  %v6830_v42 = vsel %vm6814_vm15, %v6829_v44, %v6828_v34  ;;  %7903 = vmatmul.msk.bf16.gmra.mxu0 %vm431_vm3, %v4318_v36  ;;  %v10810_v8 = vunpack.c.l.bf16 %v8397_v30  ;;  %v10812_v3 = vunpack.c.h.bf16 %v8397_v30  ;;  %v10814_v61 = vunpack.c.l.bf16 %v8398_v12  ;;  %v12214_v34 = vld [vmem:[#allocation11_spill] sm:$0xff] }
 0x4ac   : > { %v6832_v22 = vsel %vm6817_vm2, %v6831_v59, %v6830_v42  ;;  %v10816_v38 = vunpack.c.h.bf16 %v8398_v12  ;;  %v12017_v47 = vrot.slane %v10781_v53, 2  ;;  %v10820_v55 = vadd.f32 %v3950_v35, %v12206_v26 }
 0x4ad   : > { %7862 = vmatmul.msk.bf16.gmra.mxu3 %vm431_vm3, %v12205_v4  ;;  %v6917_v52 = vpack.c.b16 %v6832_v22, %v6818_v43  ;;  %v3717_v10 = vpop.f32.mrf.mxu1  ;;  %v12018_v19 = vrot.slane %v10781_v53, 4  ;;  %v12019_v49 = vrot.slane %v10781_v53, 6  ;;  %v12020_v33 = vrot.slane %v10796_v39, 2  ;;  %v10840_v43 = vpop.f32.mrf.mxu0  ;;  %v12217_v4 = vld [vmem:[#allocation33_spill] sm:$0xff] }
 0x4ae   : > { %12207 = vst [vmem:[#allocation24_spill] sm:$0xff] %v10820_v55  ;;  %v10827_v44 = vadd.f32 %v3717_v10, %v12208_v25  ;;  %v12021_v59 = vrot.slane %v10796_v39, 4  ;;  %v12022_v18 = vrot.slane %v10796_v39, 6  ;;  %v12023_v5 = vrot.slane %v10804_v41, 2  ;;  %v10846_v22 = vpop.f32.mrf.mxu3  ;;  %v12212_v10 = vld [vmem:[#allocation47_spill] sm:$0xff] }
 0x4af   : > { %8202 = vmatmul.msk.bf16.vlgmr.msrb.gmra.mxu2 %vm278_vm1, %v6917_v52  ;;  %v12025_v13 = vrot.slane %v10804_v41, 4  ;;  %v12024_v48 = vrot.slane %v10804_v41, 6  ;;  %v12026_v15 = vrot.slane %v10808_v24, 2  ;;  %v12027_v7 = vrot.slane %v10808_v24, 4  ;;  %12210 = vst [vmem:[#allocation9_spill] sm:$0xff] %v10840_v43 }
 0x4b0   : > { %12209 = vst [vmem:[#allocation20_spill] sm:$0xff] %v10827_v44  ;;  %v12028_v30 = vrot.slane %v10808_v24, 6  ;;  %v12029_v54 = vrot.slane %v10810_v8, 2  ;;  %v8106_v45 = vrot.slane %v10781_v53, 9  ;;  %v8107_v58 = vrot.slane %v12017_v47, 9 }
 0x4b1   : > { %12211 = vst [vmem:[#allocation23_spill] sm:$0xff] %v10846_v22  ;;  %v8108_v21 = vrot.slane %v12018_v19, 9  ;;  %v3952_v42 = vpop.f32.mrf.mxu2  ;;  %v8109_v52 = vrot.slane %v12019_v49, 9  ;;  %v8110_v35 = vrot.slane %v10796_v39, 9  ;;  %v8111_v26 = vrot.slane %v12020_v33, 9 }
 0x4b2   : > { %v8112_v25 = vrot.slane %v12021_v59, 9  ;;  %v10866_v12 = vadd.f32 %v3952_v42, %v12212_v10  ;;  %v8113_v47 = vrot.slane %v12022_v18, 9  ;;  %v8114_v19 = vrot.slane %v10804_v41, 9 }
 0x4b3   : > { %v8115_v49 = vrot.slane %v12023_v5, 9  ;;  %v8116_v33 = vrot.slane %v12025_v13, 9  ;;  %v8117_v59 = vrot.slane %v12024_v48, 9  ;;  %v8118_v42 = vrot.slane %v10808_v24, 9 }
 0x4b4   : > { %12213 = vst [vmem:[#allocation10_spill] sm:$0xff] %v10866_v12  ;;  %v8119_v10 = vrot.slane %v12026_v15, 9  ;;  %v8120_v18 = vrot.slane %v12027_v7, 9  ;;  %v8121_v5 = vrot.slane %v12028_v30, 9  ;;  %v8123_v48 = vrot.slane %v12029_v54, 9 }
 0x4b5   : > { %v3720_v36 = vpop.f32.mrf.mxu1  ;;  %v12219_v13 = vrot.slane %v10810_v8, 4  ;;  %v12220_v15 = vrot.slane %v10810_v8, 6  ;;  %v8126_v7 = vrot.slane %v10812_v3, 9  ;;  %v12221_v30 = vpack.c.bf16 %v10769_v37, %v10792_v28 }
 0x4b6   : > { %v10874_v62 = vadd.f32 %v3720_v36, %v12214_v34  ;;  %v8122_v34 = vrot.slane %v10810_v8, 9  ;;  %v12216_v36 = vld [vmem:[#allocation34_spill] sm:$0xff]  ;;  %v12224_v54 = vrot.slane %v10812_v3, 6  ;;  %v12226_v43 = vrot.slane %v10814_v61, 4  ;;  %v10928_v60 = vpop.f32.mrf.mxu3 }
 0x4b7   : > { %v12218_v6 = vpack.c.bf16 %v12216_v36, %v12217_v4  ;;  %v8124_v12 = vrot.slane %v12219_v13, 9  ;;  %v8125_v55 = vrot.slane %v12220_v15, 9  ;;  %v12222_v4 = vrot.slane %v10812_v3, 2  ;;  %12233 = vst [vmem:[#allocation39_spill] sm:$0xff] %v10928_v60 }
 0x4b8   : > { %12215 = vst [vmem:[#allocation32_spill] sm:$0xff] %v10874_v62  ;;  %v8129_v0 = vrot.slane %v12224_v54, 9  ;;  %v8130_v13 = vrot.slane %v10814_v61, 9  ;;  %v12225_v15 = vrot.slane %v10814_v61, 2  ;;  %v8132_v17 = vrot.slane %v12226_v43, 9 }
 0x4b9   : > { %v8127_v36 = vrot.slane %v12222_v4, 9  ;;  %v12227_v37 = vrot.slane %v10814_v61, 6  ;;  %v10917_v4 = vpop.f32.mrf.mxu0  ;;  %v12230_v54 = vrot.slane %v10816_v38, 2  ;;  %v12231_v56 = vrot.slane %v10816_v38, 4 }
 0x4ba   : > { %v8131_v46 = vrot.slane %v12225_v15, 9  ;;  %12228 = vst [vmem:[#allocation30_spill] sm:$0xff] %v10917_v4  ;;  %v12232_v15 = vrot.slane %v10816_v38, 6  ;;  %v6377_v43 = vadd.f32 %v10781_v53, %v8106_v45  ;;  %v12234_v22 = vrot.slane %v10781_v53, 2 }
 0x4bb   : > { %7934 = vmatmul.msk.bf16.gmra.mxu1 %vm431_vm3, %v12218_v6  ;;  %v12223_v6 = vrot.slane %v10812_v3, 4  ;;  %v8133_v28 = vrot.slane %v12227_v37, 9  ;;  %7904 = vmatmul.msk.bf16.gmra.mxu0 %vm431_vm3, %v12229_v51  ;;  %v8136_v1 = vrot.slane %v12231_v56, 9  ;;  %v3955_v37 = vpop.f32.mrf.mxu2  ;;  %v12235_v31 = vrot.slane %v10781_v53, 4 }
 0x4bc   : > { %v8137_v2 = vrot.slane %v12232_v15, 9  ;;  %v6378_v4 = vadd.f32 %v8107_v58, %v12234_v22  ;;  %v12236_v27 = vrot.slane %v10781_v53, 6  ;;  %v6381_v62 = vadd.f32 %v10796_v39, %v8110_v35 }
 0x4bd   : > { %7863 = vmatmul.msk.bf16.gmra.mxu3 %vm431_vm3, %v12221_v30  ;;  %v8128_v40 = vrot.slane %v12223_v6, 9  ;;  %v8134_v30 = vrot.slane %v10816_v38, 9  ;;  %v8135_v6 = vrot.slane %v12230_v54, 9  ;;  %v6379_v51 = vadd.f32 %v8108_v21, %v12235_v31  ;;  %v3722_v15 = vpop.f32.mrf.mxu1 }
 0x4be   : > { %v6380_v54 = vadd.f32 %v8109_v52, %v12236_v27  ;;  %v10938_v56 = vadd.f32 %v3955_v37, %v10624_v20  ;;  %v12238_v45 = vrot.slane %v10796_v39, 2  ;;  %v12239_v60 = vrot.slane %v10796_v39, 4 }
 0x4bf   : > { %v12240_v58 = vrot.slane %v10796_v39, 6  ;;  %v10947_v31 = vadd.f32 %v3722_v15, %v12241_v23  ;;  %v6385_v27 = vadd.f32 %v10804_v41, %v8114_v19  ;;  %v12242_v21 = vrot.slane %v10804_v41, 2 }
 0x4c0   : > { %12237 = vst [vmem:[#allocation41_spill] sm:$0xff] %v10938_v56  ;;  %v6382_v44 = vadd.f32 %v8111_v26, %v12238_v45  ;;  %v6383_v57 = vadd.f32 %v8112_v25, %v12239_v60  ;;  %v12243_v20 = vrot.slane %v10804_v41, 4  ;;  %v12244_v35 = vrot.slane %v10804_v41, 6 }
 0x4c1   : > { %v6384_v22 = vadd.f32 %v8113_v47, %v12240_v58  ;;  %v6386_v53 = vadd.f32 %v8115_v49, %v12242_v21  ;;  %v6389_v37 = vadd.f32 %v10808_v24, %v8118_v42  ;;  %v12245_v60 = vrot.slane %v10808_v24, 2 }
 0x4c2   : > { %v6387_v52 = vadd.f32 %v8116_v33, %v12243_v20  ;;  %v6388_v26 = vadd.f32 %v8117_v59, %v12244_v35  ;;  %v12246_v47 = vrot.slane %v10808_v24, 4  ;;  %v12247_v25 = vrot.slane %v10808_v24, 6 }
 0x4c3   : > { %v6390_v39 = vadd.f32 %v8119_v10, %v12245_v60  ;;  %v6393_v15 = vadd.f32 %v10810_v8, %v8122_v34  ;;  %v12248_v49 = vrot.slane %v10810_v8, 2  ;;  %v12249_v33 = vrot.slane %v10810_v8, 4 }
 0x4c4   : > { %v6391_v23 = vadd.f32 %v8120_v18, %v12246_v47  ;;  %v6392_v19 = vadd.f32 %v8121_v5, %v12247_v25  ;;  %v12250_v59 = vrot.slane %v10810_v8, 6  ;;  %v6397_v58 = vadd.f32 %v10812_v3, %v8126_v7 }
 0x4c5   : > { %v6394_v45 = vadd.f32 %v8123_v48, %v12248_v49  ;;  %v6395_v41 = vadd.f32 %v8124_v12, %v12249_v33  ;;  %v12251_v10 = vrot.slane %v10812_v3, 2  ;;  %v12252_v18 = vrot.slane %v10812_v3, 4 }
 0x4c6   : > { %v6396_v42 = vadd.f32 %v8125_v55, %v12250_v59  ;;  %v12253_v5 = vrot.slane %v10812_v3, 6  ;;  %v6401_v20 = vadd.f32 %v10814_v61, %v8130_v13  ;;  %v12254_v48 = vrot.slane %v10814_v61, 2 }
 0x4c7   : > { %v6398_v21 = vadd.f32 %v8127_v36, %v12251_v10  ;;  %v6399_v24 = vadd.f32 %v8128_v40, %v12252_v18  ;;  %v12255_v12 = vrot.slane %v10814_v61, 4  ;;  %v12256_v55 = vrot.slane %v10814_v61, 6  ;;  %v3725_v61 = vpop.f32.mrf.mxu1  ;;  %v10994_v10 = vpop.f32.mrf.mxu3 }
 0x4c8   : > { %v6400_v34 = vadd.f32 %v8129_v0, %v12253_v5  ;;  %v6402_v35 = vadd.f32 %v8131_v46, %v12254_v48  ;;  %v6405_v60 = vadd.f32 %v10816_v38, %v8134_v30  ;;  %v12257_v36 = vrot.slane %v10816_v38, 2  ;;  %v3957_v0 = vpop.f32.mrf.mxu2 }
 0x4c9   : > { %v6403_v8 = vadd.f32 %v8132_v17, %v12255_v12  ;;  %v6404_v7 = vadd.f32 %v8133_v28, %v12256_v55  ;;  %v12258_v40 = vrot.slane %v10816_v38, 4  ;;  %v12259_v13 = vrot.slane %v10816_v38, 6 }
 0x4ca   : > { %v6406_v47 = vadd.f32 %v8135_v6, %v12257_v36  ;;  %v6489_v49 = vadd.f32 %v6385_v27, %v6377_v43  ;;  %v6490_v46 = vadd.f32 %v6386_v53, %v6378_v4  ;;  %v6491_v33 = vadd.f32 %v6387_v52, %v6379_v51  ;;  %v12261_v6 = vld [vmem:[#allocation14_spill] sm:$0xff] }
 0x4cb   : > { %v6407_v3 = vadd.f32 %v8136_v1, %v12258_v40  ;;  %v6408_v25 = vadd.f32 %v8137_v2, %v12259_v13  ;;  %v10992_v17 = vadd.f32 %v3957_v0, %v10694_v16  ;;  %v6492_v28 = vadd.f32 %v6388_v26, %v6380_v54 }
 0x4cc   : > { %v6493_v59 = vadd.f32 %v6389_v37, %v6381_v62  ;;  %v6494_v30 = vadd.f32 %v6390_v39, %v6382_v44  ;;  %v10997_v18 = vadd.f32 %v3725_v61, %v12261_v6  ;;  %v6495_v1 = vadd.f32 %v6391_v23, %v6383_v57 }
 0x4cd   : > { %12260 = vst [vmem:[#allocation44_spill] sm:$0xff] %v10992_v17  ;;  %v6496_v5 = vadd.f32 %v6392_v19, %v6384_v22  ;;  %v6498_v48 = vadd.f32 %v6402_v35, %v6394_v45  ;;  %v6497_v38 = vadd.f32 %v6401_v20, %v6393_v15  ;;  %v6499_v2 = vadd.f32 %v6403_v8, %v6395_v41 }
 0x4ce   : > { %v6500_v43 = vadd.f32 %v6404_v7, %v6396_v42  ;;  %v6501_v4 = vadd.f32 %v6405_v60, %v6397_v58  ;;  %v12262_v16 = vpack.c.bf16 %v10747_v63, %v10745_v9  ;;  %v6502_v51 = vadd.f32 %v6406_v47, %v6398_v21 }
 0x4cf   : > { %v6503_v62 = vadd.f32 %v6407_v3, %v6399_v24  ;;  %v6504_v44 = vadd.f32 %v6408_v25, %v6400_v34  ;;  %v6554_v54 = vmul.f32 0.25, %v6490_v46  ;;  %v12263_v27 = vpack.c.bf16 %v10771_v29, %v10794_v50  ;;  %v3727_v20 = vpop.f32.mrf.mxu1  ;;  %v11007_v40 = vpop.f32.mrf.mxu3 }
 0x4d0   : > { %7935 = vmatmul.msk.bf16.gmra.mxu1 %vm431_vm3, %v12262_v16  ;;  %v6555_v57 = vmul.f32 0.25, %v6491_v33  ;;  %v6556_v22 = vmul.f32 0.25, %v6492_v28  ;;  %v6557_v53 = vmul.f32 0.25, %v6493_v59  ;;  %v6558_v52 = vmul.f32 0.25, %v6494_v30  ;;  %v3960_v21 = vpop.f32.mrf.mxu2 }
 0x4d1   : > { %7864 = vmatmul.msk.bf16.gmra.mxu3 %vm431_vm3, %v12263_v27  ;;  %v6553_v26 = vmul.f32 0.25, %v6489_v49  ;;  %v6559_v37 = vmul.f32 0.25, %v6495_v1  ;;  %v6560_v39 = vmul.f32 0.25, %v6496_v5  ;;  %v6562_v23 = vmul.f32 0.25, %v6498_v48 }
 0x4d2   : > { %v6561_v9 = vmul.f32 0.25, %v6497_v38  ;;  %v6563_v63 = vmul.f32 0.25, %v6499_v2  ;;  %v6564_v19 = vmul.f32 0.25, %v6500_v43  ;;  %v6565_v15 = vmul.f32 0.25, %v6501_v4  ;;  %v11009_v2 = vpop.f32.mrf.mxu0 }
 0x4d3   : > { %v6566_v45 = vmul.f32 0.25, %v6502_v51  ;;  %v6567_v41 = vmul.f32 0.25, %v6503_v62  ;;  %v6568_v42 = vmul.f32 0.25, %v6504_v44  ;;  %v6618_v58 = vpack.c.bf16 %v6554_v54, %v6554_v54 }
 0x4d4   : > { %v6619_v29 = vpack.c.bf16 %v6555_v57, %v6555_v57  ;;  %v6620_v50 = vpack.c.bf16 %v6556_v22, %v6556_v22  ;;  %v6621_v24 = vpack.c.bf16 %v6557_v53, %v6557_v53  ;;  %v6622_v34 = vpack.c.bf16 %v6558_v52, %v6558_v52 }
 0x4d5   : > { %v6617_v35 = vpack.c.bf16 %v6553_v26, %v6553_v26  ;;  %v6623_v12 = vpack.c.bf16 %v6559_v37, %v6559_v37  ;;  %v6624_v8 = vpack.c.bf16 %v6560_v39, %v6560_v39  ;;  %v6626_v55 = vpack.c.bf16 %v6562_v23, %v6562_v23 }
 0x4d6   : > { %v6625_v7 = vpack.c.bf16 %v6561_v9, %v6561_v9  ;;  %v6627_v60 = vpack.c.bf16 %v6563_v63, %v6563_v63  ;;  %v6628_v36 = vpack.c.bf16 %v6564_v19, %v6564_v19  ;;  %v6629_v47 = vpack.c.bf16 %v6565_v15, %v6565_v15 }
 0x4d7   : > { %v6630_v3 = vpack.c.bf16 %v6566_v45, %v6566_v45  ;;  %v6631_v0 = vpack.c.bf16 %v6567_v41, %v6567_v41  ;;  %v6632_v13 = vpack.c.bf16 %v6568_v42, %v6568_v42  ;;  %v6751_v25 = vunpack.c.l.b16 %v6618_v58  ;;  %v3730_v22 = vpop.f32.mrf.mxu1  ;;  %v4053_v58 = vld [vmem:[#allocation3 + $0x198] sm:$0xff] }
 0x4d8   : > { %v6752_v49 = vunpack.c.l.b16 %v6619_v29  ;;  %v6753_v46 = vunpack.c.l.b16 %v6620_v50  ;;  %v6754_v33 = vunpack.c.l.b16 %v6621_v24  ;;  %v6755_v61 = vunpack.c.l.b16 %v6622_v34  ;;  %v3962_v62 = vpop.f32.mrf.mxu2 }
 0x4d9   : > { %v6750_v28 = vunpack.c.l.b16 %v6617_v35  ;;  %v6756_v59 = vunpack.c.l.b16 %v6623_v12  ;;  %v6757_v30 = vunpack.c.l.b16 %v6624_v8  ;;  %v6759_v6 = vunpack.c.l.b16 %v6626_v55  ;;  %v4054_v35 = vld [vmem:[#allocation3 + $0x1a0] sm:$0xff] }
 0x4da   : > { %v6758_v1 = vunpack.c.l.b16 %v6625_v7  ;;  %v6760_v5 = vunpack.c.l.b16 %v6627_v60  ;;  %v6761_v48 = vunpack.c.l.b16 %v6628_v36  ;;  %v6762_v38 = vunpack.c.l.b16 %v6629_v47  ;;  %v4303_v12 = vld [vmem:[#allocation3 + $0x199] sm:$0xff]  ;;  %v4304_v8 = vld [vmem:[#allocation3 + $0x1a1] sm:$0xff]  ;;  %v11026_v60 = vpop.f32.mrf.mxu3 }
 0x4db   : > { %v6763_v43 = vunpack.c.l.b16 %v6630_v3  ;;  %v6764_v4 = vunpack.c.l.b16 %v6631_v0  ;;  %v6833_v16 = vrot.slane %v6751_v25, 7  ;;  %v6835_v51 = vrot.slane %v6752_v49, 6  ;;  %v12267_v36 = vld [vmem:[#allocation38_spill] sm:$0xff] }
 0x4dc   : > { %v6765_v44 = vunpack.c.l.b16 %v6632_v13  ;;  %v6837_v54 = vrot.slane %v6753_v46, 5  ;;  %v6839_v27 = vrot.slane %v6754_v33, 4  ;;  %v6841_v57 = vrot.slane %v6755_v61, 3  ;;  %v12270_v61 = vld [vmem:[#allocation40_spill] sm:$0xff] }
 0x4dd   : > { %v6834_v53 = vsel %vm6799_vm0, %v6833_v16, %v6750_v28  ;;  %v6843_v52 = vrot.slane %v6756_v59, 2  ;;  %v6847_v26 = vrot.slane %v6759_v6, 7  ;;  %v6849_v37 = vrot.slane %v6760_v5, 6 }
 0x4de   : > { %v6836_v39 = vsel %vm6802_vm11, %v6835_v51, %v6834_v53  ;;  %v6845_v23 = vrot.slane %v6757_v30, 1  ;;  %v6851_v9 = vrot.slane %v6761_v48, 5  ;;  %v6853_v63 = vrot.slane %v6762_v38, 4  ;;  %v11045_v30 = vpop.f32.mrf.mxu0  ;;  %v4537_v38 = vld [vmem:[#allocation3 + $0xda] sm:$0xff] }
 0x4df   : > { %v6838_v19 = vsel %vm6805_vm12, %v6837_v54, %v6836_v39  ;;  %v6848_v15 = vsel %vm6799_vm0, %v6847_v26, %v6758_v1  ;;  %v6855_v45 = vrot.slane %v6763_v43, 3  ;;  %v6857_v41 = vrot.slane %v6764_v4, 2  ;;  %v3732_v59 = vpop.f32.mrf.mxu1  ;;  %v12272_v1 = vld [vmem:[#allocation19_spill] sm:$0xff]  ;;  %v4538_v43 = vld [vmem:[#allocation3 + $0xe2] sm:$0xff]  ;;  %v12273_v51 = vld [vmem:[#allocation20_spill] sm:$0xff] }
 0x4e0   : > { %v12264_v42 = vpack.c.bf16 %v10757_v32, %v10755_v14  ;;  %v6840_v29 = vsel %vm6808_vm13, %v6839_v27, %v6838_v19  ;;  %v6850_v50 = vsel %vm6802_vm11, %v6849_v37, %v6848_v15  ;;  %v6859_v24 = vrot.slane %v6765_v44, 1  ;;  %v12266_v14 = vld [vmem:[#allocation16_spill] sm:$0xff]  ;;  %v3965_v46 = vpop.f32.mrf.mxu2  ;;  %v12275_v54 = vld [vmem:[#allocation22_spill] sm:$0xff] }
 0x4e1   : > { %v11022_v34 = vadd.f32 %v3960_v21, %v10708_v11  ;;  %v6842_v55 = vsel %vm6811_vm14, %v6841_v57, %v6840_v29  ;;  %v6852_v7 = vsel %vm6805_vm12, %v6851_v9, %v6850_v50  ;;  %v11029_v32 = vadd.f32 %v3727_v20, %v12266_v14  ;;  %v12269_v21 = vld [vmem:[#allocation18_spill] sm:$0xff]  ;;  %v11063_v53 = vld [vmem:[#allocation3 + $0xfa] sm:$0xff]  ;;  %v11067_v26 = vld [vmem:[#allocation3 + $0x112] sm:$0xff] }
 0x4e2   : > { %7936 = vmatmul.msk.bf16.gmra.mxu1 %vm431_vm3, %v12264_v42  ;;  %v11032_v47 = vadd.f32 %v3962_v62, %v12267_v36  ;;  %v6844_v3 = vsel %vm6814_vm15, %v6843_v52, %v6842_v55  ;;  %v6854_v11 = vsel %vm6808_vm13, %v6853_v63, %v6852_v7  ;;  %v11037_v0 = vadd.f32 %v3730_v22, %v12269_v21  ;;  %v4193_v4 = vpop.f32.mrf.mxu3  ;;  %v11061_v22 = vld [vmem:[#allocation3 + $0xf2] sm:$0xff]  ;;  %v11065_v52 = vld [vmem:[#allocation3 + $0x10a] sm:$0xff]  ;;  %v11069_v37 = vld [vmem:[#allocation3 + $0x122] sm:$0xff] }
 0x4e3   : > { %12265 = vst [vmem:[#allocation12_spill] sm:$0xff] %v11022_v34  ;;  %v6846_v13 = vsel %vm6817_vm2, %v6845_v23, %v6844_v3  ;;  %v6856_v25 = vsel %vm6811_vm14, %v6855_v45, %v6854_v11  ;;  %v4070_v49 = vpack.c.bf16 %v4054_v35, %v4053_v58  ;;  %v4320_v33 = vpack.c.bf16 %v4304_v8, %v4303_v12  ;;  %v11071_v39 = vld [vmem:[#allocation3 + $0x12a] sm:$0xff]  ;;  %v11073_v23 = vld [vmem:[#allocation3 + $0x13a] sm:$0xff]  ;;  %v11075_v9 = vld [vmem:[#allocation3 + $0x142] sm:$0xff] }
 0x4e4   : > { %12268 = vst [vmem:[#allocation47_spill] sm:$0xff] %v11032_v47  ;;  %v6858_v20 = vsel %vm6814_vm15, %v6857_v41, %v6856_v25  ;;  %v11043_v28 = vadd.f32 %v3965_v46, %v12270_v61  ;;  %v11050_v5 = vadd.f32 %v3732_v59, %v12272_v1  ;;  %v4562_v57 = vpack.c.bf16 %v4538_v43, %v4537_v38  ;;  %v11077_v63 = vld [vmem:[#allocation3 + $0x152] sm:$0xff]  ;;  %v11079_v19 = vld [vmem:[#allocation3 + $0x15a] sm:$0xff]  ;;  %v11081_v15 = vld [vmem:[#allocation3 + $0x16a] sm:$0xff] }
 0x4e5   : > { %v6860_v6 = vsel %vm6817_vm2, %v6859_v24, %v6858_v20  ;;  %7865 = vmatmul.msk.bf16.gmra.mxu3 %vm431_vm3, %v4070_v49  ;;  %7905 = vmatmul.msk.bf16.gmra.mxu0 %vm431_vm3, %v4320_v33  ;;  %12277 = vst [vmem:[#allocation25_spill] sm:$0xff] %v11077_v63  ;;  %v11083_v45 = vld [vmem:[#allocation3 + $0x172] sm:$0xff]  ;;  %v4563_v42 = vpack.c.bf16 %v11063_v53, %v11061_v22  ;;  %v11087_v58 = vld [vmem:[#allocation3 + $0x182] sm:$0xff]  ;;  %v11089_v29 = vld [vmem:[#allocation3 + $0x18a] sm:$0xff] }
 0x4e6   : > { %12271 = vst [vmem:[#allocation11_spill] sm:$0xff] %v11043_v28  ;;  %v6918_v48 = vpack.c.b16 %v6860_v6, %v6846_v13  ;;  %v12283_v50 = vld [vmem:[#allocation32_spill] sm:$0xff]  ;;  %v12285_v7 = vld [vmem:[#allocation17_spill] sm:$0xff]  ;;  %v12287_v11 = vld [vmem:[#allocation26_spill] sm:$0xff] }
 0x4e7   : > { %v3735_v44 = vpop.f32.mrf.mxu1  ;;  %12278 = vst [vmem:[#allocation13_spill] sm:$0xff] %v11079_v19  ;;  %v12286_v14 = vld [vmem:[#allocation48_spill] sm:$0xff]  ;;  %v12289_v49 = vld [vmem:[#allocation21_spill] sm:$0xff]  ;;  %v12291_v20 = vld [vmem:[#allocation31_spill] sm:$0xff] }
 0x4e8   : > { %8203 = vmatmul.msk.bf16.gmra.mxu2 %vm278_vm1, %v6918_v48  ;;  %v3967_v16 = vpop.f32.mrf.mxu2  ;;  %v11058_v27 = vadd.f32 %v3735_v44, %v12275_v54  ;;  %12279 = vst [vmem:[#allocation14_spill] sm:$0xff] %v11081_v15  ;;  %v4001_v36 = vadd.f32 %v12286_v14, %v12285_v7  ;;  %v12290_v46 = vld [vmem:[#allocation52_spill] sm:$0xff]  ;;  %v12292_v61 = vld [vmem:[#allocation37_spill] sm:$0xff]  ;;  %v12294_v6 = vld [vmem:[#allocation27_spill] sm:$0xff] }
 0x4e9   : > { %v11055_v62 = vadd.f32 %v3967_v16, %v12273_v51  ;;  %12280 = vst [vmem:[#allocation16_spill] sm:$0xff] %v11083_v45  ;;  %v4003_v33 = vadd.f32 %v12290_v46, %v12289_v49  ;;  %v11113_v59 = vadd.f32 %v12292_v61, %v12291_v20  ;;  %v12295_v1 = vld [vmem:[#allocation23_spill] sm:$0xff]  ;;  %v12297_v43 = vld [vmem:[#allocation42_spill] sm:$0xff]  ;;  %v12300_v44 = vld [vmem:[#allocation45_spill] sm:$0xff] }
 0x4ea   : > { %12276 = vst [vmem:[#allocation33_spill] sm:$0xff] %v11058_v27  ;;  %v4196_v3 = vpop.f32.mrf.mxu3  ;;  %v11117_v48 = vadd.f32 %v12295_v1, %v12294_v6  ;;  %v12298_v16 = vld [vmem:[#allocation39_spill] sm:$0xff]  ;;  %v11127_v54 = vadd.f32 %v10994_v10, %v12300_v44  ;;  %v12303_v22 = vld [vmem:[#allocation8_spill] sm:$0xff]  ;;  %v12306_v7 = vld [vmem:[#allocation29_spill] sm:$0xff] }
 0x4eb   : > { %12274 = vst [vmem:[#allocation34_spill] sm:$0xff] %v11055_v62  ;;  %v11123_v51 = vadd.f32 %v12298_v16, %v12297_v43  ;;  %v11134_v53 = vadd.f32 %v11026_v60, %v12303_v22  ;;  %v11141_v14 = vadd.f32 %v4196_v3, %v12306_v7  ;;  %v12309_v49 = vld [vmem:[#allocation51_spill] sm:$0xff]  ;;  %v8401_v10 = vld [vmem:[%s8723_s23 + $0x50] sm:$0xff]   ;;  %v8402_v61 = vld [vmem:[%s8723_s23 + $0x58] sm:$0xff]  }
 0x4ec   : > { %12281 = vst [vmem:[#allocation38_spill] sm:$0xff] %v11087_v58  ;;  %v12312_v1 = vld [vmem:[#allocation49_spill] sm:$0xff]  ;;  %v12313_v43 = vld [vmem:[#allocation15_spill] sm:$0xff]  ;;  %v12318_v7 = vld [vmem:[#allocation30_spill] sm:$0xff] }
 0x4ed   : > { %12282 = vst [vmem:[#allocation18_spill] sm:$0xff] %v11089_v29  ;;  %v12315_v3 = vld [vmem:[#allocation9_spill] sm:$0xff]  ;;  %v12326_v25 = vld [vmem:[#allocation36_spill] sm:$0xff] }
 0x4ee   : > { %12293 = vst [vmem:[#allocation20_spill] sm:$0xff] %v11113_v59  ;;  %v12317_v22 = vld [vmem:[#allocation53_spill] sm:$0xff] }
 0x4ef   : > { %v3737_v35 = vpop.f32.mrf.mxu1  ;;  %12296 = vst [vmem:[#allocation22_spill] sm:$0xff] %v11117_v48 }
 0x4f0   : > { %v3970_v41 = vpop.f32.mrf.mxu2  ;;  %v11103_v21 = vadd.f32 %v3737_v35, %v12287_v11  ;;  %12299 = vst [vmem:[#allocation32_spill] sm:$0xff] %v11123_v51  ;;  %v11138_v35 = vadd.f32 %v4193_v4, %v4003_v33  ;;  %v12308_v11 = vld [vmem:[#allocation43_spill] sm:$0xff]  ;;  %v11157_v4 = vadd.f32 %v12313_v43, %v12312_v1  ;;  %v12314_v33 = vld [vmem:[#allocation50_spill] sm:$0xff] }
 0x4f1   : > { %v11092_v24 = vadd.f32 %v3970_v41, %v12283_v50  ;;  %12301 = vst [vmem:[#allocation17_spill] sm:$0xff] %v11127_v54  ;;  %v8399_v41 = vld [vmem:[%s8723_s23 + $0x40] sm:$0xff]   ;;  %v8400_v50 = vld [vmem:[%s8723_s23 + $0x48] sm:$0xff]   ;;  %v4492_v46 = vadd.f32 %v12309_v49, %v12308_v11  ;;  %v11161_v16 = vadd.f32 %v12315_v3, %v12314_v33  ;;  %v11167_v11 = vadd.f32 %v12318_v7, %v12317_v22 }
 0x4f2   : > { %7937 = vmatmul.msk.bf16.gmra.mxu1 %vm431_vm3, %v4562_v57  ;;  %12288 = vst [vmem:[#allocation19_spill] sm:$0xff] %v11103_v21  ;;  %v11130_v57 = vadd.f32 %v11007_v40, %v4001_v36  ;;  %v11145_v20 = vunpack.c.l.bf16 %v8399_v41  ;;  %v12310_v40 = vld [vmem:[#allocation46_spill] sm:$0xff]  ;;  %v12311_v36 = vld [vmem:[#allocation7_spill] sm:$0xff]  ;;  %v11153_v60 = vunpack.c.h.bf16 %v8399_v41  ;;  %v11163_v44 = vunpack.c.l.bf16 %v8400_v50  ;;  %v12320_v49 = vld [vmem:[#allocation28_spill] sm:$0xff] }
 0x4f3   : > { %12284 = vst [vmem:[#allocation40_spill] sm:$0xff] %v11092_v24  ;;  %v11151_v6 = vadd.f32 %v12311_v36, %v12310_v40  ;;  %v11171_v40 = vadd.f32 %v11009_v2, %v12320_v49  ;;  %v12322_v41 = vld [vmem:[#allocation35_spill] sm:$0xff]  ;;  %v11182_v33 = vunpack.c.h.bf16 %v8400_v50  ;;  %v11184_v3 = vunpack.c.l.bf16 %v8401_v10 }
 0x4f4   : > { %12302 = vst [vmem:[#allocation48_spill] sm:$0xff] %v11130_v57  ;;  %v11175_v36 = vadd.f32 %v11045_v30, %v12322_v41  ;;  %v11180_v43 = vld [vmem:[%s11992_s4] ss:$0 sm:$0xff]  ;;  %v11186_v22 = vunpack.c.h.bf16 %v8401_v10  ;;  %v11188_v7 = vunpack.c.l.bf16 %v8402_v61  ;;  %v11193_v30 = vunpack.c.h.bf16 %v8402_v61 }
 0x4f5   : > { %12304 = vst [vmem:[#allocation26_spill] sm:$0xff] %v11134_v53  ;;  %v12328_v55 = vrot.slane %v11145_v20, 2  ;;  %v8142_v62 = vrot.slane %v11153_v60, 9  ;;  %v12337_v57 = vrot.slane %v11163_v44, 2  ;;  %v12340_v29 = vrot.slane %v11182_v33, 2 }
 0x4f6   : > { %12305 = vst [vmem:[#allocation21_spill] sm:$0xff] %v11138_v35  ;;  %v12329_v35 = vrot.slane %v11145_v20, 4  ;;  %v12343_v59 = vrot.slane %v11182_v33, 6  ;;  %v12344_v45 = vrot.slane %v11184_v3, 2  ;;  %v12346_v19 = vrot.slane %v11184_v3, 6 }
 0x4f7   : > { %12307 = vst [vmem:[#allocation52_spill] sm:$0xff] %v11141_v14  ;;  %v4661_v49 = vpop.f32.mrf.mxu1  ;;  %v8139_v28 = vrot.slane %v12328_v55, 9  ;;  %v8147_v58 = vrot.slane %v12337_v57, 9  ;;  %v12341_v57 = vrot.slane %v11182_v33, 4 }
 0x4f8   : > { %12316 = vst [vmem:[#allocation31_spill] sm:$0xff] %v11161_v16  ;;  %v3972_v1 = vpop.f32.mrf.mxu2  ;;  %v4741_v13 = vadd.f32 %v4661_v49, %v12326_v25  ;;  %v8138_v49 = vrot.slane %v11145_v20, 9  ;;  %v8140_v47 = vrot.slane %v12329_v35, 9  ;;  %v12335_v35 = vrot.slane %v11153_v60, 4 }
 0x4f9   : > { %12319 = vst [vmem:[#allocation37_spill] sm:$0xff] %v11167_v11  ;;  %v11191_v2 = vadd.f32 %v3972_v1, %v10947_v31  ;;  %v8152_v56 = vrot.slane %v12341_v57, 9  ;;  %v8153_v15 = vrot.slane %v12343_v59, 9  ;;  %v8157_v57 = vrot.slane %v12346_v19, 9 }
 0x4fa   : > { %12321 = vst [vmem:[#allocation27_spill] sm:$0xff] %v11171_v40  ;;  %v4777_v12 = vadd.f32 %v11180_v43, %v4741_v13  ;;  %v12332_v13 = vrot.slane %v11153_v60, 2  ;;  %v12349_v59 = vrot.slane %v11186_v22, 2  ;;  %v12354_v19 = vpack.c.bf16 %v11067_v26, %v11065_v52 }
 0x4fb   : > { %12323 = vst [vmem:[#allocation23_spill] sm:$0xff] %v11175_v36  ;;  %v8155_v36 = vrot.slane %v12344_v45, 9  ;;  %v8166_v52 = vrot.slane %v11193_v30, 9  ;;  %v12359_v26 = vrot.slane %v11193_v30, 2 }
 0x4fc   : > { %12324 = vst [vmem:[#allocation42_spill] sm:$0xff] %v11180_v43  ;;  %v4841_v50 = vrot.slane %v4777_v12, 2  ;;  %v4842_v61 = vrot.slane %v4777_v12, 4  ;;  %v4843_v38 = vrot.slane %v4777_v12, 6 }
 0x4fd   : > { %12325 = vst [vmem:[#allocation39_spill] sm:$0xff] %v11191_v2 }
 0x4fe   : > { %v7947_v41 = vrot.slane %v4841_v50, 9  ;;  %v7948_v10 = vrot.slane %v4842_v61, 9  ;;  %v7949_v2 = vrot.slane %v4843_v38, 9 }
 0x4ff   : > { %v4663_v24 = vpop.f32.mrf.mxu1 }
 0x500   : > { %v3975_v8 = vpop.f32.mrf.mxu2  ;;  %v4742_v14 = vadd.f32 %v4663_v24, %v4492_v46  ;;  %v11237_v25 = vadd.f32 %v7947_v41, %v4841_v50  ;;  %v11239_v24 = vadd.f32 %v7948_v10, %v4842_v61  ;;  %v11241_v46 = vadd.f32 %v7949_v2, %v4843_v38 }
 0x501   : > { %v11220_v1 = vadd.f32 %v3975_v8, %v10997_v18  ;;  %v12331_v18 = vrot.slane %v11145_v20, 6  ;;  %v12338_v10 = vrot.slane %v11163_v44, 4 }
 0x502   : > { %7938 = vmatmul.msk.bf16.gmra.mxu1 %vm431_vm3, %v4563_v42  ;;  %v7946_v42 = vrot.slane %v4777_v12, 9  ;;  %12333 = vst [vmem:[#allocation29_spill] sm:$0xff] %v11237_v25  ;;  %v4778_v55 = vadd.f32 %v11180_v43, %v4742_v14  ;;  %v12339_v14 = vrot.slane %v11163_v44, 6  ;;  %v8159_v25 = vrot.slane %v12349_v59, 9 }
 0x503   : > { %12327 = vst [vmem:[#allocation45_spill] sm:$0xff] %v11220_v1  ;;  %v8141_v8 = vrot.slane %v12331_v18, 9  ;;  %v8143_v1 = vrot.slane %v12332_v13, 9  ;;  %v8146_v18 = vrot.slane %v11163_v44, 9  ;;  %v8148_v38 = vrot.slane %v12338_v10, 9 }
 0x504   : > { %v11230_v31 = vadd.f32 %v7946_v42, %v4777_v12  ;;  %12334 = vst [vmem:[#allocation43_spill] sm:$0xff] %v11239_v24  ;;  %v8144_v12 = vrot.slane %v12335_v35, 9  ;;  %v12336_v42 = vrot.slane %v11153_v60, 6  ;;  %v4844_v13 = vrot.slane %v4778_v55, 2 }
 0x505   : > { %v4845_v41 = vrot.slane %v4778_v55, 4  ;;  %v4846_v50 = vrot.slane %v4778_v55, 6  ;;  %v7950_v2 = vrot.slane %v4778_v55, 9  ;;  %v8149_v61 = vrot.slane %v12339_v14, 9 }
 0x506   : > { %12330 = vst [vmem:[#allocation8_spill] sm:$0xff] %v11230_v31  ;;  %v8145_v53 = vrot.slane %v12336_v42, 9  ;;  %v8150_v35 = vrot.slane %v11182_v33, 9  ;;  %v8151_v42 = vrot.slane %v12340_v29, 9  ;;  %v7951_v34 = vrot.slane %v4844_v13, 9 }
 0x507   : > { %v7952_v54 = vrot.slane %v4845_v41, 9  ;;  %v7953_v17 = vrot.slane %v4846_v50, 9  ;;  %v4666_v10 = vpop.f32.mrf.mxu1  ;;  %v8154_v14 = vrot.slane %v11184_v3, 9  ;;  %v12345_v24 = vrot.slane %v11184_v3, 4 }
 0x508   : > { %v3977_v51 = vpop.f32.mrf.mxu2  ;;  %v4743_v29 = vadd.f32 %v4666_v10, %v11151_v6  ;;  %v12350_v31 = vrot.slane %v11186_v22, 4  ;;  %v12360_v59 = vrot.slane %v11193_v30, 4 }
 0x509   : > { %v11261_v48 = vadd.f32 %v3977_v51, %v11029_v32  ;;  %v8156_v63 = vrot.slane %v12345_v24, 9  ;;  %v8158_v32 = vrot.slane %v11186_v22, 9  ;;  %v11274_v51 = vadd.f32 %v7950_v2, %v4778_v55 }
 0x50a   : > { %v8160_v45 = vrot.slane %v12350_v31, 9  ;;  %v11282_v40 = vadd.f32 %v7952_v54, %v4845_v41  ;;  %v11284_v6 = vadd.f32 %v7953_v17, %v4846_v50  ;;  %v11287_v24 = vadd.f32 %v11180_v43, %v4743_v29 }
 0x50b   : > { %12342 = vst [vmem:[#allocation51_spill] sm:$0xff] %v11261_v48  ;;  %v11276_v48 = vadd.f32 %v7951_v34, %v4844_v13  ;;  %v12355_v34 = vrot.slane %v11186_v22, 6  ;;  %v8162_v13 = vrot.slane %v11188_v7, 9  ;;  %v12356_v2 = vrot.slane %v11188_v7, 2 }
 0x50c   : > { %12347 = vst [vmem:[#allocation46_spill] sm:$0xff] %v11274_v51  ;;  %v12357_v54 = vrot.slane %v11188_v7, 4  ;;  %v12358_v41 = vrot.slane %v11188_v7, 6  ;;  %v4849_v10 = vrot.slane %v11287_v24, 6  ;;  %v8167_v29 = vrot.slane %v12359_v26, 9 }
 0x50d   : > { %12348 = vst [vmem:[#allocation7_spill] sm:$0xff] %v11276_v48  ;;  %v8161_v55 = vrot.slane %v12355_v34, 9  ;;  %v8163_v31 = vrot.slane %v12356_v2, 9  ;;  %v12361_v2 = vrot.slane %v11193_v30, 6  ;;  %v12363_v26 = vrot.slane %v11145_v20, 4 }
 0x50e   : > { %12351 = vst [vmem:[#allocation49_spill] sm:$0xff] %v11282_v40  ;;  %v8164_v17 = vrot.slane %v12357_v54, 9  ;;  %v8165_v50 = vrot.slane %v12358_v41, 9  ;;  %v6409_v54 = vadd.f32 %v11145_v20, %v8138_v49  ;;  %v12362_v40 = vrot.slane %v11145_v20, 2 }
 0x50f   : > { %12352 = vst [vmem:[#allocation15_spill] sm:$0xff] %v11284_v6  ;;  %v8169_v6 = vrot.slane %v12361_v2, 9  ;;  %v7957_v21 = vrot.slane %v4849_v10, 9  ;;  %v6411_v11 = vadd.f32 %v8140_v47, %v12363_v26  ;;  %v6413_v34 = vadd.f32 %v11153_v60, %v8142_v62 }
 0x510   : > { %12353 = vst [vmem:[#allocation50_spill] sm:$0xff] %v11287_v24  ;;  %v6410_v41 = vadd.f32 %v8139_v28, %v12362_v40  ;;  %v12365_v2 = vrot.slane %v11153_v60, 2  ;;  %v12366_v49 = vrot.slane %v11153_v60, 4  ;;  %v12367_v40 = vrot.slane %v11153_v60, 6 }
 0x511   : > { %v5428_v28 = vadd.f32 %v7957_v21, %v4849_v10  ;;  %v6417_v51 = vadd.f32 %v11163_v44, %v8146_v18  ;;  %v12368_v24 = vrot.slane %v11163_v44, 2  ;;  %v12370_v62 = vrot.slane %v11163_v44, 6 }
 0x512   : > { %7939 = vmatmul.msk.bf16.gmra.mxu1 %vm431_vm3, %v12354_v19  ;;  %v8168_v19 = vrot.slane %v12360_v59, 9  ;;  %v12364_v59 = vrot.slane %v11145_v20, 6  ;;  %v6414_v43 = vadd.f32 %v8143_v1, %v12365_v2  ;;  %v6415_v16 = vadd.f32 %v8144_v12, %v12366_v49  ;;  %v11352_v2 = vpop.f32.mrf.mxu2 }
 0x513   : > { %v6416_v48 = vadd.f32 %v8145_v53, %v12367_v40  ;;  %v6418_v47 = vadd.f32 %v8147_v58, %v12368_v24  ;;  %v12369_v20 = vrot.slane %v11163_v44, 4  ;;  %v6420_v26 = vadd.f32 %v8149_v61, %v12370_v62 }
 0x514   : > { %v6412_v27 = vadd.f32 %v8141_v8, %v12364_v59  ;;  %v6421_v1 = vadd.f32 %v11182_v33, %v8150_v35  ;;  %v12371_v59 = vrot.slane %v11182_v33, 2  ;;  %v11338_v21 = vadd.f32 %v5428_v28, %v11241_v46 }
 0x515   : > { %v6419_v8 = vadd.f32 %v8148_v38, %v12369_v20  ;;  %v12372_v53 = vrot.slane %v11182_v33, 4  ;;  %v12373_v18 = vrot.slane %v11182_v33, 6  ;;  %v6425_v24 = vadd.f32 %v11184_v3, %v8154_v14 }
 0x516   : > { %v6422_v12 = vadd.f32 %v8151_v42, %v12371_v59  ;;  %v12374_v38 = vrot.slane %v11184_v3, 2  ;;  %v12375_v61 = vrot.slane %v11184_v3, 4  ;;  %v12376_v10 = vrot.slane %v11184_v3, 6 }
 0x517   : > { %v6423_v60 = vadd.f32 %v8152_v56, %v12372_v53  ;;  %v6424_v58 = vadd.f32 %v8153_v15, %v12373_v18  ;;  %v6429_v46 = vadd.f32 %v11186_v22, %v8158_v32  ;;  %v12377_v56 = vrot.slane %v11186_v22, 2 }
 0x518   : > { %v6426_v44 = vadd.f32 %v8155_v36, %v12374_v38  ;;  %v6427_v35 = vadd.f32 %v8156_v63, %v12375_v61  ;;  %v6428_v42 = vadd.f32 %v8157_v57, %v12376_v10  ;;  %v12378_v15 = vrot.slane %v11186_v22, 4  ;;  %v11362_v63 = vpop.f32.mrf.mxu1 }
 0x519   : > { %v6430_v49 = vadd.f32 %v8159_v25, %v12377_v56  ;;  %v12379_v14 = vrot.slane %v11186_v22, 6  ;;  %v12380_v36 = vrot.slane %v11188_v7, 2  ;;  %v6433_v3 = vadd.f32 %v11188_v7, %v8162_v13 }
 0x51a   : > { %v6431_v33 = vadd.f32 %v8160_v45, %v12378_v15  ;;  %v12381_v57 = vrot.slane %v11188_v7, 4  ;;  %v12382_v20 = vrot.slane %v11188_v7, 6  ;;  %v6437_v25 = vadd.f32 %v11193_v30, %v8166_v52 }
 0x51b   : > { %v6432_v28 = vadd.f32 %v8161_v55, %v12379_v14  ;;  %v6434_v40 = vadd.f32 %v8163_v31, %v12380_v36  ;;  %v12383_v45 = vrot.slane %v11193_v30, 2  ;;  %v12384_v22 = vrot.slane %v11193_v30, 4 }
 0x51c   : > { %v6435_v32 = vadd.f32 %v8164_v17, %v12381_v57  ;;  %v6436_v62 = vadd.f32 %v8165_v50, %v12382_v20  ;;  %v12385_v31 = vrot.slane %v11193_v30, 6  ;;  %v6506_v18 = vadd.f32 %v6418_v47, %v6410_v41 }
 0x51d   : > { %v6438_v59 = vadd.f32 %v8167_v29, %v12383_v45  ;;  %v6439_v55 = vadd.f32 %v8168_v19, %v12384_v22  ;;  %v6507_v38 = vadd.f32 %v6419_v8, %v6411_v11  ;;  %v6508_v13 = vadd.f32 %v6420_v26, %v6412_v27 }
 0x51e   : > { %v6440_v53 = vadd.f32 %v8169_v6, %v12385_v31  ;;  %v6509_v61 = vadd.f32 %v6421_v1, %v6413_v34  ;;  %v6510_v10 = vadd.f32 %v6422_v12, %v6414_v43  ;;  %v6505_v17 = vadd.f32 %v6417_v51, %v6409_v54 }
 0x51f   : > { %v6511_v56 = vadd.f32 %v6423_v60, %v6415_v16  ;;  %v6512_v7 = vadd.f32 %v6424_v58, %v6416_v48  ;;  %v6514_v50 = vadd.f32 %v6434_v40, %v6426_v44  ;;  %v6513_v15 = vadd.f32 %v6433_v3, %v6425_v24  ;;  %v11380_v16 = vpop.f32.mrf.mxu2 }
 0x520   : > { %v6515_v52 = vadd.f32 %v6435_v32, %v6427_v35  ;;  %v6516_v14 = vadd.f32 %v6436_v62, %v6428_v42  ;;  %v6517_v36 = vadd.f32 %v6437_v25, %v6429_v46  ;;  %v6518_v29 = vadd.f32 %v6438_v59, %v6430_v49  ;;  %v11382_v41 = vpop.f32.mrf.mxu1 }
 0x521   : > { %v6519_v57 = vadd.f32 %v6439_v55, %v6431_v33  ;;  %v6520_v20 = vadd.f32 %v6440_v53, %v6432_v28  ;;  %v6570_v19 = vmul.f32 0.25, %v6506_v18  ;;  %v12386_v30 = vpack.c.bf16 %v11071_v39, %v11069_v37 }
 0x522   : > { %v6571_v27 = vmul.f32 0.25, %v6507_v38  ;;  %v6572_v11 = vmul.f32 0.25, %v6508_v13  ;;  %v6573_v43 = vmul.f32 0.25, %v6509_v61  ;;  %v6574_v51 = vmul.f32 0.25, %v6510_v10 }
 0x523   : > { %7940 = vmatmul.msk.bf16.gmra.mxu1 %vm431_vm3, %v12386_v30  ;;  %v6569_v48 = vmul.f32 0.25, %v6505_v17  ;;  %v6575_v6 = vmul.f32 0.25, %v6511_v56  ;;  %v6576_v34 = vmul.f32 0.25, %v6512_v7  ;;  %v6578_v54 = vmul.f32 0.25, %v6514_v50  ;;  %v11384_v17 = vpop.f32.mrf.mxu3 }
 0x524   : > { %v6577_v47 = vmul.f32 0.25, %v6513_v15  ;;  %v6579_v8 = vmul.f32 0.25, %v6515_v52  ;;  %v6580_v26 = vmul.f32 0.25, %v6516_v14  ;;  %v6581_v1 = vmul.f32 0.25, %v6517_v36 }
 0x525   : > { %v6582_v12 = vmul.f32 0.25, %v6518_v29  ;;  %v6583_v37 = vmul.f32 0.25, %v6519_v57  ;;  %v6584_v39 = vmul.f32 0.25, %v6520_v20  ;;  %v6634_v60 = vpack.c.bf16 %v6570_v19, %v6570_v19 }
 0x526   : > { %v6635_v58 = vpack.c.bf16 %v6571_v27, %v6571_v27  ;;  %v6636_v24 = vpack.c.bf16 %v6572_v11, %v6572_v11  ;;  %v6637_v44 = vpack.c.bf16 %v6573_v43, %v6573_v43  ;;  %v6638_v35 = vpack.c.bf16 %v6574_v51, %v6574_v51 }
 0x527   : > { %v6633_v42 = vpack.c.bf16 %v6569_v48, %v6569_v48  ;;  %v6639_v46 = vpack.c.bf16 %v6575_v6, %v6575_v6  ;;  %v6640_v49 = vpack.c.bf16 %v6576_v34, %v6576_v34  ;;  %v6642_v33 = vpack.c.bf16 %v6578_v54, %v6578_v54  ;;  %v3985_v18 = vpop.f32.mrf.mxu2 }
 0x528   : > { %v6641_v28 = vpack.c.bf16 %v6577_v47, %v6577_v47  ;;  %v6643_v40 = vpack.c.bf16 %v6579_v8, %v6579_v8  ;;  %v6644_v3 = vpack.c.bf16 %v6580_v26, %v6580_v26  ;;  %v6645_v32 = vpack.c.bf16 %v6581_v1, %v6581_v1  ;;  %v4673_v52 = vpop.f32.mrf.mxu1 }
 0x529   : > { %v6646_v62 = vpack.c.bf16 %v6582_v12, %v6582_v12  ;;  %v6647_v25 = vpack.c.bf16 %v6583_v37, %v6583_v37  ;;  %v6648_v45 = vpack.c.bf16 %v6584_v39, %v6584_v39  ;;  %v6767_v59 = vunpack.c.l.b16 %v6634_v60 }
 0x52a   : > { %v6768_v22 = vunpack.c.l.b16 %v6635_v58  ;;  %v6769_v55 = vunpack.c.l.b16 %v6636_v24  ;;  %v6770_v31 = vunpack.c.l.b16 %v6637_v44  ;;  %v6771_v53 = vunpack.c.l.b16 %v6638_v35 }
 0x52b   : > { %v6766_v38 = vunpack.c.l.b16 %v6633_v42  ;;  %v6772_v13 = vunpack.c.l.b16 %v6639_v46  ;;  %v6773_v61 = vunpack.c.l.b16 %v6640_v49  ;;  %v6775_v10 = vunpack.c.l.b16 %v6642_v33 }
 0x52c   : > { %v6774_v56 = vunpack.c.l.b16 %v6641_v28  ;;  %v6776_v7 = vunpack.c.l.b16 %v6643_v40  ;;  %v6777_v50 = vunpack.c.l.b16 %v6644_v3  ;;  %v6778_v15 = vunpack.c.l.b16 %v6645_v32 }
 0x52d   : > { %v6779_v14 = vunpack.c.l.b16 %v6646_v62  ;;  %v6780_v36 = vunpack.c.l.b16 %v6647_v25  ;;  %v6861_v29 = vrot.slane %v6767_v59, 7  ;;  %v6863_v57 = vrot.slane %v6768_v22, 6  ;;  %v12393_v62 = vld [vmem:[#allocation42_spill] sm:$0xff] }
 0x52e   : > { %v6781_v20 = vunpack.c.l.b16 %v6648_v45  ;;  %v6865_v19 = vrot.slane %v6769_v55, 5  ;;  %v6867_v30 = vrot.slane %v6770_v31, 4  ;;  %v6869_v27 = vrot.slane %v6771_v53, 3  ;;  %v12397_v55 = vld [vmem:[#allocation37_spill] sm:$0xff] }
 0x52f   : > { %v6862_v11 = vsel %vm6799_vm0, %v6861_v29, %v6766_v38  ;;  %v6871_v43 = vrot.slane %v6772_v13, 2  ;;  %v6875_v51 = vrot.slane %v6775_v10, 7  ;;  %v6877_v48 = vrot.slane %v6776_v7, 6  ;;  %v3987_v44 = vpop.f32.mrf.mxu2 }
 0x530   : > { %v6864_v6 = vsel %vm6802_vm11, %v6863_v57, %v6862_v11  ;;  %v6873_v34 = vrot.slane %v6773_v61, 1  ;;  %v6879_v54 = vrot.slane %v6777_v50, 5  ;;  %v6881_v47 = vrot.slane %v6778_v15, 4  ;;  %v4676_v31 = vpop.f32.mrf.mxu1 }
 0x531   : > { %v6866_v8 = vsel %vm6805_vm12, %v6865_v19, %v6864_v6  ;;  %v6876_v26 = vsel %vm6799_vm0, %v6875_v51, %v6774_v56  ;;  %v6883_v1 = vrot.slane %v6779_v14, 3  ;;  %v6885_v12 = vrot.slane %v6780_v36, 2 }
 0x532   : > { %v12387_v37 = vpack.c.bf16 %v11075_v9, %v11073_v23  ;;  %v6868_v39 = vsel %vm6808_vm13, %v6867_v30, %v6866_v8  ;;  %v6878_v60 = vsel %vm6802_vm11, %v6877_v48, %v6876_v26  ;;  %v6887_v58 = vrot.slane %v6781_v20, 1  ;;  %v12390_v9 = vld [vmem:[#allocation50_spill] sm:$0xff] }
 0x533   : > { %v11398_v24 = vadd.f32 %v11352_v2, %v11037_v0  ;;  %v6870_v35 = vsel %vm6811_vm14, %v6869_v27, %v6868_v39  ;;  %v6880_v42 = vsel %vm6805_vm12, %v6879_v54, %v6878_v60  ;;  %v4744_v46 = vadd.f32 %v11362_v63, %v11157_v4  ;;  %v12392_v2 = vld [vmem:[#allocation31_spill] sm:$0xff]  ;;  %v12394_v63 = vld [vmem:[#allocation33_spill] sm:$0xff] }
 0x534   : > { %7941 = vmatmul.msk.bf16.gmra.mxu1 %vm431_vm3, %v12387_v37  ;;  %v11406_v23 = vadd.f32 %v11380_v16, %v11050_v5  ;;  %v12391_v49 = vrot.slane %v12390_v9, 2  ;;  %v6872_v28 = vsel %vm6814_vm15, %v6871_v43, %v6870_v35  ;;  %v6882_v0 = vsel %vm6808_vm13, %v6881_v47, %v6880_v42  ;;  %v11420_v5 = vpop.f32.mrf.mxu3  ;;  %v12403_v39 = vld [vmem:[#allocation27_spill] sm:$0xff] }
 0x535   : > { %12388 = vst [vmem:[#allocation9_spill] sm:$0xff] %v11398_v24  ;;  %v4745_v40 = vadd.f32 %v11382_v41, %v12392_v2  ;;  %v6874_v3 = vsel %vm6817_vm2, %v6873_v34, %v6872_v28  ;;  %v6884_v32 = vsel %vm6811_vm14, %v6883_v1, %v6882_v0  ;;  %v4780_v4 = vadd.f32 %v12393_v62, %v4744_v46  ;;  %v12405_v0 = vld [vmem:[#allocation29_spill] sm:$0xff] }
 0x536   : > { %12389 = vst [vmem:[#allocation53_spill] sm:$0xff] %v11406_v23  ;;  %v7955_v33 = vrot.slane %v12391_v49, 9  ;;  %v11418_v25 = vadd.f32 %v3985_v18, %v12394_v63  ;;  %v12396_v16 = vrot.slane %v12390_v9, 4  ;;  %v6886_v59 = vsel %vm6814_vm15, %v6885_v12, %v6884_v32  ;;  %v12401_v12 = vld [vmem:[#allocation19_spill] sm:$0xff] }
 0x537   : > { %v4781_v22 = vadd.f32 %v12393_v62, %v4745_v40  ;;  %v4746_v41 = vadd.f32 %v4673_v52, %v12397_v55  ;;  %v6888_v53 = vsel %vm6817_vm2, %v6887_v58, %v6886_v59  ;;  %v4850_v38 = vrot.slane %v4780_v4, 2  ;;  %v6945_v8 = vpop.f32.mrf.mxu2  ;;  %v12406_v55 = vld [vmem:[#allocation13_spill] sm:$0xff] }
 0x538   : > { %12395 = vst [vmem:[#allocation30_spill] sm:$0xff] %v11418_v25  ;;  %v7956_v45 = vrot.slane %v12396_v16, 9  ;;  %v4851_v13 = vrot.slane %v4780_v4, 4  ;;  %v4852_v61 = vrot.slane %v4780_v4, 6  ;;  %v6919_v10 = vpack.c.b16 %v6888_v53, %v6874_v3  ;;  %v4678_v63 = vpop.f32.mrf.mxu1 }
 0x539   : > { %v7958_v18 = vrot.slane %v4780_v4, 9  ;;  %v4853_v56 = vrot.slane %v4781_v22, 2  ;;  %v4854_v7 = vrot.slane %v4781_v22, 4  ;;  %v7959_v50 = vrot.slane %v4850_v38, 9 }
 0x53a   : > { %v7960_v15 = vrot.slane %v4851_v13, 9  ;;  %v7961_v14 = vrot.slane %v4852_v61, 9  ;;  %v4855_v36 = vrot.slane %v4781_v22, 6  ;;  %v12398_v29 = vrot.slane %v12390_v9, 9  ;;  %8204 = vmatmul.msk.bf16.gmra.mxu2 %vm278_vm1, %v6919_v10 }
 0x53b   : > { %v12399_v52 = vmov %v12391_v49  ;;  %v7962_v19 = vrot.slane %v4781_v22, 9  ;;  %v7963_v30 = vrot.slane %v4853_v56, 9  ;;  %v12400_v27 = vmov %v12396_v16 }
 0x53c   : > { %v5425_v57 = vadd.f32 %v12398_v29, %v12390_v9  ;;  %v5426_v20 = vadd.f32 %v7955_v33, %v12399_v52  ;;  %v5427_v11 = vadd.f32 %v7956_v45, %v12400_v27  ;;  %v5429_v43 = vadd.f32 %v7958_v18, %v4780_v4  ;;  %v12404_v33 = vld [vmem:[#allocation8_spill] sm:$0xff]  ;;  %v11444_v40 = vpop.f32.mrf.mxu3  ;;  %v11457_v18 = vpop.f32.mrf.mxu0  ;;  %v12411_v29 = vld [vmem:[#allocation7_spill] sm:$0xff]  ;;  %v12412_v52 = vld [vmem:[#allocation49_spill] sm:$0xff] }
 0x53d   : > { %v5430_v51 = vadd.f32 %v7959_v50, %v4850_v38  ;;  %v7964_v48 = vrot.slane %v4854_v7, 9  ;;  %v5431_v6 = vadd.f32 %v7960_v15, %v4851_v13  ;;  %v5432_v34 = vadd.f32 %v7961_v14, %v4852_v61  ;;  %v12409_v61 = vld [vmem:[#allocation43_spill] sm:$0xff]  ;;  %v12410_v14 = vld [vmem:[#allocation46_spill] sm:$0xff] }
 0x53e   : > { %v7965_v54 = vrot.slane %v4855_v36, 9  ;;  %v4782_v47 = vadd.f32 %v12393_v62, %v4746_v41  ;;  %v5433_v26 = vadd.f32 %v7962_v19, %v4781_v22  ;;  %v5434_v1 = vadd.f32 %v7963_v30, %v4853_v56  ;;  %v12407_v41 = vld [vmem:[#allocation25_spill] sm:$0xff]  ;;  %v12413_v19 = vld [vmem:[#allocation15_spill] sm:$0xff] }
 0x53f   : > { %v11438_v37 = vadd.f32 %v3987_v44, %v12401_v12  ;;  %v4747_v60 = vadd.f32 %v4676_v31, %v12403_v39  ;;  %v5435_v9 = vadd.f32 %v7964_v48, %v4854_v7  ;;  %v5545_v28 = vadd.f32 %v5425_v57, %v12404_v33  ;;  %v11466_v27 = vld [vmem:[%s11994_s6] ss:$0 sm:$0xff] }
 0x540   : > { %v4856_v58 = vrot.slane %v4782_v47, 2  ;;  %v4857_v35 = vrot.slane %v4782_v47, 4  ;;  %v4858_v42 = vrot.slane %v4782_v47, 6  ;;  %v7966_v46 = vrot.slane %v4782_v47, 9  ;;  %12414 = vst [vmem:[#allocation35_spill] sm:$0xff] %v11466_v27  ;;  %v12415_v33 = vld [vmem:[#allocation23_spill] sm:$0xff] }
 0x541   : > { %12402 = vst [vmem:[#allocation28_spill] sm:$0xff] %v11438_v37  ;;  %v4783_v49 = vadd.f32 %v12393_v62, %v4747_v60  ;;  %v5546_v2 = vadd.f32 %v5426_v20, %v12405_v0  ;;  %v5436_v3 = vadd.f32 %v7965_v54, %v4855_v36  ;;  %v12408_v31 = vpack.c.bf16 %v12406_v55, %v12407_v41 }
 0x542   : > { %v7967_v32 = vrot.slane %v4856_v58, 9  ;;  %v7968_v4 = vrot.slane %v4857_v35, 9  ;;  %v7969_v44 = vrot.slane %v4858_v42, 9  ;;  %v11450_v53 = vadd.f32 %v7966_v46, %v4782_v47 }
 0x543   : > { %v4859_v16 = vrot.slane %v4783_v49, 2  ;;  %v4860_v45 = vrot.slane %v4783_v49, 4  ;;  %v4861_v59 = vrot.slane %v4783_v49, 6  ;;  %v7970_v22 = vrot.slane %v4783_v49, 9 }
 0x544   : > { %7942 = vmatmul.msk.bf16.gmra.mxu1 %vm431_vm3, %v12408_v31  ;;  %v11452_v38 = vadd.f32 %v7967_v32, %v4856_v58  ;;  %v11454_v13 = vadd.f32 %v7968_v4, %v4857_v35  ;;  %v5547_v10 = vadd.f32 %v5427_v11, %v12409_v61  ;;  %v5549_v36 = vadd.f32 %v5429_v43, %v12410_v14  ;;  %v11483_v31 = vpop.f32.mrf.mxu0 }
 0x545   : > { %v7971_v56 = vrot.slane %v4859_v16, 9  ;;  %v7972_v7 = vrot.slane %v4860_v45, 9  ;;  %v7973_v50 = vrot.slane %v4861_v59, 9  ;;  %v5441_v15 = vadd.f32 %v7970_v22, %v4783_v49 }
 0x546   : > { %v5550_v57 = vadd.f32 %v5430_v51, %v12411_v29  ;;  %v5551_v20 = vadd.f32 %v5431_v6, %v12412_v52  ;;  %v5552_v30 = vadd.f32 %v5432_v34, %v12413_v19  ;;  %v11468_v11 = vadd.f32 %v7969_v44, %v4858_v42  ;;  %v6947_v51 = vpop.f32.mrf.mxu2 }
 0x547   : > { %v5442_v48 = vadd.f32 %v7971_v56, %v4859_v16  ;;  %v5443_v54 = vadd.f32 %v7972_v7, %v4860_v45  ;;  %v5444_v47 = vadd.f32 %v7973_v50, %v4861_v59  ;;  %v5609_v12 = vmul.f32 0.25, %v5545_v28  ;;  %v11480_v59 = vpop.f32.mrf.mxu1 }
 0x548   : > { %v5610_v39 = vmul.f32 0.25, %v5546_v2  ;;  %v5611_v60 = vmul.f32 0.25, %v5547_v10  ;;  %v5612_v43 = vmul.f32 0.25, %v11338_v21  ;;  %v5613_v6 = vmul.f32 0.25, %v5549_v36  ;;  %v11478_v2 = vpop.f32.mrf.mxu3 }
 0x549   : > { %v5556_v58 = vadd.f32 %v5444_v47, %v5436_v3  ;;  %v5614_v35 = vmul.f32 0.25, %v5550_v57  ;;  %v5615_v34 = vmul.f32 0.25, %v5551_v20  ;;  %v5616_v46 = vmul.f32 0.25, %v5552_v30 }
 0x54a   : > { %v6946_v49 = vadd.f32 %v11466_v27, %v6945_v8  ;;  %v4748_v0 = vadd.f32 %v4678_v63, %v12415_v33  ;;  %v5553_v42 = vadd.f32 %v5441_v15, %v5433_v26  ;;  %v5554_v32 = vadd.f32 %v5442_v48, %v5434_v1 }
 0x54b   : > { %v5555_v4 = vadd.f32 %v5443_v54, %v5435_v9  ;;  %v11473_v44 = vmul.f32 0.25, %v5556_v58  ;;  %v11476_v28 = vadd.f32 %v11466_v27, %v6947_v51  ;;  %v12417_v51 = vld [vmem:[#allocation14_spill] sm:$0xff] }
 0x54c   : > { %v6973_v21 = vrot.slane %v6946_v49, 2  ;;  %v6974_v3 = vrot.slane %v6946_v49, 4  ;;  %v6975_v16 = vrot.slane %v6946_v49, 6  ;;  %v6997_v45 = vrot.slane %v6946_v49, 1 }
 0x54d   : > { %v7093_v8 = vadd.f32 %v6946_v49, %v5609_v12  ;;  %v4784_v63 = vadd.f32 %v12393_v62, %v4748_v0  ;;  %v5617_v26 = vmul.f32 0.25, %v5553_v42  ;;  %v5618_v1 = vmul.f32 0.25, %v5554_v32 }
 0x54e   : > { %v6998_v9 = vrot.slane %v6973_v21, 1  ;;  %v6999_v22 = vrot.slane %v6974_v3, 1  ;;  %v7000_v55 = vrot.slane %v6975_v16, 1  ;;  %v7094_v41 = vadd.f32 %v6997_v45, %v5610_v39 }
 0x54f   : > { %v7095_v61 = vadd.f32 %v6973_v21, %v5611_v60  ;;  %v7097_v10 = vadd.f32 %v6974_v3, %v5613_v6  ;;  %v7099_v56 = vadd.f32 %v6975_v16, %v5615_v34  ;;  %v7221_v7 = vperm.slane %v7093_v8, 0  ;;  %v4683_v8 = vpop.f32.mrf.mxu1 }
 0x550   : > { %v7096_v50 = vadd.f32 %v6998_v9, %v5612_v43  ;;  %v7098_v15 = vadd.f32 %v6999_v22, %v5614_v35  ;;  %v7100_v14 = vadd.f32 %v7000_v55, %v5616_v46  ;;  %v7222_v36 = vperm.slane %v7094_v41, 0  ;;  %v12416_v43 = vld [vmem:[#allocation16_spill] sm:$0xff]  ;;  %v4208_v32 = vpop.f32.mrf.mxu3 }
 0x551   : > { %v7223_v29 = vperm.slane %v7095_v61, 0  ;;  %v7225_v57 = vperm.slane %v7097_v10, 0  ;;  %v7227_v52 = vperm.slane %v7099_v56, 0  ;;  %v4862_v20 = vrot.slane %v4784_v63, 2  ;;  %v4436_v56 = vpop.f32.mrf.mxu0 }
 0x552   : > { %v7224_v19 = vperm.slane %v7096_v50, 0  ;;  %v7226_v30 = vperm.slane %v7098_v15, 0  ;;  %v7228_v48 = vperm.slane %v7100_v14, 0  ;;  %v7285_v54 = vsel %vm6799_vm0, %v7222_v36, %v7221_v7 }
 0x553   : > { %v7286_v47 = vsel %vm6802_vm11, %v7223_v29, %v7285_v54  ;;  %v4863_v12 = vrot.slane %v4784_v63, 4  ;;  %v4864_v39 = vrot.slane %v4784_v63, 6  ;;  %v7974_v60 = vrot.slane %v4784_v63, 9 }
 0x554   : > { %v12418_v58 = vpack.c.bf16 %v12416_v43, %v12417_v51  ;;  %v7287_v6 = vsel %vm6805_vm12, %v7224_v19, %v7286_v47  ;;  %v7975_v35 = vrot.slane %v4862_v20, 9  ;;  %v5619_v34 = vmul.f32 0.25, %v5555_v4 }
 0x555   : > { %v6976_v46 = vrot.slane %v11476_v28, 2  ;;  %v7288_v49 = vsel %vm6808_vm13, %v7225_v57, %v7287_v6  ;;  %v7976_v33 = vrot.slane %v4863_v12, 9  ;;  %v7977_v0 = vrot.slane %v4864_v39, 9  ;;  %v12424_v6 = vld [vmem:[#allocation10_spill] sm:$0xff] }
 0x556   : > { %7943 = vmatmul.msk.bf16.gmra.mxu1 %vm431_vm3, %v12418_v58  ;;  %v5445_v42 = vadd.f32 %v7974_v60, %v4784_v63  ;;  %v7289_v21 = vsel %vm6811_vm14, %v7226_v30, %v7288_v49  ;;  %v5446_v3 = vadd.f32 %v7975_v35, %v4862_v20  ;;  %v6977_v16 = vrot.slane %v11476_v28, 4 }
 0x557   : > { %v6978_v45 = vrot.slane %v11476_v28, 6  ;;  %v7290_v9 = vsel %vm6814_vm15, %v7227_v52, %v7289_v21  ;;  %v5447_v22 = vadd.f32 %v7976_v33, %v4863_v12  ;;  %v5448_v4 = vadd.f32 %v7977_v0, %v4864_v39  ;;  %v12419_v12 = vld [vmem:[#allocation20_spill] sm:$0xff]  ;;  %v4686_v21 = vpop.f32.mrf.mxu1 }
 0x558   : > { %v5557_v55 = vadd.f32 %v5445_v42, %v11450_v53  ;;  %v7291_v41 = vsel %vm6817_vm2, %v7228_v48, %v7290_v9  ;;  %v5558_v61 = vadd.f32 %v5446_v3, %v11452_v38  ;;  %v7001_v63 = vrot.slane %v11476_v28, 1  ;;  %v4211_v33 = vpop.f32.mrf.mxu3  ;;  %v12428_v42 = vld [vmem:[#allocation32_spill] sm:$0xff]  ;;  %v8403_v3 = vld [vmem:[%s8723_s23 + $0x60] sm:$0xff]  }
 0x559   : > { %v7002_v10 = vrot.slane %v6976_v46, 1  ;;  %7349 = vst.msk [vmem:[%s11505_s15] sm:$0xff] %vm431_vm3, %v7291_v41  ;;  %v5559_v7 = vadd.f32 %v5447_v22, %v11454_v13  ;;  %v5560_v50 = vadd.f32 %v5448_v4, %v11468_v11  ;;  %v7003_v14 = vrot.slane %v6977_v16, 1  ;;  %v12431_v22 = vld [vmem:[#allocation17_spill] sm:$0xff] }
 0x55a   : > { %v5621_v15 = vmul.f32 0.25, %v5557_v55  ;;  %v5622_v53 = vmul.f32 0.25, %v5558_v61  ;;  %v7004_v36 = vrot.slane %v6978_v45, 1  ;;  %v7101_v29 = vadd.f32 %v11476_v28, %v5617_v26  ;;  %v11545_v61 = vpop.f32.mrf.mxu0 }
 0x55b   : > { %v7102_v38 = vadd.f32 %v7001_v63, %v5618_v1  ;;  %v5623_v57 = vmul.f32 0.25, %v5559_v7  ;;  %v5624_v52 = vmul.f32 0.25, %v5560_v50  ;;  %v7103_v20 = vadd.f32 %v6976_v46, %v5619_v34  ;;  %v12421_v1 = vld [vmem:[#allocation22_spill] sm:$0xff]  ;;  %v12426_v46 = vld [vmem:[#allocation41_spill] sm:$0xff]  ;;  %12432 = vst [vmem:[#allocation37_spill] sm:$0xff] %v11545_v61 }
 0x55c   : > { %v7104_v19 = vadd.f32 %v7002_v10, %v11473_v44  ;;  %v7105_v30 = vadd.f32 %v6977_v16, %v5621_v15  ;;  %v7106_v48 = vadd.f32 %v7003_v14, %v5622_v53  ;;  %v7229_v54 = vperm.slane %v7101_v29, 0  ;;  %v12422_v44 = vld [vmem:[#allocation24_spill] sm:$0xff]  ;;  %v12435_v50 = vld [vmem:[#allocation18_spill] sm:$0xff] }
 0x55d   : > { %v7230_v47 = vperm.slane %v7102_v38, 0  ;;  %v11515_v13 = vadd.f32 %v11384_v17, %v12419_v12  ;;  %v7107_v11 = vadd.f32 %v6978_v45, %v5623_v57  ;;  %v7231_v39 = vperm.slane %v7103_v20, 0  ;;  %v12436_v15 = vld [vmem:[#allocation38_spill] sm:$0xff] }
 0x55e   : > { %v7232_v60 = vperm.slane %v7104_v19, 0  ;;  %v7108_v43 = vadd.f32 %v7004_v36, %v5624_v52  ;;  %v7234_v28 = vperm.slane %v7106_v48, 0  ;;  %v4499_v51 = vadd.f32 %v11457_v18, %v12421_v1  ;;  %v8405_v19 = vld [vmem:[%s8723_s23 + $0x70] sm:$0xff]  }
 0x55f   : > { %12420 = vst [vmem:[#allocation36_spill] sm:$0xff] %v11515_v13  ;;  %v7292_v26 = vsel %vm6799_vm0, %v7230_v47, %v7229_v54  ;;  %v11522_v58 = vadd.f32 %v11420_v5, %v12422_v44  ;;  %v11526_v35 = vadd.f32 %v11444_v40, %v12424_v6  ;;  %v7233_v17 = vperm.slane %v7105_v30, 0  ;;  %v12429_v40 = vld [vmem:[#allocation44_spill] sm:$0xff]  ;;  %v8406_v30 = vld [vmem:[%s8723_s23 + $0x78] sm:$0xff]  }
 0x560   : > { %v7293_v34 = vsel %vm6802_vm11, %v7231_v39, %v7292_v26  ;;  %v11531_v49 = vadd.f32 %v11478_v2, %v12426_v46  ;;  %v4749_v18 = vadd.f32 %v11480_v59, %v4499_v51  ;;  %v4500_v5 = vadd.f32 %v11483_v31, %v12428_v42  ;;  %v12433_v31 = vld [vmem:[#allocation12_spill] sm:$0xff] }
 0x561   : > { %12423 = vst [vmem:[#allocation50_spill] sm:$0xff] %v11522_v58  ;;  %v7294_v0 = vsel %vm6805_vm12, %v7232_v60, %v7293_v34  ;;  %v11539_v16 = vadd.f32 %v4208_v32, %v12429_v40  ;;  %v7235_v45 = vperm.slane %v7107_v11, 0  ;;  %v4501_v2 = vadd.f32 %v4436_v56, %v12431_v22  ;;  %v8404_v56 = vld [vmem:[%s8723_s23 + $0x68] sm:$0xff]   ;;  %s8473_s23 = sshra.s32 %s7373_s9, 4  ;;  %s8474_s23 = int_to_ptr.hbm [resolvable:$true] %s8473_s23 }
 0x562   : > { %12425 = vst [vmem:[#allocation31_spill] sm:$0xff] %v11526_v35  ;;  %v7295_v9 = vsel %vm6808_vm13, %v7233_v17, %v7294_v0  ;;  %v7236_v4 = vperm.slane %v7108_v43, 0  ;;  %v4785_v59 = vadd.f32 %v12393_v62, %v4749_v18  ;;  %v4750_v41 = vadd.f32 %v4683_v8, %v4500_v5  ;;  %v11606_v22 = vpop.f32.mrf.mxu0  ;;  %s8475_s16 = scalar_lea.hbm %s8474_s23, 64  ;;  %p8480_p0 = scmp.lt.s32.totalorder %s8474_s23, %s11995_s7 }
 0x563   : > { %12427 = vst [vmem:[#allocation42_spill] sm:$0xff] %v11531_v49  ;;  %v7296_v55 = vsel %vm6811_vm14, %v7234_v28, %v7295_v9  ;;  %v11548_v63 = vadd.f32 %v4211_v33, %v12433_v31  ;;  %v4751_v10 = vadd.f32 %v4686_v21, %v4501_v2  ;;  %v11551_v7 = vunpack.c.l.bf16 %v8403_v3  ;;  %p8476_p11 = scmp.ne.s32.totalorder %s8474_s23, %s8475_s16  ;;  %p8481_p1 = scmp.lt.s32.totalorder %s8479_s19, %s8475_s16 }
 0x564   : > { %12430 = vst [vmem:[#allocation33_spill] sm:$0xff] %v11539_v16  ;;  %v7297_v32 = vsel %vm6814_vm15, %v7235_v45, %v7296_v55  ;;  %v12437_v14 = vpack.c.bf16 %v12435_v50, %v12436_v15  ;;  %v4865_v53 = vrot.slane %v4785_v59, 2  ;;  %v4866_v36 = vrot.slane %v4785_v59, 4 }
 0x565   : > { %12434 = vst [vmem:[#allocation19_spill] sm:$0xff] %v11548_v63  ;;  %v7298_v8 = vsel %vm6817_vm2, %v7236_v4, %v7297_v32  ;;  %v4867_v29 = vrot.slane %v4785_v59, 6  ;;  %v7978_v38 = vrot.slane %v4785_v59, 9  ;;  %v11562_v57 = vadd.f32 %v12393_v62, %v4750_v41  ;;  %p8477_p12 = pnand %p8476_p11, %p8604_p5  ;;  %p8482_p2 = por %p8481_p1, %p8480_p0 }
 0x566   : > { %7944 = vmatmul.msk.bf16.gmra.mxu1 %vm431_vm3, %v12437_v14  ;;  %7350 = vst.msk [vmem:[%s11505_s15 + $0x8] sm:$0xff] %vm431_vm3, %v7298_v8  ;;  %v4787_v52 = vadd.f32 %v12393_v62, %v4751_v10  ;;  %v11565_v20 = vunpack.c.h.bf16 %v8403_v3  ;;  %v7979_v48 = vrot.slane %v4865_v53, 9  ;;  %v7980_v54 = vrot.slane %v4866_v36, 9 }
 0x567   : > { %12438 = vst [vmem:[#allocation27_spill] sm:$0xff] %v11562_v57  ;;  %v7981_v47 = vrot.slane %v4867_v29, 9  ;;  %v11569_v12 = vunpack.c.l.bf16 %v8404_v56  ;;  %v12042_v11 = vrot.slane %v11562_v57, 2  ;;  %v12041_v39 = vrot.slane %v11562_v57, 4  ;;  %p8478_p13 = pneg %p8477_p12 }
 0x568   : > { %v12040_v60 = vrot.slane %v11562_v57, 6  ;;  %v11574_v43 = vunpack.c.h.bf16 %v8404_v56  ;;  %v7982_v28 = vrot.slane %v11562_v57, 9  ;;  %v11577_v62 = vunpack.c.l.bf16 %v8405_v19  ;;  %12451 = vst [vmem:[#allocation20_spill] sm:$0xff] %v11606_v22 }
 0x569   : > { %v11579_v26 = vunpack.c.h.bf16 %v8405_v19  ;;  %v11581_v1 = vunpack.c.l.bf16 %v8406_v30  ;;  %v11583_v51 = vadd.f32 %v7978_v38, %v4785_v59  ;;  %v11585_v44 = vadd.f32 %v7979_v48, %v4865_v53  ;;  %p8483_p3 = pnand %p8482_p2, %p8478_p13 }
 0x56a   : > { %12439 = vst [vmem:[#allocation8_spill] sm:$0xff] %v11574_v43  ;;  %v11587_v6 = vadd.f32 %v7980_v54, %v4866_v36  ;;  %v4871_v17 = vrot.slane %v4787_v52, 2  ;;  %v5452_v34 = vadd.f32 %v7981_v47, %v4867_v29  ;;  %v4872_v46 = vrot.slane %v4787_v52, 4  ;;  %v11643_v54 = vpop.f32.mrf.mxu0 }
 0x56b   : > { %12440 = vst [vmem:[#allocation29_spill] sm:$0xff] %v11577_v62  ;;  %v4873_v33 = vrot.slane %v4787_v52, 6  ;;  %v7986_v0 = vrot.slane %v4787_v52, 9  ;;  %v11591_v18 = vrot.slane %v12042_v11, 9  ;;  %v11595_v42 = vrot.slane %v12041_v39, 9 }
 0x56c   : > { %12441 = vst [vmem:[#allocation13_spill] sm:$0xff] %v11579_v26  ;;  %v11599_v5 = vrot.slane %v12040_v60, 9  ;;  %v7987_v21 = vrot.slane %v4871_v17, 9  ;;  %v11602_v3 = vadd.f32 %v7982_v28, %v11562_v57  ;;  %v7988_v40 = vrot.slane %v4872_v46, 9 }
 0x56d   : > { %12442 = vst [vmem:[#allocation25_spill] sm:$0xff] %v11581_v1  ;;  %v7989_v45 = vrot.slane %v4873_v33, 9  ;;  %v11604_v9 = vadd.f32 %v7986_v0, %v4787_v52  ;;  %v11610_v4 = vunpack.c.h.bf16 %v8406_v30  ;;  %v5841_v55 = vrot.slane %v11551_v7, 2 }
 0x56e   : > { %12443 = vst [vmem:[#allocation43_spill] sm:$0xff] %v11583_v51  ;;  %v11608_v2 = vadd.f32 %v7987_v21, %v4871_v17  ;;  %v5842_v59 = vrot.slane %v11551_v7, 4  ;;  %v11614_v41 = vadd.f32 %v7988_v40, %v4872_v46  ;;  %v5843_v32 = vrot.slane %v11551_v7, 6 }
 0x56f   : > { %12444 = vst [vmem:[#allocation46_spill] sm:$0xff] %v11585_v44  ;;  %v5460_v31 = vadd.f32 %v7989_v45, %v4873_v33  ;;  %v5844_v10 = vrot.slane %v11565_v20, 2  ;;  %v5845_v56 = vrot.slane %v11565_v20, 4  ;;  %v5846_v50 = vrot.slane %v11565_v20, 6 }
 0x570   : > { %12445 = vst [vmem:[#allocation7_spill] sm:$0xff] %v11587_v6  ;;  %v5847_v15 = vrot.slane %v11569_v12, 2  ;;  %v5848_v14 = vrot.slane %v11569_v12, 4  ;;  %v5849_v53 = vrot.slane %v11569_v12, 6  ;;  %v5850_v36 = vrot.slane %v11574_v43, 2 }
 0x571   : > { %12446 = vst [vmem:[#allocation49_spill] sm:$0xff] %v11591_v18  ;;  %v11622_v8 = vadd.f32 %v5460_v31, %v5452_v34  ;;  %v5851_v29 = vrot.slane %v11574_v43, 4  ;;  %v5852_v38 = vrot.slane %v11574_v43, 6  ;;  %v5853_v52 = vrot.slane %v11577_v62, 2 }
 0x572   : > { %12447 = vst [vmem:[#allocation15_spill] sm:$0xff] %v11595_v42  ;;  %v5854_v19 = vrot.slane %v11577_v62, 4  ;;  %v8170_v21 = vrot.slane %v11551_v7, 9  ;;  %v8171_v40 = vrot.slane %v5841_v55, 9  ;;  %v8172_v45 = vrot.slane %v5842_v59, 9 }
 0x573   : > { %12448 = vst [vmem:[#allocation23_spill] sm:$0xff] %v11599_v5  ;;  %v8173_v31 = vrot.slane %v5843_v32, 9  ;;  %v8174_v60 = vrot.slane %v11565_v20, 9  ;;  %v8175_v39 = vrot.slane %v5844_v10, 9  ;;  %v8176_v11 = vrot.slane %v5845_v56, 9 }
 0x574   : > { %12449 = vst [vmem:[#allocation16_spill] sm:$0xff] %v11602_v3  ;;  %v8177_v28 = vrot.slane %v5846_v50, 9  ;;  %v8178_v17 = vrot.slane %v11569_v12, 9  ;;  %v8179_v47 = vrot.slane %v5847_v15, 9  ;;  %v8180_v34 = vrot.slane %v5848_v14, 9 }
 0x575   : > { %12450 = vst [vmem:[#allocation14_spill] sm:$0xff] %v11604_v9  ;;  %v8181_v46 = vrot.slane %v5849_v53, 9  ;;  %v8182_v33 = vrot.slane %v11574_v43, 9  ;;  %v8183_v0 = vrot.slane %v5850_v36, 9  ;;  %v8184_v48 = vrot.slane %v5851_v29, 9 }
 0x576   : > { %12452 = vst [vmem:[#allocation22_spill] sm:$0xff] %v11608_v2  ;;  %v8185_v30 = vrot.slane %v5852_v38, 9  ;;  %v8186_v37 = vrot.slane %v11577_v62, 9  ;;  %v8187_v25 = vrot.slane %v5853_v52, 9  ;;  %v8188_v23 = vrot.slane %v5854_v19, 9 }
 0x577   : > { %12453 = vst [vmem:[#allocation24_spill] sm:$0xff] %v11610_v4  ;;  %v12457_v24 = vrot.slane %v11577_v62, 6  ;;  %v8190_v16 = vrot.slane %v11579_v26, 9  ;;  %v12458_v49 = vrot.slane %v11579_v26, 2  ;;  %v12459_v58 = vrot.slane %v11579_v26, 4 }
 0x578   : > { %12454 = vst [vmem:[#allocation10_spill] sm:$0xff] %v11614_v41  ;;  %v8194_v22 = vrot.slane %v11581_v1, 9  ;;  %v12462_v5 = vrot.slane %v11581_v1, 4  ;;  %v8198_v57 = vrot.slane %v11610_v4, 9  ;;  %v6441_v44 = vadd.f32 %v11551_v7, %v8170_v21 }
 0x579   : > { %12455 = vst [vmem:[#allocation41_spill] sm:$0xff] %v11622_v8  ;;  %v8189_v63 = vrot.slane %v12457_v24, 9  ;;  %v8191_v35 = vrot.slane %v12458_v49, 9  ;;  %v8192_v13 = vrot.slane %v12459_v58, 9  ;;  %v12461_v8 = vrot.slane %v11581_v1, 2 }
 0x57a   : > { %12456 = vst [vmem:[#allocation32_spill] sm:$0xff] %v11643_v54  ;;  %v12460_v54 = vrot.slane %v11579_v26, 6  ;;  %v8196_v42 = vrot.slane %v12462_v5, 9  ;;  %v12463_v24 = vrot.slane %v11581_v1, 6  ;;  %v12464_v49 = vrot.slane %v11610_v4, 2 }
 0x57b   : > { %v8195_v27 = vrot.slane %v12461_v8, 9  ;;  %v12465_v58 = vrot.slane %v11610_v4, 4  ;;  %v6442_v8 = vadd.f32 %v8171_v40, %v5841_v55  ;;  %v6443_v9 = vadd.f32 %v8172_v45, %v5842_v59  ;;  %v12468_v40 = vld [vmem:[#allocation29_spill] sm:$0xff] }
 0x57c   : > { %v8193_v3 = vrot.slane %v12460_v54, 9  ;;  %v8197_v18 = vrot.slane %v12463_v24, 9  ;;  %v8199_v41 = vrot.slane %v12464_v49, 9  ;;  %v12466_v54 = vrot.slane %v11610_v4, 6 }
 0x57d   : > { %v8200_v6 = vrot.slane %v12465_v58, 9  ;;  %v6444_v51 = vadd.f32 %v8173_v31, %v5843_v32  ;;  %v6445_v5 = vadd.f32 %v11565_v20, %v8174_v60  ;;  %v6446_v61 = vadd.f32 %v8175_v39, %v5844_v10  ;;  %v12467_v58 = vld [vmem:[#allocation8_spill] sm:$0xff]  ;;  %v11675_v32 = vpop.f32.mrf.mxu0  ;;  %v12470_v39 = vld [vmem:[#allocation13_spill] sm:$0xff] }
 0x57e   : > { %v8201_v2 = vrot.slane %v12466_v54, 9  ;;  %v6447_v24 = vadd.f32 %v8176_v11, %v5845_v56  ;;  %v6448_v1 = vadd.f32 %v8177_v28, %v5846_v50  ;;  %v6449_v26 = vadd.f32 %v11569_v12, %v8178_v17 }
 0x57f   : > { %v6450_v62 = vadd.f32 %v8179_v47, %v5847_v15  ;;  %v6451_v49 = vadd.f32 %v8180_v34, %v5848_v14  ;;  %v6452_v43 = vadd.f32 %v8181_v46, %v5849_v53  ;;  %v6453_v4 = vadd.f32 %v12467_v58, %v8182_v33  ;;  %v12474_v53 = vld [vmem:[#allocation25_spill] sm:$0xff] }
 0x580   : > { %v6454_v54 = vadd.f32 %v8183_v0, %v5850_v36  ;;  %v6455_v7 = vadd.f32 %v8184_v48, %v5851_v29  ;;  %v6456_v21 = vadd.f32 %v8185_v30, %v5852_v38  ;;  %v6457_v55 = vadd.f32 %v12468_v40, %v8186_v37  ;;  %v12478_v38 = vld [vmem:[#allocation24_spill] sm:$0xff]  ;;  %v11700_v0 = vpop.f32.mrf.mxu1 }
 0x581   : > { %v6458_v45 = vadd.f32 %v8187_v25, %v5853_v52  ;;  %v6459_v59 = vadd.f32 %v8188_v23, %v5854_v19  ;;  %v12469_v20 = vrot.slane %v12468_v40, 6  ;;  %v6461_v60 = vadd.f32 %v12470_v39, %v8190_v16 }
 0x582   : > { %v12471_v12 = vrot.slane %v12470_v39, 2  ;;  %v12472_v56 = vrot.slane %v12470_v39, 4  ;;  %v12473_v15 = vrot.slane %v12470_v39, 6  ;;  %v12475_v37 = vrot.slane %v12474_v53, 2 }
 0x583   : > { %v6460_v11 = vadd.f32 %v8189_v63, %v12469_v20  ;;  %v12476_v23 = vrot.slane %v12474_v53, 4  ;;  %v12477_v29 = vrot.slane %v12474_v53, 6  ;;  %v6465_v16 = vadd.f32 %v12474_v53, %v8194_v22 }
 0x584   : > { %v6462_v10 = vadd.f32 %v8191_v35, %v12471_v12  ;;  %v6463_v50 = vadd.f32 %v8192_v13, %v12472_v56  ;;  %v6464_v14 = vadd.f32 %v8193_v3, %v12473_v15  ;;  %v6466_v25 = vadd.f32 %v8195_v27, %v12475_v37 }
 0x585   : > { %v6467_v36 = vadd.f32 %v8196_v42, %v12476_v23  ;;  %v6468_v63 = vadd.f32 %v8197_v18, %v12477_v29  ;;  %v6469_v52 = vadd.f32 %v12478_v38, %v8198_v57  ;;  %v12479_v35 = vrot.slane %v12478_v38, 2 }
 0x586   : > { %v12480_v13 = vrot.slane %v12478_v38, 4  ;;  %v12481_v3 = vrot.slane %v12478_v38, 6  ;;  %v6522_v27 = vadd.f32 %v6450_v62, %v6442_v8  ;;  %v6523_v47 = vadd.f32 %v6451_v49, %v6443_v9  ;;  %v11702_v8 = vpop.f32.mrf.mxu0 }
 0x587   : > { %v6470_v19 = vadd.f32 %v8199_v41, %v12479_v35  ;;  %v6524_v28 = vadd.f32 %v6452_v43, %v6444_v51  ;;  %v6521_v42 = vadd.f32 %v6449_v26, %v6441_v44  ;;  %v6525_v17 = vadd.f32 %v6453_v4, %v6445_v5 }
 0x588   : > { %v6471_v30 = vadd.f32 %v8200_v6, %v12480_v13  ;;  %v6472_v48 = vadd.f32 %v8201_v2, %v12481_v3  ;;  %v6526_v34 = vadd.f32 %v6454_v54, %v6446_v61  ;;  %v6527_v18 = vadd.f32 %v6455_v7, %v6447_v24 }
 0x589   : > { %v6528_v46 = vadd.f32 %v6456_v21, %v6448_v1  ;;  %v6530_v22 = vadd.f32 %v6466_v25, %v6458_v45  ;;  %v6531_v33 = vadd.f32 %v6467_v36, %v6459_v59  ;;  %v6532_v57 = vadd.f32 %v6468_v63, %v6460_v11  ;;  %v11704_v63 = vpop.f32.mrf.mxu1 }
 0x58a   : > { %v6529_v41 = vadd.f32 %v6465_v16, %v6457_v55  ;;  %v6533_v31 = vadd.f32 %v6469_v52, %v6461_v60  ;;  %v6534_v58 = vadd.f32 %v6470_v19, %v6462_v10  ;;  %v6535_v6 = vadd.f32 %v6471_v30, %v6463_v50 }
 0x58b   : > { %v6536_v40 = vadd.f32 %v6472_v48, %v6464_v14  ;;  %v6586_v20 = vmul.f32 0.25, %v6522_v27  ;;  %v6587_v2 = vmul.f32 0.25, %v6523_v47  ;;  %v6588_v62 = vmul.f32 0.25, %v6524_v28 }
 0x58c   : > { %v6585_v9 = vmul.f32 0.25, %v6521_v42  ;;  %v6589_v43 = vmul.f32 0.25, %v6525_v17  ;;  %v6590_v26 = vmul.f32 0.25, %v6526_v34  ;;  %v6591_v51 = vmul.f32 0.25, %v6527_v18 }
 0x58d   : > { %v6592_v61 = vmul.f32 0.25, %v6528_v46  ;;  %v6594_v44 = vmul.f32 0.25, %v6530_v22  ;;  %v6595_v1 = vmul.f32 0.25, %v6531_v33  ;;  %v6596_v4 = vmul.f32 0.25, %v6532_v57 }
 0x58e   : > { %v6593_v5 = vmul.f32 0.25, %v6529_v41  ;;  %v6597_v24 = vmul.f32 0.25, %v6533_v31  ;;  %v6598_v49 = vmul.f32 0.25, %v6534_v58  ;;  %v6599_v54 = vmul.f32 0.25, %v6535_v6  ;;  %v11706_v46 = vpop.f32.mrf.mxu0 }
 0x58f   : > { %v6600_v7 = vmul.f32 0.25, %v6536_v40  ;;  %v6650_v21 = vpack.c.bf16 %v6586_v20, %v6586_v20  ;;  %v6651_v55 = vpack.c.bf16 %v6587_v2, %v6587_v2  ;;  %v6652_v45 = vpack.c.bf16 %v6588_v62, %v6588_v62 }
 0x590   : > { %v6649_v59 = vpack.c.bf16 %v6585_v9, %v6585_v9  ;;  %v6653_v11 = vpack.c.bf16 %v6589_v43, %v6589_v43  ;;  %v6654_v39 = vpack.c.bf16 %v6590_v26, %v6590_v26  ;;  %v6655_v60 = vpack.c.bf16 %v6591_v51, %v6591_v51 }
 0x591   : > { %v6656_v12 = vpack.c.bf16 %v6592_v61, %v6592_v61  ;;  %v6658_v10 = vpack.c.bf16 %v6594_v44, %v6594_v44  ;;  %v6659_v56 = vpack.c.bf16 %v6595_v1, %v6595_v1  ;;  %v6660_v50 = vpack.c.bf16 %v6596_v4, %v6596_v4  ;;  %v11713_v44 = vpop.f32.mrf.mxu1 }
 0x592   : > { %v6657_v15 = vpack.c.bf16 %v6593_v5, %v6593_v5  ;;  %v6661_v14 = vpack.c.bf16 %v6597_v24, %v6597_v24  ;;  %v6662_v53 = vpack.c.bf16 %v6598_v49, %v6598_v49  ;;  %v6663_v37 = vpack.c.bf16 %v6599_v54, %v6599_v54  ;;  %v12482_v5 = vld [vmem:[#allocation48_spill] sm:$0xff]  ;;  %v12483_v24 = vld [vmem:[#allocation37_spill] sm:$0xff]  ;;  %v12484_v54 = vld [vmem:[#allocation43_spill] sm:$0xff] }
 0x593   : > { %v6664_v25 = vpack.c.bf16 %v6600_v7, %v6600_v7  ;;  %v6783_v23 = vunpack.c.l.b16 %v6650_v21  ;;  %v6784_v36 = vunpack.c.l.b16 %v6651_v55  ;;  %v6785_v29 = vunpack.c.l.b16 %v6652_v45  ;;  %v12485_v7 = vld [vmem:[#allocation14_spill] sm:$0xff] }
 0x594   : > { %v6782_v16 = vunpack.c.l.b16 %v6649_v59  ;;  %v6786_v38 = vunpack.c.l.b16 %v6653_v11  ;;  %v6787_v52 = vunpack.c.l.b16 %v6654_v39  ;;  %v6788_v35 = vunpack.c.l.b16 %v6655_v60  ;;  %v12486_v59 = vld [vmem:[#allocation46_spill] sm:$0xff]  ;;  %v12488_v60 = vld [vmem:[#allocation7_spill] sm:$0xff] }
 0x595   : > { %v6789_v19 = vunpack.c.l.b16 %v6656_v12  ;;  %v6791_v13 = vunpack.c.l.b16 %v6658_v10  ;;  %v6792_v30 = vunpack.c.l.b16 %v6659_v56  ;;  %v6793_v3 = vunpack.c.l.b16 %v6660_v50  ;;  %v12487_v11 = vld [vmem:[#allocation22_spill] sm:$0xff]  ;;  %v6950_v56 = vpop.f32.mrf.mxu2  ;;  %v12490_v50 = vld [vmem:[#allocation27_spill] sm:$0xff] }
 0x596   : > { %v6790_v48 = vunpack.c.l.b16 %v6657_v15  ;;  %v6794_v27 = vunpack.c.l.b16 %v6661_v14  ;;  %v6795_v47 = vunpack.c.l.b16 %v6662_v53  ;;  %v6796_v28 = vunpack.c.l.b16 %v6663_v37  ;;  %v12489_v12 = vld [vmem:[#allocation10_spill] sm:$0xff]  ;;  %v12492_v14 = vld [vmem:[#allocation49_spill] sm:$0xff] }
 0x597   : > { %v6797_v42 = vunpack.c.l.b16 %v6664_v25  ;;  %v6889_v17 = vrot.slane %v6783_v23, 7  ;;  %v6891_v34 = vrot.slane %v6784_v36, 6  ;;  %v6893_v18 = vrot.slane %v6785_v29, 5  ;;  %v12494_v29 = vld [vmem:[#allocation15_spill] sm:$0xff] }
 0x598   : > { %v6895_v22 = vrot.slane %v6786_v38, 4  ;;  %v6897_v33 = vrot.slane %v6787_v52, 3  ;;  %v6899_v57 = vrot.slane %v6788_v35, 2  ;;  %v6903_v41 = vrot.slane %v6791_v13, 7  ;;  %v12496_v52 = vld [vmem:[#allocation23_spill] sm:$0xff] }
 0x599   : > { %v6890_v31 = vsel %vm6799_vm0, %v6889_v17, %v6782_v16  ;;  %v6905_v58 = vrot.slane %v6792_v30, 6  ;;  %v6907_v6 = vrot.slane %v6793_v3, 5  ;;  %v6909_v40 = vrot.slane %v6794_v27, 4  ;;  %v11745_v3 = vld [vmem:[%s11992_s4] ss:$0 sm:$0xff] }
 0x59a   : > { %v6892_v20 = vsel %vm6802_vm11, %v6891_v34, %v6890_v31  ;;  %v6901_v2 = vrot.slane %v6789_v19, 1  ;;  %v6904_v62 = vsel %vm6799_vm0, %v6903_v41, %v6790_v48  ;;  %v6911_v9 = vrot.slane %v6795_v47, 3  ;;  %v12497_v27 = vld [vmem:[#allocation35_spill] sm:$0xff]  ;;  %v12498_v34 = vld [vmem:[#allocation41_spill] sm:$0xff] }
 0x59b   : > { %v6894_v43 = vsel %vm6805_vm12, %v6893_v18, %v6892_v20  ;;  %v6906_v26 = vsel %vm6802_vm11, %v6905_v58, %v6904_v62  ;;  %v6913_v51 = vrot.slane %v6796_v28, 2  ;;  %v6915_v61 = vrot.slane %v6797_v42, 1  ;;  %v4213_v62 = vpop.f32.mrf.mxu3 }
 0x59c   : > { %v6896_v1 = vsel %vm6808_vm13, %v6895_v22, %v6894_v43  ;;  %v6908_v4 = vsel %vm6805_vm12, %v6907_v6, %v6906_v26  ;;  %v4502_v49 = vadd.f32 %v12483_v24, %v12482_v5  ;;  %v5561_v21 = vadd.f32 %v12485_v7, %v12484_v54  ;;  %v11750_v22 = vpop.f32.mrf.mxu0  ;;  %v12499_v5 = vld [vmem:[#allocation26_spill] sm:$0xff]  ;;  %v12500_v24 = vld [vmem:[#allocation20_spill] sm:$0xff] }
 0x59d   : > { %v6898_v55 = vsel %vm6811_vm14, %v6897_v33, %v6896_v1  ;;  %v6910_v45 = vsel %vm6808_vm13, %v6909_v40, %v6908_v4  ;;  %v5562_v39 = vadd.f32 %v12487_v11, %v12486_v59  ;;  %v5563_v10 = vadd.f32 %v12489_v12, %v12488_v60 }
 0x59e   : > { %v12491_v15 = vrot.slane %v12490_v50, 2  ;;  %v6900_v37 = vsel %vm6814_vm15, %v6899_v57, %v6898_v55  ;;  %v6912_v25 = vsel %vm6811_vm14, %v6911_v9, %v6910_v45  ;;  %v4752_v23 = vadd.f32 %v11700_v0, %v4502_v49  ;;  %v12501_v55 = vld [vmem:[#allocation16_spill] sm:$0xff] }
 0x59f   : > { %v12493_v36 = vrot.slane %v12490_v50, 4  ;;  %v12495_v38 = vrot.slane %v12490_v50, 6  ;;  %v6902_v19 = vsel %vm6817_vm2, %v6901_v2, %v6900_v37  ;;  %v6914_v13 = vsel %vm6814_vm15, %v6913_v51, %v6912_v25  ;;  %v11753_v2 = vpop.f32.mrf.mxu1 }
 0x5a0   : > { %v5454_v53 = vadd.f32 %v12492_v14, %v12491_v15  ;;  %v6916_v30 = vsel %vm6817_vm2, %v6915_v61, %v6914_v13  ;;  %v4788_v0 = vadd.f32 %v11745_v3, %v4752_v23  ;;  %v5625_v48 = vmul.f32 0.25, %v5561_v21 }
 0x5a1   : > { %v5455_v16 = vadd.f32 %v12494_v29, %v12493_v36  ;;  %v5456_v35 = vadd.f32 %v12496_v52, %v12495_v38  ;;  %v6951_v47 = vadd.f32 %v12497_v27, %v6950_v56  ;;  %v6920_v28 = vpack.c.b16 %v6916_v30, %v6902_v19  ;;  %v12502_v52 = vld [vmem:[#allocation47_spill] sm:$0xff] }
 0x5a2   : > { %v5626_v42 = vmul.f32 0.25, %v5562_v39  ;;  %v5627_v17 = vmul.f32 0.25, %v5563_v10  ;;  %v5628_v18 = vmul.f32 0.25, %v12498_v34  ;;  %v4874_v33 = vrot.slane %v4788_v0, 2 }
 0x5a3   : > { %v4875_v57 = vrot.slane %v4788_v0, 4  ;;  %v4876_v41 = vrot.slane %v4788_v0, 6  ;;  %v7990_v31 = vrot.slane %v4788_v0, 9  ;;  %8205 = vmatmul.msk.bf16.gmra.mxu2 %vm278_vm1, %v6920_v28  ;;  %v6979_v58 = vrot.slane %v6951_v47, 2 }
 0x5a4   : > { %v6980_v6 = vrot.slane %v6951_v47, 4  ;;  %v6981_v40 = vrot.slane %v6951_v47, 6  ;;  %v7005_v20 = vrot.slane %v6951_v47, 1  ;;  %v7991_v9 = vrot.slane %v4874_v33, 9 }
 0x5a5   : > { %v7992_v43 = vrot.slane %v4875_v57, 9  ;;  %v7993_v26 = vrot.slane %v4876_v41, 9  ;;  %v5461_v51 = vadd.f32 %v7990_v31, %v4788_v0  ;;  %v7006_v61 = vrot.slane %v6979_v58, 1  ;;  %v12503_v31 = vld [vmem:[#allocation21_spill] sm:$0xff] }
 0x5a6   : > { %v7007_v1 = vrot.slane %v6980_v6, 1  ;;  %v7109_v4 = vadd.f32 %v6951_v47, %v5625_v48  ;;  %v4503_v49 = vadd.f32 %v12500_v24, %v12499_v5  ;;  %v5462_v54 = vadd.f32 %v7991_v9, %v4874_v33  ;;  %v6952_v5 = vpop.f32.mrf.mxu2  ;;  %v12505_v24 = vld [vmem:[#allocation11_spill] sm:$0xff] }
 0x5a7   : > { %v5463_v7 = vadd.f32 %v7992_v43, %v4875_v57  ;;  %v5464_v21 = vadd.f32 %v7993_v26, %v4876_v41  ;;  %v5565_v45 = vadd.f32 %v5461_v51, %v12501_v55  ;;  %v7008_v59 = vrot.slane %v6981_v40, 1 }
 0x5a8   : > { %v7110_v11 = vadd.f32 %v7005_v20, %v5626_v42  ;;  %v7111_v39 = vadd.f32 %v6979_v58, %v5627_v17  ;;  %v7112_v60 = vadd.f32 %v7006_v61, %v5628_v18  ;;  %v5566_v12 = vadd.f32 %v5462_v54, %v5454_v53  ;;  %v4216_v18 = vpop.f32.mrf.mxu3  ;;  %v12504_v58 = vld [vmem:[#allocation32_spill] sm:$0xff] }
 0x5a9   : > { %v5568_v10 = vadd.f32 %v5464_v21, %v5456_v35  ;;  %v5567_v56 = vadd.f32 %v5463_v7, %v5455_v16  ;;  %v5629_v50 = vmul.f32 0.25, %v5565_v45  ;;  %v7237_v15 = vperm.slane %v7109_v4, 0  ;;  %v4698_v35 = vpop.f32.mrf.mxu1  ;;  %v11764_v16 = vpop.f32.mrf.mxu0  ;;  %v4554_v4 = vld [vmem:[#allocation3 + $0x1a2] sm:$0xff] }
 0x5aa   : > { %v7238_v14 = vperm.slane %v7110_v11, 0  ;;  %v7239_v37 = vperm.slane %v7111_v39, 0  ;;  %v4753_v25 = vadd.f32 %v11704_v63, %v4503_v49  ;;  %v5630_v23 = vmul.f32 0.25, %v5566_v12  ;;  %v12506_v39 = vld [vmem:[#allocation52_spill] sm:$0xff] }
 0x5ab   : > { %v5631_v36 = vmul.f32 0.25, %v5567_v56  ;;  %v5632_v29 = vmul.f32 0.25, %v5568_v10  ;;  %v7113_v38 = vadd.f32 %v6980_v6, %v5629_v50  ;;  %v11760_v19 = vadd.f32 %v4213_v62, %v12502_v52  ;;  %v12507_v12 = vld [vmem:[#allocation36_spill] sm:$0xff] }
 0x5ac   : > { %v7240_v13 = vperm.slane %v7112_v60, 0  ;;  %v7299_v30 = vsel %vm6799_vm0, %v7238_v14, %v7237_v15  ;;  %v4789_v53 = vadd.f32 %v11745_v3, %v4753_v25  ;;  %v7114_v0 = vadd.f32 %v7007_v1, %v5630_v23  ;;  %v4553_v1 = vld [vmem:[#allocation3 + $0x19a] sm:$0xff] }
 0x5ad   : > { %v7115_v48 = vadd.f32 %v6981_v40, %v5631_v36  ;;  %v7116_v47 = vadd.f32 %v7008_v59, %v5632_v29  ;;  %v7241_v28 = vperm.slane %v7113_v38, 0  ;;  %v7300_v63 = vsel %vm6802_vm11, %v7239_v37, %v7299_v30 }
 0x5ae   : > { %v4877_v42 = vrot.slane %v4789_v53, 2  ;;  %v4878_v17 = vrot.slane %v4789_v53, 4  ;;  %v4879_v34 = vrot.slane %v4789_v53, 6  ;;  %v7242_v33 = vperm.slane %v7114_v0, 0 }
 0x5af   : > { %v7243_v57 = vperm.slane %v7115_v48, 0  ;;  %v7301_v41 = vsel %vm6805_vm12, %v7240_v13, %v7300_v63  ;;  %v4504_v6 = vadd.f32 %v12504_v58, %v12503_v31  ;;  %v7994_v62 = vrot.slane %v4789_v53, 9 }
 0x5b0   : > { %v7302_v20 = vsel %vm6808_vm13, %v7241_v28, %v7301_v41  ;;  %v7995_v9 = vrot.slane %v4877_v42, 9  ;;  %v7996_v40 = vrot.slane %v4878_v17, 9  ;;  %v7244_v43 = vperm.slane %v7116_v47, 0 }
 0x5b1   : > { %v7303_v26 = vsel %vm6811_vm14, %v7242_v33, %v7302_v20  ;;  %v7997_v51 = vrot.slane %v4879_v34, 9  ;;  %v4754_v61 = vadd.f32 %v11713_v44, %v4504_v6  ;;  %v11774_v49 = vadd.f32 %v4216_v18, %v12505_v24  ;;  %v11788_v50 = vpop.f32.mrf.mxu1  ;;  %v11794_v38 = vpop.f32.mrf.mxu0 }
 0x5b2   : > { %v7304_v54 = vsel %vm6814_vm15, %v7243_v57, %v7303_v26  ;;  %v5465_v7 = vadd.f32 %v7994_v62, %v4789_v53  ;;  %v5466_v21 = vadd.f32 %v7995_v9, %v4877_v42  ;;  %v5467_v45 = vadd.f32 %v7996_v40, %v4878_v17 }
 0x5b3   : > { %v7305_v55 = vsel %vm6817_vm2, %v7244_v43, %v7304_v54  ;;  %v5468_v59 = vadd.f32 %v7997_v51, %v4879_v34  ;;  %v4790_v11 = vadd.f32 %v11745_v3, %v4754_v61  ;;  %v4505_v44 = vadd.f32 %v11675_v32, %v12506_v39 }
 0x5b4   : > { %7351 = vst.msk [vmem:[%s11505_s15 + $0x10] sm:$0xff] %vm431_vm3, %v7305_v55  ;;  %v4570_v60 = vpack.c.bf16 %v4554_v4, %v4553_v1  ;;  %v4506_v10 = vadd.f32 %v11702_v8, %v12507_v12  ;;  %v11786_v56 = vadd.f32 %v12497_v27, %v6952_v5 }
 0x5b5   : > { %v4880_v15 = vrot.slane %v4790_v11, 2  ;;  %v4881_v14 = vrot.slane %v4790_v11, 4  ;;  %v4882_v37 = vrot.slane %v4790_v11, 6  ;;  %v7998_v25 = vrot.slane %v4790_v11, 9 }
 0x5b6   : > { %v4755_v23 = vadd.f32 %v11753_v2, %v4505_v44  ;;  %7945 = vmatmul.msk.bf16.gmra.mxu1 %vm431_vm3, %v4570_v60  ;;  %v4756_v36 = vadd.f32 %v4698_v35, %v4506_v10  ;;  %v6982_v32 = vrot.slane %v11786_v56, 2  ;;  %v6983_v29 = vrot.slane %v11786_v56, 4 }
 0x5b7   : > { %v7999_v8 = vrot.slane %v4880_v15, 9  ;;  %v8000_v27 = vrot.slane %v4881_v14, 9  ;;  %v8001_v52 = vrot.slane %v4882_v37, 9  ;;  %v5469_v13 = vadd.f32 %v7998_v25, %v4790_v11 }
 0x5b8   : > { %v4791_v30 = vadd.f32 %v11745_v3, %v4755_v23  ;;  %v4792_v53 = vadd.f32 %v11745_v3, %v4756_v36  ;;  %v6984_v0 = vrot.slane %v11786_v56, 6  ;;  %v7009_v2 = vrot.slane %v11786_v56, 1 }
 0x5b9   : > { %v5470_v48 = vadd.f32 %v7999_v8, %v4880_v15  ;;  %v5471_v35 = vadd.f32 %v8000_v27, %v4881_v14  ;;  %v5472_v47 = vadd.f32 %v8001_v52, %v4882_v37  ;;  %v7010_v28 = vrot.slane %v6982_v32, 1  ;;  %v4703_v62 = vpop.f32.mrf.mxu1  ;;  %v4461_v12 = vpop.f32.mrf.mxu0 }
 0x5ba   : > { %v4883_v63 = vrot.slane %v4791_v30, 2  ;;  %v4884_v42 = vrot.slane %v4791_v30, 4  ;;  %v4885_v17 = vrot.slane %v4791_v30, 6  ;;  %v8002_v34 = vrot.slane %v4791_v30, 9 }
 0x5bb   : > { %v4886_v18 = vrot.slane %v4792_v53, 2  ;;  %v4887_v33 = vrot.slane %v4792_v53, 4  ;;  %v4888_v57 = vrot.slane %v4792_v53, 6  ;;  %v8006_v41 = vrot.slane %v4792_v53, 9 }
 0x5bc   : > { %v8003_v31 = vrot.slane %v4883_v63, 9  ;;  %v8004_v58 = vrot.slane %v4884_v42, 9  ;;  %v8005_v6 = vrot.slane %v4885_v17, 9  ;;  %v5473_v20 = vadd.f32 %v8002_v34, %v4791_v30 }
 0x5bd   : > { %v8007_v9 = vrot.slane %v4886_v18, 9  ;;  %v8008_v40 = vrot.slane %v4887_v33, 9  ;;  %v8009_v43 = vrot.slane %v4888_v57, 9  ;;  %v5477_v26 = vadd.f32 %v8006_v41, %v4792_v53 }
 0x5be   : > { %v5474_v51 = vadd.f32 %v8003_v31, %v4883_v63  ;;  %v5475_v61 = vadd.f32 %v8004_v58, %v4884_v42  ;;  %v5476_v1 = vadd.f32 %v8005_v6, %v4885_v17  ;;  %v5569_v4 = vadd.f32 %v5473_v20, %v5465_v7 }
 0x5bf   : > { %v5478_v5 = vadd.f32 %v8007_v9, %v4886_v18  ;;  %v5479_v24 = vadd.f32 %v8008_v40, %v4887_v33  ;;  %v5480_v54 = vadd.f32 %v8009_v43, %v4888_v57  ;;  %v5573_v55 = vadd.f32 %v5477_v26, %v5469_v13  ;;  %v6955_v33 = vpop.f32.mrf.mxu2  ;;  %v12511_v9 = vld [vmem:[#allocation33_spill] sm:$0xff]  ;;  %v11814_v43 = vld [vmem:[%s11994_s6] ss:$0 sm:$0xff] }
 0x5c0   : > { %v5572_v11 = vadd.f32 %v5476_v1, %v5468_v59  ;;  %v5570_v39 = vadd.f32 %v5474_v51, %v5466_v21  ;;  %v5571_v44 = vadd.f32 %v5475_v61, %v5467_v45  ;;  %v5633_v60 = vmul.f32 0.25, %v5569_v4 }
 0x5c1   : > { %v5574_v10 = vadd.f32 %v5478_v5, %v5470_v48  ;;  %v5576_v15 = vadd.f32 %v5480_v54, %v5472_v47  ;;  %v5575_v14 = vadd.f32 %v5479_v24, %v5471_v35  ;;  %v5637_v37 = vmul.f32 0.25, %v5573_v55  ;;  %v4706_v45 = vpop.f32.mrf.mxu1  ;;  %v11822_v4 = vpop.f32.mrf.mxu0 }
 0x5c2   : > { %v5634_v25 = vmul.f32 0.25, %v5570_v39  ;;  %v5635_v23 = vmul.f32 0.25, %v5571_v44  ;;  %v5636_v36 = vmul.f32 0.25, %v5572_v11  ;;  %v7011_v8 = vrot.slane %v6983_v29, 1 }
 0x5c3   : > { %v5638_v27 = vmul.f32 0.25, %v5574_v10  ;;  %v5639_v52 = vmul.f32 0.25, %v5575_v14  ;;  %v5640_v7 = vmul.f32 0.25, %v5576_v15  ;;  %v7012_v30 = vrot.slane %v6984_v0, 1 }
 0x5c4   : > { %v7117_v53 = vadd.f32 %v11786_v56, %v5633_v60  ;;  %v7118_v13 = vadd.f32 %v7009_v2, %v5634_v25  ;;  %v7119_v59 = vadd.f32 %v6982_v32, %v5635_v23  ;;  %v7120_v21 = vadd.f32 %v7010_v28, %v5636_v36  ;;  %v12508_v56 = vld [vmem:[#allocation50_spill] sm:$0xff]  ;;  %v12509_v2 = vld [vmem:[#allocation31_spill] sm:$0xff] }
 0x5c5   : > { %v7121_v63 = vadd.f32 %v6983_v29, %v5637_v37  ;;  %v7122_v42 = vadd.f32 %v7011_v8, %v5638_v27  ;;  %v7123_v48 = vadd.f32 %v6984_v0, %v5639_v52  ;;  %v7124_v47 = vadd.f32 %v7012_v30, %v5640_v7  ;;  %v12510_v28 = vld [vmem:[#allocation42_spill] sm:$0xff] }
 0x5c6   : > { %v7245_v35 = vperm.slane %v7117_v53, 0  ;;  %v7246_v17 = vperm.slane %v7118_v13, 0  ;;  %v7247_v34 = vperm.slane %v7119_v59, 0  ;;  %v7248_v18 = vperm.slane %v7120_v21, 0 }
 0x5c7   : > { %v7249_v57 = vperm.slane %v7121_v63, 0  ;;  %v7250_v41 = vperm.slane %v7122_v42, 0  ;;  %v7251_v31 = vperm.slane %v7123_v48, 0  ;;  %v7252_v58 = vperm.slane %v7124_v47, 0 }
 0x5c8   : > { %v7306_v6 = vsel %vm6799_vm0, %v7246_v17, %v7245_v35  ;;  %v4507_v32 = vadd.f32 %v11706_v46, %v12508_v56  ;;  %v4508_v29 = vadd.f32 %v11750_v22, %v12509_v2  ;;  %v4509_v0 = vadd.f32 %v11764_v16, %v12510_v28  ;;  %v12512_v46 = vld [vmem:[#allocation19_spill] sm:$0xff] }
 0x5c9   : > { %v7307_v20 = vsel %vm6802_vm11, %v7247_v34, %v7306_v6  ;;  %v4510_v40 = vadd.f32 %v11794_v38, %v12511_v9  ;;  %v11817_v26 = vadd.f32 %v11814_v43, %v6955_v33  ;;  %v4511_v51 = vadd.f32 %v4461_v12, %v12512_v46  ;;  %v11842_v6 = vpop.f32.mrf.mxu0 }
 0x5ca   : > { %v7308_v22 = vsel %vm6805_vm12, %v7248_v18, %v7307_v20  ;;  %v4757_v61 = vadd.f32 %v11788_v50, %v4507_v32  ;;  %v4758_v16 = vadd.f32 %v4703_v62, %v4508_v29  ;;  %v4759_v1 = vadd.f32 %v4706_v45, %v4509_v0  ;;  %v4708_v62 = vpop.f32.mrf.mxu1 }
 0x5cb   : > { %v7309_v38 = vsel %vm6808_vm13, %v7249_v57, %v7308_v22  ;;  %v6985_v5 = vrot.slane %v11817_v26, 2  ;;  %v6986_v24 = vrot.slane %v11817_v26, 4  ;;  %v6987_v54 = vrot.slane %v11817_v26, 6 }
 0x5cc   : > { %v7310_v55 = vsel %vm6811_vm14, %v7250_v41, %v7309_v38  ;;  %v4793_v11 = vadd.f32 %v11745_v3, %v4757_v61  ;;  %v4794_v39 = vadd.f32 %v11745_v3, %v4758_v16  ;;  %v4795_v50 = vadd.f32 %v11745_v3, %v4759_v1 }
 0x5cd   : > { %v7311_v44 = vsel %vm6814_vm15, %v7251_v31, %v7310_v55  ;;  %v4760_v60 = vadd.f32 %v4708_v62, %v4510_v40  ;;  %v7013_v12 = vrot.slane %v11817_v26, 1  ;;  %v11836_v10 = vrot.slane %v6985_v5, 1 }
 0x5ce   : > { %v7312_v15 = vsel %vm6817_vm2, %v7252_v58, %v7311_v44  ;;  %v4889_v14 = vrot.slane %v4793_v11, 2  ;;  %v4890_v37 = vrot.slane %v4793_v11, 4  ;;  %v4891_v25 = vrot.slane %v4793_v11, 6 }
 0x5cf   : > { %7352 = vst.msk [vmem:[%s11505_s15 + $0x18] sm:$0xff] %vm431_vm3, %v7312_v15  ;;  %v8010_v23 = vrot.slane %v4793_v11, 9  ;;  %v4892_v36 = vrot.slane %v4794_v39, 2  ;;  %v4893_v8 = vrot.slane %v4794_v39, 4  ;;  %v4894_v27 = vrot.slane %v4794_v39, 6 }
 0x5d0   : > { %v8011_v52 = vrot.slane %v4889_v14, 9  ;;  %v8012_v7 = vrot.slane %v4890_v37, 9  ;;  %v8013_v30 = vrot.slane %v4891_v25, 9  ;;  %v8014_v53 = vrot.slane %v4794_v39, 9 }
 0x5d1   : > { %v5481_v13 = vadd.f32 %v8010_v23, %v4793_v11  ;;  %v8015_v59 = vrot.slane %v4892_v36, 9  ;;  %v8016_v21 = vrot.slane %v4893_v8, 9  ;;  %v8017_v45 = vrot.slane %v4894_v27, 9  ;;  %v4218_v11 = vpop.f32.mrf.mxu3 }
 0x5d2   : > { %v5482_v63 = vadd.f32 %v8011_v52, %v4889_v14  ;;  %v5483_v42 = vadd.f32 %v8012_v7, %v4890_v37  ;;  %v5484_v48 = vadd.f32 %v8013_v30, %v4891_v25  ;;  %v5485_v47 = vadd.f32 %v8014_v53, %v4794_v39  ;;  %v4711_v58 = vpop.f32.mrf.mxu1 }
 0x5d3   : > { %v5486_v35 = vadd.f32 %v8015_v59, %v4892_v36  ;;  %v5487_v17 = vadd.f32 %v8016_v21, %v4893_v8  ;;  %v5488_v34 = vadd.f32 %v8017_v45, %v4894_v27  ;;  %v4895_v18 = vrot.slane %v4795_v50, 2 }
 0x5d4   : > { %v4896_v33 = vrot.slane %v4795_v50, 4  ;;  %v4897_v57 = vrot.slane %v4795_v50, 6  ;;  %v8018_v41 = vrot.slane %v4795_v50, 9  ;;  %v4796_v31 = vadd.f32 %v11745_v3, %v4760_v60 }
 0x5d5   : > { %v8019_v56 = vrot.slane %v4895_v18, 9  ;;  %v7015_v32 = vrot.slane %v6986_v24, 1  ;;  %v7016_v2 = vrot.slane %v6987_v54, 1  ;;  %v4761_v29 = vadd.f32 %v4711_v58, %v4511_v51 }
 0x5d6   : > { %v8020_v28 = vrot.slane %v4896_v33, 9  ;;  %v8021_v0 = vrot.slane %v4897_v57, 9  ;;  %v5489_v20 = vadd.f32 %v8018_v41, %v4795_v50  ;;  %v4898_v9 = vrot.slane %v4796_v31, 2 }
 0x5d7   : > { %v5490_v40 = vadd.f32 %v8019_v56, %v4895_v18  ;;  %v4899_v46 = vrot.slane %v4796_v31, 4  ;;  %v4900_v22 = vrot.slane %v4796_v31, 6  ;;  %v8022_v61 = vrot.slane %v4796_v31, 9 }
 0x5d8   : > { %v5491_v16 = vadd.f32 %v8020_v28, %v4896_v33  ;;  %v5492_v1 = vadd.f32 %v8021_v0, %v4897_v57  ;;  %v8023_v38 = vrot.slane %v4898_v9, 9  ;;  %v5577_v55 = vadd.f32 %v5489_v20, %v5481_v13 }
 0x5d9   : > { %v8024_v39 = vrot.slane %v4899_v46, 9  ;;  %v8025_v62 = vrot.slane %v4900_v22, 9  ;;  %v5493_v44 = vadd.f32 %v8022_v61, %v4796_v31  ;;  %v5578_v60 = vadd.f32 %v5490_v40, %v5482_v63 }
 0x5da   : > { %v5580_v15 = vadd.f32 %v5492_v1, %v5484_v48  ;;  %v5494_v14 = vadd.f32 %v8023_v38, %v4898_v9  ;;  %v5579_v51 = vadd.f32 %v5491_v16, %v5483_v42  ;;  %v5641_v37 = vmul.f32 0.25, %v5577_v55  ;;  %v4713_v30 = vpop.f32.mrf.mxu1  ;;  %v4221_v9 = vpop.f32.mrf.mxu3 }
 0x5db   : > { %v5495_v25 = vadd.f32 %v8024_v39, %v4899_v46  ;;  %v5496_v50 = vadd.f32 %v8025_v62, %v4900_v22  ;;  %v5581_v23 = vadd.f32 %v5493_v44, %v5485_v47  ;;  %v5642_v36 = vmul.f32 0.25, %v5578_v60  ;;  %v4468_v47 = vpop.f32.mrf.mxu0  ;;  %v6957_v55 = vpop.f32.mrf.mxu2  ;;  %v12513_v39 = vld [vmem:[#allocation34_spill] sm:$0xff]  ;;  %v12514_v44 = vld [vmem:[#allocation40_spill] sm:$0xff] }
 0x5dc   : > { %v5582_v8 = vadd.f32 %v5494_v14, %v5486_v35  ;;  %v5643_v27 = vmul.f32 0.25, %v5579_v51  ;;  %v5644_v52 = vmul.f32 0.25, %v5580_v15  ;;  %v7125_v7 = vadd.f32 %v11817_v26, %v5641_v37 }
 0x5dd   : > { %v5584_v53 = vadd.f32 %v5496_v50, %v5488_v34  ;;  %v5583_v13 = vadd.f32 %v5495_v25, %v5487_v17  ;;  %v5645_v59 = vmul.f32 0.25, %v5581_v23  ;;  %v7126_v21 = vadd.f32 %v7013_v12, %v5642_v36 }
 0x5de   : > { %v5646_v45 = vmul.f32 0.25, %v5582_v8  ;;  %v7127_v63 = vadd.f32 %v6985_v5, %v5643_v27  ;;  %v7128_v42 = vadd.f32 %v11836_v10, %v5644_v52  ;;  %v7253_v48 = vperm.slane %v7125_v7, 0 }
 0x5df   : > { %v5647_v35 = vmul.f32 0.25, %v5583_v13  ;;  %v5648_v18 = vmul.f32 0.25, %v5584_v53  ;;  %v7129_v33 = vadd.f32 %v6986_v24, %v5645_v59  ;;  %v7254_v57 = vperm.slane %v7126_v21, 0 }
 0x5e0   : > { %v7130_v34 = vadd.f32 %v7015_v32, %v5646_v45  ;;  %v7255_v17 = vperm.slane %v7127_v63, 0  ;;  %v7256_v41 = vperm.slane %v7128_v42, 0  ;;  %v4797_v31 = vadd.f32 %v11745_v3, %v4761_v29 }
 0x5e1   : > { %v7131_v12 = vadd.f32 %v6987_v54, %v5647_v35  ;;  %v7132_v58 = vadd.f32 %v7016_v2, %v5648_v18  ;;  %v7257_v5 = vperm.slane %v7129_v33, 0  ;;  %v7313_v10 = vsel %vm6799_vm0, %v7254_v57, %v7253_v48 }
 0x5e2   : > { %v7258_v56 = vperm.slane %v7130_v34, 0  ;;  %v7314_v28 = vsel %vm6802_vm11, %v7255_v17, %v7313_v10  ;;  %v4901_v0 = vrot.slane %v4797_v31, 2  ;;  %v4902_v20 = vrot.slane %v4797_v31, 4  ;;  %v4716_v22 = vpop.f32.mrf.mxu1  ;;  %v4223_v33 = vpop.f32.mrf.mxu3 }
 0x5e3   : > { %v7259_v24 = vperm.slane %v7131_v12, 0  ;;  %v7260_v40 = vperm.slane %v7132_v58, 0  ;;  %v7315_v32 = vsel %vm6805_vm12, %v7256_v41, %v7314_v28  ;;  %v4903_v46 = vrot.slane %v4797_v31, 6 }
 0x5e4   : > { %v7316_v29 = vsel %vm6808_vm13, %v7257_v5, %v7315_v32  ;;  %v8026_v26 = vrot.slane %v4797_v31, 9  ;;  %v8027_v54 = vrot.slane %v4901_v0, 9  ;;  %v8028_v2 = vrot.slane %v4902_v20, 9 }
 0x5e5   : > { %v7317_v61 = vsel %vm6811_vm14, %v7258_v56, %v7316_v29  ;;  %v8029_v16 = vrot.slane %v4903_v46, 9  ;;  %v4512_v1 = vadd.f32 %v11822_v4, %v11760_v19  ;;  %v4513_v38 = vadd.f32 %v11842_v6, %v11774_v49  ;;  %v4471_v4 = vpop.f32.mrf.mxu0 }
 0x5e6   : > { %v4264_v62 = vadd.f32 %v4218_v11, %v12513_v39  ;;  %v4265_v60 = vadd.f32 %v4221_v9, %v12514_v44  ;;  %v7318_v15 = vsel %vm6814_vm15, %v7259_v24, %v7317_v61  ;;  %v5497_v25 = vadd.f32 %v8026_v26, %v4797_v31 }
 0x5e7   : > { %v7319_v14 = vsel %vm6817_vm2, %v7260_v40, %v7318_v15  ;;  %v4762_v51 = vadd.f32 %v4713_v30, %v4512_v1  ;;  %v4763_v37 = vadd.f32 %v4716_v22, %v4513_v38  ;;  %v5498_v50 = vadd.f32 %v8027_v54, %v4901_v0 }
 0x5e8   : > { %7353 = vst.msk [vmem:[%s11505_s15 + $0x20] sm:$0xff] %vm431_vm3, %v7319_v14  ;;  %v11875_v19 = vadd.f32 %v11814_v43, %v6957_v55  ;;  %v5499_v49 = vadd.f32 %v8028_v2, %v4902_v20  ;;  %v5500_v6 = vadd.f32 %v8029_v16, %v4903_v46  ;;  %v4514_v36 = vadd.f32 %v4468_v47, %v4264_v62 }
 0x5e9   : > { %v4798_v11 = vadd.f32 %v11745_v3, %v4762_v51  ;;  %v4799_v23 = vadd.f32 %v11745_v3, %v4763_v37  ;;  %v11881_v52 = vadd.f32 %v4471_v4, %v4265_v60 }
 0x5ea   : > { %v6988_v8 = vrot.slane %v11875_v19, 2  ;;  %v6989_v27 = vrot.slane %v11875_v19, 4  ;;  %v4718_v42 = vpop.f32.mrf.mxu1  ;;  %v6990_v47 = vrot.slane %v11875_v19, 6  ;;  %v7017_v5 = vrot.slane %v11875_v19, 1 }
 0x5eb   : > { %v4904_v7 = vrot.slane %v4798_v11, 2  ;;  %v4905_v30 = vrot.slane %v4798_v11, 4  ;;  %v4906_v53 = vrot.slane %v4798_v11, 6  ;;  %v8030_v13 = vrot.slane %v4798_v11, 9 }
 0x5ec   : > { %v4907_v59 = vrot.slane %v4799_v23, 2  ;;  %v4908_v21 = vrot.slane %v4799_v23, 4  ;;  %v4909_v45 = vrot.slane %v4799_v23, 6  ;;  %v8034_v63 = vrot.slane %v4799_v23, 9 }
 0x5ed   : > { %v8031_v48 = vrot.slane %v4904_v7, 9  ;;  %v8032_v35 = vrot.slane %v4905_v30, 9  ;;  %v8033_v18 = vrot.slane %v4906_v53, 9  ;;  %v5501_v31 = vadd.f32 %v8030_v13, %v4798_v11  ;;  %v4473_v16 = vpop.f32.mrf.mxu0 }
 0x5ee   : > { %v8035_v57 = vrot.slane %v4907_v59, 9  ;;  %v8036_v34 = vrot.slane %v4908_v21, 9  ;;  %v8037_v17 = vrot.slane %v4909_v45, 9  ;;  %v5505_v41 = vadd.f32 %v8034_v63, %v4799_v23  ;;  %v4226_v23 = vpop.f32.mrf.mxu3 }
 0x5ef   : > { %v5502_v12 = vadd.f32 %v8031_v48, %v4904_v7  ;;  %v4764_v58 = vadd.f32 %v4718_v42, %v4514_v36  ;;  %v5503_v20 = vadd.f32 %v8032_v35, %v4905_v30  ;;  %v5504_v9 = vadd.f32 %v8033_v18, %v4906_v53 }
 0x5f0   : > { %v5506_v10 = vadd.f32 %v8035_v57, %v4907_v59  ;;  %v5507_v56 = vadd.f32 %v8036_v34, %v4908_v21  ;;  %v5508_v28 = vadd.f32 %v8037_v17, %v4909_v45  ;;  %v5585_v0 = vadd.f32 %v5505_v41, %v5497_v25  ;;  %v12515_v57 = vld [vmem:[#allocation39_spill] sm:$0xff] }
 0x5f1   : > { %v4800_v24 = vadd.f32 %v11745_v3, %v4764_v58  ;;  %v7018_v40 = vrot.slane %v6988_v8, 1  ;;  %v7019_v51 = vrot.slane %v6989_v27, 1  ;;  %v7020_v37 = vrot.slane %v6990_v47, 1 }
 0x5f2   : > { %v5588_v32 = vadd.f32 %v5508_v28, %v5500_v6  ;;  %v5586_v46 = vadd.f32 %v5506_v10, %v5498_v50  ;;  %v5587_v29 = vadd.f32 %v5507_v56, %v5499_v49  ;;  %v5649_v26 = vmul.f32 0.25, %v5585_v0  ;;  %v4721_v62 = vpop.f32.mrf.mxu1 }
 0x5f3   : > { %v4910_v54 = vrot.slane %v4800_v24, 2  ;;  %v4911_v2 = vrot.slane %v4800_v24, 4  ;;  %v4912_v22 = vrot.slane %v4800_v24, 6  ;;  %v8038_v61 = vrot.slane %v4800_v24, 9 }
 0x5f4   : > { %v5650_v1 = vmul.f32 0.25, %v5586_v46  ;;  %v5651_v38 = vmul.f32 0.25, %v5587_v29  ;;  %v5652_v55 = vmul.f32 0.25, %v5588_v32  ;;  %v7133_v39 = vadd.f32 %v11875_v19, %v5649_v26 }
 0x5f5   : > { %v8039_v44 = vrot.slane %v4910_v54, 9  ;;  %v8040_v60 = vrot.slane %v4911_v2, 9  ;;  %v8041_v15 = vrot.slane %v4912_v22, 9  ;;  %v5509_v14 = vadd.f32 %v8038_v61, %v4800_v24 }
 0x5f6   : > { %v7134_v25 = vadd.f32 %v7017_v5, %v5650_v1  ;;  %v7135_v50 = vadd.f32 %v6988_v8, %v5651_v38  ;;  %v7136_v36 = vadd.f32 %v7018_v40, %v5652_v55  ;;  %v7261_v7 = vperm.slane %v7133_v39, 0  ;;  %v4228_v19 = vpop.f32.mrf.mxu3 }
 0x5f7   : > { %v5510_v4 = vadd.f32 %v8039_v44, %v4910_v54  ;;  %v5511_v49 = vadd.f32 %v8040_v60, %v4911_v2  ;;  %v5512_v6 = vadd.f32 %v8041_v15, %v4912_v22  ;;  %v5589_v11 = vadd.f32 %v5509_v14, %v5501_v31  ;;  %v12517_v22 = vld [vmem:[#allocation51_spill] sm:$0xff] }
 0x5f8   : > { %v7262_v30 = vperm.slane %v7134_v25, 0  ;;  %v7263_v53 = vperm.slane %v7135_v50, 0  ;;  %v4765_v42 = vadd.f32 %v4721_v62, %v11881_v52  ;;  %v4266_v34 = vadd.f32 %v4223_v33, %v12515_v57  ;;  %v4476_v52 = vpop.f32.mrf.mxu0 }
 0x5f9   : > { %v5590_v13 = vadd.f32 %v5510_v4, %v5502_v12  ;;  %v5592_v59 = vadd.f32 %v5512_v6, %v5504_v9  ;;  %v5591_v21 = vadd.f32 %v5511_v49, %v5503_v20  ;;  %v5653_v45 = vmul.f32 0.25, %v5589_v11  ;;  %v12516_v20 = vld [vmem:[#allocation45_spill] sm:$0xff] }
 0x5fa   : > { %v7320_v63 = vsel %vm6799_vm0, %v7262_v30, %v7261_v7  ;;  %v7264_v17 = vperm.slane %v7136_v36, 0  ;;  %v4723_v31 = vpop.f32.mrf.mxu1  ;;  %v4801_v33 = vadd.f32 %v11745_v3, %v4765_v42  ;;  %v4267_v9 = vadd.f32 %v4226_v23, %v12516_v20 }
 0x5fb   : > { %v5654_v48 = vmul.f32 0.25, %v5590_v13  ;;  %v5655_v35 = vmul.f32 0.25, %v5591_v21  ;;  %v5656_v8 = vmul.f32 0.25, %v5592_v59  ;;  %v7137_v18 = vadd.f32 %v6989_v27, %v5653_v45 }
 0x5fc   : > { %v7321_v41 = vsel %vm6802_vm11, %v7263_v53, %v7320_v63  ;;  %v4516_v32 = vadd.f32 %v4473_v16, %v4266_v34  ;;  %v4913_v29 = vrot.slane %v4801_v33, 2  ;;  %v4517_v54 = vadd.f32 %v4476_v52, %v4267_v9 }
 0x5fd   : > { %v7138_v12 = vadd.f32 %v7019_v51, %v5654_v48  ;;  %v7139_v58 = vadd.f32 %v6990_v47, %v5655_v35  ;;  %v7140_v5 = vadd.f32 %v7020_v37, %v5656_v8  ;;  %v7265_v10 = vperm.slane %v7137_v18, 0 }
 0x5fe   : > { %v7322_v56 = vsel %vm6805_vm12, %v7264_v17, %v7321_v41  ;;  %v4766_v26 = vadd.f32 %v4723_v31, %v4516_v32  ;;  %v4268_v61 = vadd.f32 %v4228_v19, %v12517_v22  ;;  %v4914_v1 = vrot.slane %v4801_v33, 4 }
 0x5ff   : > { %v7266_v28 = vperm.slane %v7138_v12, 0  ;;  %v7267_v0 = vperm.slane %v7139_v58, 0  ;;  %v7323_v27 = vsel %vm6808_vm13, %v7265_v10, %v7322_v56  ;;  %v7268_v24 = vperm.slane %v7140_v5, 0  ;;  %v4231_v5 = vpop.f32.mrf.mxu3 }
 0x600   : > { %v4915_v38 = vrot.slane %v4801_v33, 6  ;;  %v8042_v55 = vrot.slane %v4801_v33, 9  ;;  %v8043_v62 = vrot.slane %v4913_v29, 9  ;;  %v4802_v16 = vadd.f32 %v11745_v3, %v4766_v26  ;;  %v4478_v44 = vpop.f32.mrf.mxu0 }
 0x601   : > { %v7324_v40 = vsel %vm6811_vm14, %v7266_v28, %v7323_v27  ;;  %v8044_v15 = vrot.slane %v4914_v1, 9  ;;  %v4518_v37 = vadd.f32 %v4478_v44, %v4268_v61  ;;  %v12519_v44 = vld [vmem:[#allocation53_spill] sm:$0xff] }
 0x602   : > { %v7325_v47 = vsel %vm6814_vm15, %v7267_v0, %v7324_v40  ;;  %v4726_v2 = vpop.f32.mrf.mxu1  ;;  %v8045_v14 = vrot.slane %v4915_v38, 9  ;;  %v5513_v51 = vadd.f32 %v8042_v55, %v4801_v33  ;;  %v5514_v6 = vadd.f32 %v8043_v62, %v4913_v29  ;;  %v12518_v55 = vld [vmem:[#allocation9_spill] sm:$0xff] }
 0x603   : > { %v7326_v46 = vsel %vm6817_vm2, %v7268_v24, %v7325_v47  ;;  %v4767_v39 = vadd.f32 %v4726_v2, %v4517_v54  ;;  %v4916_v11 = vrot.slane %v4802_v16, 2  ;;  %v4917_v23 = vrot.slane %v4802_v16, 4 }
 0x604   : > { %7354 = vst.msk [vmem:[%s11505_s15 + $0x28] sm:$0xff] %vm431_vm3, %v7326_v46  ;;  %v4918_v36 = vrot.slane %v4802_v16, 6  ;;  %v5515_v21 = vadd.f32 %v8044_v15, %v4914_v1  ;;  %v5516_v45 = vadd.f32 %v8045_v14, %v4915_v38  ;;  %v8046_v63 = vrot.slane %v4802_v16, 9 }
 0x605   : > { %v4803_v60 = vadd.f32 %v11745_v3, %v4767_v39  ;;  %v8047_v57 = vrot.slane %v4916_v11, 9  ;;  %v8048_v34 = vrot.slane %v4917_v23, 9  ;;  %v4269_v39 = vadd.f32 %v4231_v5, %v12518_v55 }
 0x606   : > { %v8049_v41 = vrot.slane %v4918_v36, 9  ;;  %v5517_v0 = vadd.f32 %v8046_v63, %v4802_v16 }
 0x607   : > { %v4919_v25 = vrot.slane %v4803_v60, 2  ;;  %v4920_v50 = vrot.slane %v4803_v60, 4  ;;  %v4921_v4 = vrot.slane %v4803_v60, 6  ;;  %v8050_v49 = vrot.slane %v4803_v60, 9  ;;  %v4233_v61 = vpop.f32.mrf.mxu3 }
 0x608   : > { %v5518_v24 = vadd.f32 %v8047_v57, %v4916_v11  ;;  %v5519_v40 = vadd.f32 %v8048_v34, %v4917_v23  ;;  %v5520_v32 = vadd.f32 %v8049_v41, %v4918_v36  ;;  %v4481_v26 = vpop.f32.mrf.mxu0 }
 0x609   : > { %v8051_v7 = vrot.slane %v4919_v25, 9  ;;  %v8052_v30 = vrot.slane %v4920_v50, 9  ;;  %v8053_v53 = vrot.slane %v4921_v4, 9  ;;  %v5521_v13 = vadd.f32 %v8050_v49, %v4803_v60 }
 0x60a   : > { %v4728_v59 = vpop.f32.mrf.mxu1  ;;  %v4519_v16 = vadd.f32 %v4481_v26, %v4269_v39  ;;  %v4270_v60 = vadd.f32 %v4233_v61, %v12519_v44 }
 0x60b   : > { %v4768_v42 = vadd.f32 %v4728_v59, %v4518_v37  ;;  %v5522_v48 = vadd.f32 %v8051_v7, %v4919_v25  ;;  %v5523_v35 = vadd.f32 %v8052_v30, %v4920_v50  ;;  %v5524_v8 = vadd.f32 %v8053_v53, %v4921_v4  ;;  %v12520_v37 = vld [vmem:[#allocation30_spill] sm:$0xff] }
 0x60c   : > { %v5593_v18 = vadd.f32 %v5521_v13, %v5513_v51 }
 0x60d   : > { %v4804_v17 = vadd.f32 %v11745_v3, %v4768_v42  ;;  %v5596_v31 = vadd.f32 %v5524_v8, %v5516_v45  ;;  %v5594_v12 = vadd.f32 %v5522_v48, %v5514_v6  ;;  %v5595_v58 = vadd.f32 %v5523_v35, %v5515_v21 }
 0x60e   : > { %v5657_v15 = vmul.f32 0.25, %v5593_v18 }
 0x60f   : > { %v4922_v10 = vrot.slane %v4804_v17, 2  ;;  %v4923_v52 = vrot.slane %v4804_v17, 4  ;;  %v4924_v56 = vrot.slane %v4804_v17, 6  ;;  %v8054_v28 = vrot.slane %v4804_v17, 9  ;;  %v4236_v62 = vpop.f32.mrf.mxu3 }
 0x610   : > { %v4483_v38 = vpop.f32.mrf.mxu0  ;;  %v4271_v25 = vadd.f32 %v4236_v62, %v12520_v37  ;;  %v5658_v50 = vmul.f32 0.25, %v5594_v12  ;;  %v5659_v4 = vmul.f32 0.25, %v5595_v58  ;;  %v5660_v11 = vmul.f32 0.25, %v5596_v31 }
 0x611   : > { %v8055_v27 = vrot.slane %v4922_v10, 9  ;;  %v8056_v33 = vrot.slane %v4923_v52, 9  ;;  %v8057_v20 = vrot.slane %v4924_v56, 9  ;;  %v5525_v9 = vadd.f32 %v8054_v28, %v4804_v17 }
 0x612   : > { %v4731_v1 = vpop.f32.mrf.mxu1  ;;  %v4520_v48 = vadd.f32 %v4483_v38, %v4270_v60 }
 0x613   : > { %v5526_v19 = vadd.f32 %v8055_v27, %v4922_v10  ;;  %v5527_v47 = vadd.f32 %v8056_v33, %v4923_v52  ;;  %v5528_v46 = vadd.f32 %v8057_v20, %v4924_v56  ;;  %v5597_v29 = vadd.f32 %v5525_v9, %v5517_v0 }
 0x614   : > { %v4769_v51 = vadd.f32 %v4731_v1, %v4519_v16 }
 0x615   : > { %v5598_v54 = vadd.f32 %v5526_v19, %v5518_v24  ;;  %v5600_v2 = vadd.f32 %v5528_v46, %v5520_v32  ;;  %v5599_v22 = vadd.f32 %v5527_v47, %v5519_v40  ;;  %v5661_v23 = vmul.f32 0.25, %v5597_v29  ;;  %v8458_v40 = vld [vmem:[%s11992_s4] ss:$0 sm:$0xff]  ;;  %v12521_v47 = vld [vmem:[#allocation28_spill] sm:$0xff] }
 0x616   : > { %v11917_v42 = vadd.f32 %v11745_v3, %v4769_v51 }
 0x617   : > { %v5662_v36 = vmul.f32 0.25, %v5598_v54  ;;  %v5663_v7 = vmul.f32 0.25, %v5599_v22  ;;  %v5664_v45 = vmul.f32 0.25, %v5600_v2  ;;  %v4238_v52 = vpop.f32.mrf.mxu3 }
 0x618   : > { %v4486_v6 = vpop.f32.mrf.mxu0  ;;  %v4925_v24 = vrot.slane %v11917_v42, 2  ;;  %v4272_v46 = vadd.f32 %v4238_v52, %v12521_v47  ;;  %v4926_v26 = vrot.slane %v11917_v42, 4  ;;  %v4927_v22 = vrot.slane %v11917_v42, 6 }
 0x619   : > { %v4521_v19 = vadd.f32 %v4486_v6, %v4271_v25  ;;  %v8058_v61 = vrot.slane %v11917_v42, 9 }
 0x61a   : > { %v4733_v30 = vpop.f32.mrf.mxu1  ;;  %v8059_v44 = vrot.slane %v4925_v24, 9  ;;  %v8060_v37 = vrot.slane %v4926_v26, 9 }
 0x61b   : > { %v4770_v31 = vadd.f32 %v4733_v30, %v4520_v48 }
 0x61c   : > { %v5530_v30 = vadd.f32 %v8059_v44, %v4925_v24 }
 0x61d   : > { %v4806_v32 = vadd.f32 %v8458_v40, %v4770_v31 }
 0x61f   : > { %v4928_v60 = vrot.slane %v4806_v32, 2 }
 0x620   : > { %v4488_v54 = vpop.f32.mrf.mxu0 }
 0x626   : > { %v6960_v14 = vpop.f32.mrf.mxu2 }
 0x627   : > { %v6961_v49 = vadd.f32 %v11814_v43, %v6960_v14  ;;  %v4522_v14 = vadd.f32 %v4488_v54, %v4272_v46 }
 0x629   : > { %v6991_v53 = vrot.slane %v6961_v49, 2  ;;  %v6992_v13 = vrot.slane %v6961_v49, 4  ;;  %v6993_v59 = vrot.slane %v6961_v49, 6  ;;  %v7021_v21 = vrot.slane %v6961_v49, 1 }
 0x62a   : > { %v7141_v63 = vadd.f32 %v6961_v49, %v5657_v15  ;;  %v4929_v15 = vrot.slane %v4806_v32, 4  ;;  %v4930_v49 = vrot.slane %v4806_v32, 6 }
 0x62b   : > { %v7022_v35 = vrot.slane %v6991_v53, 1  ;;  %v7023_v8 = vrot.slane %v6992_v13, 1  ;;  %v7024_v18 = vrot.slane %v6993_v59, 1  ;;  %v7142_v57 = vadd.f32 %v7021_v21, %v5658_v50 }
 0x62c   : > { %v7143_v34 = vadd.f32 %v6991_v53, %v5659_v4  ;;  %v7145_v17 = vadd.f32 %v6992_v13, %v5661_v23  ;;  %v7147_v41 = vadd.f32 %v6993_v59, %v5663_v7  ;;  %v7269_v5 = vperm.slane %v7141_v63, 0 }
 0x62d   : > { %v7144_v12 = vadd.f32 %v7022_v35, %v5660_v11  ;;  %v7146_v58 = vadd.f32 %v7023_v8, %v5662_v36  ;;  %v7270_v10 = vperm.slane %v7142_v57, 0  ;;  %v7148_v0 = vadd.f32 %v7024_v18, %v5664_v45 }
 0x62e   : > { %v7271_v56 = vperm.slane %v7143_v34, 0  ;;  %v7273_v28 = vperm.slane %v7145_v17, 0  ;;  %v7275_v20 = vperm.slane %v7147_v41, 0  ;;  %v6962_v62 = vpop.f32.mrf.mxu2  ;;  %v8061_v50 = vrot.slane %v4927_v22, 9 }
 0x62f   : > { %v7272_v27 = vperm.slane %v7144_v12, 0  ;;  %v7274_v3 = vperm.slane %v7146_v58, 0  ;;  %v7327_v33 = vsel %vm6799_vm0, %v7270_v10, %v7269_v5  ;;  %v7276_v38 = vperm.slane %v7148_v0, 0 }
 0x630   : > { %v7328_v9 = vsel %vm6802_vm11, %v7271_v56, %v7327_v33  ;;  %v5529_v4 = vadd.f32 %v8058_v61, %v11917_v42  ;;  %v11938_v6 = vadd.f32 %v11814_v43, %v6962_v62  ;;  %v8062_v53 = vrot.slane %v4806_v32, 9 }
 0x631   : > { %v7329_v29 = vsel %vm6805_vm12, %v7272_v27, %v7328_v9  ;;  %v8063_v13 = vrot.slane %v4928_v60, 9  ;;  %v8064_v59 = vrot.slane %v4929_v15, 9  ;;  %v5531_v35 = vadd.f32 %v8060_v37, %v4926_v26 }
 0x632   : > { %v7330_v2 = vsel %vm6808_vm13, %v7273_v28, %v7329_v29  ;;  %v5532_v8 = vadd.f32 %v8061_v50, %v4927_v22  ;;  %v8065_v18 = vrot.slane %v4930_v49, 9  ;;  %v6994_v42 = vrot.slane %v11938_v6, 2 }
 0x633   : > { %v4736_v1 = vpop.f32.mrf.mxu1  ;;  %v7331_v55 = vsel %vm6811_vm14, %v7274_v3, %v7330_v2  ;;  %v5533_v31 = vadd.f32 %v8062_v53, %v4806_v32  ;;  %v5534_v12 = vadd.f32 %v8063_v13, %v4928_v60  ;;  %v5535_v58 = vadd.f32 %v8064_v59, %v4929_v15 }
 0x634   : > { %v4771_v39 = vadd.f32 %v4736_v1, %v4521_v19  ;;  %v7332_v16 = vsel %vm6814_vm15, %v7275_v20, %v7331_v55  ;;  %v5536_v0 = vadd.f32 %v8065_v18, %v4930_v49  ;;  %v7025_v27 = vrot.slane %v11938_v6, 1 }
 0x635   : > { %v7333_v51 = vsel %vm6817_vm2, %v7276_v38, %v7332_v16  ;;  %v7026_v3 = vrot.slane %v6994_v42, 1  ;;  %v6995_v26 = vrot.slane %v11938_v6, 4 }
 0x636   : > { %v4807_v25 = vadd.f32 %v8458_v40, %v4771_v39  ;;  %7355 = vst.msk [vmem:[%s11505_s15 + $0x30] sm:$0xff] %vm431_vm3, %v7333_v51 }
 0x638   : > { %v4931_v11 = vrot.slane %v4807_v25, 2  ;;  %v4932_v23 = vrot.slane %v4807_v25, 4  ;;  %v4933_v36 = vrot.slane %v4807_v25, 6  ;;  %v8066_v7 = vrot.slane %v4807_v25, 9 }
 0x63a   : > { %v8067_v21 = vrot.slane %v4931_v11, 9  ;;  %v8068_v45 = vrot.slane %v4932_v23, 9  ;;  %v8069_v63 = vrot.slane %v4933_v36, 9  ;;  %v5537_v48 = vadd.f32 %v8066_v7, %v4807_v25 }
 0x63b   : > { %v4738_v57 = vpop.f32.mrf.mxu1 }
 0x63c   : > { %v5538_v43 = vadd.f32 %v8067_v21, %v4931_v11  ;;  %v5539_v34 = vadd.f32 %v8068_v45, %v4932_v23  ;;  %v5540_v17 = vadd.f32 %v8069_v63, %v4933_v36  ;;  %v5601_v41 = vadd.f32 %v5537_v48, %v5529_v4 }
 0x63d   : > { %v4772_v5 = vadd.f32 %v4738_v57, %v4522_v14  ;;  %v7027_v11 = vrot.slane %v6995_v26, 1 }
 0x63e   : > { %v5604_v10 = vadd.f32 %v5540_v17, %v5532_v8  ;;  %v5602_v52 = vadd.f32 %v5538_v43, %v5530_v30  ;;  %v5603_v56 = vadd.f32 %v5539_v34, %v5531_v35  ;;  %v5665_v28 = vmul.f32 0.25, %v5601_v41 }
 0x63f   : > { %v4808_v33 = vadd.f32 %v8458_v40, %v4772_v5  ;;  %v6996_v40 = vrot.slane %v11938_v6, 6 }
 0x640   : > { %v5666_v20 = vmul.f32 0.25, %v5602_v52  ;;  %v5667_v9 = vmul.f32 0.25, %v5603_v56  ;;  %v5668_v24 = vmul.f32 0.25, %v5604_v10  ;;  %v7149_v19 = vadd.f32 %v11938_v6, %v5665_v28 }
 0x641   : > { %v4934_v47 = vrot.slane %v4808_v33, 2  ;;  %v4935_v46 = vrot.slane %v4808_v33, 4  ;;  %v4936_v32 = vrot.slane %v4808_v33, 6  ;;  %v8070_v29 = vrot.slane %v4808_v33, 9 }
 0x642   : > { %v7150_v54 = vadd.f32 %v7025_v27, %v5666_v20  ;;  %v7151_v2 = vadd.f32 %v6994_v42, %v5667_v9  ;;  %v7152_v22 = vadd.f32 %v7026_v3, %v5668_v24  ;;  %v7277_v39 = vperm.slane %v7149_v19, 0 }
 0x643   : > { %v8071_v61 = vrot.slane %v4934_v47, 9  ;;  %v8072_v1 = vrot.slane %v4935_v46, 9  ;;  %v8073_v38 = vrot.slane %v4936_v32, 9  ;;  %v5541_v55 = vadd.f32 %v8070_v29, %v4808_v33 }
 0x644   : > { %v7278_v62 = vperm.slane %v7150_v54, 0  ;;  %v7279_v16 = vperm.slane %v7151_v2, 0  ;;  %v7280_v51 = vperm.slane %v7152_v22, 0  ;;  %v7028_v36 = vrot.slane %v6996_v40, 1 }
 0x645   : > { %v5542_v44 = vadd.f32 %v8071_v61, %v4934_v47  ;;  %v5543_v60 = vadd.f32 %v8072_v1, %v4935_v46  ;;  %v5544_v15 = vadd.f32 %v8073_v38, %v4936_v32  ;;  %v5605_v14 = vadd.f32 %v5541_v55, %v5533_v31 }
 0x646   : > { %v7334_v37 = vsel %vm6799_vm0, %v7278_v62, %v7277_v39 }
 0x647   : > { %v7335_v25 = vsel %vm6802_vm11, %v7279_v16, %v7334_v37  ;;  %v5606_v50 = vadd.f32 %v5542_v44, %v5534_v12  ;;  %v5607_v4 = vadd.f32 %v5543_v60, %v5535_v58  ;;  %v5608_v49 = vadd.f32 %v5544_v15, %v5536_v0 }
 0x648   : > { %v7336_v6 = vsel %vm6805_vm12, %v7280_v51, %v7335_v25  ;;  %v5669_v23 = vmul.f32 0.25, %v5605_v14 }
 0x649   : > { %v5670_v7 = vmul.f32 0.25, %v5606_v50  ;;  %v5671_v30 = vmul.f32 0.25, %v5607_v4  ;;  %v5672_v53 = vmul.f32 0.25, %v5608_v49 }
 0x64a   : > { %v7153_v13 = vadd.f32 %v6995_v26, %v5669_v23 }
 0x64b   : > { %v7154_v59 = vadd.f32 %v7027_v11, %v5670_v7  ;;  %v7155_v21 = vadd.f32 %v6996_v40, %v5671_v30  ;;  %v7156_v45 = vadd.f32 %v7028_v36, %v5672_v53 }
 0x64c   : > { %v7281_v63 = vperm.slane %v7153_v13, 0 }
 0x64d   : > { %v7282_v48 = vperm.slane %v7154_v59, 0  ;;  %v7283_v35 = vperm.slane %v7155_v21, 0  ;;  %v7284_v18 = vperm.slane %v7156_v45, 0 }
 0x64e   : > { %v7337_v8 = vsel %vm6808_vm13, %v7281_v63, %v7336_v6 }
 0x64f   : > { %v7338_v42 = vsel %vm6811_vm14, %v7282_v48, %v7337_v8 }
 0x650   : > { %v7339_v57 = vsel %vm6814_vm15, %v7283_v35, %v7338_v42 }
 0x651   : > { %v7340_v43 = vsel %vm6817_vm2, %v7284_v18, %v7339_v57 }
 0x652   : > { %7356 = vst.msk [vmem:[%s11505_s15 + $0x38] sm:$0xff] %vm431_vm3, %v7340_v43 }
 0x653   : > { %8486 = shalt.err (!%p8483_p3)
}
 0x654   : > { %s8524_s13 = smov 128   ;;  %s8525_s15 = smov 8  }
 0x655   : > { %8410 = dma.vmem_to_hbm [thread:$0]  (%p8604_p5), %s7371_s28, 1024, %s7373_s9, %s7358_s14, %s8524_s13, %s8524_s13, %s8525_s15  }
 0x656 PF: > { %p8416_p4 = scmp.ge.s32.totalorder %s8521_s27, 2  ;;  %s7387_s22 = sand.u32 1, %s8509_s24  }
 0x657   : > { %s7388_s29 = scalar_lea.sflag [#allocation5], %s7387_s22 }
 0x658   : > { %p8413_p7 = pnand %p8416_p4, %p8608_p6 }
 0x65a   : > { %p8414_p8 = pneg %p8413_p7 }
 0x65c   : > { %8504 = dma.done.wait (%p8414_p8), %s7388_s29, 1024  }
 0x65d   : > { %8506 = vsyncadd (%p8414_p8), %s7388_s29, 4294966272  ;;  %p17_p9 = scmp.ge.s32.totalorder %s8591_s30, 4   ;;  %s12522_s24 = smov %s8513_s25 }
 0x65e   : > { %s12523_s25 = smov %s8517_s26  ;;  %s12524_s26 = smov %s8602_s10 }
 0x65f   : > { %s12525_s27 = smov %s8591_s30  ;;  %19 = sbr.rel (!%p17_p9) target bundleno = 3 (0x3), region = 103 }
 0x664   :  { %7394 = vsyncpa [#allocation5], 1 }
 0x665   :  { %7396 = vsyncpa [#allocation5 + $0x1], 1 }

</bundles_post_ra>
